<compile_context>
chip_gen: v7x
topology: tpu7x:2x2x1
jax: 0.10.0
libtpu: 0.0.40
codegen_flags: <defaults>
</compile_context>

<pallas_src>
from functools import partial

import jax
import jax.numpy as jnp
import numpy as np
from jax.experimental import pallas as pl
from jax.experimental.pallas import tpu as pltpu

GRID_MIN = -1.0
GRID_MAX = 1.0
NUM_GRIDS = 8
DENOM = (GRID_MAX - GRID_MIN) / (NUM_GRIDS - 1)
INV_DENOM = 1.0 / DENOM
LN_EPS = 1e-5

GRID_NP = np.linspace(GRID_MIN, GRID_MAX, NUM_GRIDS).astype(np.float32)
GRID_POINTS = tuple(float(v) for v in GRID_NP)  # compile-time constants


def _round_up(x, m):
    return ((x + m - 1) // m) * m


def _choose_tb(n_rows):
    """Largest batch tile in {512,256,128} that still leaves >=2 grid steps.

    Per-grid-step overhead (~0.35us) is comparable to the compute of a 128-row
    tile, so big tiles win at realistic batch sizes; keeping the grid length
    >=2 keeps both v7x TensorCores busy via the "parallel" grid axis.  VMEM is
    not the limiter (weights <1 MiB, out tile <=256 KiB even at tb=512).
    """
    for tb in (512, 256, 128):
        if n_rows >= 2 * tb:
            return tb
    return 128


def _use_slab(din):
    """Use the fused big-K basis slab only when the lane concat is aligned."""
    return (din * NUM_GRIDS) % 128 == 0 and din % 8 == 0


def _fkan_layer(x, refs, use_slab, compute_dtype):
    """One FastKAN layer on a (TB, din) f32 tile; returns (TB, dout) f32."""
    if use_slab:
        gamma_ref, beta_ref, grid_ref, wsp_ref, wb_ref, bb_ref = refs
    else:
        gamma_ref, beta_ref, wsp_ref, wb_ref, bb_ref = refs

    # LayerNorm over the feature axis (biased variance, eps inside rsqrt).
    mean = jnp.mean(x, axis=-1, keepdims=True)
    var = jnp.mean(jnp.square(x - mean), axis=-1, keepdims=True)
    h = (x - mean) * jax.lax.rsqrt(var + LN_EPS)
    h = h * gamma_ref[...] + beta_ref[...]

    # Base branch: SiLU(x) @ W_base (bias added at the end); f32 accumulation.
    silu = (x * jax.nn.sigmoid(x)).astype(compute_dtype)
    acc = jnp.dot(silu, wb_ref[...], preferred_element_type=jnp.float32)

    if use_slab:
        # Fused spline branch: one lane-wide (TB, din*G) basis slab and a
        # single big-K MXU dot against the grid-major stacked spline weight
        # (row g*din+i).  Slab column g*din+i holds h[:, i] - grid[g].
        h_slab = jnp.concatenate([h] * NUM_GRIDS, axis=-1)
        z = (h_slab - grid_ref[...]) * INV_DENOM
        basis = jnp.exp(-(z * z)).astype(compute_dtype)
        acc = acc + jnp.dot(basis, wsp_ref[...],
                            preferred_element_type=jnp.float32)
    else:
        # Small/unaligned layers: per-grid-node dots (wsp_ref is (G, din, dout)
        # with wsp_ref[g, i, :] == W_sp_orig[i*G + g, :]).
        for g in range(NUM_GRIDS):
            z = (h - GRID_POINTS[g]) * INV_DENOM
            basis_g = jnp.exp(-(z * z)).astype(compute_dtype)
            acc = acc + jnp.dot(basis_g, wsp_ref[g],
                                preferred_element_type=jnp.float32)

    return acc + bb_ref[...]


def _fkan_fused_kernel(x_ref, *refs, slab_flags, compute_dtype):
    o_ref = refs[-1]
    wrefs = refs[:-1]          # 6 refs per slab layer, 5 per fallback layer
    h = x_ref[...].astype(jnp.float32)
    pos = 0
    for use_slab in slab_flags:
        n_args = 6 if use_slab else 5
        h = _fkan_layer(h, wrefs[pos:pos + n_args], use_slab, compute_dtype)
        pos += n_args
    o_ref[...] = h.astype(o_ref.dtype)


def fkan_forward(x, kernel_params, *, n_out, out_pad, tb=None,
                 compute_dtype=jnp.bfloat16):
    """Run the fused FastKAN network. kernel_params from prepare_kernel_params."""
    n, d_in = x.shape
    if tb is None:
        tb = _choose_tb(n)
    n_pad = _round_up(n, tb)
    if n_pad != n:
        x = jnp.pad(x, ((0, n_pad - n), (0, 0)))

    flat_weights = []
    in_specs = [pl.BlockSpec((tb, d_in), lambda i: (i, 0))]  # batch-tiled x
    for layer in kernel_params:
        for a in layer:
            flat_weights.append(a)
            # Full-array, constant-index block: DMA'd once, stays VMEM-resident
            # across grid steps (no per-step refetch; extra default buffering is
            # negligible at <1 MiB total weights).
            in_specs.append(
                pl.BlockSpec(tuple(a.shape), lambda i, nd=a.ndim: (0,) * nd))

    slab_flags = tuple(len(layer) == 6 for layer in kernel_params)
    kernel = partial(_fkan_fused_kernel, slab_flags=slab_flags,
                     compute_dtype=compute_dtype)

    out = pl.pallas_call(
        kernel,
        out_shape=jax.ShapeDtypeStruct((n_pad, out_pad), jnp.float32),
        grid_spec=pltpu.PrefetchScalarGridSpec(
            num_scalar_prefetch=0,
            grid=(n_pad // tb,),
            in_specs=in_specs,
            out_specs=pl.BlockSpec((tb, out_pad), lambda i: (i, 0)),
        ),
        compiler_params=pltpu.CompilerParams(
            dimension_semantics=("parallel",)),
    )(x, *flat_weights)

    return out[:n, :n_out]


def init_fkan_params(key, layers_hidden):
    """Deterministic params in the PyTorch-equivalent layout (values synthetic)."""
    params = []
    for din, dout in zip(layers_hidden[:-1], layers_hidden[1:]):
        key, k_sp, k_wb, k_bb = jax.random.split(key, 4)
        gamma = jnp.ones((din,), jnp.float32)          # torch LayerNorm init
        beta = jnp.zeros((din,), jnp.float32)
        # SplineLinear: trunc_normal_(std=0.1), no bias; stored as (din*G, dout),
        # row index = i*G + g (din-major, grid-minor, like basis.reshape).
        w_sp = 0.1 * jax.random.truncated_normal(
            k_sp, -2.0, 2.0, (din * NUM_GRIDS, dout), jnp.float32)
        bound = 1.0 / np.sqrt(din)
        w_b = jax.random.uniform(k_wb, (din, dout), jnp.float32, -bound, bound)
        b_b = jax.random.uniform(k_bb, (dout,), jnp.float32, -bound, bound)
        params.append((gamma, beta, w_sp, w_b, b_b))
    return params


def prepare_kernel_params(params, *, out_pad, compute_dtype=jnp.bfloat16):
    """Kernel-layout params.

    * MXU-friendly layers: spline weights restacked grid-major (row g*din+i) as
      a single (din*G, dout) matrix for the fused big-K dot, plus a (1, din*G)
      grid-node row; tiny/unaligned layers keep the (G, din, dout) per-node form.
    * Final layer zero-padded to `out_pad` columns -> lane-dense output store.
    * MXU operands (W_spline, W_base) stored in `compute_dtype` (bf16 default);
      LayerNorm affine, grid row and biases stay f32.
    """
    kparams = []
    n_layers = len(params)
    for l, (gamma, beta, w_sp, w_b, b_b) in enumerate(params):
        din = gamma.shape[0]
        dout = w_b.shape[1]
        pad = out_pad - dout if (l == n_layers - 1 and dout < out_pad) else 0
        w_base = jnp.pad(w_b, ((0, 0), (0, pad))) if pad else w_b
        bias = jnp.pad(b_b, ((0, pad),)) if pad else b_b

        common = (gamma.reshape(1, din).astype(jnp.float32),
                  beta.reshape(1, din).astype(jnp.float32))
        if _use_slab(din):
            # Permute spline rows from i*G+g (original) to g*din+i (grid-major).
            w_stack = jnp.transpose(w_sp.reshape(din, NUM_GRIDS, dout),
                                    (1, 0, 2)).reshape(NUM_GRIDS * din, dout)
            if pad:
                w_stack = jnp.pad(w_stack, ((0, 0), (0, pad)))
            grid_row = jnp.asarray(
                np.repeat(GRID_NP, din).reshape(1, NUM_GRIDS * din))
            kparams.append(common + (
                grid_row.astype(jnp.float32),
                w_stack.astype(compute_dtype),
                w_base.astype(compute_dtype),
                bias.reshape(1, -1).astype(jnp.float32),
            ))
        else:
            w_sp3 = jnp.transpose(w_sp.reshape(din, NUM_GRIDS, dout), (1, 0, 2))
            if pad:
                w_sp3 = jnp.pad(w_sp3, ((0, 0), (0, 0), (0, pad)))
            kparams.append(common + (
                w_sp3.astype(compute_dtype),
                w_base.astype(compute_dtype),
                bias.reshape(1, -1).astype(jnp.float32),
            ))
    return kparams


def fkan_forward_ref(x, params, dot_dtype=jnp.float32):
    """Pure-JAX reference with the original FastKAN math.

    dot_dtype=float32 reproduces the PyTorch forward exactly; dot_dtype=bfloat16
    is the matched reference for the kernel's bf16 fast path (linear-layer
    operands cast to bf16, f32 accumulation, everything else in f32).
    """
    grid = jnp.asarray(GRID_NP)
    h = x
    for gamma, beta, w_sp, w_b, b_b in params:
        mean = jnp.mean(h, axis=-1, keepdims=True)
        var = jnp.mean(jnp.square(h - mean), axis=-1, keepdims=True)
        hn = (h - mean) * jax.lax.rsqrt(var + LN_EPS) * gamma + beta
        basis = jnp.exp(-jnp.square((hn[..., None] - grid) * INV_DENOM))
        ret = jnp.dot(basis.reshape(h.shape[0], -1).astype(dot_dtype),
                      w_sp.astype(dot_dtype),
                      preferred_element_type=jnp.float32)
        base = jnp.dot(jax.nn.silu(h).astype(dot_dtype),
                       w_b.astype(dot_dtype),
                       preferred_element_type=jnp.float32)
        h = ret + base + b_b
    return h  # output_activation='None'


if __name__ == "__main__":
    # FKAN_Native defaults: n_input_dims=3, n_output_dims=1,
    # n_hidden_layers=3, n_neurons=64  ->  layers [3, 64, 64, 64, 1].
    n_input_dims, n_output_dims, n_hidden_layers, n_neurons = 3, 1, 3, 64
    layers_hidden = [n_input_dims] + [n_neurons] * n_hidden_layers + [n_output_dims]

    key = jax.random.PRNGKey(0)
    key, kx = jax.random.split(key)
    batch = 256  # tb auto-selects 128 -> grid=(2,): both v7x TensorCores busy
    x = jax.random.uniform(kx, (batch, n_input_dims), jnp.float32, -1.0, 1.0)

    params = init_fkan_params(key, layers_hidden)
    out_pad = _round_up(n_output_dims, 128)

    # 1) Exact path: f32 MXU operands -> tight check vs the FastKAN reference.
    kp_f32 = prepare_kernel_params(params, out_pad=out_pad,
                                   compute_dtype=jnp.float32)
    out_f32 = fkan_forward(x, kp_f32, n_out=n_output_dims, out_pad=out_pad,
                           compute_dtype=jnp.float32)
    out_f32 = jax.block_until_ready(out_f32)
    assert out_f32.shape == (batch, n_output_dims)
    ref_f32 = fkan_forward_ref(x, params, dot_dtype=jnp.float32)
    np.testing.assert_allclose(np.asarray(out_f32), np.asarray(ref_f32),
                               rtol=2e-4, atol=2e-4)

    # 2) Fast path (default): bf16 MXU operands, f32 accumulation.  Verified
    #    against the matched reference (identical bf16 operand quantization);
    #    the residual difference is only MXU accumulation order.
    kp_bf16 = prepare_kernel_params(params, out_pad=out_pad,
                                    compute_dtype=jnp.bfloat16)
    out_bf16 = fkan_forward(x, kp_bf16, n_out=n_output_dims, out_pad=out_pad,
                            compute_dtype=jnp.bfloat16)
    out_bf16 = jax.block_until_ready(out_bf16)
    ref_bf16 = fkan_forward_ref(x, params, dot_dtype=jnp.bfloat16)
    np.testing.assert_allclose(np.asarray(out_bf16), np.asarray(ref_bf16),
                               rtol=3e-2, atol=3e-2)

    print("KERNEL_OK")
</pallas_src>

<mosaic_0001>
module attributes {stable_mosaic.version = 11 : i64} {
  func.func @_fkan_fused_kernel(%arg0: i32, %arg1: memref<128x3xf32, #tpu.memory_space<vmem>>, %arg2: memref<1x3xf32, #tpu.memory_space<vmem>>, %arg3: memref<1x3xf32, #tpu.memory_space<vmem>>, %arg4: memref<8x3x64xf32, #tpu.memory_space<vmem>>, %arg5: memref<3x64xf32, #tpu.memory_space<vmem>>, %arg6: memref<1x64xf32, #tpu.memory_space<vmem>>, %arg7: memref<1x64xf32, #tpu.memory_space<vmem>>, %arg8: memref<1x64xf32, #tpu.memory_space<vmem>>, %arg9: memref<1x512xf32, #tpu.memory_space<vmem>>, %arg10: memref<512x64xf32, #tpu.memory_space<vmem>>, %arg11: memref<64x64xf32, #tpu.memory_space<vmem>>, %arg12: memref<1x64xf32, #tpu.memory_space<vmem>>, %arg13: memref<1x64xf32, #tpu.memory_space<vmem>>, %arg14: memref<1x64xf32, #tpu.memory_space<vmem>>, %arg15: memref<1x512xf32, #tpu.memory_space<vmem>>, %arg16: memref<512x64xf32, #tpu.memory_space<vmem>>, %arg17: memref<64x64xf32, #tpu.memory_space<vmem>>, %arg18: memref<1x64xf32, #tpu.memory_space<vmem>>, %arg19: memref<1x64xf32, #tpu.memory_space<vmem>>, %arg20: memref<1x64xf32, #tpu.memory_space<vmem>>, %arg21: memref<1x512xf32, #tpu.memory_space<vmem>>, %arg22: memref<512x128xf32, #tpu.memory_space<vmem>>, %arg23: memref<64x128xf32, #tpu.memory_space<vmem>>, %arg24: memref<1x128xf32, #tpu.memory_space<vmem>>, %arg25: memref<128x128xf32, #tpu.memory_space<vmem>>) attributes {dimension_semantics = [#tpu.dimension_semantics<parallel>], iteration_bounds = array<i64: 2>, scalar_prefetch = 0 : i64, scratch_operands = 0 : i64, tpu.core_type = #tpu.core_type<tc>, window_params = [{transform_indices = @transform_0, window_bounds = array<i64: 128, 3>}, {pipeline_mode = #tpu.pipeline_mode<synchronous>, transform_indices = @transform_1, window_bounds = array<i64: 1, 3>}, {pipeline_mode = #tpu.pipeline_mode<synchronous>, transform_indices = @transform_2, window_bounds = array<i64: 1, 3>}, {pipeline_mode = #tpu.pipeline_mode<synchronous>, transform_indices = @transform_3, window_bounds = array<i64: 8, 3, 64>}, {pipeline_mode = #tpu.pipeline_mode<synchronous>, transform_indices = @transform_4, window_bounds = array<i64: 3, 64>}, {pipeline_mode = #tpu.pipeline_mode<synchronous>, transform_indices = @transform_5, window_bounds = array<i64: 1, 64>}, {pipeline_mode = #tpu.pipeline_mode<synchronous>, transform_indices = @transform_6, window_bounds = array<i64: 1, 64>}, {pipeline_mode = #tpu.pipeline_mode<synchronous>, transform_indices = @transform_7, window_bounds = array<i64: 1, 64>}, {pipeline_mode = #tpu.pipeline_mode<synchronous>, transform_indices = @transform_8, window_bounds = array<i64: 1, 512>}, {pipeline_mode = #tpu.pipeline_mode<synchronous>, transform_indices = @transform_9, window_bounds = array<i64: 512, 64>}, {pipeline_mode = #tpu.pipeline_mode<synchronous>, transform_indices = @transform_10, window_bounds = array<i64: 64, 64>}, {pipeline_mode = #tpu.pipeline_mode<synchronous>, transform_indices = @transform_11, window_bounds = array<i64: 1, 64>}, {pipeline_mode = #tpu.pipeline_mode<synchronous>, transform_indices = @transform_12, window_bounds = array<i64: 1, 64>}, {pipeline_mode = #tpu.pipeline_mode<synchronous>, transform_indices = @transform_13, window_bounds = array<i64: 1, 64>}, {pipeline_mode = #tpu.pipeline_mode<synchronous>, transform_indices = @transform_14, window_bounds = array<i64: 1, 512>}, {pipeline_mode = #tpu.pipeline_mode<synchronous>, transform_indices = @transform_15, window_bounds = array<i64: 512, 64>}, {pipeline_mode = #tpu.pipeline_mode<synchronous>, transform_indices = @transform_16, window_bounds = array<i64: 64, 64>}, {pipeline_mode = #tpu.pipeline_mode<synchronous>, transform_indices = @transform_17, window_bounds = array<i64: 1, 64>}, {pipeline_mode = #tpu.pipeline_mode<synchronous>, transform_indices = @transform_18, window_bounds = array<i64: 1, 64>}, {pipeline_mode = #tpu.pipeline_mode<synchronous>, transform_indices = @transform_19, window_bounds = array<i64: 1, 64>}, {pipeline_mode = #tpu.pipeline_mode<synchronous>, transform_indices = @transform_20, window_bounds = array<i64: 1, 512>}, {pipeline_mode = #tpu.pipeline_mode<synchronous>, transform_indices = @transform_21, window_bounds = array<i64: 512, 128>}, {pipeline_mode = #tpu.pipeline_mode<synchronous>, transform_indices = @transform_22, window_bounds = array<i64: 64, 128>}, {pipeline_mode = #tpu.pipeline_mode<synchronous>, transform_indices = @transform_23, window_bounds = array<i64: 1, 128>}, {transform_indices = @transform_24, window_bounds = array<i64: 128, 128>}]} {
    %c0 = arith.constant 0 : index
    %c0_0 = arith.constant 0 : index
    %0 = vector.load %arg1[%c0, %c0_0] : memref<128x3xf32, #tpu.memory_space<vmem>>, vector<128x3xf32>
    %cst = arith.constant dense<0.000000e+00> : vector<128xf32>
    %1 = vector.multi_reduction <add>, %0, %cst [1] : vector<128x3xf32> to vector<128xf32>
    %2 = vector.shape_cast %1 : vector<128xf32> to vector<128x1xf32>
    %cst_1 = arith.constant 3.000000e+00 : f32
    %3 = vector.broadcast %cst_1 : f32 to vector<128x1xf32>
    %4 = arith.divf %2, %3 : vector<128x1xf32>
    %5 = vector.broadcast %4 : vector<128x1xf32> to vector<128x3xf32>
    %6 = arith.subf %0, %5 : vector<128x3xf32>
    %7 = arith.mulf %6, %6 : vector<128x3xf32>
    %cst_2 = arith.constant dense<0.000000e+00> : vector<128xf32>
    %8 = vector.multi_reduction <add>, %7, %cst_2 [1] : vector<128x3xf32> to vector<128xf32>
    %9 = vector.shape_cast %8 : vector<128xf32> to vector<128x1xf32>
    %cst_3 = arith.constant 3.000000e+00 : f32
    %10 = vector.broadcast %cst_3 : f32 to vector<128x1xf32>
    %11 = arith.divf %9, %10 : vector<128x1xf32>
    %12 = vector.broadcast %4 : vector<128x1xf32> to vector<128x3xf32>
    %13 = arith.subf %0, %12 : vector<128x3xf32>
    %cst_4 = arith.constant 9.99999974E-6 : f32
    %14 = vector.broadcast %cst_4 : f32 to vector<128x1xf32>
    %15 = arith.addf %11, %14 : vector<128x1xf32>
    %16 = math.rsqrt %15 : vector<128x1xf32>
    %17 = vector.broadcast %16 : vector<128x1xf32> to vector<128x3xf32>
    %18 = arith.mulf %13, %17 : vector<128x3xf32>
    %c0_5 = arith.constant 0 : index
    %c0_6 = arith.constant 0 : index
    %19 = vector.load %arg2[%c0_5, %c0_6] : memref<1x3xf32, #tpu.memory_space<vmem>>, vector<1x3xf32>
    %20 = vector.broadcast %19 : vector<1x3xf32> to vector<128x3xf32>
    %21 = arith.mulf %18, %20 : vector<128x3xf32>
    %c0_7 = arith.constant 0 : index
    %c0_8 = arith.constant 0 : index
    %22 = vector.load %arg3[%c0_7, %c0_8] : memref<1x3xf32, #tpu.memory_space<vmem>>, vector<1x3xf32>
    %23 = vector.broadcast %22 : vector<1x3xf32> to vector<128x3xf32>
    %24 = arith.addf %21, %23 : vector<128x3xf32>
    %25 = arith.negf %0 : vector<128x3xf32>
    %26 = math.exp %25 : vector<128x3xf32>
    %cst_9 = arith.constant 1.000000e+00 : f32
    %27 = vector.broadcast %cst_9 : f32 to vector<128x3xf32>
    %28 = arith.addf %27, %26 : vector<128x3xf32>
    %29 = arith.divf %27, %28 : vector<128x3xf32>
    %30 = arith.mulf %0, %29 : vector<128x3xf32>
    %c0_10 = arith.constant 0 : index
    %c0_11 = arith.constant 0 : index
    %31 = vector.load %arg5[%c0_10, %c0_11] : memref<3x64xf32, #tpu.memory_space<vmem>>, vector<3x64xf32>
    %cst_12 = arith.constant dense<0.000000e+00> : vector<128x64xf32>
    %32 = tpu.matmul %30, %31, %cst_12 {dimension_numbers = #tpu.dot_dimension_numbers<[1], [0], [0], [1], [0, 0, 1, 1], [], []>} : vector<128x3xf32>, vector<3x64xf32>, vector<128x64xf32> -> vector<128x64xf32>
    %cst_13 = arith.constant -1.000000e+00 : f32
    %33 = vector.broadcast %cst_13 : f32 to vector<128x3xf32>
    %34 = arith.subf %24, %33 : vector<128x3xf32>
    %cst_14 = arith.constant 3.500000e+00 : f32
    %35 = vector.broadcast %cst_14 : f32 to vector<128x3xf32>
    %36 = arith.mulf %34, %35 : vector<128x3xf32>
    %37 = arith.mulf %36, %36 : vector<128x3xf32>
    %cst_15 = arith.constant 0.000000e+00 : f32
    %38 = vector.broadcast %cst_15 : f32 to vector<128x3xf32>
    %39 = arith.subf %38, %37 : vector<128x3xf32>
    %40 = math.exp %39 : vector<128x3xf32>
    %c0_16 = arith.constant 0 : index
    %c0_17 = arith.constant 0 : index
    %c0_18 = arith.constant 0 : index
    %41 = vector.load %arg4[%c0_16, %c0_17, %c0_18] : memref<8x3x64xf32, #tpu.memory_space<vmem>>, vector<1x3x64xf32>
    %42 = vector.shape_cast %41 : vector<1x3x64xf32> to vector<3x64xf32>
    %cst_19 = arith.constant dense<0.000000e+00> : vector<128x64xf32>
    %43 = tpu.matmul %40, %42, %cst_19 {dimension_numbers = #tpu.dot_dimension_numbers<[1], [0], [0], [1], [0, 0, 1, 1], [], []>} : vector<128x3xf32>, vector<3x64xf32>, vector<128x64xf32> -> vector<128x64xf32>
    %44 = arith.addf %32, %43 : vector<128x64xf32>
    %cst_20 = arith.constant -0.714285731 : f32
    %45 = vector.broadcast %cst_20 : f32 to vector<128x3xf32>
    %46 = arith.subf %24, %45 : vector<128x3xf32>
    %cst_21 = arith.constant 3.500000e+00 : f32
    %47 = vector.broadcast %cst_21 : f32 to vector<128x3xf32>
    %48 = arith.mulf %46, %47 : vector<128x3xf32>
    %49 = arith.mulf %48, %48 : vector<128x3xf32>
    %cst_22 = arith.constant 0.000000e+00 : f32
    %50 = vector.broadcast %cst_22 : f32 to vector<128x3xf32>
    %51 = arith.subf %50, %49 : vector<128x3xf32>
    %52 = math.exp %51 : vector<128x3xf32>
    %c1 = arith.constant 1 : index
    %c0_23 = arith.constant 0 : index
    %c0_24 = arith.constant 0 : index
    %53 = vector.load %arg4[%c1, %c0_23, %c0_24] : memref<8x3x64xf32, #tpu.memory_space<vmem>>, vector<1x3x64xf32>
    %54 = vector.shape_cast %53 : vector<1x3x64xf32> to vector<3x64xf32>
    %cst_25 = arith.constant dense<0.000000e+00> : vector<128x64xf32>
    %55 = tpu.matmul %52, %54, %cst_25 {dimension_numbers = #tpu.dot_dimension_numbers<[1], [0], [0], [1], [0, 0, 1, 1], [], []>} : vector<128x3xf32>, vector<3x64xf32>, vector<128x64xf32> -> vector<128x64xf32>
    %56 = arith.addf %44, %55 : vector<128x64xf32>
    %cst_26 = arith.constant -0.428571433 : f32
    %57 = vector.broadcast %cst_26 : f32 to vector<128x3xf32>
    %58 = arith.subf %24, %57 : vector<128x3xf32>
    %cst_27 = arith.constant 3.500000e+00 : f32
    %59 = vector.broadcast %cst_27 : f32 to vector<128x3xf32>
    %60 = arith.mulf %58, %59 : vector<128x3xf32>
    %61 = arith.mulf %60, %60 : vector<128x3xf32>
    %cst_28 = arith.constant 0.000000e+00 : f32
    %62 = vector.broadcast %cst_28 : f32 to vector<128x3xf32>
    %63 = arith.subf %62, %61 : vector<128x3xf32>
    %64 = math.exp %63 : vector<128x3xf32>
    %c2 = arith.constant 2 : index
    %c0_29 = arith.constant 0 : index
    %c0_30 = arith.constant 0 : index
    %65 = vector.load %arg4[%c2, %c0_29, %c0_30] : memref<8x3x64xf32, #tpu.memory_space<vmem>>, vector<1x3x64xf32>
    %66 = vector.shape_cast %65 : vector<1x3x64xf32> to vector<3x64xf32>
    %cst_31 = arith.constant dense<0.000000e+00> : vector<128x64xf32>
    %67 = tpu.matmul %64, %66, %cst_31 {dimension_numbers = #tpu.dot_dimension_numbers<[1], [0], [0], [1], [0, 0, 1, 1], [], []>} : vector<128x3xf32>, vector<3x64xf32>, vector<128x64xf32> -> vector<128x64xf32>
    %68 = arith.addf %56, %67 : vector<128x64xf32>
    %cst_32 = arith.constant -0.142857149 : f32
    %69 = vector.broadcast %cst_32 : f32 to vector<128x3xf32>
    %70 = arith.subf %24, %69 : vector<128x3xf32>
    %cst_33 = arith.constant 3.500000e+00 : f32
    %71 = vector.broadcast %cst_33 : f32 to vector<128x3xf32>
    %72 = arith.mulf %70, %71 : vector<128x3xf32>
    %73 = arith.mulf %72, %72 : vector<128x3xf32>
    %cst_34 = arith.constant 0.000000e+00 : f32
    %74 = vector.broadcast %cst_34 : f32 to vector<128x3xf32>
    %75 = arith.subf %74, %73 : vector<128x3xf32>
    %76 = math.exp %75 : vector<128x3xf32>
    %c3 = arith.constant 3 : index
    %c0_35 = arith.constant 0 : index
    %c0_36 = arith.constant 0 : index
    %77 = vector.load %arg4[%c3, %c0_35, %c0_36] : memref<8x3x64xf32, #tpu.memory_space<vmem>>, vector<1x3x64xf32>
    %78 = vector.shape_cast %77 : vector<1x3x64xf32> to vector<3x64xf32>
    %cst_37 = arith.constant dense<0.000000e+00> : vector<128x64xf32>
    %79 = tpu.matmul %76, %78, %cst_37 {dimension_numbers = #tpu.dot_dimension_numbers<[1], [0], [0], [1], [0, 0, 1, 1], [], []>} : vector<128x3xf32>, vector<3x64xf32>, vector<128x64xf32> -> vector<128x64xf32>
    %80 = arith.addf %68, %79 : vector<128x64xf32>
    %cst_38 = arith.constant 0.142857149 : f32
    %81 = vector.broadcast %cst_38 : f32 to vector<128x3xf32>
    %82 = arith.subf %24, %81 : vector<128x3xf32>
    %cst_39 = arith.constant 3.500000e+00 : f32
    %83 = vector.broadcast %cst_39 : f32 to vector<128x3xf32>
    %84 = arith.mulf %82, %83 : vector<128x3xf32>
    %85 = arith.mulf %84, %84 : vector<128x3xf32>
    %cst_40 = arith.constant 0.000000e+00 : f32
    %86 = vector.broadcast %cst_40 : f32 to vector<128x3xf32>
    %87 = arith.subf %86, %85 : vector<128x3xf32>
    %88 = math.exp %87 : vector<128x3xf32>
    %c4 = arith.constant 4 : index
    %c0_41 = arith.constant 0 : index
    %c0_42 = arith.constant 0 : index
    %89 = vector.load %arg4[%c4, %c0_41, %c0_42] : memref<8x3x64xf32, #tpu.memory_space<vmem>>, vector<1x3x64xf32>
    %90 = vector.shape_cast %89 : vector<1x3x64xf32> to vector<3x64xf32>
    %cst_43 = arith.constant dense<0.000000e+00> : vector<128x64xf32>
    %91 = tpu.matmul %88, %90, %cst_43 {dimension_numbers = #tpu.dot_dimension_numbers<[1], [0], [0], [1], [0, 0, 1, 1], [], []>} : vector<128x3xf32>, vector<3x64xf32>, vector<128x64xf32> -> vector<128x64xf32>
    %92 = arith.addf %80, %91 : vector<128x64xf32>
    %cst_44 = arith.constant 0.428571433 : f32
    %93 = vector.broadcast %cst_44 : f32 to vector<128x3xf32>
    %94 = arith.subf %24, %93 : vector<128x3xf32>
    %cst_45 = arith.constant 3.500000e+00 : f32
    %95 = vector.broadcast %cst_45 : f32 to vector<128x3xf32>
    %96 = arith.mulf %94, %95 : vector<128x3xf32>
    %97 = arith.mulf %96, %96 : vector<128x3xf32>
    %cst_46 = arith.constant 0.000000e+00 : f32
    %98 = vector.broadcast %cst_46 : f32 to vector<128x3xf32>
    %99 = arith.subf %98, %97 : vector<128x3xf32>
    %100 = math.exp %99 : vector<128x3xf32>
    %c5 = arith.constant 5 : index
    %c0_47 = arith.constant 0 : index
    %c0_48 = arith.constant 0 : index
    %101 = vector.load %arg4[%c5, %c0_47, %c0_48] : memref<8x3x64xf32, #tpu.memory_space<vmem>>, vector<1x3x64xf32>
    %102 = vector.shape_cast %101 : vector<1x3x64xf32> to vector<3x64xf32>
    %cst_49 = arith.constant dense<0.000000e+00> : vector<128x64xf32>
    %103 = tpu.matmul %100, %102, %cst_49 {dimension_numbers = #tpu.dot_dimension_numbers<[1], [0], [0], [1], [0, 0, 1, 1], [], []>} : vector<128x3xf32>, vector<3x64xf32>, vector<128x64xf32> -> vector<128x64xf32>
    %104 = arith.addf %92, %103 : vector<128x64xf32>
    %cst_50 = arith.constant 0.714285731 : f32
    %105 = vector.broadcast %cst_50 : f32 to vector<128x3xf32>
    %106 = arith.subf %24, %105 : vector<128x3xf32>
    %cst_51 = arith.constant 3.500000e+00 : f32
    %107 = vector.broadcast %cst_51 : f32 to vector<128x3xf32>
    %108 = arith.mulf %106, %107 : vector<128x3xf32>
    %109 = arith.mulf %108, %108 : vector<128x3xf32>
    %cst_52 = arith.constant 0.000000e+00 : f32
    %110 = vector.broadcast %cst_52 : f32 to vector<128x3xf32>
    %111 = arith.subf %110, %109 : vector<128x3xf32>
    %112 = math.exp %111 : vector<128x3xf32>
    %c6 = arith.constant 6 : index
    %c0_53 = arith.constant 0 : index
    %c0_54 = arith.constant 0 : index
    %113 = vector.load %arg4[%c6, %c0_53, %c0_54] : memref<8x3x64xf32, #tpu.memory_space<vmem>>, vector<1x3x64xf32>
    %114 = vector.shape_cast %113 : vector<1x3x64xf32> to vector<3x64xf32>
    %cst_55 = arith.constant dense<0.000000e+00> : vector<128x64xf32>
    %115 = tpu.matmul %112, %114, %cst_55 {dimension_numbers = #tpu.dot_dimension_numbers<[1], [0], [0], [1], [0, 0, 1, 1], [], []>} : vector<128x3xf32>, vector<3x64xf32>, vector<128x64xf32> -> vector<128x64xf32>
    %116 = arith.addf %104, %115 : vector<128x64xf32>
    %cst_56 = arith.constant 1.000000e+00 : f32
    %117 = vector.broadcast %cst_56 : f32 to vector<128x3xf32>
    %118 = arith.subf %24, %117 : vector<128x3xf32>
    %cst_57 = arith.constant 3.500000e+00 : f32
    %119 = vector.broadcast %cst_57 : f32 to vector<128x3xf32>
    %120 = arith.mulf %118, %119 : vector<128x3xf32>
    %121 = arith.mulf %120, %120 : vector<128x3xf32>
    %cst_58 = arith.constant 0.000000e+00 : f32
    %122 = vector.broadcast %cst_58 : f32 to vector<128x3xf32>
    %123 = arith.subf %122, %121 : vector<128x3xf32>
    %124 = math.exp %123 : vector<128x3xf32>
    %c7 = arith.constant 7 : index
    %c0_59 = arith.constant 0 : index
    %c0_60 = arith.constant 0 : index
    %125 = vector.load %arg4[%c7, %c0_59, %c0_60] : memref<8x3x64xf32, #tpu.memory_space<vmem>>, vector<1x3x64xf32>
    %126 = vector.shape_cast %125 : vector<1x3x64xf32> to vector<3x64xf32>
    %cst_61 = arith.constant dense<0.000000e+00> : vector<128x64xf32>
    %127 = tpu.matmul %124, %126, %cst_61 {dimension_numbers = #tpu.dot_dimension_numbers<[1], [0], [0], [1], [0, 0, 1, 1], [], []>} : vector<128x3xf32>, vector<3x64xf32>, vector<128x64xf32> -> vector<128x64xf32>
    %128 = arith.addf %116, %127 : vector<128x64xf32>
    %c0_62 = arith.constant 0 : index
    %c0_63 = arith.constant 0 : index
    %129 = vector.load %arg6[%c0_62, %c0_63] : memref<1x64xf32, #tpu.memory_space<vmem>>, vector<1x64xf32>
    %130 = vector.broadcast %129 : vector<1x64xf32> to vector<128x64xf32>
    %131 = arith.addf %128, %130 : vector<128x64xf32>
    %cst_64 = arith.constant dense<0.000000e+00> : vector<128xf32>
    %132 = vector.multi_reduction <add>, %131, %cst_64 [1] : vector<128x64xf32> to vector<128xf32>
    %133 = vector.shape_cast %132 : vector<128xf32> to vector<128x1xf32>
    %cst_65 = arith.constant 6.400000e+01 : f32
    %134 = vector.broadcast %cst_65 : f32 to vector<128x1xf32>
    %135 = arith.divf %133, %134 : vector<128x1xf32>
    %136 = vector.broadcast %135 : vector<128x1xf32> to vector<128x64xf32>
    %137 = arith.subf %131, %136 : vector<128x64xf32>
    %138 = arith.mulf %137, %137 : vector<128x64xf32>
    %cst_66 = arith.constant dense<0.000000e+00> : vector<128xf32>
    %139 = vector.multi_reduction <add>, %138, %cst_66 [1] : vector<128x64xf32> to vector<128xf32>
    %140 = vector.shape_cast %139 : vector<128xf32> to vector<128x1xf32>
    %cst_67 = arith.constant 6.400000e+01 : f32
    %141 = vector.broadcast %cst_67 : f32 to vector<128x1xf32>
    %142 = arith.divf %140, %141 : vector<128x1xf32>
    %143 = vector.broadcast %135 : vector<128x1xf32> to vector<128x64xf32>
    %144 = arith.subf %131, %143 : vector<128x64xf32>
    %cst_68 = arith.constant 9.99999974E-6 : f32
    %145 = vector.broadcast %cst_68 : f32 to vector<128x1xf32>
    %146 = arith.addf %142, %145 : vector<128x1xf32>
    %147 = math.rsqrt %146 : vector<128x1xf32>
    %148 = vector.broadcast %147 : vector<128x1xf32> to vector<128x64xf32>
    %149 = arith.mulf %144, %148 : vector<128x64xf32>
    %c0_69 = arith.constant 0 : index
    %c0_70 = arith.constant 0 : index
    %150 = vector.load %arg7[%c0_69, %c0_70] : memref<1x64xf32, #tpu.memory_space<vmem>>, vector<1x64xf32>
    %151 = vector.broadcast %150 : vector<1x64xf32> to vector<128x64xf32>
    %152 = arith.mulf %149, %151 : vector<128x64xf32>
    %c0_71 = arith.constant 0 : index
    %c0_72 = arith.constant 0 : index
    %153 = vector.load %arg8[%c0_71, %c0_72] : memref<1x64xf32, #tpu.memory_space<vmem>>, vector<1x64xf32>
    %154 = vector.broadcast %153 : vector<1x64xf32> to vector<128x64xf32>
    %155 = arith.addf %152, %154 : vector<128x64xf32>
    %156 = arith.negf %131 : vector<128x64xf32>
    %157 = math.exp %156 : vector<128x64xf32>
    %cst_73 = arith.constant 1.000000e+00 : f32
    %158 = vector.broadcast %cst_73 : f32 to vector<128x64xf32>
    %159 = arith.addf %158, %157 : vector<128x64xf32>
    %160 = arith.divf %158, %159 : vector<128x64xf32>
    %161 = arith.mulf %131, %160 : vector<128x64xf32>
    %c0_74 = arith.constant 0 : index
    %c0_75 = arith.constant 0 : index
    %162 = vector.load %arg11[%c0_74, %c0_75] : memref<64x64xf32, #tpu.memory_space<vmem>>, vector<64x64xf32>
    %cst_76 = arith.constant dense<0.000000e+00> : vector<128x64xf32>
    %163 = tpu.matmul %161, %162, %cst_76 {dimension_numbers = #tpu.dot_dimension_numbers<[1], [0], [0], [1], [0, 0, 1, 1], [], []>} : vector<128x64xf32>, vector<64x64xf32>, vector<128x64xf32> -> vector<128x64xf32>
    %164 = tpu.concatenate %155, %155, %155, %155, %155, %155, %155, %155 in 1 : vector<128x64xf32>, vector<128x64xf32>, vector<128x64xf32>, vector<128x64xf32>, vector<128x64xf32>, vector<128x64xf32>, vector<128x64xf32>, vector<128x64xf32> -> vector<128x512xf32>
    %c0_77 = arith.constant 0 : index
    %c0_78 = arith.constant 0 : index
    %165 = vector.load %arg9[%c0_77, %c0_78] : memref<1x512xf32, #tpu.memory_space<vmem>>, vector<1x512xf32>
    %166 = vector.broadcast %165 : vector<1x512xf32> to vector<128x512xf32>
    %167 = arith.subf %164, %166 : vector<128x512xf32>
    %cst_79 = arith.constant 3.500000e+00 : f32
    %168 = vector.broadcast %cst_79 : f32 to vector<128x512xf32>
    %169 = arith.mulf %167, %168 : vector<128x512xf32>
    %170 = arith.mulf %169, %169 : vector<128x512xf32>
    %cst_80 = arith.constant 0.000000e+00 : f32
    %171 = vector.broadcast %cst_80 : f32 to vector<128x512xf32>
    %172 = arith.subf %171, %170 : vector<128x512xf32>
    %173 = math.exp %172 : vector<128x512xf32>
    %c0_81 = arith.constant 0 : index
    %c0_82 = arith.constant 0 : index
    %174 = vector.load %arg10[%c0_81, %c0_82] : memref<512x64xf32, #tpu.memory_space<vmem>>, vector<512x64xf32>
    %cst_83 = arith.constant dense<0.000000e+00> : vector<128x64xf32>
    %175 = tpu.matmul %173, %174, %cst_83 {dimension_numbers = #tpu.dot_dimension_numbers<[1], [0], [0], [1], [0, 0, 1, 1], [], []>} : vector<128x512xf32>, vector<512x64xf32>, vector<128x64xf32> -> vector<128x64xf32>
    %176 = arith.addf %163, %175 : vector<128x64xf32>
    %c0_84 = arith.constant 0 : index
    %c0_85 = arith.constant 0 : index
    %177 = vector.load %arg12[%c0_84, %c0_85] : memref<1x64xf32, #tpu.memory_space<vmem>>, vector<1x64xf32>
    %178 = vector.broadcast %177 : vector<1x64xf32> to vector<128x64xf32>
    %179 = arith.addf %176, %178 : vector<128x64xf32>
    %cst_86 = arith.constant dense<0.000000e+00> : vector<128xf32>
    %180 = vector.multi_reduction <add>, %179, %cst_86 [1] : vector<128x64xf32> to vector<128xf32>
    %181 = vector.shape_cast %180 : vector<128xf32> to vector<128x1xf32>
    %cst_87 = arith.constant 6.400000e+01 : f32
    %182 = vector.broadcast %cst_87 : f32 to vector<128x1xf32>
    %183 = arith.divf %181, %182 : vector<128x1xf32>
    %184 = vector.broadcast %183 : vector<128x1xf32> to vector<128x64xf32>
    %185 = arith.subf %179, %184 : vector<128x64xf32>
    %186 = arith.mulf %185, %185 : vector<128x64xf32>
    %cst_88 = arith.constant dense<0.000000e+00> : vector<128xf32>
    %187 = vector.multi_reduction <add>, %186, %cst_88 [1] : vector<128x64xf32> to vector<128xf32>
    %188 = vector.shape_cast %187 : vector<128xf32> to vector<128x1xf32>
    %cst_89 = arith.constant 6.400000e+01 : f32
    %189 = vector.broadcast %cst_89 : f32 to vector<128x1xf32>
    %190 = arith.divf %188, %189 : vector<128x1xf32>
    %191 = vector.broadcast %183 : vector<128x1xf32> to vector<128x64xf32>
    %192 = arith.subf %179, %191 : vector<128x64xf32>
    %cst_90 = arith.constant 9.99999974E-6 : f32
    %193 = vector.broadcast %cst_90 : f32 to vector<128x1xf32>
    %194 = arith.addf %190, %193 : vector<128x1xf32>
    %195 = math.rsqrt %194 : vector<128x1xf32>
    %196 = vector.broadcast %195 : vector<128x1xf32> to vector<128x64xf32>
    %197 = arith.mulf %192, %196 : vector<128x64xf32>
    %c0_91 = arith.constant 0 : index
    %c0_92 = arith.constant 0 : index
    %198 = vector.load %arg13[%c0_91, %c0_92] : memref<1x64xf32, #tpu.memory_space<vmem>>, vector<1x64xf32>
    %199 = vector.broadcast %198 : vector<1x64xf32> to vector<128x64xf32>
    %200 = arith.mulf %197, %199 : vector<128x64xf32>
    %c0_93 = arith.constant 0 : index
    %c0_94 = arith.constant 0 : index
    %201 = vector.load %arg14[%c0_93, %c0_94] : memref<1x64xf32, #tpu.memory_space<vmem>>, vector<1x64xf32>
    %202 = vector.broadcast %201 : vector<1x64xf32> to vector<128x64xf32>
    %203 = arith.addf %200, %202 : vector<128x64xf32>
    %204 = arith.negf %179 : vector<128x64xf32>
    %205 = math.exp %204 : vector<128x64xf32>
    %cst_95 = arith.constant 1.000000e+00 : f32
    %206 = vector.broadcast %cst_95 : f32 to vector<128x64xf32>
    %207 = arith.addf %206, %205 : vector<128x64xf32>
    %208 = arith.divf %206, %207 : vector<128x64xf32>
    %209 = arith.mulf %179, %208 : vector<128x64xf32>
    %c0_96 = arith.constant 0 : index
    %c0_97 = arith.constant 0 : index
    %210 = vector.load %arg17[%c0_96, %c0_97] : memref<64x64xf32, #tpu.memory_space<vmem>>, vector<64x64xf32>
    %cst_98 = arith.constant dense<0.000000e+00> : vector<128x64xf32>
    %211 = tpu.matmul %209, %210, %cst_98 {dimension_numbers = #tpu.dot_dimension_numbers<[1], [0], [0], [1], [0, 0, 1, 1], [], []>} : vector<128x64xf32>, vector<64x64xf32>, vector<128x64xf32> -> vector<128x64xf32>
    %212 = tpu.concatenate %203, %203, %203, %203, %203, %203, %203, %203 in 1 : vector<128x64xf32>, vector<128x64xf32>, vector<128x64xf32>, vector<128x64xf32>, vector<128x64xf32>, vector<128x64xf32>, vector<128x64xf32>, vector<128x64xf32> -> vector<128x512xf32>
    %c0_99 = arith.constant 0 : index
    %c0_100 = arith.constant 0 : index
    %213 = vector.load %arg15[%c0_99, %c0_100] : memref<1x512xf32, #tpu.memory_space<vmem>>, vector<1x512xf32>
    %214 = vector.broadcast %213 : vector<1x512xf32> to vector<128x512xf32>
    %215 = arith.subf %212, %214 : vector<128x512xf32>
    %cst_101 = arith.constant 3.500000e+00 : f32
    %216 = vector.broadcast %cst_101 : f32 to vector<128x512xf32>
    %217 = arith.mulf %215, %216 : vector<128x512xf32>
    %218 = arith.mulf %217, %217 : vector<128x512xf32>
    %cst_102 = arith.constant 0.000000e+00 : f32
    %219 = vector.broadcast %cst_102 : f32 to vector<128x512xf32>
    %220 = arith.subf %219, %218 : vector<128x512xf32>
    %221 = math.exp %220 : vector<128x512xf32>
    %c0_103 = arith.constant 0 : index
    %c0_104 = arith.constant 0 : index
    %222 = vector.load %arg16[%c0_103, %c0_104] : memref<512x64xf32, #tpu.memory_space<vmem>>, vector<512x64xf32>
    %cst_105 = arith.constant dense<0.000000e+00> : vector<128x64xf32>
    %223 = tpu.matmul %221, %222, %cst_105 {dimension_numbers = #tpu.dot_dimension_numbers<[1], [0], [0], [1], [0, 0, 1, 1], [], []>} : vector<128x512xf32>, vector<512x64xf32>, vector<128x64xf32> -> vector<128x64xf32>
    %224 = arith.addf %211, %223 : vector<128x64xf32>
    %c0_106 = arith.constant 0 : index
    %c0_107 = arith.constant 0 : index
    %225 = vector.load %arg18[%c0_106, %c0_107] : memref<1x64xf32, #tpu.memory_space<vmem>>, vector<1x64xf32>
    %226 = vector.broadcast %225 : vector<1x64xf32> to vector<128x64xf32>
    %227 = arith.addf %224, %226 : vector<128x64xf32>
    %cst_108 = arith.constant dense<0.000000e+00> : vector<128xf32>
    %228 = vector.multi_reduction <add>, %227, %cst_108 [1] : vector<128x64xf32> to vector<128xf32>
    %229 = vector.shape_cast %228 : vector<128xf32> to vector<128x1xf32>
    %cst_109 = arith.constant 6.400000e+01 : f32
    %230 = vector.broadcast %cst_109 : f32 to vector<128x1xf32>
    %231 = arith.divf %229, %230 : vector<128x1xf32>
    %232 = vector.broadcast %231 : vector<128x1xf32> to vector<128x64xf32>
    %233 = arith.subf %227, %232 : vector<128x64xf32>
    %234 = arith.mulf %233, %233 : vector<128x64xf32>
    %cst_110 = arith.constant dense<0.000000e+00> : vector<128xf32>
    %235 = vector.multi_reduction <add>, %234, %cst_110 [1] : vector<128x64xf32> to vector<128xf32>
    %236 = vector.shape_cast %235 : vector<128xf32> to vector<128x1xf32>
    %cst_111 = arith.constant 6.400000e+01 : f32
    %237 = vector.broadcast %cst_111 : f32 to vector<128x1xf32>
    %238 = arith.divf %236, %237 : vector<128x1xf32>
    %239 = vector.broadcast %231 : vector<128x1xf32> to vector<128x64xf32>
    %240 = arith.subf %227, %239 : vector<128x64xf32>
    %cst_112 = arith.constant 9.99999974E-6 : f32
    %241 = vector.broadcast %cst_112 : f32 to vector<128x1xf32>
    %242 = arith.addf %238, %241 : vector<128x1xf32>
    %243 = math.rsqrt %242 : vector<128x1xf32>
    %244 = vector.broadcast %243 : vector<128x1xf32> to vector<128x64xf32>
    %245 = arith.mulf %240, %244 : vector<128x64xf32>
    %c0_113 = arith.constant 0 : index
    %c0_114 = arith.constant 0 : index
    %246 = vector.load %arg19[%c0_113, %c0_114] : memref<1x64xf32, #tpu.memory_space<vmem>>, vector<1x64xf32>
    %247 = vector.broadcast %246 : vector<1x64xf32> to vector<128x64xf32>
    %248 = arith.mulf %245, %247 : vector<128x64xf32>
    %c0_115 = arith.constant 0 : index
    %c0_116 = arith.constant 0 : index
    %249 = vector.load %arg20[%c0_115, %c0_116] : memref<1x64xf32, #tpu.memory_space<vmem>>, vector<1x64xf32>
    %250 = vector.broadcast %249 : vector<1x64xf32> to vector<128x64xf32>
    %251 = arith.addf %248, %250 : vector<128x64xf32>
    %252 = arith.negf %227 : vector<128x64xf32>
    %253 = math.exp %252 : vector<128x64xf32>
    %cst_117 = arith.constant 1.000000e+00 : f32
    %254 = vector.broadcast %cst_117 : f32 to vector<128x64xf32>
    %255 = arith.addf %254, %253 : vector<128x64xf32>
    %256 = arith.divf %254, %255 : vector<128x64xf32>
    %257 = arith.mulf %227, %256 : vector<128x64xf32>
    %c0_118 = arith.constant 0 : index
    %c0_119 = arith.constant 0 : index
    %258 = vector.load %arg23[%c0_118, %c0_119] : memref<64x128xf32, #tpu.memory_space<vmem>>, vector<64x128xf32>
    %cst_120 = arith.constant dense<0.000000e+00> : vector<128x128xf32>
    %259 = tpu.matmul %257, %258, %cst_120 {dimension_numbers = #tpu.dot_dimension_numbers<[1], [0], [0], [1], [0, 0, 1, 1], [], []>} : vector<128x64xf32>, vector<64x128xf32>, vector<128x128xf32> -> vector<128x128xf32>
    %260 = tpu.concatenate %251, %251, %251, %251, %251, %251, %251, %251 in 1 : vector<128x64xf32>, vector<128x64xf32>, vector<128x64xf32>, vector<128x64xf32>, vector<128x64xf32>, vector<128x64xf32>, vector<128x64xf32>, vector<128x64xf32> -> vector<128x512xf32>
    %c0_121 = arith.constant 0 : index
    %c0_122 = arith.constant 0 : index
    %261 = vector.load %arg21[%c0_121, %c0_122] : memref<1x512xf32, #tpu.memory_space<vmem>>, vector<1x512xf32>
    %262 = vector.broadcast %261 : vector<1x512xf32> to vector<128x512xf32>
    %263 = arith.subf %260, %262 : vector<128x512xf32>
    %cst_123 = arith.constant 3.500000e+00 : f32
    %264 = vector.broadcast %cst_123 : f32 to vector<128x512xf32>
    %265 = arith.mulf %263, %264 : vector<128x512xf32>
    %266 = arith.mulf %265, %265 : vector<128x512xf32>
    %cst_124 = arith.constant 0.000000e+00 : f32
    %267 = vector.broadcast %cst_124 : f32 to vector<128x512xf32>
    %268 = arith.subf %267, %266 : vector<128x512xf32>
    %269 = math.exp %268 : vector<128x512xf32>
    %c0_125 = arith.constant 0 : index
    %c0_126 = arith.constant 0 : index
    %270 = vector.load %arg22[%c0_125, %c0_126] : memref<512x128xf32, #tpu.memory_space<vmem>>, vector<512x128xf32>
    %cst_127 = arith.constant dense<0.000000e+00> : vector<128x128xf32>
    %271 = tpu.matmul %269, %270, %cst_127 {dimension_numbers = #tpu.dot_dimension_numbers<[1], [0], [0], [1], [0, 0, 1, 1], [], []>} : vector<128x512xf32>, vector<512x128xf32>, vector<128x128xf32> -> vector<128x128xf32>
    %272 = arith.addf %259, %271 : vector<128x128xf32>
    %c0_128 = arith.constant 0 : index
    %c0_129 = arith.constant 0 : index
    %273 = vector.load %arg24[%c0_128, %c0_129] : memref<1x128xf32, #tpu.memory_space<vmem>>, vector<1x128xf32>
    %274 = vector.broadcast %273 : vector<1x128xf32> to vector<128x128xf32>
    %275 = arith.addf %272, %274 : vector<128x128xf32>
    %c0_130 = arith.constant 0 : index
    %c0_131 = arith.constant 0 : index
    %276 = vector.load %arg25[%c0_130, %c0_131] : memref<128x128xf32, #tpu.memory_space<vmem>>, vector<128x128xf32>
    tpu.vector_store %arg25[%c0_130, %c0_131], %275 {strides = array<i32>} : memref<128x128xf32, #tpu.memory_space<vmem>>, vector<128x128xf32>,
    return
  }
  func.func @transform_0(%arg0: i32) -> (i32, i32) {
    %c0_i32 = arith.constant 0 : i32
    %c0_i32_0 = arith.constant 0 : i32
    return %arg0, %c0_i32 : i32, i32
  }
  func.func @transform_1(%arg0: i32) -> (i32, i32) {
    %c0_i32 = arith.constant 0 : i32
    %c0_i32_0 = arith.constant 0 : i32
    %c0_i32_1 = arith.constant 0 : i32
    return %c0_i32, %c0_i32_0 : i32, i32
  }
  func.func @transform_2(%arg0: i32) -> (i32, i32) {
    %c0_i32 = arith.constant 0 : i32
    %c0_i32_0 = arith.constant 0 : i32
    %c0_i32_1 = arith.constant 0 : i32
    return %c0_i32, %c0_i32_0 : i32, i32
  }
  func.func @transform_3(%arg0: i32) -> (i32, i32, i32) {
    %c0_i32 = arith.constant 0 : i32
    %c0_i32_0 = arith.constant 0 : i32
    %c0_i32_1 = arith.constant 0 : i32
    %c0_i32_2 = arith.constant 0 : i32
    return %c0_i32, %c0_i32_0, %c0_i32_1 : i32, i32, i32
  }
  func.func @transform_4(%arg0: i32) -> (i32, i32) {
    %c0_i32 = arith.constant 0 : i32
    %c0_i32_0 = arith.constant 0 : i32
    %c0_i32_1 = arith.constant 0 : i32
    return %c0_i32, %c0_i32_0 : i32, i32
  }
  func.func @transform_5(%arg0: i32) -> (i32, i32) {
    %c0_i32 = arith.constant 0 : i32
    %c0_i32_0 = arith.constant 0 : i32
    %c0_i32_1 = arith.constant 0 : i32
    return %c0_i32, %c0_i32_0 : i32, i32
  }
  func.func @transform_6(%arg0: i32) -> (i32, i32) {
    %c0_i32 = arith.constant 0 : i32
    %c0_i32_0 = arith.constant 0 : i32
    %c0_i32_1 = arith.constant 0 : i32
    return %c0_i32, %c0_i32_0 : i32, i32
  }
  func.func @transform_7(%arg0: i32) -> (i32, i32) {
    %c0_i32 = arith.constant 0 : i32
    %c0_i32_0 = arith.constant 0 : i32
    %c0_i32_1 = arith.constant 0 : i32
    return %c0_i32, %c0_i32_0 : i32, i32
  }
  func.func @transform_8(%arg0: i32) -> (i32, i32) {
    %c0_i32 = arith.constant 0 : i32
    %c0_i32_0 = arith.constant 0 : i32
    %c0_i32_1 = arith.constant 0 : i32
    return %c0_i32, %c0_i32_0 : i32, i32
  }
  func.func @transform_9(%arg0: i32) -> (i32, i32) {
    %c0_i32 = arith.constant 0 : i32
    %c0_i32_0 = arith.constant 0 : i32
    %c0_i32_1 = arith.constant 0 : i32
    return %c0_i32, %c0_i32_0 : i32, i32
  }
  func.func @transform_10(%arg0: i32) -> (i32, i32) {
    %c0_i32 = arith.constant 0 : i32
    %c0_i32_0 = arith.constant 0 : i32
    %c0_i32_1 = arith.constant 0 : i32
    return %c0_i32, %c0_i32_0 : i32, i32
  }
  func.func @transform_11(%arg0: i32) -> (i32, i32) {
    %c0_i32 = arith.constant 0 : i32
    %c0_i32_0 = arith.constant 0 : i32
    %c0_i32_1 = arith.constant 0 : i32
    return %c0_i32, %c0_i32_0 : i32, i32
  }
  func.func @transform_12(%arg0: i32) -> (i32, i32) {
    %c0_i32 = arith.constant 0 : i32
    %c0_i32_0 = arith.constant 0 : i32
    %c0_i32_1 = arith.constant 0 : i32
    return %c0_i32, %c0_i32_0 : i32, i32
  }
  func.func @transform_13(%arg0: i32) -> (i32, i32) {
    %c0_i32 = arith.constant 0 : i32
    %c0_i32_0 = arith.constant 0 : i32
    %c0_i32_1 = arith.constant 0 : i32
    return %c0_i32, %c0_i32_0 : i32, i32
  }
  func.func @transform_14(%arg0: i32) -> (i32, i32) {
    %c0_i32 = arith.constant 0 : i32
    %c0_i32_0 = arith.constant 0 : i32
    %c0_i32_1 = arith.constant 0 : i32
    return %c0_i32, %c0_i32_0 : i32, i32
  }
  func.func @transform_15(%arg0: i32) -> (i32, i32) {
    %c0_i32 = arith.constant 0 : i32
    %c0_i32_0 = arith.constant 0 : i32
    %c0_i32_1 = arith.constant 0 : i32
    return %c0_i32, %c0_i32_0 : i32, i32
  }
  func.func @transform_16(%arg0: i32) -> (i32, i32) {
    %c0_i32 = arith.constant 0 : i32
    %c0_i32_0 = arith.constant 0 : i32
    %c0_i32_1 = arith.constant 0 : i32
    return %c0_i32, %c0_i32_0 : i32, i32
  }
  func.func @transform_17(%arg0: i32) -> (i32, i32) {
    %c0_i32 = arith.constant 0 : i32
    %c0_i32_0 = arith.constant 0 : i32
    %c0_i32_1 = arith.constant 0 : i32
    return %c0_i32, %c0_i32_0 : i32, i32
  }
  func.func @transform_18(%arg0: i32) -> (i32, i32) {
    %c0_i32 = arith.constant 0 : i32
    %c0_i32_0 = arith.constant 0 : i32
    %c0_i32_1 = arith.constant 0 : i32
    return %c0_i32, %c0_i32_0 : i32, i32
  }
  func.func @transform_19(%arg0: i32) -> (i32, i32) {
    %c0_i32 = arith.constant 0 : i32
    %c0_i32_0 = arith.constant 0 : i32
    %c0_i32_1 = arith.constant 0 : i32
    return %c0_i32, %c0_i32_0 : i32, i32
  }
  func.func @transform_20(%arg0: i32) -> (i32, i32) {
    %c0_i32 = arith.constant 0 : i32
    %c0_i32_0 = arith.constant 0 : i32
    %c0_i32_1 = arith.constant 0 : i32
    return %c0_i32, %c0_i32_0 : i32, i32
  }
  func.func @transform_21(%arg0: i32) -> (i32, i32) {
    %c0_i32 = arith.constant 0 : i32
    %c0_i32_0 = arith.constant 0 : i32
    %c0_i32_1 = arith.constant 0 : i32
    return %c0_i32, %c0_i32_0 : i32, i32
  }
  func.func @transform_22(%arg0: i32) -> (i32, i32) {
    %c0_i32 = arith.constant 0 : i32
    %c0_i32_0 = arith.constant 0 : i32
    %c0_i32_1 = arith.constant 0 : i32
    return %c0_i32, %c0_i32_0 : i32, i32
  }
  func.func @transform_23(%arg0: i32) -> (i32, i32) {
    %c0_i32 = arith.constant 0 : i32
    %c0_i32_0 = arith.constant 0 : i32
    %c0_i32_1 = arith.constant 0 : i32
    return %c0_i32, %c0_i32_0 : i32, i32
  }
  func.func @transform_24(%arg0: i32) -> (i32, i32) {
    %c0_i32 = arith.constant 0 : i32
    %c0_i32_0 = arith.constant 0 : i32
    return %arg0, %c0_i32 : i32, i32
  }
}

</mosaic_0001>

<bundles_post_ra>
// kernel: tpu_custom_call.1
= control target key start
LH: loop header
LB: loop body
LE: loop exit
PB: predicated region body
PF: predicated region fallthrough
CT: control target
= control target key end

     0   :  { %s14806_s0 = inlined_call_operand.vmem [shape: f32[256,3], index: 0, kind: input, shape index: {}]   ;;  %s14807_s1 = inlined_call_operand.vmem [shape: f32[1,3], index: 1, kind: input, shape index: {}]   ;;  %s14808_s2 = inlined_call_operand.vmem [shape: f32[1,3], index: 2, kind: input, shape index: {}]   ;;  %s14809_s3 = inlined_call_operand.vmem [shape: f32[8,3,64], index: 3, kind: input, shape index: {}]   ;;  %s14810_s4 = inlined_call_operand.vmem [shape: f32[3,64], index: 4, kind: input, shape index: {}]   ;;  %s14811_s5 = inlined_call_operand.vmem [shape: f32[1,64], index: 5, kind: input, shape index: {}]   ;;  %s14812_s6 = inlined_call_operand.vmem [shape: f32[1,64], index: 6, kind: input, shape index: {}]   ;;  %s14813_s7 = inlined_call_operand.vmem [shape: f32[1,64], index: 7, kind: input, shape index: {}]   ;;  %s14814_s8 = inlined_call_operand.vmem [shape: f32[1,512], index: 8, kind: input, shape index: {}]   ;;  %s14815_s9 = inlined_call_operand.vmem [shape: f32[512,64], index: 9, kind: input, shape index: {}]   ;;  %s14816_s10 = inlined_call_operand.vmem [shape: f32[64,64], index: 10, kind: input, shape index: {}]   ;;  %s14817_s11 = inlined_call_operand.vmem [shape: f32[1,64], index: 11, kind: input, shape index: {}]   ;;  %s14818_s12 = inlined_call_operand.vmem [shape: f32[1,64], index: 12, kind: input, shape index: {}]   ;;  %s14819_s13 = inlined_call_operand.vmem [shape: f32[1,64], index: 13, kind: input, shape index: {}]   ;;  %s14820_s14 = inlined_call_operand.vmem [shape: f32[1,512], index: 14, kind: input, shape index: {}]   ;;  %s14821_s15 = inlined_call_operand.vmem [shape: f32[512,64], index: 15, kind: input, shape index: {}]   ;;  %s14822_s16 = inlined_call_operand.vmem [shape: f32[64,64], index: 16, kind: input, shape index: {}]   ;;  %s14823_s17 = inlined_call_operand.vmem [shape: f32[1,64], index: 17, kind: input, shape index: {}]   ;;  %s14824_s18 = inlined_call_operand.vmem [shape: f32[1,64], index: 18, kind: input, shape index: {}]   ;;  %s14825_s19 = inlined_call_operand.vmem [shape: f32[1,64], index: 19, kind: input, shape index: {}]   ;;  %s14826_s20 = inlined_call_operand.vmem [shape: f32[1,512], index: 20, kind: input, shape index: {}]   ;;  %s14827_s21 = inlined_call_operand.vmem [shape: f32[512,128], index: 21, kind: input, shape index: {}]   ;;  %s14828_s22 = inlined_call_operand.vmem [shape: f32[64,128], index: 22, kind: input, shape index: {}]   ;;  %s14829_s23 = inlined_call_operand.vmem [shape: f32[1,128], index: 23, kind: input, shape index: {}]   ;;  %s14830_s24 = inlined_call_operand.hbm [shape: f32[256,128], index: 24, kind: output, shape index: {}]  }
   0x1   :  { %14869 = sst [smem:[#allocation22_spill]] %s14806_s0 }
   0x2   :  { %14870 = sst [smem:[#allocation23_spill]] %s14807_s1 }
   0x3   :  { %14871 = sst [smem:[#allocation24_spill]] %s14808_s2 }
   0x4   :  { %14872 = sst [smem:[#allocation25_spill]] %s14809_s3 }
   0x5   :  { %14873 = sst [smem:[#allocation26_spill]] %s14810_s4 }
   0x6   :  { %14874 = sst [smem:[#allocation27_spill]] %s14811_s5 }
   0x7   :  { %14875 = sst [smem:[#allocation28_spill]] %s14812_s6 }
   0x8   :  { %14876 = sst [smem:[#allocation29_spill]] %s14813_s7 }
   0x9   :  { %14877 = sst [smem:[#allocation30_spill]] %s14814_s8 }
   0xa   :  { %14878 = sst [smem:[#allocation31_spill]] %s14815_s9 }
   0xb   :  { %14879 = sst [smem:[#allocation32_spill]] %s14816_s10 }
   0xc   :  { %29 = vsyncpa [#allocation3], 0 }
   0xd   :  { %31 = vsyncpa [#allocation3 + $0x1], 0  ;;  %s11317_s5 = smov 0   ;;  %s11319_s26 = smov 0  }
   0xe   :  { %s11321_s27 = smov 0   ;;  %s11323_s28 = smov 0  }
   0xf LB: > { %14880 = sst [smem:[#allocation5_spill]] %s11174_s5  ;;  %s11338_s6 = sadd.s32 4294967295, %s11186_s28   ;;  %s11186_s28 = sphi %s11323_s28, %s14988_s28   ;;  %s11182_s27 = sphi %s11321_s27, %s14990_s27   ;;  %s11178_s26 = sphi %s11319_s26, %s14992_s26   ;;  %s11174_s5 = sphi %s11317_s5, %s14991_s5  }
  0x10   : > { %14881 = sst [smem:[#allocation6_spill]] %s11182_s27  ;;  %s8191_s2 = sadd.s32 4294967294, %s11186_s28  }
  0x11   : > { %s11342_s29 = sadd.s32 1, %s11186_s28   ;;  %s553_s0 = sadd.s32 1, %s11182_s27 }
  0x12   : > { %14882 = sst [smem:[#allocation7_spill]] %s11342_s29  ;;  %s550_s7 = ssub.s32 %s11186_s28, %s11342_s29 }
  0x13   : > { %p563_p0 = scmp.ne.s32.totalorder %s11182_s27, %s11178_s26  ;;  %p551_p1 = scmp.eq.s32.totalorder %s550_s7, 0 }
  0x14   : > { %p564_p2 = scmp.eq.s32.totalorder %s11338_s6, 1  ;;  %p569_p3 = scmp.ne.s32.totalorder %s11178_s26, %s11174_s5 }
  0x15   : > { %p570_p4 = scmp.eq.s32.totalorder %s8191_s2, 1  ;;  %p8194_p7 = scmp.ge.s32.totalorder %s11186_s28, 1 }
  0x16   : > { %s11353_s30 = scalar_select %p551_p1, %s11182_s27, %s553_s0  }
  0x17   : > { %p11355_p5 = por %p564_p2, %p563_p0  ;;  %p11359_p6 = por %p570_p4, %p569_p3 }
  0x18   : > { %14883 = sst [smem:[#allocation8_spill]] %s11353_s30  ;;  %p666_p8 = scmp.lt.s32.totalorder %s11186_s28, 3 }
  0x19   : > { %s14885_s25 = scalar_select %p11359_p6, 1, 0 }
  0x1a   : > { %p667_p9 = pnand %p8194_p7, %p666_p8 }
  0x1b   : > { %14886 = sst [smem:[#allocation9_spill]] %s14885_s25 }
  0x1c   : > { %670 = sbr.rel (%p667_p9) target bundleno = 3227 (0xc9b), region = 116 }
  0x23   : > { %s8196_s8 = sshll.u32 %s11338_s6, 4  ;;  %vm755_vm0 = vcmask 23552   ;;  %s14887_s0 = sld [smem:[#allocation22_spill]]  ;;  %vm1269_vm1 = vcmask 1042432   ;;  %vm3807_vm2 = vcmask 523264  }
  0x24   : > { %p733_p10 = scmp.lt.s32.totalorder %s8196_s8, 31  ;;  %s14890_s1 = sld [smem:[#allocation25_spill]] }
  0x25   : > { %s14891_s30 = sld [smem:[#allocation26_spill]]  ;;  %s14903_s9 = sld [smem:[#allocation31_spill]] }
  0x26   : > { %s14994_s8 = smov (!%p733_p10, %s8196_s8), 31  ;;  %s14905_s2 = sld [smem:[#allocation29_spill]] }
  0x27   : > { %s8197_s4 = sshll.u32 %s14994_s8, 3  ;;  %s14907_s27 = sld [smem:[#allocation30_spill]] }
  0x28   : > { %s14911_s10 = sld [smem:[#allocation32_spill]]  ;;  %s14931_s8 = smov 64  }
  0x29   : > { %s11369_s7 = scalar_lea.vmem %s14887_s0, %s8197_s4  ;;  %s14892_s4 = sld [smem:[#allocation23_spill]] }
  0x2a   : > { %v11372_v0 = vld [vmem:[%s11369_s7] sm:$0xff]  ;;  %v11375_v1 = vld [vmem:[%s11369_s7 + $0x10] sm:$0xff]  ;;  %v11378_v2 = vld [vmem:[%s11369_s7 + $0x8] sm:$0xff]  ;;  %s14856_s0 = smov 64   ;;  %s11189_s5 = smov [#allocation2]  }
  0x2b   : > { %v756_v3 = vsel %vm755_vm0, %v11372_v0, 0.0  ;;  %v762_v4 = vsel %vm755_vm0, %v11375_v1, 0.0  ;;  %v11385_v5 = vld [vmem:[%s11369_s7 + $0x18] sm:$0xff]  ;;  %v759_v6 = vsel %vm755_vm0, %v11378_v2, 0.0  ;;  %v11392_v8 = vld [vmem:[%s11369_s7 + $0x20] sm:$0xff]  ;;  %v11395_v9 = vld [vmem:[%s11369_s7 + $0x28] sm:$0xff] }
  0x2c   : > { %757 = vadd.xlane.f32.xlu0 %v756_v3  ;;  %763 = vadd.xlane.f32.xlu1 %v762_v4  ;;  %v765_v7 = vsel %vm755_vm0, %v11385_v5, 0.0  ;;  %v768_v10 = vsel %vm755_vm0, %v11392_v8, 0.0  ;;  %v771_v11 = vsel %vm755_vm0, %v11395_v9, 0.0  ;;  %v11402_v12 = vld [vmem:[%s11369_s7 + $0x30] sm:$0xff]  ;;  %v11405_v13 = vld [vmem:[%s11369_s7 + $0x38] sm:$0xff]  ;;  %v11412_v16 = vld [vmem:[%s11369_s7 + $0x40] sm:$0xff] }
  0x2d   : > { %14888 = vst [vmem:[#allocation10_spill] sm:$0xff] %v11405_v13  ;;  %v774_v14 = vsel %vm755_vm0, %v11402_v12, 0.0  ;;  %v777_v15 = vsel %vm755_vm0, %v11405_v13, 0.0  ;;  %14889 = vst [vmem:[#allocation11_spill] sm:$0xff] %v11412_v16  ;;  %v11415_v17 = vld [vmem:[%s11369_s7 + $0x48] sm:$0xff]  ;;  %v780_v18 = vsel %vm755_vm0, %v11412_v16, 0.0 }
  0x2e   : > { %v783_v19 = vsel %vm755_vm0, %v11415_v17, 0.0  ;;  %v11422_v20 = vld [vmem:[%s11369_s7 + $0x50] sm:$0xff]  ;;  %v11425_v21 = vld [vmem:[%s11369_s7 + $0x58] sm:$0xff]  ;;  %v11432_v24 = vld [vmem:[%s11369_s7 + $0x60] sm:$0xff] }
  0x2f   : > { %v786_v22 = vsel %vm755_vm0, %v11422_v20, 0.0  ;;  %v789_v23 = vsel %vm755_vm0, %v11425_v21, 0.0  ;;  %v11435_v25 = vld [vmem:[%s11369_s7 + $0x68] sm:$0xff]  ;;  %v792_v26 = vsel %vm755_vm0, %v11432_v24, 0.0  ;;  %v11442_v28 = vld [vmem:[%s11369_s7 + $0x70] sm:$0xff]  ;;  %v11445_v29 = vld [vmem:[%s11369_s7 + $0x78] sm:$0xff] }
  0x30   : > { %760 = vadd.xlane.f32.xlu0 %v759_v6  ;;  %766 = vadd.xlane.f32.xlu1 %v765_v7  ;;  %v795_v27 = vsel %vm755_vm0, %v11435_v25, 0.0  ;;  %v798_v30 = vsel %vm755_vm0, %v11442_v28, 0.0  ;;  %v801_v31 = vsel %vm755_vm0, %v11445_v29, 0.0 }
  0x34   : > { %769 = vadd.xlane.f32.xlu0 %v768_v10  ;;  %772 = vadd.xlane.f32.xlu1 %v771_v11 }
  0x38   : > { %775 = vadd.xlane.f32.xlu0 %v774_v14  ;;  %778 = vadd.xlane.f32.xlu1 %v777_v15 }
  0x3c   : > { %781 = vadd.xlane.f32.xlu0 %v780_v18  ;;  %784 = vadd.xlane.f32.xlu1 %v783_v19 }
  0x40   : > { %787 = vadd.xlane.f32.xlu0 %v786_v22  ;;  %790 = vadd.xlane.f32.xlu1 %v789_v23 }
  0x44   : > { %793 = vadd.xlane.f32.xlu0 %v792_v26  ;;  %796 = vadd.xlane.f32.xlu1 %v795_v27 }
  0x48   : > { %799 = vadd.xlane.f32.xlu0 %v798_v30  ;;  %802 = vadd.xlane.f32.xlu1 %v801_v31 }
  0xb9   : > { %v758_v32 = vpop.xlane.xlu0 %757  ;;  %v764_v33 = vpop.xlane.xlu1 %763 }
  0xba   : > { %v805_v34 = vmul.f32 0.33333334, %v758_v32  ;;  %v807_v35 = vmul.f32 0.33333334, %v764_v33 }
  0xbc   : > { %v11452_v36 = vsub.f32 %v11372_v0, %v805_v34  ;;  %v11455_v37 = vsub.f32 %v11375_v1, %v807_v35 }
  0xbd   : > { %v761_v38 = vpop.xlane.xlu0 %760  ;;  %v767_v39 = vpop.xlane.xlu1 %766 }
  0xbe   : > { %v806_v40 = vmul.f32 0.33333334, %v761_v38  ;;  %v808_v41 = vmul.f32 0.33333334, %v767_v39  ;;  %v837_v42 = vmul.f32 %v11452_v36, %v11452_v36  ;;  %v839_v43 = vmul.f32 %v11455_v37, %v11455_v37 }
  0xc0   : > { %v11462_v44 = vsub.f32 %v11378_v2, %v806_v40  ;;  %v11465_v45 = vsub.f32 %v11385_v5, %v808_v41  ;;  %v853_v46 = vsel %vm755_vm0, %v837_v42, 0.0  ;;  %v859_v49 = vsel %vm755_vm0, %v839_v43, 0.0 }
  0xc1   : > { %854 = vadd.xlane.f32.xlu0 %v853_v46  ;;  %v770_v47 = vpop.xlane.xlu0 %769  ;;  %v773_v48 = vpop.xlane.xlu1 %772 }
  0xc2   : > { %v809_v50 = vmul.f32 0.33333334, %v770_v47  ;;  %v810_v51 = vmul.f32 0.33333334, %v773_v48  ;;  %v838_v52 = vmul.f32 %v11462_v44, %v11462_v44  ;;  %v840_v53 = vmul.f32 %v11465_v45, %v11465_v45 }
  0xc4   : > { %v11474_v54 = vsub.f32 %v11392_v8, %v809_v50  ;;  %v11477_v55 = vsub.f32 %v11395_v9, %v810_v51  ;;  %v856_v56 = vsel %vm755_vm0, %v838_v52, 0.0  ;;  %v862_v59 = vsel %vm755_vm0, %v840_v53, 0.0 }
  0xc5   : > { %860 = vadd.xlane.f32.xlu0 %v859_v49  ;;  %857 = vadd.xlane.f32.xlu1 %v856_v56  ;;  %v776_v57 = vpop.xlane.xlu0 %775  ;;  %v779_v58 = vpop.xlane.xlu1 %778 }
  0xc6   : > { %v811_v60 = vmul.f32 0.33333334, %v776_v57  ;;  %v812_v61 = vmul.f32 0.33333334, %v779_v58  ;;  %v841_v62 = vmul.f32 %v11474_v54, %v11474_v54  ;;  %v842_v63 = vmul.f32 %v11477_v55, %v11477_v55 }
  0xc8   : > { %v11486_v3 = vsub.f32 %v11402_v12, %v811_v60  ;;  %v11489_v4 = vsub.f32 %v11405_v13, %v812_v61  ;;  %v865_v6 = vsel %vm755_vm0, %v841_v62, 0.0  ;;  %v868_v11 = vsel %vm755_vm0, %v842_v63, 0.0 }
  0xc9   : > { %863 = vadd.xlane.f32.xlu1 %v862_v59  ;;  %866 = vadd.xlane.f32.xlu0 %v865_v6  ;;  %v782_v7 = vpop.xlane.xlu0 %781  ;;  %v785_v10 = vpop.xlane.xlu1 %784 }
  0xca   : > { %v813_v14 = vmul.f32 0.33333334, %v782_v7  ;;  %v814_v15 = vmul.f32 0.33333334, %v785_v10  ;;  %v843_v18 = vmul.f32 %v11486_v3, %v11486_v3  ;;  %v844_v19 = vmul.f32 %v11489_v4, %v11489_v4 }
  0xcc   : > { %v11498_v22 = vsub.f32 %v11412_v16, %v813_v14  ;;  %v11501_v23 = vsub.f32 %v11415_v17, %v814_v15  ;;  %v871_v26 = vsel %vm755_vm0, %v843_v18, 0.0  ;;  %v874_v31 = vsel %vm755_vm0, %v844_v19, 0.0  ;;  %v1220_v18 = vld [vmem:[%s14890_s1] sm:$0x7] }
  0xcd   : > { %869 = vadd.xlane.f32.xlu1 %v868_v11  ;;  %872 = vadd.xlane.f32.xlu0 %v871_v26  ;;  %v788_v27 = vpop.xlane.xlu0 %787  ;;  %v791_v30 = vpop.xlane.xlu1 %790  ;;  %v11554_v19 = vld [vmem:[%s14891_s30] sm:$0x7]  ;;  %s14893_s30 = sld [smem:[#allocation24_spill]] }
  0xce   : > { %v815_v32 = vmul.f32 0.33333334, %v788_v27  ;;  %v816_v33 = vmul.f32 0.33333334, %v791_v30  ;;  %v845_v34 = vmul.f32 %v11498_v22, %v11498_v22  ;;  %v846_v35 = vmul.f32 %v11501_v23, %v11501_v23  ;;  %9321 = vmatprep.subr.msk.mxu0 %vm1269_vm1, %v1220_v18 }
  0xcf   : > { %9322 = vmatpush3.msk.msra.mxu0 %vm1269_vm1, %v1220_v18 }
  0xd0   : > { %v11510_v38 = vsub.f32 %v11422_v20, %v815_v32  ;;  %v11513_v39 = vsub.f32 %v11425_v21, %v816_v33  ;;  %v877_v40 = vsel %vm755_vm0, %v845_v34, 0.0  ;;  %v880_v43 = vsel %vm755_vm0, %v846_v35, 0.0  ;;  %9347 = vmatprep.subr.msk.mxu0 %vm1269_vm1, %v11554_v19 }
  0xd1   : > { %875 = vadd.xlane.f32.xlu1 %v874_v31  ;;  %878 = vadd.xlane.f32.xlu0 %v877_v40  ;;  %v794_v41 = vpop.xlane.xlu0 %793  ;;  %v797_v42 = vpop.xlane.xlu1 %796 }
  0xd2   : > { %v817_v46 = vmul.f32 0.33333334, %v794_v41  ;;  %v818_v47 = vmul.f32 0.33333334, %v797_v42  ;;  %v847_v48 = vmul.f32 %v11510_v38, %v11510_v38  ;;  %v848_v49 = vmul.f32 %v11513_v39, %v11513_v39 }
  0xd4   : > { %v11522_v50 = vsub.f32 %v11432_v24, %v817_v46  ;;  %v11525_v51 = vsub.f32 %v11435_v25, %v818_v47  ;;  %v883_v52 = vsel %vm755_vm0, %v847_v48, 0.0  ;;  %v886_v57 = vsel %vm755_vm0, %v848_v49, 0.0 }
  0xd5   : > { %881 = vadd.xlane.f32.xlu1 %v880_v43  ;;  %884 = vadd.xlane.f32.xlu0 %v883_v52  ;;  %v800_v53 = vpop.xlane.xlu0 %799  ;;  %v803_v56 = vpop.xlane.xlu1 %802 }
  0xd6   : > { %v819_v58 = vmul.f32 0.33333334, %v800_v53  ;;  %v820_v59 = vmul.f32 0.33333334, %v803_v56  ;;  %v849_v60 = vmul.f32 %v11522_v50, %v11522_v50  ;;  %v850_v61 = vmul.f32 %v11525_v51, %v11525_v51 }
  0xd8   : > { %v11534_v62 = vsub.f32 %v11442_v28, %v819_v58  ;;  %v11537_v63 = vsub.f32 %v11445_v29, %v820_v59  ;;  %v889_v6 = vsel %vm755_vm0, %v849_v60, 0.0  ;;  %v892_v7 = vsel %vm755_vm0, %v850_v61, 0.0 }
  0xd9   : > { %887 = vadd.xlane.f32.xlu1 %v886_v57  ;;  %890 = vadd.xlane.f32.xlu0 %v889_v6 }
  0xda   : > { %v851_v10 = vmul.f32 %v11534_v62, %v11534_v62  ;;  %v852_v11 = vmul.f32 %v11537_v63, %v11537_v63 }
  0xdc   : > { %v895_v14 = vsel %vm755_vm0, %v851_v10, 0.0  ;;  %v898_v15 = vsel %vm755_vm0, %v852_v11, 0.0 }
  0xdd   : > { %893 = vadd.xlane.f32.xlu1 %v892_v7  ;;  %896 = vadd.xlane.f32.xlu0 %v895_v14 }
  0xe1   : > { %899 = vadd.xlane.f32.xlu1 %v898_v15 }
 0x14e   : > { %v855_v26 = vpop.xlane.xlu0 %854 }
 0x14f   : > { %v901_v27 = vmul.f32 0.33333334, %v855_v26  ;;  %v11563_v26 = vld [vmem:[%s14892_s4] ss:$0 sm:$0xff] }
 0x151   : > { %v917_v32 = vadd.f32 1e-05, %v901_v27 }
 0x152   : > { %v858_v30 = vpop.xlane.xlu1 %857  ;;  %v861_v31 = vpop.xlane.xlu0 %860 }
 0x153   : > { %v902_v33 = vmul.f32 0.33333334, %v858_v30  ;;  %v903_v34 = vmul.f32 0.33333334, %v861_v31  ;;  %10093 = vrsqrt.f32 %v917_v32  ;;  %v8200_v31 = vmul.f32 -1.442695, %v11372_v0 }
 0x155   : > { %v918_v43 = vadd.f32 1e-05, %v902_v33  ;;  %v919_v46 = vadd.f32 1e-05, %v903_v34  ;;  %v8202_v33 = vmul.f32 -1.442695, %v11375_v1 }
 0x156   : > { %v864_v35 = vpop.xlane.xlu1 %863  ;;  %v867_v40 = vpop.xlane.xlu0 %866 }
 0x157   : > { %v904_v41 = vmul.f32 0.33333334, %v864_v35  ;;  %v905_v42 = vmul.f32 0.33333334, %v867_v40  ;;  %10095 = vrsqrt.f32 %v918_v43 }
 0x158   : > { %10097 = vrsqrt.f32 %v919_v46  ;;  %v8203_v46 = vmul.f32 -1.442695, %v11385_v5 }
 0x159   : > { %v920_v49 = vadd.f32 1e-05, %v904_v41  ;;  %v921_v56 = vadd.f32 1e-05, %v905_v42  ;;  %v11572_v41 = vld [vmem:[%s14893_s30] ss:$0 sm:$0xff] }
 0x15a   : > { %v870_v47 = vpop.xlane.xlu1 %869  ;;  %v873_v48 = vpop.xlane.xlu0 %872  ;;  %s14904_s30 = sld [smem:[#allocation28_spill]] }
 0x15b   : > { %v906_v52 = vmul.f32 0.33333334, %v870_v47  ;;  %v907_v53 = vmul.f32 0.33333334, %v873_v48  ;;  %10099 = vrsqrt.f32 %v920_v49  ;;  %v8204_v47 = vmul.f32 -1.442695, %v11392_v8 }
 0x15c   : > { %10101 = vrsqrt.f32 %v921_v56 }
 0x15d   : > { %v922_v57 = vadd.f32 1e-05, %v906_v52  ;;  %v923_v60 = vadd.f32 1e-05, %v907_v53  ;;  %v10094_v7 = vpop.eup %10093 }
 0x15e   : > { %v876_v58 = vpop.xlane.xlu1 %875  ;;  %v879_v59 = vpop.xlane.xlu0 %878  ;;  %v949_v18 = vmul.f32 %v10094_v7, %v11452_v36  ;;  %v8201_v36 = vmul.f32 -1.442695, %v11378_v2 }
 0x15f   : > { %v908_v61 = vmul.f32 0.33333334, %v876_v58  ;;  %v909_v6 = vmul.f32 0.33333334, %v879_v59  ;;  %10103 = vrsqrt.f32 %v922_v57  ;;  %v8205_v57 = vmul.f32 -1.442695, %v11395_v9 }
 0x160   : > { %10105 = vrsqrt.f32 %v923_v60  ;;  %v972_v34 = vmul.f32 %v11563_v26, %v949_v18  ;;  %v8206_v60 = vmul.f32 -1.442695, %v11402_v12 }
 0x161   : > { %v924_v10 = vadd.f32 1e-05, %v908_v61  ;;  %v925_v11 = vadd.f32 1e-05, %v909_v6  ;;  %v10096_v30 = vpop.eup %10095  ;;  %v11586_v61 = vmul.f32 -1.442695, %v11405_v13 }
 0x162   : > { %v882_v14 = vpop.xlane.xlu1 %881  ;;  %v10098_v32 = vpop.eup %10097  ;;  %v11577_v49 = vadd.f32 %v11572_v41, %v972_v34  ;;  %v950_v52 = vmul.f32 %v10096_v30, %v11462_v44  ;;  %v11589_v44 = vmul.f32 -1.442695, %v11412_v16  ;;  %v11597_v30 = vmul.f32 -1.442695, %v11415_v17 }
 0x163   : > { %v910_v15 = vmul.f32 0.33333334, %v882_v14  ;;  %10107 = vrsqrt.f32 %v924_v10  ;;  %v885_v35 = vpop.xlane.xlu0 %884  ;;  %v951_v53 = vmul.f32 %v10098_v32, %v11455_v37 }
 0x164   : > { %10109 = vrsqrt.f32 %v925_v11  ;;  %v911_v10 = vmul.f32 0.33333334, %v885_v35  ;;  %v8216_v18 = vadd.f32 1.0, %v11577_v49 }
 0x165   : > { %v926_v27 = vadd.f32 1e-05, %v910_v15  ;;  %v10100_v40 = vpop.eup %10099 }
 0x166   : > { %v888_v42 = vpop.xlane.xlu1 %887  ;;  %v10102_v43 = vpop.eup %10101  ;;  %v952_v58 = vmul.f32 %v10100_v40, %v11465_v45  ;;  %v973_v45 = vmul.f32 %v11563_v26, %v950_v52 }
 0x167   : > { %10111 = vrsqrt.f32 %v926_v27  ;;  %v953_v59 = vmul.f32 %v10102_v43, %v11474_v54  ;;  %v891_v6 = vpop.xlane.xlu0 %890  ;;  %v974_v54 = vmul.f32 %v11563_v26, %v951_v53  ;;  %v912_v34 = vmul.f32 0.33333334, %v888_v42 }
 0x168   : > { %10113 = vpow2.f32 %v8200_v31  ;;  %v975_v31 = vmul.f32 %v11563_v26, %v952_v58  ;;  %v11607_v17 = vadd.f32 %v11572_v41, %v973_v45 }
 0x169   : > { %v10104_v48 = vpop.eup %10103  ;;  %10115 = vpow2.f32 %v8202_v33  ;;  %v11610_v43 = vadd.f32 %v11572_v41, %v974_v54  ;;  %v928_v58 = vadd.f32 1e-05, %v912_v34 }
 0x16a   : > { %v10106_v56 = vpop.eup %10105  ;;  %10117 = vpow2.f32 %v8201_v36  ;;  %v954_v37 = vmul.f32 %v10104_v48, %v11477_v55  ;;  %v894_v11 = vpop.xlane.xlu1 %893  ;;  %v976_v55 = vmul.f32 %v11563_v26, %v953_v59  ;;  %v927_v36 = vadd.f32 1e-05, %v911_v10 }
 0x16b   : > { %10119 = vpow2.f32 %v8203_v46  ;;  %v955_v15 = vmul.f32 %v10106_v56, %v11486_v3  ;;  %v1140_v48 = vmul.f32 3.5, %v8216_v18  ;;  %v913_v59 = vmul.f32 0.33333334, %v891_v6 }
 0x16c   : > { %10121 = vpow2.f32 %v8204_v47  ;;  %v977_v32 = vmul.f32 %v11563_v26, %v954_v37  ;;  %v897_v47 = vpop.xlane.xlu0 %896  ;;  %v8218_v34 = vadd.f32 1.0, %v11610_v43 }
 0x16d   : > { %v10108_v7 = vpop.eup %10107  ;;  %10123 = vpow2.f32 %v8205_v57  ;;  %v978_v35 = vmul.f32 %v11563_v26, %v955_v15  ;;  %v915_v45 = vmul.f32 0.33333334, %v897_v47  ;;  %v929_v18 = vadd.f32 1e-05, %v913_v59 }
 0x16e   : > { %v10110_v14 = vpop.eup %10109  ;;  %10125 = vpow2.f32 %v8206_v60  ;;  %v956_v33 = vmul.f32 %v10108_v7, %v11489_v4  ;;  %v11616_v4 = vadd.f32 %v11572_v41, %v975_v31  ;;  %v900_v53 = vpop.xlane.xlu1 %899  ;;  %v11626_v57 = vadd.f32 %v11572_v41, %v977_v32 }
 0x16f   : > { %v957_v3 = vmul.f32 %v10110_v14, %v11498_v22  ;;  %v11619_v22 = vadd.f32 %v11572_v41, %v976_v55  ;;  %v914_v60 = vmul.f32 0.33333334, %v894_v11  ;;  %v11631_v37 = vadd.f32 %v11572_v41, %v978_v35 }
 0x170   : > { %v979_v46 = vmul.f32 %v11563_v26, %v956_v33  ;;  %14894 = vst [vmem:[#allocation12_spill] sm:$0xff] %v11626_v57  ;;  %v916_v11 = vmul.f32 0.33333334, %v900_v53  ;;  %10127 = vrsqrt.f32 %v927_v36  ;;  %v931_v31 = vadd.f32 1e-05, %v915_v45 }
 0x171   : > { %v10112_v27 = vpop.eup %10111  ;;  %v930_v6 = vadd.f32 1e-05, %v914_v60  ;;  %v1156_v55 = vmul.f32 %v1140_v48, %v1140_v48  ;;  %v8217_v32 = vadd.f32 1.0, %v11607_v17  ;;  %10129 = vrsqrt.f32 %v928_v58 }
 0x172   : > { %v958_v40 = vmul.f32 %v10112_v27, %v11501_v23  ;;  %v11613_v52 = vpop.eup %10113  ;;  %v980_v23 = vmul.f32 %v11563_v26, %v957_v3  ;;  %v11634_v10 = vadd.f32 %v11572_v41, %v979_v46  ;;  %v932_v33 = vadd.f32 1e-05, %v916_v11 }
 0x173   : > { %v11623_v56 = vpop.eup %10115  ;;  %v8219_v35 = vadd.f32 1.0, %v11616_v4  ;;  %10131 = vrsqrt.f32 %v929_v18  ;;  %v1141_v46 = vmul.f32 3.5, %v8217_v32  ;;  %v8220_v47 = vadd.f32 1.0, %v11619_v22 }
 0x174   : > { %v981_v42 = vmul.f32 %v11563_v26, %v958_v40  ;;  %v11628_v7 = vpop.eup %10117  ;;  %v11637_v14 = vadd.f32 %v11572_v41, %v980_v23  ;;  %v1172_v40 = vsub.f32 0.0, %v1156_v55  ;;  %10133 = vrsqrt.f32 %v930_v6 }
 0x175   : > { %v11639_v54 = vpop.eup %10119  ;;  %v1142_v36 = vmul.f32 3.5, %v8218_v34  ;;  %v1143_v48 = vmul.f32 3.5, %v8219_v35  ;;  %10135 = vrsqrt.f32 %v931_v31  ;;  %v1157_v58 = vmul.f32 %v1141_v46, %v1141_v46 }
 0x176   : > { %v11642_v15 = vadd.f32 %v11572_v41, %v981_v42  ;;  %v11644_v27 = vpop.eup %10121  ;;  %v8221_v42 = vadd.f32 1.0, %v11626_v57  ;;  %v1188_v53 = vmul.f32 1.442695, %v1172_v40  ;;  %v1144_v59 = vmul.f32 3.5, %v8220_v47 }
 0x177   : > { %v11649_v3 = vpop.eup %10123  ;;  %10137 = vrsqrt.f32 %v932_v33  ;;  %v1158_v60 = vmul.f32 %v1142_v36, %v1142_v36  ;;  %v1159_v45 = vmul.f32 %v1143_v48, %v1143_v48  ;;  %v1173_v18 = vsub.f32 0.0, %v1157_v58 }
 0x178   : > { %v11652_v23 = vpop.eup %10125  ;;  %v1145_v11 = vmul.f32 3.5, %v8221_v42  ;;  %10139 = vpow2.f32 %v1188_v53  ;;  %v1160_v55 = vmul.f32 %v1144_v59, %v1144_v59  ;;  %v8222_v32 = vadd.f32 1.0, %v11631_v37 }
 0x179   : > { %v1174_v16 = vsub.f32 0.0, %v1158_v60  ;;  %v1175_v13 = vsub.f32 0.0, %v1159_v45  ;;  %v8223_v34 = vadd.f32 1.0, %v11634_v10  ;;  %v1190_v35 = vmul.f32 1.442695, %v1173_v18 }
 0x17a   : > { %v1161_v6 = vmul.f32 %v1145_v11, %v1145_v11  ;;  %v1176_v57 = vsub.f32 0.0, %v1160_v55  ;;  %v1146_v31 = vmul.f32 3.5, %v8222_v32  ;;  %v8224_v40 = vadd.f32 1.0, %v11637_v14  ;;  %v10128_v48 = vpop.eup %10127 }
 0x17b   : > { %v1192_v46 = vmul.f32 1.442695, %v1174_v16  ;;  %v1194_v33 = vmul.f32 1.442695, %v1175_v13  ;;  %v1147_v36 = vmul.f32 3.5, %v8223_v34  ;;  %10141 = vpow2.f32 %v1190_v35  ;;  %v10130_v59 = vpop.eup %10129 }
 0x17c   : > { %v1177_v47 = vsub.f32 0.0, %v1161_v6  ;;  %v1196_v42 = vmul.f32 1.442695, %v1176_v57  ;;  %v1162_v53 = vmul.f32 %v1146_v31, %v1146_v31  ;;  %v1148_v58 = vmul.f32 3.5, %v8224_v40 }
 0x17d   : > { %v959_v60 = vmul.f32 %v10128_v48, %v11510_v38  ;;  %10143 = vpow2.f32 %v1192_v46  ;;  %v1163_v11 = vmul.f32 %v1147_v36, %v1147_v36  ;;  %v10132_v18 = vpop.eup %10131  ;;  %v960_v55 = vmul.f32 %v10130_v59, %v11513_v39 }
 0x17e   : > { %v1198_v45 = vmul.f32 1.442695, %v1177_v47  ;;  %10145 = vpow2.f32 %v1194_v33  ;;  %v1178_v32 = vsub.f32 0.0, %v1162_v53  ;;  %v1164_v16 = vmul.f32 %v1148_v58, %v1148_v58  ;;  %v10134_v13 = vpop.eup %10133 }
 0x17f   : > { %v982_v6 = vmul.f32 %v11563_v26, %v959_v60  ;;  %v961_v34 = vmul.f32 %v10132_v18, %v11522_v50  ;;  %10147 = vpow2.f32 %v1196_v42  ;;  %v1179_v57 = vsub.f32 0.0, %v1163_v11  ;;  %v10136_v35 = vpop.eup %10135 }
 0x180   : > { %v983_v31 = vmul.f32 %v11563_v26, %v960_v55  ;;  %v962_v38 = vmul.f32 %v10134_v13, %v11525_v51  ;;  %10149 = vpow2.f32 %v1198_v45  ;;  %v1200_v40 = vmul.f32 1.442695, %v1178_v32 }
 0x181   : > { %v10138_v46 = vpop.eup %10137  ;;  %v11665_v39 = vadd.f32 %v11572_v41, %v982_v6  ;;  %v984_v33 = vmul.f32 %v11563_v26, %v961_v34  ;;  %v963_v47 = vmul.f32 %v10136_v35, %v11534_v62  ;;  %v1202_v36 = vmul.f32 1.442695, %v1179_v57  ;;  %v11697_v57 = vld [vmem:[%s14890_s1 + $0x4] sm:$0x7] }
 0x182   : > { %v10140_v48 = vpop.eup %10139  ;;  %v11670_v50 = vadd.f32 %v11572_v41, %v983_v31  ;;  %v985_v42 = vmul.f32 %v11563_v26, %v962_v38  ;;  %v964_v53 = vmul.f32 %v10138_v46, %v11537_v63  ;;  %10151 = vpow2.f32 %v1200_v40 }
 0x183   : > { %v11675_v51 = vadd.f32 %v11572_v41, %v984_v33  ;;  %v986_v58 = vmul.f32 %v11563_v26, %v963_v47  ;;  %9323 = vmatprep.mubr.msk.f32.mxu0 %vm755_vm0, %v10140_v48  ;;  %10153 = vpow2.f32 %v1202_v36  ;;  %v1180_v59 = vsub.f32 0.0, %v1164_v16 }
 0x184   : > { %v11680_v62 = vadd.f32 %v11572_v41, %v985_v42  ;;  %v987_v60 = vmul.f32 %v11563_v26, %v964_v53  ;;  %v8225_v45 = vadd.f32 1.0, %v11642_v15  ;;  %v8226_v11 = vadd.f32 1.0, %v11665_v39 }
 0x185   : > { %v11686_v63 = vadd.f32 %v11572_v41, %v986_v58  ;;  %v1204_v18 = vmul.f32 1.442695, %v1180_v59  ;;  %v8227_v55 = vadd.f32 1.0, %v11670_v50  ;;  %v8228_v32 = vadd.f32 1.0, %v11675_v51  ;;  %v10142_v13 = vpop.eup %10141 }
 0x186   : > { %v11691_v16 = vadd.f32 %v11572_v41, %v987_v60  ;;  %v1149_v6 = vmul.f32 3.5, %v8225_v45  ;;  %v1150_v34 = vmul.f32 3.5, %v8226_v11  ;;  %v8229_v26 = vadd.f32 1.0, %v11680_v62  ;;  %9324 = vmatmul.mubr.msk.f32.vlgmr.msra.gmra.mrb[0].mxu0 %vm755_vm0, %v10142_v13 }
 0x187   : > { %v10144_v35 = vpop.eup %10143  ;;  %10155 = vpow2.f32 %v1204_v18  ;;  %v1151_v31 = vmul.f32 3.5, %v8227_v55  ;;  %v1152_v38 = vmul.f32 3.5, %v8228_v32  ;;  %v8230_v40 = vadd.f32 1.0, %v11686_v63  ;;  %9348 = vmatpush3.msk.msra.mxu0 %vm1269_vm1, %v11554_v19 }
 0x188   : > { %v10146_v46 = vpop.eup %10145  ;;  %9326 = vmatprep.mubr.msk.f32.mxu0 %vm755_vm0, %v10144_v35  ;;  %v1165_v41 = vmul.f32 %v1149_v6, %v1149_v6  ;;  %v1166_v33 = vmul.f32 %v1150_v34, %v1150_v34  ;;  %v1153_v47 = vmul.f32 3.5, %v8229_v26  ;;  %v8231_v36 = vadd.f32 1.0, %v11691_v16  ;;  %9373 = vmatprep.subr.msk.mxu0 %vm1269_vm1, %v11697_v57 }
 0x189   : > { %v10148_v48 = vpop.eup %10147  ;;  %10157 = vpow2.f32 %v11586_v61  ;;  %v1167_v42 = vmul.f32 %v1151_v31, %v1151_v31  ;;  %v1168_v53 = vmul.f32 %v1152_v38, %v1152_v38  ;;  %v1154_v58 = vmul.f32 3.5, %v8230_v40 }
 0x18a   : > { %v10150_v59 = vpop.eup %10149  ;;  %v1181_v60 = vsub.f32 0.0, %v1165_v41  ;;  %v1182_v45 = vsub.f32 0.0, %v1166_v33  ;;  %v1169_v19 = vmul.f32 %v1153_v47, %v1153_v47  ;;  %v1155_v11 = vmul.f32 3.5, %v8231_v36  ;;  %9327 = vmatmul.mubr.msk.f32.gmra.mrb[2].mxu0 %vm755_vm0, %v10146_v46 }
 0x18b   : > { %10159 = vpow2.f32 %v11589_v44  ;;  %v1183_v18 = vsub.f32 0.0, %v1167_v42  ;;  %v1184_v55 = vsub.f32 0.0, %v1168_v53  ;;  %v1170_v32 = vmul.f32 %v1154_v58, %v1154_v58  ;;  %9329 = vmatprep.mubr.msk.f32.mxu0 %vm755_vm0, %v10148_v48 }
 0x18c   : > { %v10152_v13 = vpop.eup %10151  ;;  %v1206_v61 = vmul.f32 1.442695, %v1181_v60  ;;  %v1208_v6 = vmul.f32 1.442695, %v1182_v45  ;;  %v1185_v34 = vsub.f32 0.0, %v1169_v19  ;;  %v1171_v26 = vmul.f32 %v1155_v11, %v1155_v11 }
 0x18d   : > { %v10154_v35 = vpop.eup %10153  ;;  %10161 = vpow2.f32 %v11597_v30  ;;  %v1210_v31 = vmul.f32 1.442695, %v1183_v18  ;;  %v1212_v38 = vmul.f32 1.442695, %v1184_v55  ;;  %v1186_v40 = vsub.f32 0.0, %v1170_v32 }
 0x18e   : > { %v8210_v44 = vmul.f32 -1.442695, %v11422_v20  ;;  %10163 = vpow2.f32 %v1206_v61  ;;  %v1059_v46 = vadd.f32 1.0, %v11613_v52  ;;  %9330 = vmatmul.mubr.msk.f32.gmra.mrb[4].mxu0 %vm755_vm0, %v10150_v59  ;;  %v1214_v41 = vmul.f32 1.442695, %v1185_v34 }
 0x18f   : > { %10165 = vpow2.f32 %v1208_v6  ;;  %9332 = vmatprep.mubr.msk.f32.mxu0 %vm755_vm0, %v10152_v13  ;;  %v1187_v33 = vsub.f32 0.0, %v1171_v26  ;;  %v1216_v36 = vmul.f32 1.442695, %v1186_v40  ;;  %v8211_v30 = vmul.f32 -1.442695, %v11425_v21 }
 0x190   : > { %10167 = vpow2.f32 %v1210_v31  ;;  %v1060_v20 = vadd.f32 1.0, %v11628_v7  ;;  %v1061_v53 = vadd.f32 1.0, %v11623_v56  ;;  %v8212_v58 = vmul.f32 -1.442695, %v11432_v24 }
 0x191   : > { %v10156_v47 = vpop.eup %10155  ;;  %10169 = vpow2.f32 %v1212_v38  ;;  %v1218_v52 = vmul.f32 1.442695, %v1187_v33  ;;  %v1062_v21 = vadd.f32 1.0, %v11639_v54  ;;  %v1063_v7 = vadd.f32 1.0, %v11644_v27 }
 0x192   : > { %10171 = vpow2.f32 %v8210_v44  ;;  %9333 = vmatmul.mubr.msk.f32.gmra.mrb[6].mxu0 %vm755_vm0, %v10154_v35  ;;  %v8213_v19 = vmul.f32 -1.442695, %v11435_v25  ;;  %v8214_v56 = vmul.f32 -1.442695, %v11442_v28  ;;  %v1064_v54 = vadd.f32 1.0, %v11649_v3 }
 0x193   : > { %v10158_v48 = vpop.eup %10157  ;;  %10173 = vrcp.f32 %v1059_v46  ;;  %9335 = vmatprep.mubr.msk.f32.mxu0 %vm755_vm0, %v10156_v47  ;;  %v1065_v55 = vadd.f32 1.0, %v11652_v23  ;;  %v8215_v32 = vmul.f32 -1.442695, %v11445_v29 }
 0x194   : > { %10175 = vpow2.f32 %v1214_v41  ;;  %v1066_v61 = vadd.f32 1.0, %v10158_v48 }
 0x195   : > { %v10160_v42 = vpop.eup %10159  ;;  %10177 = vpow2.f32 %v1216_v36  ;;  %v11744_v36 = vld [vmem:[%s14890_s1 + $0x8] sm:$0x7] }
 0x196   : > { %10179 = vpow2.f32 %v8211_v30  ;;  %v1067_v34 = vadd.f32 1.0, %v10160_v42  ;;  %v8267_v30 = vadd.f32 0.71428573, %v11607_v17 }
 0x197   : > { %v10162_v59 = vpop.eup %10161  ;;  %10181 = vrcp.f32 %v1060_v20 }
 0x198   : > { %v10164_v60 = vpop.eup %10163  ;;  %10183 = vpow2.f32 %v1218_v52  ;;  %v1068_v35 = vadd.f32 1.0, %v10162_v59  ;;  %v8268_v59 = vadd.f32 0.71428573, %v11610_v43 }
 0x199   : > { %v10166_v45 = vpop.eup %10165  ;;  %10185 = vrcp.f32 %v1061_v53  ;;  %9336 = vmatmul.mubr.msk.f32.gmra.mrb[8].mxu0 %vm755_vm0, %v10164_v60  ;;  %v8269_v60 = vadd.f32 0.71428573, %v11616_v4 }
 0x19a   : > { %v10168_v11 = vpop.eup %10167  ;;  %10187 = vpow2.f32 %v8212_v58  ;;  %9338 = vmatprep.mubr.msk.f32.mxu0 %vm755_vm0, %v10166_v45  ;;  %v8270_v45 = vadd.f32 0.71428573, %v11619_v22 }
 0x19b   : > { %v10170_v24 = vpop.eup %10169  ;;  %10189 = vrcp.f32 %v1062_v21 }
 0x19c   : > { %v10172_v18 = vpop.eup %10171  ;;  %10191 = vrcp.f32 %v1063_v7 }
 0x19d   : > { %v10174_v27 = vpop.eup %10173  ;;  %10193 = vpow2.f32 %v8213_v19  ;;  %9339 = vmatmul.mubr.msk.f32.gmra.mrb[10].mxu0 %vm755_vm0, %v10168_v11  ;;  %v1069_v40 = vadd.f32 1.0, %v10172_v18 }
 0x19e   : > { %v10176_v25 = vpop.eup %10175  ;;  %10195 = vpow2.f32 %v8214_v56  ;;  %9341 = vmatprep.mubr.msk.f32.mxu0 %vm755_vm0, %v10170_v24  ;;  %v1107_v23 = vmul.f32 %v10174_v27, %v11372_v0  ;;  %v8266_v0 = vadd.f32 0.71428573, %v11577_v49  ;;  %v1632_v24 = vmul.f32 3.5, %v8268_v59 }
 0x19f   : > { %v10178_v28 = vpop.eup %10177  ;;  %10197 = vrcp.f32 %v1064_v54 }
 0x1a0   : > { %v10180_v13 = vpop.eup %10179  ;;  %10199 = vrcp.f32 %v1065_v55  ;;  %v1630_v58 = vmul.f32 3.5, %v8266_v0  ;;  %v1633_v55 = vmul.f32 3.5, %v8269_v60 }
 0x1a1   : > { %v10182_v6 = vpop.eup %10181  ;;  %9342 = vmatmul.mubr.msk.f32.gmra.mrb[12].mxu0 %vm755_vm0, %v10176_v25  ;;  %10201 = vpow2.f32 %v8215_v32  ;;  %v1070_v33 = vadd.f32 1.0, %v10180_v13  ;;  %v14896_v25 = vld [vmem:[#allocation12_spill] sm:$0xff]  ;;  %v1634_v13 = vmul.f32 3.5, %v8270_v45 }
 0x1a2   : > { %v10184_v3 = vpop.eup %10183  ;;  %9344 = vmatprep.mubr.msk.f32.mxu0 %vm755_vm0, %v10178_v28  ;;  %10203 = vrcp.f32 %v1066_v61  ;;  %v1108_v38 = vmul.f32 %v10182_v6, %v11378_v2  ;;  %v1646_v56 = vmul.f32 %v1630_v58, %v1630_v58  ;;  %v8271_v32 = vadd.f32 0.71428573, %v14896_v25 }
 0x1a3   : > { %v10186_v26 = vpop.eup %10185  ;;  %10205 = vrcp.f32 %v1067_v34  ;;  %v8272_v61 = vadd.f32 0.71428573, %v11631_v37 }
 0x1a4   : > { %v10188_v29 = vpop.eup %10187  ;;  %v1109_v46 = vmul.f32 %v10186_v26, %v11375_v1  ;;  %10207 = vrcp.f32 %v1068_v35  ;;  %v1662_v34 = vsub.f32 0.0, %v1646_v56 }
 0x1a5   : > { %v10190_v31 = vpop.eup %10189  ;;  %9345 = vmatmul.mubr.msk.f32.gmra.mrb[14].mxu0 %vm755_vm0, %v10184_v3  ;;  %10209 = vrcp.f32 %v1069_v40  ;;  %v1071_v2 = vadd.f32 1.0, %v10188_v29  ;;  %v1648_v3 = vmul.f32 %v1632_v24, %v1632_v24  ;;  %v8273_v40 = vadd.f32 0.71428573, %v11634_v10  ;;  %v11122_v24 = vld [vmem:[%s11369_s7 + $0x70] sm:$0xff] }
 0x1a6   : > { %v10192_v44 = vpop.eup %10191  ;;  %9349 = vmatprep.mubr.msk.f32.mxu0 %vm755_vm0, %v1107_v23  ;;  %v1110_v48 = vmul.f32 %v10190_v31, %v11385_v5  ;;  %10211 = vrcp.f32 %v1070_v33  ;;  %v1631_v5 = vmul.f32 3.5, %v8267_v30  ;;  %v11117_v23 = vld [vmem:[%s11369_s7 + $0x48] sm:$0xff]  ;;  %v1649_v31 = vmul.f32 %v1633_v55, %v1633_v55 }
 0x1a7   : > { %v10194_v41 = vpop.eup %10193  ;;  %v1111_v52 = vmul.f32 %v10192_v44, %v11392_v8  ;;  %10213 = vrcp.f32 %v1071_v2  ;;  %v11118_v44 = vld [vmem:[%s11369_s7 + $0x50] sm:$0xff]  ;;  %v1636_v33 = vmul.f32 3.5, %v8272_v61  ;;  %v1664_v2 = vsub.f32 0.0, %v1648_v3  ;;  %v11123_v3 = vld [vmem:[%s11369_s7 + $0x78] sm:$0xff] }
 0x1a8   : > { %v10196_v47 = vpop.eup %10195  ;;  %v1072_v20 = vadd.f32 1.0, %v10194_v41  ;;  %v1647_v54 = vmul.f32 %v1631_v5, %v1631_v5  ;;  %v1650_v41 = vmul.f32 %v1634_v13, %v1634_v13  ;;  %v8274_v30 = vadd.f32 0.71428573, %v11637_v14 }
 0x1a9   : > { %9350 = vmatmul.mubr.msk.f32.vlgmr.msra.gmra.mrb[0].mxu0 %vm755_vm0, %v1108_v38  ;;  %v10198_v1 = vpop.eup %10197  ;;  %v1073_v53 = vadd.f32 1.0, %v10196_v47  ;;  %v1635_v38 = vmul.f32 3.5, %v8271_v32  ;;  %v1678_v47 = vmul.f32 1.442695, %v1662_v34  ;;  %v1637_v59 = vmul.f32 3.5, %v8273_v40 }
 0x1aa   : > { %9374 = vmatpush3.msk.msra.mxu0 %vm1269_vm1, %v11697_v57  ;;  %9352 = vmatprep.mubr.msk.f32.mxu0 %vm755_vm0, %v1109_v46  ;;  %v10200_v42 = vpop.eup %10199  ;;  %v1112_v57 = vmul.f32 %v10198_v1, %v11395_v9  ;;  %10215 = vrcp.f32 %v1072_v20  ;;  %v14895_v9 = vld [vmem:[#allocation10_spill] sm:$0xff]  ;;  %v1663_v29 = vsub.f32 0.0, %v1647_v54  ;;  %v11119_v1 = vld [vmem:[%s11369_s7 + $0x58] sm:$0xff]  ;;  %v1652_v60 = vmul.f32 %v1636_v33, %v1636_v33 }
 0x1ab   : > { %9399 = vmatprep.subr.msk.mxu0 %vm1269_vm1, %v11744_v36  ;;  %v10202_v21 = vpop.eup %10201  ;;  %v1113_v8 = vmul.f32 %v10200_v42, %v11402_v12  ;;  %10217 = vrcp.f32 %v1073_v53  ;;  %v14897_v12 = vld [vmem:[#allocation11_spill] sm:$0xff]  ;;  %v1665_v53 = vsub.f32 0.0, %v1649_v31  ;;  %v1651_v58 = vmul.f32 %v1635_v38, %v1635_v38 }
 0x1ac   : > { %v10204_v7 = vpop.eup %10203  ;;  %v1074_v11 = vadd.f32 1.0, %v10202_v21  ;;  %v1680_v42 = vmul.f32 1.442695, %v1663_v29  ;;  %v11120_v21 = vld [vmem:[%s11369_s7 + $0x60] sm:$0xff]  ;;  %v1638_v45 = vmul.f32 3.5, %v8274_v30  ;;  %v1653_v55 = vmul.f32 %v1637_v59, %v1637_v59 }
 0x1ad   : > { %9353 = vmatmul.mubr.msk.f32.gmra.mrb[2].mxu0 %vm755_vm0, %v1110_v48  ;;  %v10206_v19 = vpop.eup %10205  ;;  %v1114_v27 = vmul.f32 %v10204_v7, %v14895_v9  ;;  %v8275_v7 = vadd.f32 0.71428573, %v11642_v15  ;;  %v1684_v9 = vmul.f32 1.442695, %v1665_v53  ;;  %v8277_v13 = vadd.f32 0.71428573, %v11670_v50 }
 0x1ae   : > { %9355 = vmatprep.mubr.msk.f32.mxu0 %vm755_vm0, %v1111_v52  ;;  %v10208_v18 = vpop.eup %10207  ;;  %v1115_v28 = vmul.f32 %v10206_v19, %v14897_v12  ;;  %10219 = vrcp.f32 %v1074_v11  ;;  %v8276_v19 = vadd.f32 0.71428573, %v11665_v39  ;;  %v11121_v11 = vld [vmem:[%s11369_s7 + $0x68] sm:$0xff]  ;;  %v1668_v12 = vsub.f32 0.0, %v1652_v60  ;;  %s14898_s7 = sld [smem:[#allocation27_spill]] }
 0x1af   : > { %v10210_v6 = vpop.eup %10209  ;;  %v1116_v26 = vmul.f32 %v11117_v23, %v10208_v18  ;;  %10221 = vpow2.f32 %v1678_v47  ;;  %v1654_v61 = vmul.f32 %v1638_v45, %v1638_v45  ;;  %v8278_v34 = vadd.f32 0.71428573, %v11675_v51 }
 0x1b0   : > { %v10212_v35 = vpop.eup %10211  ;;  %v1117_v46 = vmul.f32 %v11118_v44, %v10210_v6  ;;  %10223 = vpow2.f32 %v1680_v42  ;;  %v1640_v6 = vmul.f32 3.5, %v8276_v19  ;;  %v8279_v29 = vadd.f32 0.71428573, %v11680_v62 }
 0x1b1   : > { %9356 = vmatmul.mubr.msk.f32.gmra.mrb[4].mxu0 %vm755_vm0, %v1112_v57  ;;  %v10214_v0 = vpop.eup %10213  ;;  %v1118_v20 = vmul.f32 %v11119_v1, %v10212_v35  ;;  %v1666_v57 = vsub.f32 0.0, %v1650_v41  ;;  %v1669_v35 = vsub.f32 0.0, %v1653_v55  ;;  %v1690_v31 = vmul.f32 1.442695, %v1668_v12 }
 0x1b2   : > { %9358 = vmatprep.mubr.msk.f32.mxu0 %vm755_vm0, %v1113_v8  ;;  %v1119_v5 = vmul.f32 %v11120_v21, %v10214_v0  ;;  %v1682_v8 = vmul.f32 1.442695, %v1664_v2  ;;  %v1641_v40 = vmul.f32 3.5, %v8277_v13  ;;  %v1670_v44 = vsub.f32 0.0, %v1654_v61  ;;  %v11798_v21 = vld [vmem:[%s14890_s1 + $0xc] sm:$0x7] }
 0x1b3   : > { %v1686_v32 = vmul.f32 1.442695, %v1666_v57  ;;  %v1642_v41 = vmul.f32 3.5, %v8278_v34  ;;  %v8280_v33 = vadd.f32 0.71428573, %v11686_v63  ;;  %v1643_v47 = vmul.f32 3.5, %v8279_v29 }
 0x1b4   : > { %v10216_v48 = vpop.eup %10215  ;;  %10225 = vpow2.f32 %v1682_v8  ;;  %v8281_v2 = vadd.f32 0.71428573, %v11691_v16  ;;  %v8300_v30 = vadd.f32 0.42857143, %v11577_v49  ;;  %v1694_v42 = vmul.f32 1.442695, %v1670_v44 }
 0x1b5   : > { %9359 = vmatmul.mubr.msk.f32.gmra.mrb[6].mxu0 %vm755_vm0, %v1114_v27  ;;  %v10218_v52 = vpop.eup %10217  ;;  %v1120_v56 = vmul.f32 %v11121_v11, %v10216_v48  ;;  %v1667_v27 = vsub.f32 0.0, %v1651_v58  ;;  %10227 = vpow2.f32 %v1684_v9  ;;  %v1692_v48 = vmul.f32 1.442695, %v1669_v35 }
 0x1b6   : > { %9361 = vmatprep.mubr.msk.f32.mxu0 %vm755_vm0, %v1115_v28  ;;  %v1121_v18 = vmul.f32 %v11122_v24, %v10218_v52  ;;  %v1639_v28 = vmul.f32 3.5, %v8275_v7  ;;  %10229 = vpow2.f32 %v1686_v32  ;;  %v1658_v58 = vmul.f32 %v1642_v41, %v1642_v41 }
 0x1b7   : > { %v1644_v59 = vmul.f32 3.5, %v8280_v33  ;;  %v8301_v57 = vadd.f32 0.42857143, %v11607_v17  ;;  %v1659_v60 = vmul.f32 %v1643_v47, %v1643_v47  ;;  %v1645_v7 = vmul.f32 3.5, %v8281_v2 }
 0x1b8   : > { %v10220_v54 = vpop.eup %10219  ;;  %v1655_v38 = vmul.f32 %v1639_v28, %v1639_v28  ;;  %v1940_v8 = vmul.f32 3.5, %v8300_v30  ;;  %v8302_v11 = vadd.f32 0.42857143, %v11610_v43  ;;  %v8303_v13 = vadd.f32 0.42857143, %v11616_v4 }
 0x1b9   : > { %9362 = vmatmul.mubr.msk.f32.gmra.mrb[8].mxu0 %vm755_vm0, %v1116_v26  ;;  %v1122_v23 = vmul.f32 %v11123_v3, %v10220_v54  ;;  %v1688_v26 = vmul.f32 1.442695, %v1667_v27  ;;  %v10222_v0 = vpop.eup %10221  ;;  %v1660_v54 = vmul.f32 %v1644_v59, %v1644_v59  ;;  %v1941_v27 = vmul.f32 3.5, %v8301_v57 }
 0x1ba   : > { %9364 = vmatprep.mubr.msk.f32.mxu0 %vm755_vm0, %v1117_v46  ;;  %v1656_v46 = vmul.f32 %v1640_v6, %v1640_v6  ;;  %v1671_v1 = vsub.f32 0.0, %v1655_v38  ;;  %v10224_v52 = vpop.eup %10223  ;;  %v1661_v55 = vmul.f32 %v1645_v7, %v1645_v7  ;;  %v1956_v32 = vmul.f32 %v1940_v8, %v1940_v8 }
 0x1bb   : > { %10231 = vpow2.f32 %v1688_v26  ;;  %v1942_v28 = vmul.f32 3.5, %v8302_v11  ;;  %v1676_v34 = vsub.f32 0.0, %v1660_v54  ;;  %v8304_v3 = vadd.f32 0.42857143, %v11619_v22 }
 0x1bc   : > { %10233 = vpow2.f32 %v1690_v31  ;;  %v1672_v53 = vsub.f32 0.0, %v1656_v46  ;;  %v1696_v45 = vmul.f32 1.442695, %v1671_v1  ;;  %v1957_v26 = vmul.f32 %v1941_v27, %v1941_v27 }
 0x1bd   : > { %9365 = vmatmul.mubr.msk.f32.gmra.mrb[10].mxu0 %vm755_vm0, %v1118_v20  ;;  %v1657_v20 = vmul.f32 %v1641_v40, %v1641_v40  ;;  %10235 = vpow2.f32 %v1692_v48  ;;  %v1677_v29 = vsub.f32 0.0, %v1661_v55  ;;  %v8305_v31 = vadd.f32 0.42857143, %v14896_v25 }
 0x1be   : > { %9367 = vmatprep.mubr.msk.f32.mxu0 %vm755_vm0, %v1119_v5  ;;  %v10226_v5 = vpop.eup %10225  ;;  %10237 = vpow2.f32 %v1694_v42  ;;  %v1698_v24 = vmul.f32 1.442695, %v1672_v53  ;;  %v1958_v38 = vmul.f32 %v1942_v28, %v1942_v28  ;;  %v1943_v40 = vmul.f32 3.5, %v8303_v13 }
 0x1bf   : > { %v1673_v19 = vsub.f32 0.0, %v1657_v20  ;;  %10239 = vpow2.f32 %v1696_v45  ;;  %v8306_v44 = vadd.f32 0.42857143, %v11631_v37  ;;  %v1706_v46 = vmul.f32 1.442695, %v1676_v34 }
 0x1c0   : > { %10241 = vpow2.f32 %v1698_v24  ;;  %v1972_v41 = vsub.f32 0.0, %v1956_v32  ;;  %v1944_v33 = vmul.f32 3.5, %v8304_v3  ;;  %v1973_v2 = vsub.f32 0.0, %v1957_v26 }
 0x1c1   : > { %9368 = vmatmul.mubr.msk.f32.gmra.mrb[12].mxu0 %vm755_vm0, %v1120_v56  ;;  %v10228_v56 = vpop.eup %10227  ;;  %v1700_v12 = vmul.f32 1.442695, %v1673_v19  ;;  %v1708_v30 = vmul.f32 1.442695, %v1677_v29  ;;  %v1945_v48 = vmul.f32 3.5, %v8305_v31  ;;  %v1974_v1 = vsub.f32 0.0, %v1958_v38 }
 0x1c2   : > { %9370 = vmatprep.mubr.msk.f32.mxu0 %vm755_vm0, %v1121_v18  ;;  %v1674_v18 = vsub.f32 0.0, %v1658_v58  ;;  %v10230_v9 = vpop.eup %10229  ;;  %v1959_v20 = vmul.f32 %v1943_v40, %v1943_v40  ;;  %v8307_v42 = vadd.f32 0.42857143, %v11634_v10  ;;  %v1988_v53 = vmul.f32 1.442695, %v1972_v41 }
 0x1c3   : > { %10243 = vpow2.f32 %v1700_v12  ;;  %v1960_v58 = vmul.f32 %v1944_v33, %v1944_v33  ;;  %v8308_v59 = vadd.f32 0.42857143, %v11637_v14  ;;  %v1961_v7 = vmul.f32 %v1945_v48, %v1945_v48 }
 0x1c4   : > { %v1702_v6 = vmul.f32 1.442695, %v1674_v18  ;;  %v8309_v8 = vadd.f32 0.42857143, %v11642_v15  ;;  %v1992_v45 = vmul.f32 1.442695, %v1974_v1 }
 0x1c5   : > { %9371 = vmatmul.mubr.msk.f32.gmra.mrb[14].mxu0 %vm755_vm0, %v1122_v23  ;;  %v10232_v61 = vpop.eup %10231  ;;  %v1975_v19 = vsub.f32 0.0, %v1959_v20  ;;  %v1976_v24 = vsub.f32 0.0, %v1960_v58  ;;  %v1948_v18 = vmul.f32 3.5, %v8308_v59  ;;  %v8310_v54 = vadd.f32 0.42857143, %v11665_v39 }
 0x1c6   : > { %9375 = vmatprep.mubr.msk.f32.mxu0 %vm755_vm0, %v10222_v0  ;;  %v10234_v23 = vpop.eup %10233  ;;  %10245 = vpow2.f32 %v1702_v6  ;;  %v1949_v55 = vmul.f32 3.5, %v8309_v8  ;;  %v8311_v32 = vadd.f32 0.42857143, %v11670_v50  ;;  %v8313_v38 = vadd.f32 0.42857143, %v11680_v62 }
 0x1c7   : > { %v10236_v0 = vpop.eup %10235  ;;  %v1994_v12 = vmul.f32 1.442695, %v1975_v19  ;;  %v1996_v6 = vmul.f32 1.442695, %v1976_v24  ;;  %v1964_v34 = vmul.f32 %v1948_v18, %v1948_v18  ;;  %v1950_v3 = vmul.f32 3.5, %v8310_v54 }
 0x1c8   : > { %v10238_v47 = vpop.eup %10237  ;;  %v1965_v29 = vmul.f32 %v1949_v55, %v1949_v55  ;;  %v1951_v31 = vmul.f32 3.5, %v8311_v32  ;;  %v1953_v1 = vmul.f32 3.5, %v8313_v38  ;;  %v8335_v8 = vadd.f32 0.14285715, %v11607_v17 }
 0x1c9   : > { %9376 = vmatmul.mubr.msk.f32.vlgmr.msra.gmra.mrb[0].mxu0 %vm755_vm0, %v10224_v52  ;;  %v1946_v52 = vmul.f32 3.5, %v8306_v44  ;;  %v1980_v33 = vsub.f32 0.0, %v1964_v34  ;;  %v8336_v18 = vadd.f32 0.14285715, %v11610_v43  ;;  %v8339_v38 = vadd.f32 0.14285715, %v14896_v25 }
 0x1ca   : > { %9400 = vmatpush3.msk.msra.mxu0 %vm1269_vm1, %v11744_v36  ;;  %9378 = vmatprep.mubr.msk.f32.mxu0 %vm755_vm0, %v10226_v5  ;;  %v1675_v36 = vsub.f32 0.0, %v1659_v60  ;;  %v10240_v5 = vpop.eup %10239  ;;  %v1990_v60 = vmul.f32 1.442695, %v1973_v2  ;;  %v1967_v48 = vmul.f32 %v1951_v31, %v1951_v31  ;;  %v2251_v32 = vmul.f32 3.5, %v8335_v8 }
 0x1cb   : > { %9425 = vmatprep.subr.msk.mxu0 %vm1269_vm1, %v11798_v21  ;;  %v10242_v57 = vpop.eup %10241  ;;  %v1962_v11 = vmul.f32 %v1946_v52, %v1946_v52  ;;  %v2004_v58 = vmul.f32 1.442695, %v1980_v33 }
 0x1cc   : > { %v1704_v35 = vmul.f32 1.442695, %v1675_v36  ;;  %v1977_v36 = vsub.f32 0.0, %v1961_v7  ;;  %v11839_v7 = vld [vmem:[%s14890_s1 + $0x10] sm:$0x7]  ;;  %v1983_v19 = vsub.f32 0.0, %v1967_v48 }
 0x1cd   : > { %9379 = vmatmul.mubr.msk.f32.gmra.mrb[2].mxu0 %vm755_vm0, %v10228_v56  ;;  %v1947_v56 = vmul.f32 3.5, %v8307_v42  ;;  %v1978_v28 = vsub.f32 0.0, %v1962_v11  ;;  %v8315_v42 = vadd.f32 0.42857143, %v11691_v16  ;;  %v1969_v11 = vmul.f32 %v1953_v1, %v1953_v1 }
 0x1ce   : > { %9381 = vmatprep.mubr.msk.f32.mxu0 %vm755_vm0, %v10230_v9  ;;  %10247 = vpow2.f32 %v1704_v35  ;;  %v10244_v9 = vpop.eup %10243  ;;  %v1998_v35 = vmul.f32 1.442695, %v1977_v36  ;;  %v2255_v1 = vmul.f32 3.5, %v8339_v38 }
 0x1cf   : > { %10249 = vpow2.f32 %v1706_v46  ;;  %v1963_v13 = vmul.f32 %v1947_v56, %v1947_v56  ;;  %v2000_v40 = vmul.f32 1.442695, %v1978_v28  ;;  %v8314_v46 = vadd.f32 0.42857143, %v11686_v63 }
 0x1d0   : > { %10251 = vpow2.f32 %v1708_v30  ;;  %v10246_v27 = vpop.eup %10245  ;;  %v1981_v30 = vsub.f32 0.0, %v1965_v29  ;;  %v1955_v24 = vmul.f32 3.5, %v8315_v42  ;;  %v2267_v29 = vmul.f32 %v2251_v32, %v2251_v32 }
 0x1d1   : > { %9382 = vmatmul.mubr.msk.f32.gmra.mrb[4].mxu0 %vm755_vm0, %v10232_v61  ;;  %10253 = vpow2.f32 %v1988_v53  ;;  %v1979_v44 = vsub.f32 0.0, %v1963_v13  ;;  %v1954_v52 = vmul.f32 3.5, %v8314_v46 }
 0x1d2   : > { %9384 = vmatprep.mubr.msk.f32.mxu0 %vm755_vm0, %v10234_v23  ;;  %10255 = vpow2.f32 %v1990_v60  ;;  %v8312_v23 = vadd.f32 0.42857143, %v11675_v51  ;;  %v1971_v13 = vmul.f32 %v1955_v24, %v1955_v24  ;;  %v2283_v48 = vsub.f32 0.0, %v2267_v29 }
 0x1d3   : > { %10257 = vpow2.f32 %v1992_v45  ;;  %v2002_v20 = vmul.f32 1.442695, %v1979_v44  ;;  %v2006_v45 = vmul.f32 1.442695, %v1981_v30  ;;  %v1970_v56 = vmul.f32 %v1954_v52, %v1954_v52 }
 0x1d4   : > { %10259 = vpow2.f32 %v1994_v12  ;;  %v1985_v12 = vsub.f32 0.0, %v1969_v11  ;;  %v1987_v44 = vsub.f32 0.0, %v1971_v13  ;;  %v8345_v13 = vadd.f32 0.14285715, %v11670_v50 }
 0x1d5   : > { %9385 = vmatmul.mubr.msk.f32.gmra.mrb[6].mxu0 %vm755_vm0, %v10236_v0  ;;  %10261 = vpow2.f32 %v1996_v6  ;;  %v1966_v0 = vmul.f32 %v1950_v3, %v1950_v3  ;;  %v1986_v28 = vsub.f32 0.0, %v1970_v56  ;;  %v8337_v6 = vadd.f32 0.14285715, %v11616_v4 }
 0x1d6   : > { %9387 = vmatprep.mubr.msk.f32.mxu0 %vm755_vm0, %v10238_v47  ;;  %v1952_v47 = vmul.f32 3.5, %v8312_v23  ;;  %10263 = vpow2.f32 %v1998_v35  ;;  %v2014_v31 = vmul.f32 1.442695, %v1985_v12  ;;  %v2018_v52 = vmul.f32 1.442695, %v1987_v44 }
 0x1d7   : > { %10265 = vpow2.f32 %v2000_v40  ;;  %v1982_v59 = vsub.f32 0.0, %v1966_v0  ;;  %v2016_v40 = vmul.f32 1.442695, %v1986_v28  ;;  %v8343_v56 = vadd.f32 0.14285715, %v11642_v15 }
 0x1d8   : > { %v10248_v61 = vpop.eup %10247  ;;  %10267 = vpow2.f32 %v2002_v20  ;;  %v8341_v20 = vadd.f32 0.14285715, %v11634_v10  ;;  %v2261_v44 = vmul.f32 3.5, %v8345_v13  ;;  %v8371_v13 = vadd.f32 -0.14285715, %v11616_v4 }
 0x1d9   : > { %9388 = vmatmul.mubr.msk.f32.gmra.mrb[8].mxu0 %vm755_vm0, %v10240_v5  ;;  %v10250_v26 = vpop.eup %10249  ;;  %v1968_v5 = vmul.f32 %v1952_v47, %v1952_v47  ;;  %10269 = vpow2.f32 %v2004_v58  ;;  %v2008_v54 = vmul.f32 1.442695, %v1982_v59  ;;  %v8340_v47 = vadd.f32 0.14285715, %v11631_v37 }
 0x1da   : > { %9390 = vmatprep.mubr.msk.f32.mxu0 %vm755_vm0, %v10242_v57  ;;  %v10252_v41 = vpop.eup %10251  ;;  %v8334_v57 = vadd.f32 0.14285715, %v11577_v49  ;;  %10271 = vpow2.f32 %v2006_v45  ;;  %v2300_v45 = vmul.f32 1.442695, %v2283_v48  ;;  %v2257_v11 = vmul.f32 3.5, %v8341_v20 }
 0x1db   : > { %v10254_v2 = vpop.eup %10253  ;;  %10273 = vpow2.f32 %v2008_v54  ;;  %v8344_v54 = vadd.f32 0.14285715, %v11665_v39  ;;  %v2259_v28 = vmul.f32 3.5, %v8343_v56 }
 0x1dc   : > { %v10256_v53 = vpop.eup %10255  ;;  %v2273_v12 = vmul.f32 %v2257_v11, %v2257_v11  ;;  %v8369_v11 = vadd.f32 -0.14285715, %v11607_v17 }
 0x1dd   : > { %9391 = vmatmul.mubr.msk.f32.gmra.mrb[10].mxu0 %vm755_vm0, %v10244_v9  ;;  %v10258_v60 = vpop.eup %10257  ;;  %v1984_v9 = vsub.f32 0.0, %v1968_v5 }
 0x1de   : > { %9393 = vmatprep.mubr.msk.f32.mxu0 %vm755_vm0, %v10246_v27  ;;  %v2250_v27 = vmul.f32 3.5, %v8334_v57  ;;  %v10260_v36 = vpop.eup %10259  ;;  %v2256_v57 = vmul.f32 3.5, %v8340_v47  ;;  %v2289_v38 = vsub.f32 0.0, %v2273_v12 }
 0x1df   : > { %v10262_v55 = vpop.eup %10261  ;;  %v2012_v3 = vmul.f32 1.442695, %v1984_v9 }
 0x1e0   : > { %v10264_v34 = vpop.eup %10263  ;;  %v2266_v23 = vmul.f32 %v2250_v27, %v2250_v27 }
 0x1e1   : > { %9394 = vmatmul.mubr.msk.f32.gmra.mrb[12].mxu0 %vm755_vm0, %v10248_v61  ;;  %v2252_v61 = vmul.f32 3.5, %v8336_v18  ;;  %v10266_v35 = vpop.eup %10265 }
 0x1e2   : > { %9396 = vmatprep.mubr.msk.f32.mxu0 %vm755_vm0, %v10250_v26  ;;  %v8338_v26 = vadd.f32 0.14285715, %v11619_v22  ;;  %v2282_v33 = vsub.f32 0.0, %v2266_v23 }
 0x1e3   : > { %v2268_v46 = vmul.f32 %v2252_v61, %v2252_v61 }
 0x1e4   : > { %v2254_v0 = vmul.f32 3.5, %v8338_v26  ;;  %v2298_v59 = vmul.f32 1.442695, %v2282_v33  ;;  %v8347_v33 = vadd.f32 0.14285715, %v11680_v62 }
 0x1e5   : > { %9397 = vmatmul.mubr.msk.f32.gmra.mrb[14].mxu0 %vm755_vm0, %v10252_v41  ;;  %v2253_v41 = vmul.f32 3.5, %v8337_v6  ;;  %v2284_v42 = vsub.f32 0.0, %v2268_v46  ;;  %v2260_v6 = vmul.f32 3.5, %v8344_v54 }
 0x1e6   : > { %9401 = vmatprep.mubr.msk.f32.mxu0 %vm755_vm0, %v10254_v2  ;;  %v10268_v2 = vpop.eup %10267  ;;  %v2270_v5 = vmul.f32 %v2254_v0, %v2254_v0 }
 0x1e7   : > { %v10270_v30 = vpop.eup %10269  ;;  %v2302_v24 = vmul.f32 1.442695, %v2284_v42  ;;  %v2276_v46 = vmul.f32 %v2260_v6, %v2260_v6 }
 0x1e8   : > { %v10272_v58 = vpop.eup %10271  ;;  %v2286_v27 = vsub.f32 0.0, %v2270_v5 }
 0x1e9   : > { %9402 = vmatmul.mubr.msk.f32.vlgmr.msra.gmra.mrb[0].mxu0 %vm755_vm0, %v10256_v53  ;;  %v2269_v53 = vmul.f32 %v2253_v41, %v2253_v41  ;;  %v10274_v8 = vpop.eup %10273  ;;  %v2292_v42 = vsub.f32 0.0, %v2276_v46 }
 0x1ea   : > { %9426 = vmatpush3.msk.msra.mxu0 %vm1269_vm1, %v11798_v21  ;;  %9404 = vmatprep.mubr.msk.f32.mxu0 %vm755_vm0, %v10258_v60  ;;  %v2010_v21 = vmul.f32 1.442695, %v1983_v19  ;;  %v8342_v60 = vadd.f32 0.14285715, %v11637_v14  ;;  %v2271_v19 = vmul.f32 %v2255_v1, %v2255_v1  ;;  %v2306_v23 = vmul.f32 1.442695, %v2286_v27 }
 0x1eb   : > { %9451 = vmatprep.subr.msk.mxu0 %vm1269_vm1, %v11839_v7  ;;  %v2285_v18 = vsub.f32 0.0, %v2269_v53  ;;  %v2312_v1 = vmul.f32 1.442695, %v2289_v38 }
 0x1ec   : > { %10275 = vpow2.f32 %v2010_v21  ;;  %v2287_v21 = vsub.f32 0.0, %v2271_v19 }
 0x1ed   : > { %9405 = vmatmul.mubr.msk.f32.gmra.mrb[2].mxu0 %vm755_vm0, %v10260_v36  ;;  %10277 = vpow2.f32 %v2012_v3  ;;  %v2272_v36 = vmul.f32 %v2256_v57, %v2256_v57  ;;  %v2304_v61 = vmul.f32 1.442695, %v2285_v18  ;;  %v2318_v18 = vmul.f32 1.442695, %v2292_v42 }
 0x1ee   : > { %9407 = vmatprep.mubr.msk.f32.mxu0 %vm755_vm0, %v10262_v55  ;;  %10279 = vpow2.f32 %v2014_v31  ;;  %v2258_v55 = vmul.f32 3.5, %v8342_v60  ;;  %v2308_v31 = vmul.f32 1.442695, %v2287_v21  ;;  %v8368_v60 = vadd.f32 -0.14285715, %v11577_v49 }
 0x1ef   : > { %10281 = vpow2.f32 %v2016_v40  ;;  %v2288_v26 = vsub.f32 0.0, %v2272_v36  ;;  %v2275_v40 = vmul.f32 %v2259_v28, %v2259_v28  ;;  %v2561_v28 = vmul.f32 3.5, %v8369_v11 }
 0x1f0   : > { %10283 = vpow2.f32 %v2018_v52  ;;  %v2277_v52 = vmul.f32 %v2261_v44, %v2261_v44  ;;  %v2563_v44 = vmul.f32 3.5, %v8371_v13 }
 0x1f1   : > { %9408 = vmatmul.mubr.msk.f32.gmra.mrb[4].mxu0 %vm755_vm0, %v10264_v34  ;;  %10285 = vpow2.f32 %v2298_v59  ;;  %v8346_v34 = vadd.f32 0.14285715, %v11675_v51  ;;  %v2310_v0 = vmul.f32 1.442695, %v2288_v26  ;;  %v2291_v20 = vsub.f32 0.0, %v2275_v40 }
 0x1f2   : > { %9410 = vmatprep.mubr.msk.f32.mxu0 %vm755_vm0, %v10266_v35  ;;  %10287 = vpow2.f32 %v2300_v45  ;;  %v2274_v35 = vmul.f32 %v2258_v55, %v2258_v55  ;;  %v8349_v59 = vadd.f32 0.14285715, %v11691_v16  ;;  %v11880_v45 = vld [vmem:[%s14890_s1 + $0x14] sm:$0x7]  ;;  %v2560_v55 = vmul.f32 3.5, %v8368_v60 }
 0x1f3   : > { %10289 = vpow2.f32 %v2302_v24  ;;  %v2262_v41 = vmul.f32 3.5, %v8346_v34  ;;  %v2316_v56 = vmul.f32 1.442695, %v2291_v20  ;;  %v2293_v24 = vsub.f32 0.0, %v2277_v52 }
 0x1f4   : > { %10291 = vpow2.f32 %v2304_v61  ;;  %v2290_v47 = vsub.f32 0.0, %v2274_v35  ;;  %v2265_v27 = vmul.f32 3.5, %v8349_v59  ;;  %v2576_v26 = vmul.f32 %v2560_v55, %v2560_v55 }
 0x1f5   : > { %9411 = vmatmul.mubr.msk.f32.gmra.mrb[6].mxu0 %vm755_vm0, %v10268_v2  ;;  %10293 = vpow2.f32 %v2306_v23  ;;  %v8348_v2 = vadd.f32 0.14285715, %v11686_v63  ;;  %v2278_v53 = vmul.f32 %v2262_v41, %v2262_v41  ;;  %v2577_v40 = vmul.f32 %v2561_v28, %v2561_v28 }
 0x1f6   : > { %9413 = vmatprep.mubr.msk.f32.mxu0 %vm755_vm0, %v10270_v30  ;;  %v10276_v9 = vpop.eup %10275  ;;  %10295 = vpow2.f32 %v2308_v31  ;;  %v2314_v5 = vmul.f32 1.442695, %v2290_v47  ;;  %v2281_v34 = vmul.f32 %v2265_v27, %v2265_v27  ;;  %v8373_v31 = vadd.f32 -0.14285715, %v14896_v25 }
 0x1f7   : > { %v10278_v32 = vpop.eup %10277  ;;  %10297 = vpow2.f32 %v2310_v0  ;;  %v2264_v57 = vmul.f32 3.5, %v8348_v2  ;;  %v2294_v54 = vsub.f32 0.0, %v2278_v53  ;;  %v2592_v2 = vsub.f32 0.0, %v2576_v26 }
 0x1f8   : > { %v10280_v3 = vpop.eup %10279  ;;  %10299 = vpow2.f32 %v2312_v1  ;;  %v2297_v41 = vsub.f32 0.0, %v2281_v34  ;;  %v2565_v1 = vmul.f32 3.5, %v8373_v31  ;;  %v2593_v52 = vsub.f32 0.0, %v2577_v40 }
 0x1f9   : > { %9414 = vmatmul.mubr.msk.f32.gmra.mrb[8].mxu0 %vm755_vm0, %v10272_v58  ;;  %v10282_v29 = vpop.eup %10281  ;;  %v2263_v58 = vmul.f32 3.5, %v8347_v33  ;;  %10301 = vpow2.f32 %v2314_v5  ;;  %v2280_v36 = vmul.f32 %v2264_v57, %v2264_v57  ;;  %v2322_v61 = vmul.f32 1.442695, %v2294_v54 }
 0x1fa   : > { %9416 = vmatprep.mubr.msk.f32.mxu0 %vm755_vm0, %v10274_v8  ;;  %v10284_v30 = vpop.eup %10283  ;;  %10303 = vpow2.f32 %v2316_v56  ;;  %v8374_v33 = vadd.f32 -0.14285715, %v11631_v37  ;;  %v2579_v42 = vmul.f32 %v2563_v44, %v2563_v44  ;;  %v8375_v53 = vadd.f32 -0.14285715, %v11634_v10 }
 0x1fb   : > { %v10286_v48 = vpop.eup %10285  ;;  %10305 = vpow2.f32 %v2318_v18  ;;  %v2296_v23 = vsub.f32 0.0, %v2280_v36  ;;  %v8376_v5 = vadd.f32 -0.14285715, %v11637_v14  ;;  %v2608_v60 = vmul.f32 1.442695, %v2592_v2 }
 0x1fc   : > { %v10288_v8 = vpop.eup %10287  ;;  %v2566_v59 = vmul.f32 3.5, %v8374_v33  ;;  %v2581_v56 = vmul.f32 %v2565_v1, %v2565_v1  ;;  %v2595_v18 = vsub.f32 0.0, %v2579_v42  ;;  %v2567_v54 = vmul.f32 3.5, %v8375_v53 }
 0x1fd   : > { %9417 = vmatmul.mubr.msk.f32.gmra.mrb[10].mxu0 %vm755_vm0, %v10276_v9  ;;  %v10290_v19 = vpop.eup %10289  ;;  %v2279_v9 = vmul.f32 %v2263_v58, %v2263_v58  ;;  %v2326_v47 = vmul.f32 1.442695, %v2296_v23  ;;  %v2328_v58 = vmul.f32 1.442695, %v2297_v41  ;;  %v2568_v27 = vmul.f32 3.5, %v8376_v5 }
 0x1fe   : > { %9419 = vmatprep.mubr.msk.f32.mxu0 %vm755_vm0, %v10278_v32  ;;  %v8370_v32 = vadd.f32 -0.14285715, %v11610_v43  ;;  %v10292_v21 = vpop.eup %10291  ;;  %v8377_v36 = vadd.f32 -0.14285715, %v11642_v15  ;;  %v2583_v13 = vmul.f32 %v2567_v54, %v2567_v54  ;;  %v8381_v41 = vadd.f32 -0.14285715, %v11680_v62 }
 0x1ff   : > { %v10294_v12 = vpop.eup %10293  ;;  %v2295_v6 = vsub.f32 0.0, %v2279_v9  ;;  %v2582_v9 = vmul.f32 %v2566_v59, %v2566_v59 }
 0x200   : > { %v2562_v35 = vmul.f32 3.5, %v8370_v32  ;;  %v2569_v23 = vmul.f32 3.5, %v8377_v36  ;;  %v2599_v44 = vsub.f32 0.0, %v2583_v13  ;;  %v2573_v53 = vmul.f32 3.5, %v8381_v41 }
 0x201   : > { %9420 = vmatmul.mubr.msk.f32.gmra.mrb[12].mxu0 %vm755_vm0, %v10280_v3  ;;  %v10296_v3 = vpop.eup %10295  ;;  %v2324_v46 = vmul.f32 1.442695, %v2295_v6  ;;  %v2614_v6 = vmul.f32 1.442695, %v2595_v18  ;;  %v2598_v34 = vsub.f32 0.0, %v2582_v9 }
 0x202   : > { %9422 = vmatprep.mubr.msk.f32.mxu0 %vm755_vm0, %v10282_v29  ;;  %v8372_v29 = vadd.f32 -0.14285715, %v11619_v22  ;;  %v10298_v38 = vpop.eup %10297  ;;  %v2589_v9 = vmul.f32 %v2573_v53, %v2573_v53 }
 0x203   : > { %v10300_v0 = vpop.eup %10299  ;;  %v2620_v33 = vmul.f32 1.442695, %v2598_v34 }
 0x204   : > { %v10302_v20 = vpop.eup %10301 }
 0x205   : > { %9423 = vmatmul.mubr.msk.f32.gmra.mrb[14].mxu0 %vm755_vm0, %v10284_v30  ;;  %v2578_v30 = vmul.f32 %v2562_v35, %v2562_v35  ;;  %v10304_v57 = vpop.eup %10303 }
 0x206   : > { %9427 = vmatprep.mubr.msk.f32.mxu0 %vm755_vm0, %v10286_v48  ;;  %v2564_v48 = vmul.f32 3.5, %v8372_v29  ;;  %v10306_v11 = vpop.eup %10305  ;;  %v8380_v29 = vadd.f32 -0.14285715, %v11675_v51 }
 0x209   : > { %9428 = vmatmul.mubr.msk.f32.vlgmr.msra.gmra.mrb[0].mxu0 %vm755_vm0, %v10288_v8  ;;  %v2594_v8 = vsub.f32 0.0, %v2578_v30  ;;  %v2572_v30 = vmul.f32 3.5, %v8380_v29 }
 0x20a   : > { %9452 = vmatpush3.msk.msra.mxu0 %vm1269_vm1, %v11839_v7  ;;  %9430 = vmatprep.mubr.msk.f32.mxu0 %vm755_vm0, %v10290_v19  ;;  %v2320_v7 = vmul.f32 1.442695, %v2293_v24  ;;  %v2580_v19 = vmul.f32 %v2564_v48, %v2564_v48  ;;  %v2610_v24 = vmul.f32 1.442695, %v2593_v52  ;;  %v8382_v48 = vadd.f32 -0.14285715, %v11686_v63 }
 0x20b   : > { %9477 = vmatprep.subr.msk.mxu0 %vm1269_vm1, %v11880_v45  ;;  %v2612_v32 = vmul.f32 1.442695, %v2594_v8  ;;  %v2622_v52 = vmul.f32 1.442695, %v2599_v44  ;;  %v2588_v8 = vmul.f32 %v2572_v30, %v2572_v30 }
 0x20c   : > { %10307 = vpow2.f32 %v2320_v7  ;;  %v2597_v7 = vsub.f32 0.0, %v2581_v56  ;;  %v8403_v56 = vadd.f32 -0.42857143, %v11607_v17 }
 0x20d   : > { %9431 = vmatmul.mubr.msk.f32.gmra.mrb[2].mxu0 %vm755_vm0, %v10292_v21  ;;  %10309 = vpow2.f32 %v2322_v61  ;;  %v2596_v21 = vsub.f32 0.0, %v2580_v19  ;;  %v8379_v61 = vadd.f32 -0.14285715, %v11670_v50  ;;  %v2574_v19 = vmul.f32 3.5, %v8382_v48 }
 0x20e   : > { %9433 = vmatprep.mubr.msk.f32.mxu0 %vm755_vm0, %v10294_v12  ;;  %10311 = vpow2.f32 %v2324_v46  ;;  %v8378_v12 = vadd.f32 -0.14285715, %v11665_v39 }
 0x20f   : > { %10313 = vpow2.f32 %v2326_v47  ;;  %v2616_v26 = vmul.f32 1.442695, %v2596_v21  ;;  %v2571_v46 = vmul.f32 3.5, %v8379_v61  ;;  %v2585_v47 = vmul.f32 %v2569_v23, %v2569_v23 }
 0x210   : > { %10315 = vpow2.f32 %v2328_v58  ;;  %v2570_v35 = vmul.f32 3.5, %v8378_v12  ;;  %v8383_v58 = vadd.f32 -0.14285715, %v11691_v16  ;;  %v2604_v21 = vsub.f32 0.0, %v2588_v8 }
 0x211   : > { %9434 = vmatmul.mubr.msk.f32.gmra.mrb[4].mxu0 %vm755_vm0, %v10296_v3  ;;  %10317 = vpow2.f32 %v2608_v60  ;;  %v2584_v3 = vmul.f32 %v2568_v27, %v2568_v27  ;;  %v2587_v42 = vmul.f32 %v2571_v46, %v2571_v46  ;;  %v2601_v5 = vsub.f32 0.0, %v2585_v47 }
 0x212   : > { %9436 = vmatprep.mubr.msk.f32.mxu0 %vm755_vm0, %v10298_v38  ;;  %10319 = vpow2.f32 %v2610_v24  ;;  %v2618_v38 = vmul.f32 1.442695, %v2597_v7  ;;  %v2586_v2 = vmul.f32 %v2570_v35, %v2570_v35  ;;  %v11922_v24 = vld [vmem:[%s14890_s1 + $0x18] sm:$0x7]  ;;  %v2575_v27 = vmul.f32 3.5, %v8383_v58 }
 0x213   : > { %10321 = vpow2.f32 %v2612_v32  ;;  %v2603_v54 = vsub.f32 0.0, %v2587_v42  ;;  %v2626_v36 = vmul.f32 1.442695, %v2601_v5  ;;  %v2590_v12 = vmul.f32 %v2574_v19, %v2574_v19 }
 0x214   : > { %10323 = vpow2.f32 %v2614_v6  ;;  %v2602_v60 = vsub.f32 0.0, %v2586_v2  ;;  %v2871_v61 = vmul.f32 3.5, %v8403_v56  ;;  %v2591_v34 = vmul.f32 %v2575_v27, %v2575_v27 }
 0x215   : > { %9437 = vmatmul.mubr.msk.f32.gmra.mrb[6].mxu0 %vm755_vm0, %v10300_v0  ;;  %v2600_v0 = vsub.f32 0.0, %v2584_v3  ;;  %10325 = vpow2.f32 %v2616_v26  ;;  %v2630_v6 = vmul.f32 1.442695, %v2603_v54  ;;  %v8405_v26 = vadd.f32 -0.42857143, %v11616_v4 }
 0x216   : > { %9439 = vmatprep.mubr.msk.f32.mxu0 %vm755_vm0, %v10302_v20  ;;  %v10308_v55 = vpop.eup %10307  ;;  %10327 = vpow2.f32 %v2618_v38  ;;  %v2628_v32 = vmul.f32 1.442695, %v2602_v60  ;;  %v8406_v35 = vadd.f32 -0.42857143, %v11619_v22  ;;  %v2632_v29 = vmul.f32 1.442695, %v2604_v21 }
 0x217   : > { %v10310_v28 = vpop.eup %10309  ;;  %10329 = vpow2.f32 %v2620_v33  ;;  %v2624_v59 = vmul.f32 1.442695, %v2600_v0  ;;  %v2887_v44 = vmul.f32 %v2871_v61, %v2871_v61  ;;  %v2607_v41 = vsub.f32 0.0, %v2591_v34 }
 0x218   : > { %v10312_v31 = vpop.eup %10311  ;;  %10331 = vpow2.f32 %v2622_v52  ;;  %v8407_v33 = vadd.f32 -0.42857143, %v14896_v25  ;;  %v2873_v47 = vmul.f32 3.5, %v8405_v26  ;;  %v2874_v2 = vmul.f32 3.5, %v8406_v35 }
 0x219   : > { %9440 = vmatmul.mubr.msk.f32.gmra.mrb[8].mxu0 %vm755_vm0, %v10304_v57  ;;  %v10314_v40 = vpop.eup %10313  ;;  %10333 = vpow2.f32 %v2624_v59  ;;  %v2903_v42 = vsub.f32 0.0, %v2887_v44  ;;  %v2638_v53 = vmul.f32 1.442695, %v2607_v41  ;;  %v8409_v60 = vadd.f32 -0.42857143, %v11634_v10 }
 0x21a   : > { %9442 = vmatprep.mubr.msk.f32.mxu0 %vm755_vm0, %v10306_v11  ;;  %v10316_v1 = vpop.eup %10315  ;;  %v8402_v11 = vadd.f32 -0.42857143, %v11577_v49  ;;  %10335 = vpow2.f32 %v2626_v36  ;;  %v2875_v58 = vmul.f32 3.5, %v8407_v33  ;;  %v2889_v5 = vmul.f32 %v2873_v47, %v2873_v47 }
 0x21b   : > { %v10318_v20 = vpop.eup %10317  ;;  %10337 = vpow2.f32 %v2628_v32  ;;  %v2920_v54 = vmul.f32 1.442695, %v2903_v42  ;;  %v8411_v27 = vadd.f32 -0.42857143, %v11642_v15  ;;  %v2877_v21 = vmul.f32 3.5, %v8409_v60 }
 0x21c   : > { %v10320_v57 = vpop.eup %10319  ;;  %10339 = vpow2.f32 %v2630_v6  ;;  %v8413_v34 = vadd.f32 -0.42857143, %v11670_v50  ;;  %v8414_v26 = vadd.f32 -0.42857143, %v11675_v51 }
 0x21d   : > { %9443 = vmatmul.mubr.msk.f32.gmra.mrb[10].mxu0 %vm755_vm0, %v10308_v55  ;;  %v10322_v18 = vpop.eup %10321  ;;  %v8404_v55 = vadd.f32 -0.42857143, %v11610_v43  ;;  %10341 = vpow2.f32 %v2632_v29 }
 0x21e   : > { %9445 = vmatprep.mubr.msk.f32.mxu0 %vm755_vm0, %v10310_v28  ;;  %v2870_v28 = vmul.f32 3.5, %v8402_v11  ;;  %v10324_v7 = vpop.eup %10323  ;;  %v8410_v11 = vadd.f32 -0.42857143, %v11637_v14  ;;  %v2881_v33 = vmul.f32 3.5, %v8413_v34 }
 0x21f   : > { %v10326_v13 = vpop.eup %10325  ;;  %v2872_v23 = vmul.f32 3.5, %v8404_v55  ;;  %v2905_v55 = vsub.f32 0.0, %v2889_v5 }
 0x220   : > { %v10328_v3 = vpop.eup %10327  ;;  %v2886_v38 = vmul.f32 %v2870_v28, %v2870_v28  ;;  %v2878_v28 = vmul.f32 3.5, %v8410_v11 }
 0x221   : > { %9446 = vmatmul.mubr.msk.f32.gmra.mrb[12].mxu0 %vm755_vm0, %v10312_v31  ;;  %v2606_v31 = vsub.f32 0.0, %v2590_v12  ;;  %v2888_v0 = vmul.f32 %v2872_v23, %v2872_v23  ;;  %v2893_v23 = vmul.f32 %v2877_v21, %v2877_v21 }
 0x222   : > { %9448 = vmatprep.mubr.msk.f32.mxu0 %vm755_vm0, %v10314_v40  ;;  %v10330_v40 = vpop.eup %10329 }
 0x223   : > { %v10332_v30 = vpop.eup %10331  ;;  %v2636_v48 = vmul.f32 1.442695, %v2606_v31  ;;  %v2904_v59 = vsub.f32 0.0, %v2888_v0  ;;  %v8415_v0 = vadd.f32 -0.42857143, %v11680_v62  ;;  %v2909_v47 = vsub.f32 0.0, %v2893_v23 }
 0x224   : > { %v10334_v52 = vpop.eup %10333 }
 0x225   : > { %9449 = vmatmul.mubr.msk.f32.gmra.mrb[14].mxu0 %vm755_vm0, %v10316_v1  ;;  %v2902_v1 = vsub.f32 0.0, %v2886_v38  ;;  %v10336_v56 = vpop.eup %10335  ;;  %v2922_v36 = vmul.f32 1.442695, %v2904_v59  ;;  %v2894_v38 = vmul.f32 %v2878_v28, %v2878_v28  ;;  %v2883_v59 = vmul.f32 3.5, %v8415_v0 }
 0x226   : > { %9453 = vmatprep.mubr.msk.f32.mxu0 %vm755_vm0, %v10318_v20  ;;  %v8408_v20 = vadd.f32 -0.42857143, %v11631_v37  ;;  %v2932_v5 = vmul.f32 1.442695, %v2909_v47  ;;  %v8441_v0 = vadd.f32 -0.71428573, %v14896_v25 }
 0x227   : > { %v2918_v8 = vmul.f32 1.442695, %v2902_v1 }
 0x228   : > { %v2876_v19 = vmul.f32 3.5, %v8408_v20  ;;  %v2910_v20 = vsub.f32 0.0, %v2894_v38 }
 0x229   : > { %9454 = vmatmul.mubr.msk.f32.vlgmr.msra.gmra.mrb[0].mxu0 %vm755_vm0, %v10320_v57  ;;  %v2890_v57 = vmul.f32 %v2874_v2, %v2874_v2  ;;  %v2882_v2 = vmul.f32 3.5, %v8414_v26 }
 0x22a   : > { %9478 = vmatpush3.msk.msra.mxu0 %vm1269_vm1, %v11880_v45  ;;  %9456 = vmatprep.mubr.msk.f32.mxu0 %vm755_vm0, %v10322_v18  ;;  %v2605_v45 = vsub.f32 0.0, %v2589_v9  ;;  %v10338_v18 = vpop.eup %10337  ;;  %v2891_v9 = vmul.f32 %v2875_v58, %v2875_v58  ;;  %v2892_v12 = vmul.f32 %v2876_v19, %v2876_v19  ;;  %v2897_v58 = vmul.f32 %v2881_v33, %v2881_v33 }
 0x22b   : > { %9503 = vmatprep.subr.msk.mxu0 %vm1269_vm1, %v11922_v24  ;;  %v2906_v32 = vsub.f32 0.0, %v2890_v57  ;;  %v2898_v57 = vmul.f32 %v2882_v2, %v2882_v2  ;;  %v2934_v11 = vmul.f32 1.442695, %v2910_v20 }
 0x22c   : > { %v2634_v46 = vmul.f32 1.442695, %v2605_v45  ;;  %v2907_v6 = vsub.f32 0.0, %v2891_v9  ;;  %v2879_v45 = vmul.f32 3.5, %v8411_v27  ;;  %v2908_v31 = vsub.f32 0.0, %v2892_v12 }
 0x22d   : > { %9457 = vmatmul.mubr.msk.f32.gmra.mrb[2].mxu0 %vm755_vm0, %v10324_v7  ;;  %v8412_v7 = vadd.f32 -0.42857143, %v11665_v39  ;;  %v2926_v29 = vmul.f32 1.442695, %v2906_v32  ;;  %v11962_v9 = vld [vmem:[%s14890_s1 + $0x1c] sm:$0x7]  ;;  %v2899_v32 = vmul.f32 %v2883_v59, %v2883_v59 }
 0x22e   : > { %9459 = vmatprep.mubr.msk.f32.mxu0 %vm755_vm0, %v10326_v13  ;;  %10343 = vpow2.f32 %v2634_v46  ;;  %v10340_v13 = vpop.eup %10339  ;;  %v2928_v46 = vmul.f32 1.442695, %v2907_v6  ;;  %v2895_v41 = vmul.f32 %v2879_v45, %v2879_v45  ;;  %v2930_v1 = vmul.f32 1.442695, %v2908_v31 }
 0x22f   : > { %10345 = vpow2.f32 %v2636_v48  ;;  %v10342_v61 = vpop.eup %10341  ;;  %v8437_v27 = vadd.f32 -0.71428573, %v11607_v17  ;;  %v2914_v21 = vsub.f32 0.0, %v2898_v57  ;;  %v3185_v59 = vmul.f32 3.5, %v8441_v0 }
 0x230   : > { %10347 = vpow2.f32 %v2638_v53  ;;  %v2911_v53 = vsub.f32 0.0, %v2895_v41 }
 0x231   : > { %9460 = vmatmul.mubr.msk.f32.gmra.mrb[4].mxu0 %vm755_vm0, %v10328_v3  ;;  %10349 = vpow2.f32 %v2918_v8  ;;  %v2924_v3 = vmul.f32 1.442695, %v2905_v55  ;;  %v8417_v8 = vadd.f32 -0.42857143, %v11691_v16  ;;  %v2913_v55 = vsub.f32 0.0, %v2897_v58 }
 0x232   : > { %9462 = vmatprep.mubr.msk.f32.mxu0 %vm755_vm0, %v10330_v40  ;;  %10351 = vpow2.f32 %v2920_v54  ;;  %v2880_v40 = vmul.f32 3.5, %v8412_v7  ;;  %v3181_v34 = vmul.f32 3.5, %v8437_v27  ;;  %v2942_v23 = vmul.f32 1.442695, %v2914_v21 }
 0x233   : > { %10353 = vpow2.f32 %v2922_v36  ;;  %v2936_v36 = vmul.f32 1.442695, %v2911_v53  ;;  %v2885_v28 = vmul.f32 3.5, %v8417_v8  ;;  %v8444_v8 = vadd.f32 -0.71428573, %v11637_v14 }
 0x234   : > { %10355 = vpow2.f32 %v2924_v3  ;;  %v2915_v3 = vsub.f32 0.0, %v2899_v32  ;;  %v3197_v41 = vmul.f32 %v3181_v34, %v3181_v34  ;;  %v8445_v21 = vadd.f32 -0.71428573, %v11642_v15 }
 0x235   : > { %9463 = vmatmul.mubr.msk.f32.gmra.mrb[6].mxu0 %vm755_vm0, %v10332_v30  ;;  %v8416_v30 = vadd.f32 -0.42857143, %v11686_v63  ;;  %10357 = vpow2.f32 %v2926_v29  ;;  %v8439_v29 = vadd.f32 -0.71428573, %v11616_v4 }
 0x236   : > { %9465 = vmatprep.mubr.msk.f32.mxu0 %vm755_vm0, %v10334_v52  ;;  %v2896_v52 = vmul.f32 %v2880_v40, %v2880_v40  ;;  %10359 = vpow2.f32 %v2928_v46  ;;  %v2944_v33 = vmul.f32 1.442695, %v2915_v3  ;;  %v3213_v58 = vsub.f32 0.0, %v3197_v41 }
 0x237   : > { %v2884_v60 = vmul.f32 3.5, %v8416_v30  ;;  %10361 = vpow2.f32 %v2930_v1  ;;  %v3183_v30 = vmul.f32 3.5, %v8439_v29 }
 0x238   : > { %v10344_v35 = vpop.eup %10343  ;;  %10363 = vpow2.f32 %v2932_v5  ;;  %v8443_v5 = vadd.f32 -0.71428573, %v11634_v10 }
 0x239   : > { %9466 = vmatmul.mubr.msk.f32.gmra.mrb[8].mxu0 %vm755_vm0, %v10336_v56  ;;  %v10346_v44 = vpop.eup %10345  ;;  %v2912_v56 = vsub.f32 0.0, %v2896_v52  ;;  %v2900_v12 = vmul.f32 %v2884_v60, %v2884_v60  ;;  %10365 = vpow2.f32 %v2934_v11  ;;  %v8442_v52 = vadd.f32 -0.71428573, %v11631_v37 }
 0x23a   : > { %9468 = vmatprep.mubr.msk.f32.mxu0 %vm755_vm0, %v10338_v18  ;;  %v10348_v48 = vpop.eup %10347  ;;  %v8436_v18 = vadd.f32 -0.71428573, %v11577_v49  ;;  %10367 = vpow2.f32 %v2936_v36  ;;  %v3199_v60 = vmul.f32 %v3183_v30, %v3183_v30  ;;  %v3230_v36 = vmul.f32 1.442695, %v3213_v58 }
 0x23b   : > { %v10350_v42 = vpop.eup %10349  ;;  %v2938_v7 = vmul.f32 1.442695, %v2912_v56  ;;  %v2916_v26 = vsub.f32 0.0, %v2900_v12  ;;  %v3187_v32 = vmul.f32 3.5, %v8443_v5 }
 0x23c   : > { %v10352_v19 = vpop.eup %10351  ;;  %v3215_v12 = vsub.f32 0.0, %v3199_v60 }
 0x23d   : > { %9469 = vmatmul.mubr.msk.f32.gmra.mrb[10].mxu0 %vm755_vm0, %v10340_v13  ;;  %v10354_v54 = vpop.eup %10353  ;;  %v3180_v13 = vmul.f32 3.5, %v8436_v18  ;;  %10369 = vpow2.f32 %v2938_v7  ;;  %v2946_v47 = vmul.f32 1.442695, %v2916_v26  ;;  %v8446_v7 = vadd.f32 -0.71428573, %v11665_v39 }
 0x23e   : > { %9471 = vmatprep.mubr.msk.f32.mxu0 %vm755_vm0, %v10342_v61  ;;  %v8438_v61 = vadd.f32 -0.71428573, %v11610_v43  ;;  %v10356_v6 = vpop.eup %10355  ;;  %v3203_v3 = vmul.f32 %v3187_v32, %v3187_v32  ;;  %v8447_v26 = vadd.f32 -0.71428573, %v11670_v50 }
 0x23f   : > { %v10358_v45 = vpop.eup %10357  ;;  %v3196_v38 = vmul.f32 %v3180_v13, %v3180_v13 }
 0x240   : > { %v10360_v31 = vpop.eup %10359  ;;  %v3182_v40 = vmul.f32 3.5, %v8438_v61  ;;  %v3219_v0 = vsub.f32 0.0, %v3203_v3 }
 0x241   : > { %9472 = vmatmul.mubr.msk.f32.gmra.mrb[12].mxu0 %vm755_vm0, %v10344_v35  ;;  %v2901_v35 = vmul.f32 %v2885_v28, %v2885_v28  ;;  %v10362_v46 = vpop.eup %10361  ;;  %v3188_v28 = vmul.f32 3.5, %v8444_v8 }
 0x242   : > { %9474 = vmatprep.mubr.msk.f32.mxu0 %vm755_vm0, %v10346_v44  ;;  %v8440_v44 = vadd.f32 -0.71428573, %v11619_v22  ;;  %v3198_v1 = vmul.f32 %v3182_v40, %v3182_v40 }
 0x243   : > { %v2917_v2 = vsub.f32 0.0, %v2901_v35  ;;  %v3234_v35 = vmul.f32 1.442695, %v3215_v12  ;;  %v3204_v29 = vmul.f32 %v3188_v28, %v3188_v28 }
 0x244   : > { %v3184_v20 = vmul.f32 3.5, %v8440_v44  ;;  %v3214_v56 = vsub.f32 0.0, %v3198_v1  ;;  %v8449_v1 = vadd.f32 -0.71428573, %v11680_v62 }
 0x245   : > { %9475 = vmatmul.mubr.msk.f32.gmra.mrb[14].mxu0 %vm755_vm0, %v10348_v48  ;;  %v3212_v48 = vsub.f32 0.0, %v3196_v38  ;;  %v2948_v57 = vmul.f32 1.442695, %v2917_v2  ;;  %v3191_v2 = vmul.f32 3.5, %v8447_v26  ;;  %v3220_v30 = vsub.f32 0.0, %v3204_v29 }
 0x246   : > { %9479 = vmatprep.mubr.msk.f32.mxu0 %vm755_vm0, %v10350_v42  ;;  %v10364_v42 = vpop.eup %10363  ;;  %v3200_v18 = vmul.f32 %v3184_v20, %v3184_v20  ;;  %v3232_v61 = vmul.f32 1.442695, %v3214_v56  ;;  %v8474_v26 = vadd.f32 -1.0, %v11619_v22 }
 0x247   : > { %v10366_v53 = vpop.eup %10365  ;;  %v3228_v11 = vmul.f32 1.442695, %v3212_v48  ;;  %v3244_v60 = vmul.f32 1.442695, %v3220_v30 }
 0x248   : > { %v3494_v22 = vmul.f32 3.5, %v8474_v26 }
 0x249   : > { %9480 = vmatmul.mubr.msk.f32.vlgmr.msra.gmra.mrb[0].mxu0 %vm755_vm0, %v10352_v19  ;;  %v10368_v19 = vpop.eup %10367 }
 0x24a   : > { %9504 = vmatpush3.msk.msra.mxu0 %vm1269_vm1, %v11922_v24  ;;  %9482 = vmatprep.mubr.msk.f32.mxu0 %vm755_vm0, %v10354_v54  ;;  %v2940_v24 = vmul.f32 1.442695, %v2913_v55  ;;  %v3186_v54 = vmul.f32 3.5, %v8442_v52  ;;  %v10370_v27 = vpop.eup %10369  ;;  %v3201_v55 = vmul.f32 %v3185_v59, %v3185_v59  ;;  %v3242_v59 = vmul.f32 1.442695, %v3219_v0 }
 0x24b   : > { %9529 = vmatprep.subr.msk.mxu0 %vm1269_vm1, %v11962_v9 }
 0x24c   : > { %10371 = vpow2.f32 %v2940_v24  ;;  %v3217_v24 = vsub.f32 0.0, %v3201_v55  ;;  %v8471_v55 = vadd.f32 -1.0, %v11607_v17 }
 0x24d   : > { %9483 = vmatmul.mubr.msk.f32.gmra.mrb[2].mxu0 %vm755_vm0, %v10356_v6  ;;  %10373 = vpow2.f32 %v2942_v23  ;;  %v3216_v6 = vsub.f32 0.0, %v3200_v18  ;;  %v3189_v23 = vmul.f32 3.5, %v8445_v21 }
 0x24e   : > { %9485 = vmatprep.mubr.msk.f32.mxu0 %vm755_vm0, %v10358_v45  ;;  %10375 = vpow2.f32 %v2944_v33  ;;  %v3202_v45 = vmul.f32 %v3186_v54, %v3186_v54  ;;  %v3238_v33 = vmul.f32 1.442695, %v3217_v24  ;;  %v8470_v54 = vadd.f32 -1.0, %v11577_v49 }
 0x24f   : > { %10377 = vpow2.f32 %v2946_v47  ;;  %v3236_v40 = vmul.f32 1.442695, %v3216_v6  ;;  %v3205_v47 = vmul.f32 %v3189_v23, %v3189_v23  ;;  %v8472_v6 = vadd.f32 -1.0, %v11610_v43 }
 0x250   : > { %10379 = vpow2.f32 %v2948_v57  ;;  %v3218_v44 = vsub.f32 0.0, %v3202_v45  ;;  %v3207_v57 = vmul.f32 %v3191_v2, %v3191_v2 }
 0x251   : > { %9486 = vmatmul.mubr.msk.f32.gmra.mrb[4].mxu0 %vm755_vm0, %v10360_v31  ;;  %10381 = vpow2.f32 %v3228_v11  ;;  %v3190_v31 = vmul.f32 3.5, %v8446_v7  ;;  %v3221_v5 = vsub.f32 0.0, %v3205_v47  ;;  %v8451_v11 = vadd.f32 -0.71428573, %v11691_v16 }
 0x252   : > { %9488 = vmatprep.mubr.msk.f32.mxu0 %vm755_vm0, %v10362_v46  ;;  %10383 = vpow2.f32 %v3230_v36  ;;  %v8448_v46 = vadd.f32 -0.71428573, %v11675_v51  ;;  %v3240_v20 = vmul.f32 1.442695, %v3218_v44  ;;  %v3223_v21 = vsub.f32 0.0, %v3207_v57 }
 0x253   : > { %10385 = vpow2.f32 %v3232_v61  ;;  %v3206_v48 = vmul.f32 %v3190_v31, %v3190_v31  ;;  %v3246_v32 = vmul.f32 1.442695, %v3221_v5  ;;  %v3195_v7 = vmul.f32 3.5, %v8451_v11 }
 0x254   : > { %10387 = vpow2.f32 %v3234_v35  ;;  %v3192_v52 = vmul.f32 3.5, %v8448_v46  ;;  %v3490_v61 = vmul.f32 3.5, %v8470_v54  ;;  %v3250_v24 = vmul.f32 1.442695, %v3223_v21 }
 0x255   : > { %9489 = vmatmul.mubr.msk.f32.gmra.mrb[6].mxu0 %vm755_vm0, %v10364_v42  ;;  %10389 = vpow2.f32 %v3236_v40  ;;  %v8450_v42 = vadd.f32 -0.71428573, %v11686_v63  ;;  %v3222_v8 = vsub.f32 0.0, %v3206_v48  ;;  %v3211_v23 = vmul.f32 %v3195_v7, %v3195_v7 }
 0x256   : > { %9491 = vmatprep.mubr.msk.f32.mxu0 %vm755_vm0, %v10366_v53  ;;  %v10372_v13 = vpop.eup %10371  ;;  %10391 = vpow2.f32 %v3238_v33  ;;  %v3208_v56 = vmul.f32 %v3192_v52, %v3192_v52  ;;  %v3506_v43 = vmul.f32 %v3490_v61, %v3490_v61  ;;  %v8475_v40 = vadd.f32 -1.0, %v14896_v25 }
 0x257   : > { %v10374_v34 = vpop.eup %10373  ;;  %10393 = vpow2.f32 %v3240_v20  ;;  %v3194_v18 = vmul.f32 3.5, %v8450_v42  ;;  %v3248_v12 = vmul.f32 1.442695, %v3222_v8  ;;  %v3227_v0 = vsub.f32 0.0, %v3211_v23 }
 0x258   : > { %v10376_v38 = vpop.eup %10375  ;;  %10395 = vpow2.f32 %v3242_v59  ;;  %v3522_v30 = vsub.f32 0.0, %v3506_v43  ;;  %v3495_v25 = vmul.f32 3.5, %v8475_v40  ;;  %v8477_v42 = vadd.f32 -1.0, %v11634_v10 }
 0x259   : > { %9492 = vmatmul.mubr.msk.f32.gmra.mrb[8].mxu0 %vm755_vm0, %v10368_v19  ;;  %v10378_v41 = vpop.eup %10377  ;;  %v3193_v19 = vmul.f32 3.5, %v8449_v1  ;;  %10397 = vpow2.f32 %v3244_v60  ;;  %v3210_v49 = vmul.f32 %v3194_v18, %v3194_v18  ;;  %v8478_v60 = vadd.f32 -1.0, %v11637_v14 }
 0x25a   : > { %9494 = vmatprep.mubr.msk.f32.mxu0 %vm755_vm0, %v10370_v27  ;;  %v10380_v53 = vpop.eup %10379  ;;  %10399 = vpow2.f32 %v3246_v32  ;;  %v3538_v5 = vmul.f32 1.442695, %v3522_v30  ;;  %v3497_v18 = vmul.f32 3.5, %v8477_v42  ;;  %v8480_v32 = vadd.f32 -1.0, %v11665_v39 }
 0x25b   : > { %v10382_v58 = vpop.eup %10381  ;;  %v3209_v28 = vmul.f32 %v3193_v19, %v3193_v19  ;;  %10401 = vpow2.f32 %v3248_v12  ;;  %v3226_v31 = vsub.f32 0.0, %v3210_v49  ;;  %v3511_v19 = vmul.f32 %v3495_v25, %v3495_v25 }
 0x25c   : > { %v10384_v27 = vpop.eup %10383  ;;  %10403 = vpow2.f32 %v3250_v24  ;;  %v8482_v39 = vadd.f32 -1.0, %v11675_v51  ;;  %v8484_v51 = vadd.f32 -1.0, %v11686_v63 }
 0x25d   : > { %9495 = vmatmul.mubr.msk.f32.gmra.mrb[10].mxu0 %vm755_vm0, %v10372_v13  ;;  %v10386_v36 = vpop.eup %10385  ;;  %v3224_v13 = vsub.f32 0.0, %v3208_v56  ;;  %v3225_v3 = vsub.f32 0.0, %v3209_v28  ;;  %v3256_v2 = vmul.f32 1.442695, %v3226_v31  ;;  %v3527_v21 = vsub.f32 0.0, %v3511_v19 }
 0x25e   : > { %9497 = vmatprep.mubr.msk.f32.mxu0 %vm755_vm0, %v10374_v34  ;;  %v10388_v17 = vpop.eup %10387  ;;  %v3491_v34 = vmul.f32 3.5, %v8471_v55  ;;  %v3498_v55 = vmul.f32 3.5, %v8478_v60  ;;  %v3502_v31 = vmul.f32 3.5, %v8482_v39 }
 0x25f   : > { %v10390_v45 = vpop.eup %10389  ;;  %v3252_v29 = vmul.f32 1.442695, %v3224_v13  ;;  %v3254_v33 = vmul.f32 1.442695, %v3225_v3  ;;  %v3513_v13 = vmul.f32 %v3497_v18, %v3497_v18 }
 0x260   : > { %v10392_v35 = vpop.eup %10391  ;;  %v3507_v46 = vmul.f32 %v3491_v34, %v3491_v34  ;;  %v3548_v34 = vmul.f32 1.442695, %v3527_v21 }
 0x261   : > { %9498 = vmatmul.mubr.msk.f32.gmra.mrb[12].mxu0 %vm755_vm0, %v10376_v38  ;;  %v3492_v38 = vmul.f32 3.5, %v8472_v6  ;;  %v10394_v44 = vpop.eup %10393  ;;  %10405 = vpow2.f32 %v3252_v29  ;;  %v3514_v6 = vmul.f32 %v3498_v55, %v3498_v55  ;;  %v3529_v3 = vsub.f32 0.0, %v3513_v13 }
 0x262   : > { %9500 = vmatprep.mubr.msk.f32.mxu0 %vm755_vm0, %v10378_v41  ;;  %v10396_v47 = vpop.eup %10395  ;;  %10407 = vpow2.f32 %v3254_v33 }
 0x263   : > { %v3508_v48 = vmul.f32 %v3492_v38, %v3492_v38  ;;  %v10398_v1 = vpop.eup %10397  ;;  %10409 = vpow2.f32 %v3256_v2  ;;  %v3552_v40 = vmul.f32 1.442695, %v3529_v3 }
 0x264   : > { %v10400_v59 = vpop.eup %10399 }
 0x265   : > { %9501 = vmatmul.mubr.msk.f32.gmra.mrb[14].mxu0 %vm755_vm0, %v10380_v53  ;;  %v3258_v53 = vmul.f32 1.442695, %v3227_v0  ;;  %v3524_v57 = vsub.f32 0.0, %v3508_v48  ;;  %v10402_v8 = vpop.eup %10401  ;;  %v3518_v0 = vmul.f32 %v3502_v31, %v3502_v31 }
 0x266   : > { %9505 = vmatprep.mubr.msk.f32.mxu0 %vm755_vm0, %v10382_v58  ;;  %v3510_v58 = vmul.f32 %v3494_v22, %v3494_v22  ;;  %v10404_v14 = vpop.eup %10403  ;;  %v3504_v22 = vmul.f32 3.5, %v8484_v51 }
 0x267   : > { %10411 = vpow2.f32 %v3258_v53 }
 0x268   : > { %v3526_v54 = vsub.f32 0.0, %v3510_v58  ;;  %10413 = vpow2.f32 %v3538_v5 }
 0x269   : > { %9506 = vmatmul.mubr.msk.f32.vlgmr.msra.gmra.mrb[0].mxu0 %vm755_vm0, %v10384_v27  ;;  %v8479_v27 = vadd.f32 -1.0, %v11642_v15  ;;  %v8481_v15 = vadd.f32 -1.0, %v11670_v50  ;;  %v8483_v50 = vadd.f32 -1.0, %v11680_v62 }
 0x26a   : > { %9530 = vmatpush3.msk.msra.mxu0 %vm1269_vm1, %v11962_v9  ;;  %9508 = vmatprep.mubr.msk.f32.mxu0 %vm755_vm0, %v10386_v36  ;;  %v8473_v9 = vadd.f32 -1.0, %v11616_v4  ;;  %v8476_v4 = vadd.f32 -1.0, %v11631_v37  ;;  %v3523_v37 = vsub.f32 0.0, %v3507_v46  ;;  %v3542_v36 = vmul.f32 1.442695, %v3524_v57 }
 0x26b   : > { %v10406_v12 = vpop.eup %10405  ;;  %v3546_v49 = vmul.f32 1.442695, %v3526_v54  ;;  %v3499_v61 = vmul.f32 3.5, %v8479_v27  ;;  %v3501_v26 = vmul.f32 3.5, %v8481_v15 }
 0x26c   : > { %v3493_v41 = vmul.f32 3.5, %v8473_v9  ;;  %v3496_v52 = vmul.f32 3.5, %v8476_v4  ;;  %v3540_v10 = vmul.f32 1.442695, %v3523_v37  ;;  %v8485_v4 = vadd.f32 -1.0, %v11691_v16 }
 0x26d   : > { %9509 = vmatmul.mubr.msk.f32.gmra.mrb[2].mxu0 %vm755_vm0, %v10388_v17  ;;  %v3500_v17 = vmul.f32 3.5, %v8480_v32  ;;  %v3515_v23 = vmul.f32 %v3499_v61, %v3499_v61  ;;  %v3517_v46 = vmul.f32 %v3501_v26, %v3501_v26  ;;  %v3520_v16 = vmul.f32 %v3504_v22, %v3504_v22 }
 0x26e   : > { %9511 = vmatprep.mubr.msk.f32.mxu0 %vm755_vm0, %v10390_v45  ;;  %v3509_v20 = vmul.f32 %v3493_v41, %v3493_v41  ;;  %v3512_v56 = vmul.f32 %v3496_v52, %v3496_v52  ;;  %10415 = vpow2.f32 %v3540_v10  ;;  %v10408_v45 = vpop.eup %10407  ;;  %v3503_v41 = vmul.f32 3.5, %v8483_v50 }
 0x26f   : > { %10417 = vpow2.f32 %v3542_v36  ;;  %v10410_v24 = vpop.eup %10409  ;;  %v3516_v29 = vmul.f32 %v3500_v17, %v3500_v17  ;;  %v3533_v30 = vsub.f32 0.0, %v3517_v46  ;;  %v3534_v52 = vsub.f32 0.0, %v3518_v0 }
 0x270   : > { %v3525_v11 = vsub.f32 0.0, %v3509_v20  ;;  %v3528_v7 = vsub.f32 0.0, %v3512_v56  ;;  %v3519_v48 = vmul.f32 %v3503_v41, %v3503_v41  ;;  %v3536_v60 = vsub.f32 0.0, %v3520_v16 }
 0x271   : > { %9512 = vmatmul.mubr.msk.f32.gmra.mrb[4].mxu0 %vm755_vm0, %v10392_v35  ;;  %v3530_v35 = vsub.f32 0.0, %v3514_v6  ;;  %v10412_v43 = vpop.eup %10411  ;;  %v3532_v33 = vsub.f32 0.0, %v3516_v29  ;;  %v3560_v53 = vmul.f32 1.442695, %v3533_v30  ;;  %v3562_v57 = vmul.f32 1.442695, %v3534_v52 }
 0x272   : > { %9514 = vmatprep.mubr.msk.f32.mxu0 %vm755_vm0, %v10394_v44  ;;  %v3544_v28 = vmul.f32 1.442695, %v3525_v11  ;;  %v3550_v9 = vmul.f32 1.442695, %v3528_v7  ;;  %v10414_v38 = vpop.eup %10413  ;;  %v3531_v44 = vsub.f32 0.0, %v3515_v23  ;;  %v3535_v58 = vsub.f32 0.0, %v3519_v48 }
 0x273   : > { %v3554_v62 = vmul.f32 1.442695, %v3530_v35  ;;  %v3558_v20 = vmul.f32 1.442695, %v3532_v33  ;;  %v3566_v56 = vmul.f32 1.442695, %v3536_v60 }
 0x274   : > { %10419 = vpow2.f32 %v3544_v28  ;;  %v3556_v2 = vmul.f32 1.442695, %v3531_v44 }
 0x275   : > { %9515 = vmatmul.mubr.msk.f32.gmra.mrb[6].mxu0 %vm755_vm0, %v10396_v47  ;;  %10421 = vpow2.f32 %v3546_v49 }
 0x276   : > { %9517 = vmatprep.mubr.msk.f32.mxu0 %vm755_vm0, %v10398_v1  ;;  %10423 = vpow2.f32 %v3548_v34  ;;  %v3505_v1 = vmul.f32 3.5, %v8485_v4 }
 0x277   : > { %10425 = vpow2.f32 %v3550_v9 }
 0x278   : > { %v10416_v47 = vpop.eup %10415  ;;  %10427 = vpow2.f32 %v3552_v40 }
 0x279   : > { %9518 = vmatmul.mubr.msk.f32.gmra.mrb[8].mxu0 %vm755_vm0, %v10400_v59  ;;  %v10418_v63 = vpop.eup %10417  ;;  %10429 = vpow2.f32 %v3554_v62  ;;  %v3521_v59 = vmul.f32 %v3505_v1, %v3505_v1 }
 0x27a   : > { %9520 = vmatprep.mubr.msk.f32.mxu0 %vm755_vm0, %v10402_v8  ;;  %10431 = vpow2.f32 %v3556_v2  ;;  %v3564_v8 = vmul.f32 1.442695, %v3535_v58 }
 0x27b   : > { %10433 = vpow2.f32 %v3558_v20  ;;  %v3537_v19 = vsub.f32 0.0, %v3521_v59 }
 0x27c   : > { %10435 = vpow2.f32 %v3560_v53 }
 0x27d   : > { %9521 = vmatmul.mubr.msk.f32.gmra.mrb[10].mxu0 %vm755_vm0, %v10404_v14  ;;  %10437 = vpow2.f32 %v3562_v57  ;;  %v3568_v10 = vmul.f32 1.442695, %v3537_v19 }
 0x27e   : > { %9523 = vmatprep.mubr.msk.f32.mxu0 %vm755_vm0, %v10406_v12  ;;  %v10420_v25 = vpop.eup %10419  ;;  %10439 = vpow2.f32 %v3564_v8  ;;  %v8504_v12 = vld [vmem:[%s14898_s7] ss:$0 sm:$0xff] }
 0x27f   : > { %v10422_v42 = vpop.eup %10421  ;;  %10441 = vpow2.f32 %v3566_v56 }
 0x280   : > { %v10424_v37 = vpop.eup %10423  ;;  %10443 = vpow2.f32 %v3568_v10 }
 0x281   : > { %9524 = vmatmul.mubr.msk.f32.gmra.mrb[12].mxu0 %vm755_vm0, %v10408_v45  ;;  %v10426_v5 = vpop.eup %10425 }
 0x282   : > { %9526 = vmatprep.mubr.msk.f32.mxu0 %vm755_vm0, %v10410_v24  ;;  %v10428_v11 = vpop.eup %10427 }
 0x283   : > { %v10430_v18 = vpop.eup %10429 }
 0x284   : > { %v10432_v54 = vpop.eup %10431 }
 0x285   : > { %9527 = vmatmul.mubr.msk.f32.gmra.mrb[14].mxu0 %vm755_vm0, %v10412_v43  ;;  %v10434_v27 = vpop.eup %10433 }
 0x286   : > { %9531 = vmatprep.mubr.msk.f32.mxu0 %vm755_vm0, %v10414_v38  ;;  %v10436_v36 = vpop.eup %10435 }
 0x287   : > { %v10438_v55 = vpop.eup %10437 }
 0x288   : > { %v10440_v32 = vpop.eup %10439 }
 0x289   : > { %9532 = vmatmul.mubr.msk.f32.vlgmr.msra.gmra.mrb[0].mxu0 %vm755_vm0, %v10416_v47  ;;  %v10442_v14 = vpop.eup %10441 }
 0x28a   : > { %9534 = vmatprep.mubr.msk.f32.mxu0 %vm755_vm0, %v10418_v63  ;;  %v10444_v21 = vpop.eup %10443 }
 0x28d   : > { %9535 = vmatmul.mubr.msk.f32.gmra.mrb[2].mxu0 %vm755_vm0, %v10420_v25 }
 0x28e   : > { %9537 = vmatprep.mubr.msk.f32.mxu0 %vm755_vm0, %v10422_v42 }
 0x291   : > { %9538 = vmatmul.mubr.msk.f32.gmra.mrb[4].mxu0 %vm755_vm0, %v10424_v37 }
 0x292   : > { %9540 = vmatprep.mubr.msk.f32.mxu0 %vm755_vm0, %v10426_v5 }
 0x295   : > { %9541 = vmatmul.mubr.msk.f32.gmra.mrb[6].mxu0 %vm755_vm0, %v10428_v11 }
 0x296   : > { %9543 = vmatprep.mubr.msk.f32.mxu0 %vm755_vm0, %v10430_v18 }
 0x299   : > { %9544 = vmatmul.mubr.msk.f32.gmra.mrb[8].mxu0 %vm755_vm0, %v10432_v54 }
 0x29a   : > { %9546 = vmatprep.mubr.msk.f32.mxu0 %vm755_vm0, %v10434_v27 }
 0x29d   : > { %9547 = vmatmul.mubr.msk.f32.gmra.mrb[10].mxu0 %vm755_vm0, %v10436_v36 }
 0x29e   : > { %9549 = vmatprep.mubr.msk.f32.mxu0 %vm755_vm0, %v10438_v55 }
 0x2a1   : > { %9550 = vmatmul.mubr.msk.f32.gmra.mrb[12].mxu0 %vm755_vm0, %v10440_v32 }
 0x2a2   : > { %9552 = vmatprep.mubr.msk.f32.mxu0 %vm755_vm0, %v10442_v14 }
 0x2a5   : > { %9553 = vmatmul.mubr.msk.f32.gmra.mrb[14].mxu0 %vm755_vm0, %v10444_v21 }
 0x35c   : > { %v9533_v28 = vpop.f32.mrb[0].mxu0 }
 0x35d   : > { %v12051_v7 = vadd.f32 %v9533_v28, %v8504_v12  ;;  %v3689_v13 = vpop.f32.mrb[1].mxu0 }
 0x35e   : > { %v12053_v49 = vadd.f32 %v8504_v12, %v3689_v13 }
 0x35f   : > { %v3811_v61 = vsel %vm3807_vm2, %v12051_v7, 0.0 }
 0x360   : > { %3812 = vadd.xlane.f32.xlu1 %v3811_v61  ;;  %v9536_v15 = vpop.f32.mrb[2].mxu0  ;;  %v3808_v6 = vsel %vm3807_vm2, %v12053_v49, 0.0 }
 0x361   : > { %v12059_v17 = vadd.f32 %v9536_v15, %v8504_v12  ;;  %3809 = vadd.xlane.f32.xlu0 %v3808_v6  ;;  %v3699_v39 = vpop.f32.mrb[3].mxu0 }
 0x362   : > { %v12061_v45 = vadd.f32 %v8504_v12, %v3699_v39 }
 0x363   : > { %v3817_v34 = vsel %vm3807_vm2, %v12059_v17, 0.0 }
 0x364   : > { %3818 = vadd.xlane.f32.xlu1 %v3817_v34  ;;  %v9539_v24 = vpop.f32.mrb[4].mxu0  ;;  %v3814_v9 = vsel %vm3807_vm2, %v12061_v45, 0.0 }
 0x365   : > { %v12067_v3 = vadd.f32 %v9539_v24, %v8504_v12  ;;  %3815 = vadd.xlane.f32.xlu0 %v3814_v9  ;;  %v3709_v23 = vpop.f32.mrb[5].mxu0 }
 0x366   : > { %v12069_v26 = vadd.f32 %v8504_v12, %v3709_v23 }
 0x367   : > { %v3823_v50 = vsel %vm3807_vm2, %v12067_v3, 0.0 }
 0x368   : > { %3824 = vadd.xlane.f32.xlu1 %v3823_v50  ;;  %v9542_v35 = vpop.f32.mrb[6].mxu0  ;;  %v3820_v29 = vsel %vm3807_vm2, %v12069_v26, 0.0 }
 0x369   : > { %v12075_v31 = vadd.f32 %v9542_v35, %v8504_v12  ;;  %3821 = vadd.xlane.f32.xlu0 %v3820_v29  ;;  %v3719_v51 = vpop.f32.mrb[7].mxu0 }
 0x36a   : > { %v12077_v43 = vadd.f32 %v8504_v12, %v3719_v51 }
 0x36b   : > { %v3829_v38 = vsel %vm3807_vm2, %v12075_v31, 0.0 }
 0x36c   : > { %3830 = vadd.xlane.f32.xlu1 %v3829_v38  ;;  %v9545_v40 = vpop.f32.mrb[8].mxu0  ;;  %v3826_v44 = vsel %vm3807_vm2, %v12077_v43, 0.0 }
 0x36d   : > { %v12083_v46 = vadd.f32 %v9545_v40, %v8504_v12  ;;  %3827 = vadd.xlane.f32.xlu0 %v3826_v44  ;;  %v3729_v41 = vpop.f32.mrb[9].mxu0 }
 0x36e   : > { %v12085_v4 = vadd.f32 %v8504_v12, %v3729_v41 }
 0x36f   : > { %v3835_v62 = vsel %vm3807_vm2, %v12083_v46, 0.0 }
 0x370   : > { %3836 = vadd.xlane.f32.xlu1 %v3835_v62  ;;  %v9548_v33 = vpop.f32.mrb[10].mxu0  ;;  %v3832_v0 = vsel %vm3807_vm2, %v12085_v4, 0.0 }
 0x371   : > { %v12091_v22 = vadd.f32 %v9548_v33, %v8504_v12  ;;  %3833 = vadd.xlane.f32.xlu0 %v3832_v0  ;;  %v3739_v47 = vpop.f32.mrb[11].mxu0 }
 0x372   : > { %v12093_v63 = vadd.f32 %v8504_v12, %v3739_v47 }
 0x373   : > { %v3841_v2 = vsel %vm3807_vm2, %v12091_v22, 0.0 }
 0x374   : > { %3842 = vadd.xlane.f32.xlu1 %v3841_v2  ;;  %v9551_v30 = vpop.f32.mrb[12].mxu0  ;;  %v3838_v48 = vsel %vm3807_vm2, %v12093_v63, 0.0 }
 0x375   : > { %v12099_v1 = vadd.f32 %v9551_v30, %v8504_v12  ;;  %3839 = vadd.xlane.f32.xlu0 %v3838_v48  ;;  %v3749_v25 = vpop.f32.mrb[13].mxu0 }
 0x376   : > { %v12101_v20 = vadd.f32 %v8504_v12, %v3749_v25 }
 0x377   : > { %14899 = vst [vmem:[#allocation10_spill] sm:$0xff] %v12099_v1  ;;  %v3847_v52 = vsel %vm3807_vm2, %v12099_v1, 0.0 }
 0x378   : > { %14900 = vst [vmem:[#allocation12_spill] sm:$0xff] %v12101_v20  ;;  %3848 = vadd.xlane.f32.xlu1 %v3847_v52  ;;  %v9554_v16 = vpop.f32.mrb[14].mxu0  ;;  %v3844_v42 = vsel %vm3807_vm2, %v12101_v20, 0.0 }
 0x379   : > { %v12107_v37 = vadd.f32 %v9554_v16, %v8504_v12  ;;  %3845 = vadd.xlane.f32.xlu0 %v3844_v42  ;;  %v3759_v53 = vpop.f32.mrb[15].mxu0 }
 0x37a   : > { %v12109_v58 = vadd.f32 %v8504_v12, %v3759_v53 }
 0x37b   : > { %14901 = vst [vmem:[#allocation11_spill] sm:$0xff] %v12107_v37  ;;  %v3853_v59 = vsel %vm3807_vm2, %v12107_v37, 0.0 }
 0x37c   : > { %14902 = vst [vmem:[#allocation13_spill] sm:$0xff] %v12109_v58  ;;  %3854 = vadd.xlane.f32.xlu1 %v3853_v59  ;;  %v3850_v5 = vsel %vm3807_vm2, %v12109_v58, 0.0 }
 0x37d   : > { %3851 = vadd.xlane.f32.xlu0 %v3850_v5 }
 0x3ed   : > { %v3813_v57 = vpop.xlane.xlu1 %3812 }
 0x3ee   : > { %v3858_v60 = vmul.f32 0.015625, %v3813_v57  ;;  %v3810_v8 = vpop.xlane.xlu0 %3809 }
 0x3ef   : > { %v3857_v19 = vmul.f32 0.015625, %v3810_v8 }
 0x3f0   : > { %v12116_v11 = vsub.f32 %v12051_v7, %v3858_v60 }
 0x3f1   : > { %v12119_v56 = vsub.f32 %v12053_v49, %v3857_v19  ;;  %v3819_v18 = vpop.xlane.xlu1 %3818 }
 0x3f2   : > { %v3860_v10 = vmul.f32 0.015625, %v3819_v18  ;;  %v3816_v54 = vpop.xlane.xlu0 %3815  ;;  %v3890_v27 = vmul.f32 %v12116_v11, %v12116_v11 }
 0x3f3   : > { %v3859_v36 = vmul.f32 0.015625, %v3816_v54  ;;  %v3889_v55 = vmul.f32 %v12119_v56, %v12119_v56 }
 0x3f4   : > { %v12126_v32 = vsub.f32 %v12059_v17, %v3860_v10  ;;  %v3908_v14 = vsel %vm3807_vm2, %v3890_v27, 0.0 }
 0x3f5   : > { %v12130_v21 = vsub.f32 %v12061_v45, %v3859_v36  ;;  %v3825_v12 = vpop.xlane.xlu1 %3824  ;;  %3909 = vadd.xlane.f32.xlu1 %v3908_v14  ;;  %v3905_v28 = vsel %vm3807_vm2, %v3889_v55, 0.0 }
 0x3f6   : > { %v3862_v13 = vmul.f32 0.015625, %v3825_v12  ;;  %v3822_v61 = vpop.xlane.xlu0 %3821  ;;  %3906 = vadd.xlane.f32.xlu0 %v3905_v28  ;;  %v3892_v15 = vmul.f32 %v12126_v32, %v12126_v32 }
 0x3f7   : > { %v3861_v6 = vmul.f32 0.015625, %v3822_v61  ;;  %v3891_v39 = vmul.f32 %v12130_v21, %v12130_v21 }
 0x3f8   : > { %v12138_v34 = vsub.f32 %v12067_v3, %v3862_v13  ;;  %v3914_v24 = vsel %vm3807_vm2, %v3892_v15, 0.0 }
 0x3f9   : > { %v12142_v9 = vsub.f32 %v12069_v26, %v3861_v6  ;;  %v3831_v23 = vpop.xlane.xlu1 %3830  ;;  %3915 = vadd.xlane.f32.xlu1 %v3914_v24  ;;  %v3911_v50 = vsel %vm3807_vm2, %v3891_v39, 0.0 }
 0x3fa   : > { %v3864_v35 = vmul.f32 0.015625, %v3831_v23  ;;  %v3828_v29 = vpop.xlane.xlu0 %3827  ;;  %3912 = vadd.xlane.f32.xlu0 %v3911_v50  ;;  %v3894_v51 = vmul.f32 %v12138_v34, %v12138_v34 }
 0x3fb   : > { %v3863_v38 = vmul.f32 0.015625, %v3828_v29  ;;  %v3893_v40 = vmul.f32 %v12142_v9, %v12142_v9 }
 0x3fc   : > { %v12150_v44 = vsub.f32 %v12075_v31, %v3864_v35  ;;  %v3920_v41 = vsel %vm3807_vm2, %v3894_v51, 0.0 }
 0x3fd   : > { %v12154_v62 = vsub.f32 %v12077_v43, %v3863_v38  ;;  %v3837_v33 = vpop.xlane.xlu1 %3836  ;;  %3921 = vadd.xlane.f32.xlu1 %v3920_v41  ;;  %v3917_v0 = vsel %vm3807_vm2, %v3893_v40, 0.0 }
 0x3fe   : > { %v3866_v47 = vmul.f32 0.015625, %v3837_v33  ;;  %v3834_v2 = vpop.xlane.xlu0 %3833  ;;  %3918 = vadd.xlane.f32.xlu0 %v3917_v0  ;;  %v3896_v30 = vmul.f32 %v12150_v44, %v12150_v44 }
 0x3ff   : > { %v3865_v48 = vmul.f32 0.015625, %v3834_v2  ;;  %v3895_v25 = vmul.f32 %v12154_v62, %v12154_v62 }
 0x400   : > { %v12162_v52 = vsub.f32 %v12083_v46, %v3866_v47  ;;  %v3926_v16 = vsel %vm3807_vm2, %v3896_v30, 0.0 }
 0x401   : > { %v12166_v42 = vsub.f32 %v12085_v4, %v3865_v48  ;;  %v3843_v53 = vpop.xlane.xlu1 %3842  ;;  %3927 = vadd.xlane.f32.xlu1 %v3926_v16  ;;  %v3923_v59 = vsel %vm3807_vm2, %v3895_v25, 0.0  ;;  %v4685_v48 = vld [vmem:[%s14903_s9 + $0x80] sm:$0xff]  ;;  %v4686_v25 = vld [vmem:[%s14903_s9 + $0x88] sm:$0xff] }
 0x402   : > { %v3868_v5 = vmul.f32 0.015625, %v3843_v53  ;;  %v3840_v57 = vpop.xlane.xlu0 %3839  ;;  %3924 = vadd.xlane.f32.xlu0 %v3923_v59  ;;  %v3898_v60 = vmul.f32 %v12162_v52, %v12162_v52  ;;  %v4669_v16 = vld [vmem:[%s14903_s9] sm:$0xff]  ;;  %v9675_v53 = vpack.c.bf16 %v4686_v25, %v4685_v48  ;;  %v4670_v59 = vld [vmem:[%s14903_s9 + $0x8] sm:$0xff] }
 0x403   : > { %v3867_v8 = vmul.f32 0.015625, %v3840_v57  ;;  %v3897_v19 = vmul.f32 %v12166_v42, %v12166_v42  ;;  %v4688_v57 = vld [vmem:[%s14903_s9 + $0x98] sm:$0xff] }
 0x404   : > { %v12174_v18 = vsub.f32 %v12091_v22, %v3868_v5  ;;  %v3932_v10 = vsel %vm3807_vm2, %v3898_v60, 0.0  ;;  %v4687_v5 = vld [vmem:[%s14903_s9 + $0x90] sm:$0xff]  ;;  %v9677_v60 = vpack.c.bf16 %v4670_v59, %v4669_v16  ;;  %9676 = vmatprep.subr.bf16.mxu1 %v9675_v53 }
 0x405   : > { %v12178_v54 = vsub.f32 %v12093_v63, %v3867_v8  ;;  %v3849_v27 = vpop.xlane.xlu1 %3848  ;;  %3933 = vadd.xlane.f32.xlu1 %v3932_v10  ;;  %v3929_v36 = vsel %vm3807_vm2, %v3897_v19, 0.0  ;;  %v9679_v8 = vpack.c.bf16 %v4688_v57, %v4687_v5  ;;  %v4671_v19 = vld [vmem:[%s14903_s9 + $0x10] sm:$0xff]  ;;  %v4672_v10 = vld [vmem:[%s14903_s9 + $0x18] sm:$0xff] }
 0x406   : > { %v3870_v55 = vmul.f32 0.015625, %v3849_v27  ;;  %v3846_v14 = vpop.xlane.xlu0 %3845  ;;  %3930 = vadd.xlane.f32.xlu0 %v3929_v36  ;;  %v3900_v12 = vmul.f32 %v12174_v18, %v12174_v18  ;;  %v4689_v27 = vld [vmem:[%s14903_s9 + $0xa0] sm:$0xff]  ;;  %v4690_v36 = vld [vmem:[%s14903_s9 + $0xa8] sm:$0xff]  ;;  %9678 = vmatpush3.bf16.msra.mxu1 %v9677_v60 }
 0x407   : > { %v3869_v28 = vmul.f32 0.015625, %v3846_v14  ;;  %v3899_v13 = vmul.f32 %v12178_v54, %v12178_v54  ;;  %9680 = vmatprep.subr.bf16.mxu1 %v9679_v8  ;;  %v9683_v14 = vpack.c.bf16 %v4690_v36, %v4689_v27  ;;  %v12244_v60 = vld [vmem:[%s14904_s30] ss:$0 sm:$0xff] }
 0x408   : > { %v12186_v61 = vsub.f32 %v12099_v1, %v3870_v55  ;;  %v3938_v15 = vsel %vm3807_vm2, %v3900_v12, 0.0  ;;  %v9681_v55 = vpack.c.bf16 %v4672_v10, %v4671_v19 }
 0x409   : > { %v12190_v6 = vsub.f32 %v12101_v20, %v3869_v28  ;;  %3939 = vadd.xlane.f32.xlu1 %v3938_v15  ;;  %v3855_v39 = vpop.xlane.xlu1 %3854  ;;  %v3935_v24 = vsel %vm3807_vm2, %v3899_v13, 0.0 }
 0x40a   : > { %v3872_v23 = vmul.f32 0.015625, %v3855_v39  ;;  %3936 = vadd.xlane.f32.xlu0 %v3935_v24  ;;  %v3852_v50 = vpop.xlane.xlu0 %3851  ;;  %v3902_v35 = vmul.f32 %v12186_v61, %v12186_v61  ;;  %9682 = vmatpush3.bf16.msra.mxu1 %v9681_v55 }
 0x40b   : > { %v3871_v29 = vmul.f32 0.015625, %v3852_v50  ;;  %v3901_v51 = vmul.f32 %v12190_v6, %v12190_v6  ;;  %9684 = vmatprep.subr.bf16.mxu1 %v9683_v14  ;;  %v12250_v14 = vld [vmem:[%s14905_s2] ss:$0 sm:$0xff]  ;;  %s8615_s2 = sshll.u32 %s11338_s6, 11 }
 0x40c   : > { %v12198_v38 = vsub.f32 %v12107_v37, %v3872_v23  ;;  %v3944_v40 = vsel %vm3807_vm2, %v3902_v35, 0.0  ;;  %s14756_s25 = scalar_lea.hbm %s14830_s24, %s8615_s2 }
 0x40d   : > { %v12202_v41 = vsub.f32 %v12109_v58, %v3871_v29  ;;  %3945 = vadd.xlane.f32.xlu1 %v3944_v40  ;;  %v3941_v33 = vsel %vm3807_vm2, %v3901_v51, 0.0 }
 0x40e   : > { %3942 = vadd.xlane.f32.xlu0 %v3941_v33  ;;  %v3904_v0 = vmul.f32 %v12198_v38, %v12198_v38 }
 0x40f   : > { %v3903_v47 = vmul.f32 %v12202_v41, %v12202_v41 }
 0x410   : > { %v3950_v2 = vsel %vm3807_vm2, %v3904_v0, 0.0 }
 0x411   : > { %3951 = vadd.xlane.f32.xlu1 %v3950_v2  ;;  %v3947_v30 = vsel %vm3807_vm2, %v3903_v47, 0.0 }
 0x412   : > { %3948 = vadd.xlane.f32.xlu0 %v3947_v30 }
 0x482   : > { %v3910_v12 = vpop.xlane.xlu1 %3909 }
 0x483   : > { %v3954_v28 = vmul.f32 0.015625, %v3910_v12  ;;  %v3907_v13 = vpop.xlane.xlu0 %3906 }
 0x484   : > { %v3953_v15 = vmul.f32 0.015625, %v3907_v13 }
 0x485   : > { %v3970_v39 = vadd.f32 1e-05, %v3954_v28 }
 0x486   : > { %v3969_v24 = vadd.f32 1e-05, %v3953_v15  ;;  %v3916_v23 = vpop.xlane.xlu1 %3915 }
 0x487   : > { %10445 = vrsqrt.f32 %v3970_v39  ;;  %v3956_v50 = vmul.f32 0.015625, %v3916_v23  ;;  %v3913_v35 = vpop.xlane.xlu0 %3912 }
 0x488   : > { %10447 = vrsqrt.f32 %v3969_v24  ;;  %v3955_v29 = vmul.f32 0.015625, %v3913_v35 }
 0x489   : > { %v3972_v51 = vadd.f32 1e-05, %v3956_v50 }
 0x48a   : > { %v3971_v40 = vadd.f32 1e-05, %v3955_v29  ;;  %v3922_v33 = vpop.xlane.xlu1 %3921 }
 0x48b   : > { %10449 = vrsqrt.f32 %v3972_v51  ;;  %v3958_v0 = vmul.f32 0.015625, %v3922_v33  ;;  %v3919_v47 = vpop.xlane.xlu0 %3918 }
 0x48c   : > { %10451 = vrsqrt.f32 %v3971_v40  ;;  %v3957_v2 = vmul.f32 0.015625, %v3919_v47 }
 0x48d   : > { %v3974_v30 = vadd.f32 1e-05, %v3958_v0 }
 0x48e   : > { %v3973_v48 = vadd.f32 1e-05, %v3957_v2  ;;  %v3928_v25 = vpop.xlane.xlu1 %3927 }
 0x48f   : > { %10453 = vrsqrt.f32 %v3974_v30  ;;  %v3960_v16 = vmul.f32 0.015625, %v3928_v25  ;;  %v3925_v53 = vpop.xlane.xlu0 %3924 }
 0x490   : > { %10455 = vrsqrt.f32 %v3973_v48  ;;  %v3959_v59 = vmul.f32 0.015625, %v3925_v53  ;;  %v4673_v48 = vld [vmem:[%s14903_s9 + $0x20] sm:$0xff] }
 0x491   : > { %v10446_v5 = vpop.eup %10445  ;;  %v3976_v57 = vadd.f32 1e-05, %v3960_v16 }
 0x492   : > { %v10448_v8 = vpop.eup %10447  ;;  %v3975_v19 = vadd.f32 1e-05, %v3959_v59  ;;  %v3934_v10 = vpop.xlane.xlu1 %3933  ;;  %v4002_v27 = vmul.f32 %v10446_v5, %v12116_v11 }
 0x493   : > { %10457 = vrsqrt.f32 %v3976_v57  ;;  %v3962_v36 = vmul.f32 0.015625, %v3934_v10  ;;  %v3931_v55 = vpop.xlane.xlu0 %3930  ;;  %v4001_v12 = vmul.f32 %v10448_v8, %v12119_v56 }
 0x494   : > { %10459 = vrsqrt.f32 %v3975_v19  ;;  %v3961_v28 = vmul.f32 0.015625, %v3931_v55  ;;  %v4025_v13 = vmul.f32 %v12244_v60, %v4002_v27  ;;  %v4675_v55 = vld [vmem:[%s14903_s9 + $0x30] sm:$0xff] }
 0x495   : > { %v10450_v15 = vpop.eup %10449  ;;  %v3978_v39 = vadd.f32 1e-05, %v3962_v36  ;;  %v4024_v24 = vmul.f32 %v12244_v60, %v4001_v12  ;;  %v4691_v36 = vld [vmem:[%s14903_s9 + $0xb0] sm:$0xff] }
 0x496   : > { %v10452_v23 = vpop.eup %10451  ;;  %v3977_v11 = vadd.f32 1e-05, %v3961_v28  ;;  %v3940_v50 = vpop.xlane.xlu1 %3939  ;;  %v12256_v35 = vadd.f32 %v12250_v14, %v4025_v13  ;;  %v4004_v29 = vmul.f32 %v10450_v15, %v12126_v32 }
 0x497   : > { %10461 = vrsqrt.f32 %v3978_v39  ;;  %v3964_v51 = vmul.f32 0.015625, %v3940_v50  ;;  %v3937_v40 = vpop.xlane.xlu0 %3936  ;;  %v12260_v56 = vadd.f32 %v12250_v14, %v4024_v24  ;;  %v4003_v33 = vmul.f32 %v10452_v23, %v12130_v21  ;;  %v4674_v21 = vld [vmem:[%s14903_s9 + $0x28] sm:$0xff]  ;;  %v4676_v39 = vld [vmem:[%s14903_s9 + $0x38] sm:$0xff] }
 0x498   : > { %10463 = vrsqrt.f32 %v3977_v11  ;;  %v3963_v0 = vmul.f32 0.015625, %v3937_v40  ;;  %4201 = vrot.lane.b32.xlu1 %v12256_v35, %s14856_s0  ;;  %v4027_v30 = vmul.f32 %v12244_v60, %v4004_v29  ;;  %v9685_v5 = vpack.c.bf16 %v4674_v21, %v4673_v48 }
 0x499   : > { %v10454_v47 = vpop.eup %10453  ;;  %v3980_v2 = vadd.f32 1e-05, %v3964_v51  ;;  %4199 = vrot.lane.b32.xlu0 %v12260_v56, %s14856_s0  ;;  %v4026_v32 = vmul.f32 %v12244_v60, %v4003_v33  ;;  %v9689_v51 = vpack.c.bf16 %v4676_v39, %v4675_v55 }
 0x49a   : > { %v10456_v25 = vpop.eup %10455  ;;  %v3979_v16 = vadd.f32 1e-05, %v3963_v0  ;;  %v3946_v53 = vpop.xlane.xlu1 %3945  ;;  %v4006_v59 = vmul.f32 %v10454_v47, %v12138_v34  ;;  %9686 = vmatpush3.bf16.msra.mxu1 %v9685_v5  ;;  %v4692_v34 = vld [vmem:[%s14903_s9 + $0xb8] sm:$0xff]  ;;  %v4677_v5 = vld [vmem:[%s14903_s9 + $0x40] sm:$0xff] }
 0x49b   : > { %10465 = vrsqrt.f32 %v3980_v2  ;;  %v3966_v57 = vmul.f32 0.015625, %v3946_v53  ;;  %v3943_v8 = vpop.xlane.xlu0 %3942  ;;  %v12277_v19 = vadd.f32 %v12250_v14, %v4026_v32  ;;  %v4005_v10 = vmul.f32 %v10456_v25, %v12142_v9  ;;  %v4693_v53 = vld [vmem:[%s14903_s9 + $0xc0] sm:$0xff] }
 0x49c   : > { %10467 = vrsqrt.f32 %v3979_v16  ;;  %v3965_v27 = vmul.f32 0.015625, %v3943_v8  ;;  %v12292_v9 = vadd.f32 %v12250_v14, %v4027_v30  ;;  %v9687_v15 = vpack.c.bf16 %v4692_v34, %v4691_v36 }
 0x49d   : > { %v10458_v12 = vpop.eup %10457  ;;  %v3982_v28 = vadd.f32 1e-05, %v3966_v57  ;;  %4203 = vrot.lane.b32.xlu1 %v12277_v19, %s14856_s0  ;;  %v4028_v13 = vmul.f32 %v12244_v60, %v4005_v10  ;;  %v4029_v50 = vmul.f32 %v12244_v60, %v4006_v59  ;;  %v4694_v59 = vld [vmem:[%s14903_s9 + $0xc8] sm:$0xff] }
 0x49e   : > { %v10460_v24 = vpop.eup %10459  ;;  %v3981_v23 = vadd.f32 1e-05, %v3965_v27  ;;  %v3952_v11 = vpop.xlane.xlu1 %3951  ;;  %v4008_v29 = vmul.f32 %v10458_v12, %v12150_v44  ;;  %9688 = vmatprep.subr.bf16.mxu1 %v9687_v15  ;;  %v9691_v10 = vpack.c.bf16 %v4694_v59, %v4693_v53 }
 0x49f   : > { %10469 = vrsqrt.f32 %v3982_v28  ;;  %v3968_v40 = vmul.f32 0.015625, %v3952_v11  ;;  %v3949_v33 = vpop.xlane.xlu0 %3948  ;;  %v12301_v0 = vadd.f32 %v12250_v14, %v4028_v13  ;;  %v4007_v47 = vmul.f32 %v10460_v24, %v12154_v62  ;;  %9690 = vmatpush3.bf16.msra.mxu1 %v9689_v51 }
 0x4a0   : > { %10471 = vrsqrt.f32 %v3981_v23  ;;  %v3967_v2 = vmul.f32 0.015625, %v3949_v33  ;;  %v12310_v25 = vadd.f32 %v12250_v14, %v4029_v50  ;;  %v4031_v62 = vmul.f32 %v12244_v60, %v4008_v29  ;;  %9692 = vmatprep.subr.bf16.mxu1 %v9691_v10  ;;  %v4696_v33 = vld [vmem:[%s14903_s9 + $0xd8] sm:$0xff]  ;;  %v4681_v10 = vld [vmem:[%s14903_s9 + $0x60] sm:$0xff] }
 0x4a1   : > { %v10462_v32 = vpop.eup %10461  ;;  %v3984_v30 = vadd.f32 1e-05, %v3968_v40  ;;  %4205 = vrot.lane.b32.xlu1 %v12292_v9, %s14856_s0  ;;  %4207 = vrot.lane.b32.xlu0 %v12301_v0, %s14856_s0  ;;  %v4030_v44 = vmul.f32 %v12244_v60, %v4007_v47 }
 0x4a2   : > { %v10464_v48 = vpop.eup %10463  ;;  %v3983_v21 = vadd.f32 1e-05, %v3967_v2  ;;  %v4010_v16 = vmul.f32 %v10462_v32, %v12162_v52  ;;  %v4678_v52 = vld [vmem:[%s14903_s9 + $0x48] sm:$0xff] }
 0x4a3   : > { %10473 = vrsqrt.f32 %v3984_v30  ;;  %v12324_v57 = vadd.f32 %v12250_v14, %v4030_v44  ;;  %v4009_v8 = vmul.f32 %v10464_v48, %v12166_v42  ;;  %v9693_v27 = vpack.c.bf16 %v4678_v52, %v4677_v5  ;;  %v4679_v30 = vld [vmem:[%s14903_s9 + $0x50] sm:$0xff]  ;;  %v4680_v44 = vld [vmem:[%s14903_s9 + $0x58] sm:$0xff] }
 0x4a4   : > { %10475 = vrsqrt.f32 %v3983_v21  ;;  %v12337_v42 = vadd.f32 %v12250_v14, %v4031_v62  ;;  %v4033_v13 = vmul.f32 %v12244_v60, %v4010_v16  ;;  %v9697_v16 = vpack.c.bf16 %v4680_v44, %v4679_v30 }
 0x4a5   : > { %v10466_v36 = vpop.eup %10465  ;;  %4209 = vrot.lane.b32.xlu1 %v12310_v25, %s14856_s0  ;;  %4211 = vrot.lane.b32.xlu0 %v12324_v57, %s14856_s0  ;;  %v4032_v34 = vmul.f32 %v12244_v60, %v4009_v8  ;;  %v4697_v8 = vld [vmem:[%s14903_s9 + $0xe0] sm:$0xff] }
 0x4a6   : > { %v10468_v55 = vpop.eup %10467  ;;  %v4012_v12 = vmul.f32 %v10466_v36, %v12174_v18  ;;  %9694 = vmatpush3.bf16.msra.mxu1 %v9693_v27  ;;  %v12352_v50 = vadd.f32 %v12250_v14, %v4033_v13  ;;  %v4699_v36 = vld [vmem:[%s14903_s9 + $0xf0] sm:$0xff]  ;;  %v4684_v13 = vld [vmem:[%s14903_s9 + $0x78] sm:$0xff] }
 0x4a7   : > { %v12340_v28 = vadd.f32 %v12250_v14, %v4032_v34  ;;  %v4011_v15 = vmul.f32 %v10468_v55, %v12178_v54  ;;  %v4700_v34 = vld [vmem:[%s14903_s9 + $0xf8] sm:$0xff]  ;;  %v4683_v55 = vld [vmem:[%s14903_s9 + $0x70] sm:$0xff] }
 0x4a8   : > { %v4035_v23 = vmul.f32 %v12244_v60, %v4012_v12  ;;  %v9703_v12 = vpack.c.bf16 %v4700_v34, %v4699_v36 }
 0x4a9   : > { %v10470_v39 = vpop.eup %10469  ;;  %4213 = vrot.lane.b32.xlu1 %v12337_v42, %s14856_s0  ;;  %4215 = vrot.lane.b32.xlu0 %v12340_v28, %s14856_s0  ;;  %v4034_v18 = vmul.f32 %v12244_v60, %v4011_v15  ;;  %v9705_v15 = vpack.c.bf16 %v4684_v13, %v4683_v55 }
 0x4aa   : > { %v10472_v24 = vpop.eup %10471  ;;  %v4014_v11 = vmul.f32 %v10470_v39, %v12186_v61  ;;  %v4695_v61 = vld [vmem:[%s14903_s9 + $0xd0] sm:$0xff]  ;;  %v4717_v39 = vld [vmem:[%s14903_s9 + $0x180] sm:$0xff] }
 0x4ab   : > { %v12355_v54 = vadd.f32 %v12250_v14, %v4034_v18  ;;  %v4013_v29 = vmul.f32 %v10472_v24, %v12190_v6  ;;  %v12370_v6 = vadd.f32 %v12250_v14, %v4035_v23  ;;  %v9695_v32 = vpack.c.bf16 %v4696_v33, %v4695_v61  ;;  %v4718_v18 = vld [vmem:[%s14903_s9 + $0x188] sm:$0xff] }
 0x4ac   : > { %v4037_v2 = vmul.f32 %v12244_v60, %v4014_v11  ;;  %v9707_v24 = vpack.c.bf16 %v4718_v18, %v4717_v39  ;;  %v4265_v23 = vlaneseq }
 0x4ad   : > { %v10474_v51 = vpop.eup %10473  ;;  %4217 = vrot.lane.b32.xlu1 %v12352_v50, %s14856_s0  ;;  %4219 = vrot.lane.b32.xlu0 %v12355_v54, %s14856_s0  ;;  %v4036_v40 = vmul.f32 %v12244_v60, %v4013_v29 }
 0x4ae   : > { %v10476_v47 = vpop.eup %10475  ;;  %v4016_v62 = vmul.f32 %v10474_v51, %v12198_v38  ;;  %9696 = vmatprep.subr.bf16.mxu1 %v9695_v32  ;;  %v12390_v59 = vadd.f32 %v12250_v14, %v4037_v2  ;;  %v12435_v11 = vshrl.u32 %v4265_v23, 7  ;;  %v12443_v51 = vld [vmem:[%s14907_s27] sm:$0xf] }
 0x4af   : > { %v12380_v48 = vadd.f32 %v12250_v14, %v4036_v40  ;;  %v4015_v21 = vmul.f32 %v10476_v47, %v12202_v41  ;;  %9698 = vmatpush3.bf16.msra.mxu1 %v9697_v16 }
 0x4b0   : > { %v4039_v41 = vmul.f32 %v12244_v60, %v4016_v62  ;;  %v12438_v29 = vsub.s32 2, %v12435_v11  ;;  %v12498_v34 = vsub.s32 0, %v12435_v11 }
 0x4b1   : > { %4221 = vrot.lane.b32.xlu1 %v12370_v6, %s14856_s0  ;;  %4223 = vrot.lane.b32.xlu0 %v12380_v48, %s14856_s0  ;;  %v4038_v53 = vmul.f32 %v12244_v60, %v4015_v21  ;;  %v4698_v60 = vld [vmem:[%s14903_s9 + $0xe8] sm:$0xff] }
 0x4b2   : > { %v12401_v38 = vadd.f32 %v12250_v14, %v4039_v41  ;;  %v9699_v52 = vpack.c.bf16 %v4698_v60, %v4697_v8  ;;  %14906 = vst [vmem:[#allocation14_spill] sm:$0xff] %v12438_v29  ;;  %v12447_v40 = vrot.slane %v12443_v51, %v12438_v29  ;;  %14908 = vst [vmem:[#allocation15_spill] sm:$0xff] %v12498_v34 }
 0x4b3   : > { %v12393_v5 = vadd.f32 %v12250_v14, %v4038_v53  ;;  %v4682_v14 = vld [vmem:[%s14903_s9 + $0x68] sm:$0xff] }
 0x4b4   : > { %v9701_v27 = vpack.c.bf16 %v4682_v14, %v4681_v10  ;;  %9700 = vmatprep.subr.bf16.mxu1 %v9699_v52 }
 0x4b5   : > { %4225 = vrot.lane.b32.xlu1 %v12390_v59, %s14856_s0  ;;  %4227 = vrot.lane.b32.xlu0 %v12393_v5, %s14856_s0 }
 0x4b6   : > { %9702 = vmatpush3.bf16.msra.mxu1 %v9701_v27 }
 0x4b7   : > { %9704 = vmatprep.subr.bf16.mxu1 %v9703_v12  ;;  %v12509_v12 = vrot.slane %v12443_v51, %v12498_v34 }
 0x4b9   : > { %4229 = vrot.lane.b32.xlu1 %v12401_v38, %s14856_s0 }
 0x4ba   : > { %9706 = vmatpush3.bf16.msra.mxu1 %v9705_v15 }
 0x4bb   : > { %9708 = vmatprep.subr.bf16.mxu1 %v9707_v24 }
 0x50a   : > { %v4202_v61 = vpop.permute.xlu1 %4201 }
 0x50b   : > { %v12451_v33 = vsel %vm3807_vm2, %v12256_v35, %v4202_v61  ;;  %v4200_v47 = vpop.permute.xlu0 %4199 }
 0x50c   : > { %v12457_v32 = vsel %vm3807_vm2, %v12260_v56, %v4200_v47  ;;  %v4289_v47 = vsub.f32 %v12451_v33, %v12509_v12 }
 0x50f   : > { %v4204_v44 = vpop.permute.xlu1 %4203 }
 0x510   : > { %v12463_v21 = vsel %vm3807_vm2, %v12277_v19, %v4204_v44 }
 0x513   : > { %v4206_v62 = vpop.permute.xlu1 %4205  ;;  %v4208_v53 = vpop.permute.xlu0 %4207 }
 0x514   : > { %v12469_v16 = vsel %vm3807_vm2, %v12292_v9, %v4206_v62  ;;  %v12475_v41 = vsel %vm3807_vm2, %v12301_v0, %v4208_v53 }
 0x517   : > { %v4210_v8 = vpop.permute.xlu1 %4209  ;;  %v4212_v10 = vpop.permute.xlu0 %4211 }
 0x518   : > { %v12481_v60 = vsel %vm3807_vm2, %v12310_v25, %v4210_v8  ;;  %v12487_v52 = vsel %vm3807_vm2, %v12324_v57, %v4212_v10  ;;  %v12505_v57 = vsub.s32 1, %v12435_v11  ;;  %v4293_v8 = vsub.f32 %v12463_v21, %v12509_v12 }
 0x519   : > { %v4305_v30 = vsub.f32 %v12481_v60, %v12509_v12 }
 0x51a   : > { %14909 = vst [vmem:[#allocation16_spill] sm:$0xff] %v12505_v57  ;;  %v12515_v15 = vrot.slane %v12443_v51, %v12505_v57  ;;  %v4357_v18 = vmul.f32 3.5, %v4293_v8  ;;  %v4704_v57 = vld [vmem:[%s14903_s9 + $0x118] sm:$0xff] }
 0x51b   : > { %v4214_v14 = vpop.permute.xlu1 %4213  ;;  %v4216_v36 = vpop.permute.xlu0 %4215 }
 0x51c   : > { %v12493_v27 = vsel %vm3807_vm2, %v12337_v42, %v4214_v14  ;;  %v12502_v55 = vsel %vm3807_vm2, %v12340_v28, %v4216_v36  ;;  %v4285_v28 = vsub.f32 %v12457_v32, %v12509_v12  ;;  %v4290_v24 = vsub.f32 %v12451_v33, %v12515_v15 }
 0x51d   : > { %v4294_v62 = vsub.f32 %v12463_v21, %v12515_v15  ;;  %v4286_v10 = vsub.f32 %v12457_v32, %v12515_v15  ;;  %v4353_v36 = vmul.f32 3.5, %v4289_v47  ;;  %v4421_v56 = vmul.f32 %v4357_v18, %v4357_v18 }
 0x51e   : > { %v4349_v61 = vmul.f32 3.5, %v4285_v28 }
 0x51f   : > { %v4218_v13 = vpop.permute.xlu1 %4217  ;;  %v4220_v23 = vpop.permute.xlu0 %4219  ;;  %v4358_v28 = vmul.f32 3.5, %v4294_v62  ;;  %v4350_v42 = vmul.f32 3.5, %v4286_v10  ;;  %v4417_v25 = vmul.f32 %v4353_v36, %v4353_v36  ;;  %v4301_v10 = vsub.f32 %v12475_v41, %v12509_v12 }
 0x520   : > { %v12519_v39 = vsel %vm3807_vm2, %v12352_v50, %v4218_v13  ;;  %v12531_v44 = vsel %vm3807_vm2, %v12355_v54, %v4220_v23  ;;  %v4354_v50 = vmul.f32 3.5, %v4290_v24  ;;  %v4413_v53 = vmul.f32 %v4349_v61, %v4349_v61 }
 0x521   : > { %v4298_v13 = vsub.f32 %v12469_v16, %v12515_v15  ;;  %v4297_v61 = vsub.f32 %v12469_v16, %v12509_v12  ;;  %v4414_v9 = vmul.f32 %v4350_v42, %v4350_v42  ;;  %v4422_v14 = vmul.f32 %v4358_v28, %v4358_v28 }
 0x522   : > { %v4418_v54 = vmul.f32 %v4354_v50, %v4354_v50  ;;  %v4477_v23 = vsub.f32 0.0, %v4413_v53  ;;  %v4302_v50 = vsub.f32 %v12475_v41, %v12515_v15  ;;  %v4306_v42 = vsub.f32 %v12481_v60, %v12515_v15 }
 0x523   : > { %v4222_v24 = vpop.permute.xlu1 %4221  ;;  %v4362_v0 = vmul.f32 3.5, %v4298_v13  ;;  %v4361_v53 = vmul.f32 3.5, %v4297_v61  ;;  %v4478_v8 = vsub.f32 0.0, %v4414_v9  ;;  %v4224_v35 = vpop.permute.xlu0 %4223  ;;  %v4481_v36 = vsub.f32 0.0, %v4417_v25 }
 0x524   : > { %v12547_v19 = vsel %vm3807_vm2, %v12370_v6, %v4222_v24  ;;  %v4482_v47 = vsub.f32 0.0, %v4418_v54  ;;  %v4541_v62 = vmul.f32 1.442695, %v4477_v23  ;;  %v4486_v24 = vsub.f32 0.0, %v4422_v14 }
 0x525   : > { %v4426_v13 = vmul.f32 %v4362_v0, %v4362_v0  ;;  %v4543_v54 = vmul.f32 1.442695, %v4478_v8  ;;  %v4366_v2 = vmul.f32 3.5, %v4302_v50  ;;  %v12559_v18 = vsel %vm3807_vm2, %v12380_v48, %v4224_v35  ;;  %v4701_v50 = vld [vmem:[%s14903_s9 + $0x100] sm:$0xff] }
 0x526   : > { %v4551_v28 = vmul.f32 1.442695, %v4482_v47  ;;  %10477 = vpow2.f32 %v4541_v62  ;;  %v4485_v9 = vsub.f32 0.0, %v4421_v56  ;;  %v4425_v23 = vmul.f32 %v4361_v53, %v4361_v53 }
 0x527   : > { %v4365_v61 = vmul.f32 3.5, %v4301_v10  ;;  %v4370_v29 = vmul.f32 3.5, %v4306_v42  ;;  %10479 = vpow2.f32 %v4543_v54  ;;  %v4549_v6 = vmul.f32 1.442695, %v4481_v36  ;;  %v4226_v62 = vpop.permute.xlu1 %4225  ;;  %v4702_v36 = vld [vmem:[%s14903_s9 + $0x108] sm:$0xff] }
 0x528   : > { %v4490_v25 = vsub.f32 0.0, %v4426_v13  ;;  %v4310_v0 = vsub.f32 %v12487_v52, %v12515_v15  ;;  %10481 = vpow2.f32 %v4551_v28  ;;  %v4559_v48 = vmul.f32 1.442695, %v4486_v24  ;;  %v4720_v13 = vld [vmem:[%s14903_s9 + $0x198] sm:$0xff] }
 0x529   : > { %v4430_v35 = vmul.f32 %v4366_v2, %v4366_v2  ;;  %v4557_v47 = vmul.f32 1.442695, %v4485_v9  ;;  %v4489_v56 = vsub.f32 0.0, %v4425_v23  ;;  %v4429_v53 = vmul.f32 %v4365_v61, %v4365_v61  ;;  %v4719_v2 = vld [vmem:[%s14903_s9 + $0x190] sm:$0xff]  ;;  %v4228_v61 = vpop.permute.xlu0 %4227 }
 0x52a   : > { %v4369_v8 = vmul.f32 3.5, %v4305_v30  ;;  %v4434_v10 = vmul.f32 %v4370_v29, %v4370_v29  ;;  %v4309_v42 = vsub.f32 %v12487_v52, %v12509_v12  ;;  %10483 = vpow2.f32 %v4549_v6  ;;  %v4703_v6 = vld [vmem:[%s14903_s9 + $0x110] sm:$0xff] }
 0x52b   : > { %v4567_v54 = vmul.f32 1.442695, %v4490_v25  ;;  %v4374_v28 = vmul.f32 3.5, %v4310_v0  ;;  %10485 = vpow2.f32 %v4559_v48  ;;  %v4494_v29 = vsub.f32 0.0, %v4430_v35 }
 0x52c   : > { %v4314_v30 = vsub.f32 %v12493_v27, %v12515_v15  ;;  %v12585_v24 = vsel %vm3807_vm2, %v12390_v59, %v4226_v62  ;;  %10487 = vpow2.f32 %v4557_v47  ;;  %v4565_v9 = vmul.f32 1.442695, %v4489_v56  ;;  %v12596_v59 = vld [vmem:[%s14903_s9 + $0x1a0] sm:$0xff]  ;;  %v12601_v47 = vld [vmem:[%s14903_s9 + $0x1a8] sm:$0xff] }
 0x52d   : > { %v9709_v23 = vpack.c.bf16 %v4702_v36, %v4701_v50  ;;  %v9711_v14 = vpack.c.bf16 %v4720_v13, %v4719_v2  ;;  %v4493_v25 = vsub.f32 0.0, %v4429_v53  ;;  %v4433_v0 = vmul.f32 %v4369_v8, %v4369_v8 }
 0x52e   : > { %v4498_v48 = vsub.f32 0.0, %v4434_v10  ;;  %v4373_v35 = vmul.f32 3.5, %v4309_v42  ;;  %10489 = vpow2.f32 %v4567_v54  ;;  %v4438_v50 = vmul.f32 %v4374_v28, %v4374_v28  ;;  %v12618_v28 = vld [vmem:[%s14903_s9 + $0x120] sm:$0xff] }
 0x52f   : > { %v4313_v62 = vsub.f32 %v12493_v27, %v12509_v12  ;;  %v4575_v10 = vmul.f32 1.442695, %v4494_v29  ;;  %v4378_v42 = vmul.f32 3.5, %v4314_v30  ;;  %v4318_v36 = vsub.f32 %v12502_v55, %v12515_v15  ;;  %v4706_v29 = vld [vmem:[%s14903_s9 + $0x128] sm:$0xff] }
 0x530   : > { %v10478_v56 = vpop.eup %10477  ;;  %v12611_v2 = vsel %vm3807_vm2, %v12393_v5, %v4228_v61  ;;  %10491 = vpow2.f32 %v4565_v9  ;;  %v9713_v13 = vpack.c.bf16 %v4704_v57, %v4703_v6  ;;  %v9715_v54 = vpack.c.bf16 %v12601_v47, %v12596_v59  ;;  %v12626_v5 = vld [vmem:[%s14903_s9 + $0x1b0] sm:$0xff]  ;;  %v4724_v59 = vld [vmem:[%s14903_s9 + $0x1b8] sm:$0xff] }
 0x531   : > { %v10480_v8 = vpop.eup %10479  ;;  %v4573_v9 = vmul.f32 1.442695, %v4493_v25  ;;  %v4497_v57 = vsub.f32 0.0, %v4433_v0  ;;  %v4583_v61 = vmul.f32 1.442695, %v4498_v48  ;;  %v4437_v6 = vmul.f32 %v4373_v35, %v4373_v35 }
 0x532   : > { %4797 = vmatprep.mubr.f32.mxu1 %v10480_v8  ;;  %v10482_v30 = vpop.eup %10481  ;;  %v4502_v47 = vsub.f32 0.0, %v4438_v50  ;;  %v4377_v8 = vmul.f32 3.5, %v4313_v62  ;;  %v4317_v53 = vsub.f32 %v12502_v55, %v12509_v12  ;;  %10493 = vpow2.f32 %v4575_v10  ;;  %v4230_v50 = vpop.permute.xlu1 %4229 }
 0x533   : > { %4798 = vmatmul.mubr.f32.vlgmr.msra.gmra.mrb[0].mxu1 %v10478_v56  ;;  %v4442_v25 = vmul.f32 %v4378_v42, %v4378_v42  ;;  %v4382_v0 = vmul.f32 3.5, %v4318_v36  ;;  %v4322_v48 = vsub.f32 %v12519_v39, %v12515_v15  ;;  %v4321_v56 = vsub.f32 %v12519_v39, %v12509_v12  ;;  %v4708_v42 = vld [vmem:[%s14903_s9 + $0x138] sm:$0xff] }
 0x534   : > { %9710 = vmatpush3.bf16.msra.mxu1 %v9709_v23  ;;  %4802 = vmatprep.mubr.f32.mxu1 %v10482_v30  ;;  %v10484_v35 = vpop.eup %10483  ;;  %v9717_v62 = vpack.c.bf16 %v4706_v29, %v12618_v28  ;;  %v9719_v23 = vpack.c.bf16 %v4724_v59, %v12626_v5  ;;  %10495 = vpow2.f32 %v4573_v9  ;;  %v4581_v37 = vmul.f32 1.442695, %v4497_v57  ;;  %v4725_v9 = vld [vmem:[%s14903_s9 + $0x1c0] sm:$0xff]  ;;  %v4726_v57 = vld [vmem:[%s14903_s9 + $0x1c8] sm:$0xff] }
 0x535   : > { %9712 = vmatprep.subr.bf16.mxu1 %v9711_v14  ;;  %v10486_v30 = vpop.eup %10485  ;;  %v4501_v34 = vsub.f32 0.0, %v4437_v6  ;;  %v4326_v10 = vsub.f32 %v12531_v44, %v12515_v15  ;;  %v4707_v14 = vld [vmem:[%s14903_s9 + $0x130] sm:$0xff]  ;;  %10497 = vpow2.f32 %v4583_v61  ;;  %v4591_v28 = vmul.f32 1.442695, %v4502_v47 }
 0x536   : > { %v10488_v36 = vpop.eup %10487  ;;  %v4441_v29 = vmul.f32 %v4377_v8, %v4377_v8  ;;  %v4381_v5 = vmul.f32 3.5, %v4317_v53  ;;  %v4506_v6 = vsub.f32 0.0, %v4442_v25  ;;  %v4446_v59 = vmul.f32 %v4382_v0, %v4382_v0 }
 0x537   : > { %4803 = vmatmul.mubr.f32.gmra.mrb[2].mxu1 %v10484_v35  ;;  %v4386_v35 = vmul.f32 3.5, %v4322_v48  ;;  %v12657_v58 = vsel %vm3807_vm2, %v12401_v38, %v4230_v50  ;;  %v4385_v53 = vmul.f32 3.5, %v4321_v56  ;;  %v9721_v47 = vpack.c.bf16 %v4708_v42, %v4707_v14  ;;  %v4727_v42 = vld [vmem:[%s14903_s9 + $0x1d0] sm:$0xff] }
 0x538   : > { %4807 = vmatprep.mubr.f32.mxu1 %v10486_v30  ;;  %9714 = vmatpush3.bf16.msra.mxu1 %v9713_v13  ;;  %v10490_v61 = vpop.eup %10489  ;;  %v4325_v13 = vsub.f32 %v12531_v44, %v12509_v12  ;;  %10499 = vpow2.f32 %v4581_v37  ;;  %v4390_v8 = vmul.f32 3.5, %v4326_v10  ;;  %v4330_v30 = vsub.f32 %v12547_v19, %v12515_v15  ;;  %v4710_v37 = vld [vmem:[%s14903_s9 + $0x148] sm:$0xff] }
 0x539   : > { %9716 = vmatprep.subr.bf16.mxu1 %v9715_v54  ;;  %v9723_v25 = vpack.c.bf16 %v4726_v57, %v4725_v9  ;;  %v4589_v48 = vmul.f32 1.442695, %v4501_v34  ;;  %v4505_v1 = vsub.f32 0.0, %v4441_v29  ;;  %v4445_v20 = vmul.f32 %v4381_v5, %v4381_v5  ;;  %v4709_v54 = vld [vmem:[%s14903_s9 + $0x140] sm:$0xff] }
 0x53a   : > { %v10492_v0 = vpop.eup %10491  ;;  %v4347_v38 = vsub.f32 %v12657_v58, %v12447_v40  ;;  %10501 = vpow2.f32 %v4591_v28  ;;  %v4599_v56 = vmul.f32 1.442695, %v4506_v6  ;;  %v4510_v50 = vsub.f32 0.0, %v4446_v59 }
 0x53b   : > { %4808 = vmatmul.mubr.f32.gmra.mrb[4].mxu1 %v10488_v36  ;;  %v4450_v10 = vmul.f32 %v4386_v35, %v4386_v35  ;;  %v4449_v34 = vmul.f32 %v4385_v53, %v4385_v53  ;;  %v4389_v14 = vmul.f32 3.5, %v4325_v13  ;;  %v4454_v29 = vmul.f32 %v4390_v8, %v4390_v8  ;;  %v4711_v13 = vld [vmem:[%s14903_s9 + $0x150] sm:$0xff] }
 0x53c   : > { %4812 = vmatprep.mubr.f32.mxu1 %v10490_v61  ;;  %9718 = vmatpush3.bf16.msra.mxu1 %v9717_v62  ;;  %v4728_v62 = vld [vmem:[%s14903_s9 + $0x1d8] sm:$0xff]  ;;  %v10494_v36 = vpop.eup %10493  ;;  %v4329_v5 = vsub.f32 %v12547_v19, %v12509_v12  ;;  %v4394_v28 = vmul.f32 3.5, %v4330_v30  ;;  %v9725_v9 = vpack.c.bf16 %v4710_v37, %v4709_v54  ;;  %10503 = vpow2.f32 %v4589_v48 }
 0x53d   : > { %9720 = vmatprep.subr.bf16.mxu1 %v9719_v23  ;;  %v4597_v23 = vmul.f32 1.442695, %v4505_v1  ;;  %v4509_v57 = vsub.f32 0.0, %v4445_v20  ;;  %v4334_v6 = vsub.f32 %v12559_v18, %v12515_v15  ;;  %10505 = vpow2.f32 %v4599_v56  ;;  %v4712_v1 = vld [vmem:[%s14903_s9 + $0x158] sm:$0xff] }
 0x53e   : > { %v10496_v59 = vpop.eup %10495  ;;  %v4607_v35 = vmul.f32 1.442695, %v4510_v50  ;;  %v4514_v61 = vsub.f32 0.0, %v4450_v10  ;;  %v9727_v53 = vpack.c.bf16 %v4728_v62, %v4727_v42  ;;  %v4513_v8 = vsub.f32 0.0, %v4449_v34 }
 0x53f   : > { %4813 = vmatmul.mubr.f32.gmra.mrb[6].mxu1 %v10492_v0  ;;  %v10498_v20 = vpop.eup %10497  ;;  %v4453_v30 = vmul.f32 %v4389_v14, %v4389_v14  ;;  %v4518_v0 = vsub.f32 0.0, %v4454_v29  ;;  %v4393_v48 = vmul.f32 3.5, %v4329_v5  ;;  %v4458_v54 = vmul.f32 %v4394_v28, %v4394_v28  ;;  %v4714_v29 = vld [vmem:[%s14903_s9 + $0x168] sm:$0xff] }
 0x540   : > { %4817 = vmatprep.mubr.f32.mxu1 %v10494_v36  ;;  %9722 = vmatpush3.bf16.msra.mxu1 %v9721_v47  ;;  %v4729_v47 = vld [vmem:[%s14903_s9 + $0x1e0] sm:$0xff]  ;;  %v4333_v37 = vsub.f32 %v12559_v18, %v12509_v12  ;;  %10507 = vpow2.f32 %v4597_v23  ;;  %v4605_v56 = vmul.f32 1.442695, %v4509_v57  ;;  %v4398_v50 = vmul.f32 3.5, %v4334_v6  ;;  %v4731_v23 = vld [vmem:[%s14903_s9 + $0x1f0] sm:$0xff]  ;;  %v4732_v57 = vld [vmem:[%s14903_s9 + $0x1f8] sm:$0xff] }
 0x541   : > { %9724 = vmatprep.subr.bf16.mxu1 %v9723_v25  ;;  %v4730_v25 = vld [vmem:[%s14903_s9 + $0x1e8] sm:$0xff]  ;;  %v9729_v10 = vpack.c.bf16 %v4712_v1, %v4711_v13  ;;  %10509 = vpow2.f32 %v4607_v35  ;;  %v4615_v14 = vmul.f32 1.442695, %v4514_v61  ;;  %v4338_v42 = vsub.f32 %v12585_v24, %v12515_v15  ;;  %v4713_v36 = vld [vmem:[%s14903_s9 + $0x160] sm:$0xff] }
 0x542   : > { %v10500_v34 = vpop.eup %10499  ;;  %v9731_v62 = vpack.c.bf16 %v4730_v25, %v4729_v47  ;;  %v12704_v5 = vsub.s32 3, %v12435_v11  ;;  %v4613_v28 = vmul.f32 1.442695, %v4513_v8  ;;  %v4457_v35 = vmul.f32 %v4393_v48, %v4393_v48  ;;  %v4715_v47 = vld [vmem:[%s14903_s9 + $0x170] sm:$0xff]  ;;  %v4716_v25 = vld [vmem:[%s14903_s9 + $0x178] sm:$0xff] }
 0x543   : > { %4818 = vmatmul.mubr.f32.gmra.mrb[8].mxu1 %v10496_v59  ;;  %v4623_v59 = vmul.f32 1.442695, %v4518_v0  ;;  %v4522_v61 = vsub.f32 0.0, %v4458_v54  ;;  %10511 = vpow2.f32 %v4605_v56  ;;  %v4462_v13 = vmul.f32 %v4398_v50, %v4398_v50  ;;  %v4176_v56 = vld [vmem:[%s14911_s10 + $0x8] sm:$0xff] }
 0x544   : > { %4822 = vmatprep.mubr.f32.mxu1 %v10498_v20  ;;  %9726 = vmatpush3.bf16.msra.mxu1 %v9725_v9  ;;  %14910 = vst [vmem:[#allocation17_spill] sm:$0xff] %v12704_v5  ;;  %v4517_v9 = vsub.f32 0.0, %v4453_v30  ;;  %v10502_v6 = vpop.eup %10501  ;;  %v4337_v11 = vsub.f32 %v12585_v24, %v12509_v12  ;;  %v9733_v1 = vpack.c.bf16 %v4714_v29, %v4713_v36  ;;  %10513 = vpow2.f32 %v4615_v14 }
 0x545   : > { %9728 = vmatprep.subr.bf16.mxu1 %v9727_v53  ;;  %v4397_v53 = vmul.f32 3.5, %v4333_v37  ;;  %v4402_v20 = vmul.f32 3.5, %v4338_v42  ;;  %v4342_v8 = vsub.f32 %v12611_v2, %v12515_v15  ;;  %v9735_v30 = vpack.c.bf16 %v4732_v57, %v4731_v23  ;;  %v4175_v37 = vld [vmem:[%s14911_s10] sm:$0xff] }
 0x546   : > { %v10504_v0 = vpop.eup %10503  ;;  %v12724_v48 = vrot.slane %v12443_v51, %v12704_v5  ;;  %10515 = vpow2.f32 %v4613_v28  ;;  %v4621_v54 = vmul.f32 1.442695, %v4517_v9  ;;  %v4526_v42 = vsub.f32 0.0, %v4462_v13 }
 0x547   : > { %4823 = vmatmul.mubr.f32.gmra.mrb[10].mxu1 %v10500_v34  ;;  %v10506_v50 = vpop.eup %10505  ;;  %10517 = vpow2.f32 %v4623_v59  ;;  %v4631_v34 = vmul.f32 1.442695, %v4522_v61  ;;  %v4461_v14 = vmul.f32 %v4397_v53, %v4397_v53  ;;  %v4341_v51 = vsub.f32 %v12611_v2, %v12509_v12 }
 0x548   : > { %4827 = vmatprep.mubr.f32.mxu1 %v10502_v6  ;;  %9730 = vmatpush3.bf16.msra.mxu1 %v9729_v10  ;;  %v4521_v10 = vsub.f32 0.0, %v4457_v35  ;;  %v9737_v36 = vpack.c.bf16 %v4716_v25, %v4715_v47  ;;  %v4466_v29 = vmul.f32 %v4402_v20, %v4402_v20  ;;  %v4406_v28 = vmul.f32 3.5, %v4342_v8 }
 0x549   : > { %9732 = vmatprep.subr.bf16.mxu1 %v9731_v62  ;;  %v4401_v62 = vmul.f32 3.5, %v4337_v11  ;;  %v4346_v9 = vsub.f32 %v12657_v58, %v12515_v15  ;;  %v12736_v23 = vpack.c.bf16 %v4176_v56, %v4175_v37  ;;  %10519 = vpow2.f32 %v4621_v54 }
 0x54a   : > { %v10508_v57 = vpop.eup %10507  ;;  %v4288_v59 = vsub.f32 %v12457_v32, %v12724_v48  ;;  %v4629_v35 = vmul.f32 1.442695, %v4521_v10  ;;  %10521 = vpow2.f32 %v4631_v34  ;;  %v4525_v61 = vsub.f32 0.0, %v4461_v14 }
 0x54b   : > { %4828 = vmatmul.mubr.f32.gmra.mrb[12].mxu1 %v10504_v0  ;;  %v10510_v6 = vpop.eup %10509  ;;  %v4465_v53 = vmul.f32 %v4401_v62, %v4401_v62  ;;  %v4405_v13 = vmul.f32 3.5, %v4341_v51  ;;  %v4345_v11 = vsub.f32 %v12657_v58, %v12509_v12  ;;  %v4639_v15 = vmul.f32 1.442695, %v4526_v42 }
 0x54c   : > { %4832 = vmatprep.mubr.f32.mxu1 %v10506_v50  ;;  %9734 = vmatpush3.bf16.msra.mxu1 %v9733_v1  ;;  %v4530_v1 = vsub.f32 0.0, %v4466_v29  ;;  %v4470_v20 = vmul.f32 %v4406_v28, %v4406_v28  ;;  %v4410_v8 = vmul.f32 3.5, %v4346_v9  ;;  %v4292_v25 = vsub.f32 %v12451_v33, %v12724_v48 }
 0x54d   : > { %9736 = vmatprep.subr.bf16.mxu1 %v9735_v30  ;;  %v10512_v30 = vpop.eup %10511  ;;  %v4352_v0 = vmul.f32 3.5, %v4288_v59  ;;  %10523 = vpow2.f32 %v4629_v35  ;;  %v4637_v37 = vmul.f32 1.442695, %v4525_v61  ;;  %v4529_v56 = vsub.f32 0.0, %v4465_v53 }
 0x54e   : > { %v10514_v47 = vpop.eup %10513  ;;  %v4469_v12 = vmul.f32 %v4405_v13, %v4405_v13  ;;  %v4409_v50 = vmul.f32 3.5, %v4345_v11  ;;  %10525 = vpow2.f32 %v4639_v15  ;;  %v4647_v34 = vmul.f32 1.442695, %v4530_v1 }
 0x54f   : > { %4833 = vmatmul.mubr.f32.gmra.mrb[14].mxu1 %v10508_v57  ;;  %v4534_v14 = vsub.f32 0.0, %v4470_v20  ;;  %v4474_v42 = vmul.f32 %v4410_v8, %v4410_v8  ;;  %v4356_v62 = vmul.f32 3.5, %v4292_v25  ;;  %v14912_v51 = vsub.f32 %v12457_v32, %v12447_v40 }
 0x550   : > { %4837 = vmatprep.mubr.f32.mxu1 %v10510_v6  ;;  %9738 = vmatpush3.bf16.msra.mxu1 %v9737_v36  ;;  %v10516_v54 = vpop.eup %10515  ;;  %v4416_v29 = vmul.f32 %v4352_v0, %v4352_v0  ;;  %10527 = vpow2.f32 %v4637_v37  ;;  %v4645_v9 = vmul.f32 1.442695, %v4529_v56  ;;  %v4533_v57 = vsub.f32 0.0, %v4469_v12 }
 0x551   : > { %9740 = vmatprep.subr.bf16.mxu1 %v12736_v23  ;;  %v10518_v10 = vpop.eup %10517  ;;  %v4351_v36 = vmul.f32 3.5, %v14912_v51  ;;  %v4473_v6 = vmul.f32 %v4409_v50, %v4409_v50  ;;  %v4296_v35 = vsub.f32 %v12463_v21, %v12724_v48  ;;  %10529 = vpow2.f32 %v4647_v34 }
 0x552   : > { %v4655_v61 = vmul.f32 1.442695, %v4534_v14  ;;  %v4538_v53 = vsub.f32 0.0, %v4474_v42  ;;  %v14913_v13 = vsub.f32 %v12451_v33, %v12447_v40  ;;  %v4420_v11 = vmul.f32 %v4356_v62, %v4356_v62 }
 0x553   : > { %4838 = vmatmul.mubr.f32.gmra.mrb[16].mxu1 %v10512_v30  ;;  %v10520_v28 = vpop.eup %10519  ;;  %v4415_v15 = vmul.f32 %v4351_v36, %v4351_v36  ;;  %v4480_v1 = vsub.f32 0.0, %v4416_v29  ;;  %10531 = vpow2.f32 %v4645_v9  ;;  %v4653_v20 = vmul.f32 1.442695, %v4533_v57 }
 0x554   : > { %4842 = vmatprep.mubr.f32.mxu1 %v10514_v47  ;;  %v10522_v59 = vpop.eup %10521  ;;  %v4355_v32 = vmul.f32 3.5, %v14913_v13  ;;  %v4537_v8 = vsub.f32 0.0, %v4473_v6  ;;  %v4360_v47 = vmul.f32 3.5, %v4296_v35  ;;  %v4300_v25 = vsub.f32 %v12469_v16, %v12724_v48 }
 0x555   : > { %10533 = vpow2.f32 %v4655_v61  ;;  %v4663_v0 = vmul.f32 1.442695, %v4538_v53  ;;  %v4484_v56 = vsub.f32 0.0, %v4420_v11  ;;  %v4479_v33 = vsub.f32 0.0, %v4415_v15 }
 0x556   : > { %v4419_v37 = vmul.f32 %v4355_v32, %v4355_v32  ;;  %v14914_v12 = vsub.f32 %v12463_v21, %v12447_v40  ;;  %10535 = vpow2.f32 %v4653_v20  ;;  %v4661_v34 = vmul.f32 1.442695, %v4537_v8 }
 0x557   : > { %4843 = vmatmul.mubr.f32.gmra.mrb[18].mxu1 %v10516_v54  ;;  %v10524_v30 = vpop.eup %10523  ;;  %v4547_v14 = vmul.f32 1.442695, %v4480_v1  ;;  %v4424_v42 = vmul.f32 %v4360_v47, %v4360_v47  ;;  %v4364_v62 = vmul.f32 3.5, %v4300_v25  ;;  %10537 = vpow2.f32 %v4663_v0 }
 0x558   : > { %4847 = vmatprep.mubr.f32.mxu1 %v10518_v10  ;;  %v10526_v54 = vpop.eup %10525  ;;  %v4359_v50 = vmul.f32 3.5, %v14914_v12  ;;  %v4304_v10 = vsub.f32 %v12475_v41, %v12724_v48  ;;  %v4483_v29 = vsub.f32 0.0, %v4419_v37  ;;  %v4308_v21 = vsub.f32 %v12481_v60, %v12724_v48 }
 0x559   : > { %v4545_v57 = vmul.f32 1.442695, %v4479_v33  ;;  %10539 = vpow2.f32 %v4661_v34  ;;  %v4555_v35 = vmul.f32 1.442695, %v4484_v56  ;;  %v4488_v61 = vsub.f32 0.0, %v4424_v42 }
 0x55a   : > { %v10528_v51 = vpop.eup %10527  ;;  %v4423_v6 = vmul.f32 %v4359_v50, %v4359_v50  ;;  %10541 = vpow2.f32 %v4547_v14  ;;  %v4428_v53 = vmul.f32 %v4364_v62, %v4364_v62  ;;  %v14916_v32 = vsub.f32 %v12475_v41, %v12447_v40 }
 0x55b   : > { %4848 = vmatmul.mubr.f32.gmra.mrb[20].mxu1 %v10520_v28  ;;  %v10530_v36 = vpop.eup %10529  ;;  %v14915_v28 = vsub.f32 %v12469_v16, %v12447_v40  ;;  %v4553_v15 = vmul.f32 1.442695, %v4483_v29  ;;  %v4372_v20 = vmul.f32 3.5, %v4308_v21  ;;  %10543 = vpow2.f32 %v4545_v57  ;;  %v4177_v29 = vld [vmem:[%s14911_s10 + $0x10] sm:$0xff] }
 0x55c   : > { %4852 = vmatprep.mubr.f32.mxu1 %v10522_v59  ;;  %v4368_v59 = vmul.f32 3.5, %v4304_v10  ;;  %v4367_v11 = vmul.f32 3.5, %v14916_v32  ;;  %v4487_v8 = vsub.f32 0.0, %v4423_v6  ;;  %v4312_v47 = vsub.f32 %v12487_v52, %v12724_v48 }
 0x55d   : > { %v4363_v9 = vmul.f32 3.5, %v14915_v28  ;;  %v10532_v13 = vpop.eup %10531  ;;  %10545 = vpow2.f32 %v4555_v35  ;;  %v4563_v25 = vmul.f32 1.442695, %v4488_v61  ;;  %v4492_v0 = vsub.f32 0.0, %v4428_v53 }
 0x55e   : > { %v4431_v37 = vmul.f32 %v4367_v11, %v4367_v11  ;;  %v14917_v33 = vsub.f32 %v12481_v60, %v12447_v40  ;;  %v4436_v50 = vmul.f32 %v4372_v20, %v4372_v20  ;;  %10547 = vpow2.f32 %v4553_v15  ;;  %v4178_v60 = vld [vmem:[%s14911_s10 + $0x18] sm:$0xff]  ;;  %v4179_v15 = vld [vmem:[%s14911_s10 + $0x20] sm:$0xff] }
 0x55f   : > { %4853 = vmatmul.mubr.f32.gmra.mrb[22].mxu1 %v10524_v30  ;;  %v10534_v16 = vpop.eup %10533  ;;  %v4427_v1 = vmul.f32 %v4363_v9, %v4363_v9  ;;  %v4432_v30 = vmul.f32 %v4368_v59, %v4368_v59  ;;  %v4561_v10 = vmul.f32 1.442695, %v4487_v8  ;;  %v4376_v14 = vmul.f32 3.5, %v4312_v47 }
 0x560   : > { %4857 = vmatprep.mubr.f32.mxu1 %v10526_v54  ;;  %v10536_v54 = vpop.eup %10535  ;;  %v4371_v12 = vmul.f32 3.5, %v14917_v33  ;;  %10549 = vpow2.f32 %v4563_v25  ;;  %v4571_v42 = vmul.f32 1.442695, %v4492_v0  ;;  %v4316_v62 = vsub.f32 %v12493_v27, %v12724_v48 }
 0x561   : > { %v10538_v56 = vpop.eup %10537  ;;  %v4491_v41 = vsub.f32 0.0, %v4427_v1  ;;  %v4496_v34 = vsub.f32 0.0, %v4432_v30  ;;  %v4500_v57 = vsub.f32 0.0, %v4436_v50  ;;  %v14918_v6 = vsub.f32 %v12487_v52, %v12447_v40  ;;  %v4180_v52 = vld [vmem:[%s14911_s10 + $0x28] sm:$0xff] }
 0x562   : > { %v4435_v21 = vmul.f32 %v4371_v12, %v4371_v12  ;;  %10551 = vpow2.f32 %v4561_v10  ;;  %v4440_v61 = vmul.f32 %v4376_v14, %v4376_v14  ;;  %v4380_v53 = vmul.f32 3.5, %v4316_v62  ;;  %v4181_v12 = vld [vmem:[%s14911_s10 + $0x30] sm:$0xff] }
 0x563   : > { %4858 = vmatmul.mubr.f32.gmra.mrb[24].mxu1 %v10528_v51  ;;  %v10540_v51 = vpop.eup %10539  ;;  %v4569_v9 = vmul.f32 1.442695, %v4491_v41  ;;  %v4375_v59 = vmul.f32 3.5, %v14918_v6  ;;  %v4579_v35 = vmul.f32 1.442695, %v4496_v34  ;;  %10553 = vpow2.f32 %v4571_v42 }
 0x564   : > { %4862 = vmatprep.mubr.f32.mxu1 %v10530_v36  ;;  %v4495_v36 = vsub.f32 0.0, %v4431_v37  ;;  %v10542_v28 = vpop.eup %10541  ;;  %v9743_v32 = vpack.c.bf16 %v4178_v60, %v4177_v29  ;;  %v4499_v20 = vsub.f32 0.0, %v4435_v21  ;;  %v4587_v8 = vmul.f32 1.442695, %v4500_v57 }
 0x565   : > { %v10544_v11 = vpop.eup %10543  ;;  %10555 = vpow2.f32 %v4569_v9  ;;  %v4439_v30 = vmul.f32 %v4375_v59, %v4375_v59  ;;  %v4504_v47 = vsub.f32 0.0, %v4440_v61  ;;  %v14919_v25 = vsub.f32 %v12493_v27, %v12447_v40  ;;  %v4182_v27 = vld [vmem:[%s14911_s10 + $0x38] sm:$0xff]  ;;  %s729_s10 = sand.u32 1, %s11178_s26  }
 0x566   : > { %10557 = vpow2.f32 %v4579_v35  ;;  %v9747_v41 = vpack.c.bf16 %v4180_v52, %v4179_v15  ;;  %v14920_v42 = vsub.f32 %v12502_v55, %v12447_v40  ;;  %v14921_v6 = vsub.f32 %v12519_v39, %v12447_v40  ;;  %s8195_s7 = sshll.u32 %s729_s10, 7  ;;  %s14765_s6 = scalar_lea.sflag [#allocation3], %s729_s10 }
 0x567   : > { %4863 = vmatmul.mubr.f32.gmra.mrb[26].mxu1 %v10532_v13  ;;  %v4320_v13 = vsub.f32 %v12502_v55, %v12724_v48  ;;  %v10546_v1 = vpop.eup %10545  ;;  %v4379_v0 = vmul.f32 3.5, %v14919_v25  ;;  %v4503_v10 = vsub.f32 0.0, %v4439_v30  ;;  %v4595_v34 = vmul.f32 1.442695, %v4504_v47  ;;  %s14715_s9 = scalar_lea.vmem [#allocation2], %s8195_s7 }
 0x568   : > { %4867 = vmatprep.mubr.f32.mxu1 %v10534_v16  ;;  %v4577_v16 = vmul.f32 1.442695, %v4495_v36  ;;  %v10548_v33 = vpop.eup %10547  ;;  %v4383_v62 = vmul.f32 3.5, %v14920_v42  ;;  %v4387_v59 = vmul.f32 3.5, %v14921_v6  ;;  %s8129_s27 = sshll.u32 %s14715_s9, 4  ;;  %s14758_s27 = int_to_ptr.vmem [resolvable:$true] %s8129_s27 }
 0x569   : > { %v4384_v37 = vmul.f32 3.5, %v4320_v13  ;;  %v4443_v14 = vmul.f32 %v4379_v0, %v4379_v0  ;;  %v4593_v57 = vmul.f32 1.442695, %v4503_v10  ;;  %s11124_s0 = scalar_lea.vmem %s14758_s27, 2048 }
 0x56a   : > { %10559 = vpow2.f32 %v4577_v16  ;;  %v10550_v50 = vpop.eup %10549  ;;  %v4447_v35 = vmul.f32 %v4383_v62, %v4383_v62  ;;  %v4451_v52 = vmul.f32 %v4387_v59, %v4387_v59  ;;  %p11125_p11 = scmp.ne.s32.totalorder %s14758_s27, %s11124_s0 }
 0x56b   : > { %4868 = vmatmul.mubr.f32.gmra.mrb[28].mxu1 %v10536_v54  ;;  %v4444_v54 = vmul.f32 %v4380_v53, %v4380_v53  ;;  %10561 = vpow2.f32 %v4587_v8  ;;  %v4448_v29 = vmul.f32 %v4384_v37, %v4384_v37  ;;  %v4507_v55 = vsub.f32 0.0, %v4443_v14 }
 0x56c   : > { %4872 = vmatprep.mubr.f32.mxu1 %v10538_v56  ;;  %v4324_v56 = vsub.f32 %v12519_v39, %v12724_v48  ;;  %v10552_v9 = vpop.eup %10551  ;;  %v4332_v53 = vsub.f32 %v12547_v19, %v12724_v48  ;;  %v14922_v39 = vsub.f32 %v12531_v44, %v12447_v40  ;;  %v4511_v30 = vsub.f32 0.0, %v4447_v35  ;;  %p11126_p12 = pnand %p11125_p11, %p11355_p5 }
 0x56d   : > { %v4508_v36 = vsub.f32 0.0, %v4444_v54  ;;  %v10554_v21 = vpop.eup %10553  ;;  %v4601_v8 = vmul.f32 1.442695, %v4507_v55 }
 0x56e   : > { %v4388_v60 = vmul.f32 3.5, %v4324_v56  ;;  %v4396_v25 = vmul.f32 3.5, %v4332_v53  ;;  %v4336_v56 = vsub.f32 %v12559_v18, %v12724_v48  ;;  %v8509_v53 = vmul.f32 -1.442695, %v12061_v45  ;;  %p11127_p13 = pneg %p11126_p12 }
 0x56f   : > { %4873 = vmatmul.mubr.f32.gmra.mrb[30].mxu1 %v10540_v51  ;;  %v4328_v51 = vsub.f32 %v12531_v44, %v12724_v48  ;;  %v10556_v13 = vpop.eup %10555  ;;  %v8507_v44 = vmul.f32 -1.442695, %v12053_v49 }
 0x570   : > { %4942 = vmatprep.mubr.f32.mxu1 %v10542_v28  ;;  %v9751_v28 = vpack.c.bf16 %v4182_v27, %v4181_v12  ;;  %v4452_v16 = vmul.f32 %v4388_v60, %v4388_v60  ;;  %v10558_v15 = vpop.eup %10557  ;;  %v14923_v27 = vsub.f32 %v12547_v19, %v12447_v40  ;;  %v4400_v62 = vmul.f32 3.5, %v4336_v56 }
 0x571   : > { %v4392_v61 = vmul.f32 3.5, %v4328_v51  ;;  %v4340_v51 = vsub.f32 %v12585_v24, %v12724_v48  ;;  %v14926_v56 = vsub.f32 %v12611_v2, %v12447_v40 }
 0x572   : > { %v4516_v37 = vsub.f32 0.0, %v4452_v16  ;;  %v4464_v55 = vmul.f32 %v4400_v62, %v4400_v62 }
 0x573   : > { %4943 = vmatmul.mubr.f32.vlgmr.msra.gmra.mrb[32].mxu1 %v10544_v11  ;;  %v4512_v11 = vsub.f32 0.0, %v4448_v29  ;;  %v4456_v47 = vmul.f32 %v4392_v61, %v4392_v61  ;;  %v4404_v35 = vmul.f32 3.5, %v4340_v51  ;;  %v4344_v61 = vsub.f32 %v12611_v2, %v12724_v48 }
 0x574   : > { %9742 = vmatpush3.bf16.msra.mxu1 %v12736_v23  ;;  %4947 = vmatprep.mubr.f32.mxu1 %v10546_v1  ;;  %v4585_v23 = vmul.f32 1.442695, %v4499_v20  ;;  %v4391_v1 = vmul.f32 3.5, %v14922_v39  ;;  %v10560_v20 = vpop.eup %10559  ;;  %v4619_v42 = vmul.f32 1.442695, %v4516_v37  ;;  %v4528_v39 = vsub.f32 0.0, %v4464_v55 }
 0x575   : > { %9744 = vmatprep.subr.bf16.mxu1 %v9743_v32  ;;  %v10562_v0 = vpop.eup %10561  ;;  %v4611_v54 = vmul.f32 1.442695, %v4512_v11  ;;  %v4520_v10 = vsub.f32 0.0, %v4456_v47  ;;  %v8512_v47 = vmul.f32 -1.442695, %v12067_v3  ;;  %v4411_v51 = vmul.f32 3.5, %v4347_v38 }
 0x576   : > { %10563 = vpow2.f32 %v4585_v23  ;;  %v4455_v12 = vmul.f32 %v4391_v1, %v4391_v1  ;;  %v4609_v23 = vmul.f32 1.442695, %v4511_v30  ;;  %v4468_v1 = vmul.f32 %v4404_v35, %v4404_v35 }
 0x577   : > { %4948 = vmatmul.mubr.f32.gmra.mrb[34].mxu1 %v10548_v33  ;;  %10565 = vpow2.f32 %v4595_v34  ;;  %v4515_v33 = vsub.f32 0.0, %v4451_v52  ;;  %v4460_v34 = vmul.f32 %v4396_v25, %v4396_v25  ;;  %v4475_v55 = vmul.f32 %v4411_v51, %v4411_v51  ;;  %v14930_v51 = vld [vmem:[#allocation11_spill] sm:$0xff] }
 0x578   : > { %4952 = vmatprep.mubr.f32.mxu1 %v10550_v50  ;;  %9746 = vmatpush3.bf16.msra.mxu1 %v9743_v32  ;;  %v4603_v32 = vmul.f32 1.442695, %v4508_v36  ;;  %10567 = vpow2.f32 %v4593_v57  ;;  %v4395_v50 = vmul.f32 3.5, %v14923_v27  ;;  %v8510_v36 = vmul.f32 -1.442695, %v12059_v17 }
 0x579   : > { %9748 = vmatprep.subr.bf16.mxu1 %v9747_v41  ;;  %v4617_v19 = vmul.f32 1.442695, %v4515_v33  ;;  %v4519_v60 = vsub.f32 0.0, %v4455_v12  ;;  %v14924_v57 = vsub.f32 %v12559_v18, %v12447_v40  ;;  %v4643_v33 = vmul.f32 1.442695, %v4528_v39 }
 0x57a   : > { %10569 = vpow2.f32 %v4603_v32  ;;  %v8517_v39 = vmul.f32 -1.442695, %v12093_v63 }
 0x57b   : > { %4953 = vmatmul.mubr.f32.gmra.mrb[36].mxu1 %v10552_v9  ;;  %10571 = vpow2.f32 %v4601_v8  ;;  %v4627_v9 = vmul.f32 1.442695, %v4520_v10  ;;  %v4399_v6 = vmul.f32 3.5, %v14924_v57  ;;  %v4625_v32 = vmul.f32 1.442695, %v4519_v60 }
 0x57c   : > { %4957 = vmatprep.mubr.f32.mxu1 %v10554_v21  ;;  %9750 = vmatpush3.bf16.msra.mxu1 %v9747_v41  ;;  %v8508_v41 = vmul.f32 -1.442695, %v12051_v7  ;;  %10573 = vpow2.f32 %v4611_v54  ;;  %v4524_v21 = vsub.f32 0.0, %v4460_v34  ;;  %v4348_v8 = vsub.f32 %v12657_v58, %v12724_v48 }
 0x57d   : > { %9752 = vmatprep.subr.bf16.mxu1 %v9751_v28  ;;  %v4463_v18 = vmul.f32 %v4399_v6, %v4399_v6  ;;  %v4532_v48 = vsub.f32 0.0, %v4468_v1  ;;  %v8514_v34 = vmul.f32 -1.442695, %v12075_v31 }
 0x57e   : > { %10575 = vpow2.f32 %v8508_v41  ;;  %v4635_v16 = vmul.f32 1.442695, %v4524_v21  ;;  %v4407_v41 = vmul.f32 3.5, %v14926_v56  ;;  %v4412_v27 = vmul.f32 3.5, %v4348_v8 }
 0x57f   : > { %4958 = vmatmul.mubr.f32.gmra.mrb[38].mxu1 %v10556_v13  ;;  %10577 = vpow2.f32 %v8507_v44  ;;  %v4527_v37 = vsub.f32 0.0, %v4463_v18  ;;  %v8513_v21 = vmul.f32 -1.442695, %v12077_v43 }
 0x580   : > { %4962 = vmatprep.mubr.f32.mxu1 %v10558_v15  ;;  %9754 = vmatpush3.bf16.msra.mxu1 %v9751_v28  ;;  %v10564_v14 = vpop.eup %10563  ;;  %v4459_v28 = vmul.f32 %v4395_v50, %v4395_v50  ;;  %10579 = vpow2.f32 %v4609_v23  ;;  %v14925_v15 = vsub.f32 %v12585_v24, %v12447_v40  ;;  %v8511_v23 = vmul.f32 -1.442695, %v12069_v26 }
 0x581   : > { %v10566_v29 = vpop.eup %10565  ;;  %10581 = vpow2.f32 %v4619_v42  ;;  %v4641_v42 = vmul.f32 1.442695, %v4527_v37  ;;  %v4471_v2 = vmul.f32 %v4407_v41, %v4407_v41  ;;  %v4476_v60 = vmul.f32 %v4412_v27, %v4412_v27  ;;  %v14928_v27 = vld [vmem:[#allocation10_spill] sm:$0xff] }
 0x582   : > { %v10568_v59 = vpop.eup %10567  ;;  %10583 = vpow2.f32 %v8510_v36  ;;  %v4523_v11 = vsub.f32 0.0, %v4459_v28  ;;  %v4403_v52 = vmul.f32 3.5, %v14925_v15  ;;  %v8516_v15 = vmul.f32 -1.442695, %v12083_v46 }
 0x583   : > { %4963 = vmatmul.mubr.f32.gmra.mrb[40].mxu1 %v10560_v20  ;;  %10585 = vpow2.f32 %v4617_v19  ;;  %v4408_v20 = vmul.f32 3.5, %v4344_v61  ;;  %v4540_v38 = vsub.f32 0.0, %v4476_v60 }
 0x584   : > { %4967 = vmatprep.mubr.f32.mxu1 %v10562_v0  ;;  %v10570_v13 = vpop.eup %10569  ;;  %10587 = vpow2.f32 %v4627_v9  ;;  %v4633_v0 = vmul.f32 1.442695, %v4523_v11  ;;  %v4467_v24 = vmul.f32 %v4403_v52, %v4403_v52  ;;  %v4539_v11 = vsub.f32 0.0, %v4475_v55 }
 0x585   : > { %v10572_v30 = vpop.eup %10571  ;;  %10589 = vpow2.f32 %v8509_v53  ;;  %v4472_v12 = vmul.f32 %v4408_v20, %v4408_v20  ;;  %v8515_v53 = vmul.f32 -1.442695, %v12085_v4  ;;  %v4667_v18 = vmul.f32 1.442695, %v4540_v38 }
 0x586   : > { %v10574_v25 = vpop.eup %10573  ;;  %10591 = vpow2.f32 %v4625_v32  ;;  %v4531_v62 = vsub.f32 0.0, %v4467_v24  ;;  %v4665_v20 = vmul.f32 1.442695, %v4539_v11  ;;  %v14927_v24 = vld [vmem:[#allocation12_spill] sm:$0xff] }
 0x587   : > { %4968 = vmatmul.mubr.f32.gmra.mrb[42].mxu1 %v10564_v14  ;;  %10593 = vpow2.f32 %v4635_v16  ;;  %v4536_v19 = vsub.f32 0.0, %v4472_v12  ;;  %v8519_v56 = vmul.f32 -1.442695, %v14927_v24 }
 0x588   : > { %4972 = vmatprep.mubr.f32.mxu1 %v10566_v29  ;;  %v10576_v54 = vpop.eup %10575  ;;  %10595 = vpow2.f32 %v8512_v47  ;;  %v4651_v29 = vmul.f32 1.442695, %v4532_v48  ;;  %v4649_v6 = vmul.f32 1.442695, %v4531_v62 }
 0x589   : > { %v10578_v44 = vpop.eup %10577  ;;  %10597 = vpow2.f32 %v4633_v0  ;;  %v4112_v9 = vadd.f32 1.0, %v10576_v54  ;;  %v4659_v40 = vmul.f32 1.442695, %v4536_v19  ;;  %v8518_v54 = vmul.f32 -1.442695, %v12091_v22 }
 0x58a   : > { %v10580_v50 = vpop.eup %10579  ;;  %10599 = vpow2.f32 %v4643_v33  ;;  %v4111_v61 = vadd.f32 1.0, %v10578_v44 }
 0x58b   : > { %4973 = vmatmul.mubr.f32.gmra.mrb[44].mxu1 %v10568_v59  ;;  %v10582_v10 = vpop.eup %10581  ;;  %10601 = vpow2.f32 %v8511_v23  ;;  %v4535_v59 = vsub.f32 0.0, %v4471_v2 }
 0x58c   : > { %4977 = vmatprep.mubr.f32.mxu1 %v10570_v13  ;;  %v10584_v14 = vpop.eup %10583  ;;  %10603 = vpow2.f32 %v8514_v34 }
 0x58d   : > { %v10586_v36 = vpop.eup %10585  ;;  %10605 = vpow2.f32 %v4641_v42  ;;  %v4657_v32 = vmul.f32 1.442695, %v4535_v59 }
 0x58e   : > { %v10588_v28 = vpop.eup %10587  ;;  %10607 = vpow2.f32 %v4651_v29 }
 0x58f   : > { %4978 = vmatmul.mubr.f32.gmra.mrb[46].mxu1 %v10572_v30  ;;  %v10590_v57 = vpop.eup %10589  ;;  %10609 = vrcp.f32 %v4112_v9 }
 0x590   : > { %4982 = vmatprep.mubr.f32.mxu1 %v10574_v25  ;;  %v10592_v58 = vpop.eup %10591  ;;  %10611 = vpow2.f32 %v8513_v21  ;;  %v4113_v30 = vadd.f32 1.0, %v10590_v57  ;;  %v4114_v25 = vadd.f32 1.0, %v10584_v14 }
 0x591   : > { %v10594_v35 = vpop.eup %10593  ;;  %10613 = vpow2.f32 %v4649_v6 }
 0x592   : > { %v10596_v13 = vpop.eup %10595  ;;  %10615 = vpow2.f32 %v4659_v40 }
 0x593   : > { %4983 = vmatmul.mubr.f32.gmra.mrb[48].mxu1 %v10580_v50  ;;  %v10598_v16 = vpop.eup %10597  ;;  %10617 = vrcp.f32 %v4111_v61  ;;  %v4116_v48 = vadd.f32 1.0, %v10596_v13  ;;  %v8520_v50 = vmul.f32 -1.442695, %v14928_v27 }
 0x594   : > { %4987 = vmatprep.mubr.f32.mxu1 %v10582_v10  ;;  %v10600_v52 = vpop.eup %10599  ;;  %10619 = vpow2.f32 %v8515_v53  ;;  %v14929_v10 = vld [vmem:[#allocation13_spill] sm:$0xff] }
 0x595   : > { %v10602_v1 = vpop.eup %10601  ;;  %10621 = vpow2.f32 %v4657_v32  ;;  %v8521_v34 = vmul.f32 -1.442695, %v14929_v10 }
 0x596   : > { %v10604_v8 = vpop.eup %10603  ;;  %10623 = vpow2.f32 %v4667_v18  ;;  %v4115_v44 = vadd.f32 1.0, %v10602_v1 }
 0x597   : > { %4988 = vmatmul.mubr.f32.gmra.mrb[50].mxu1 %v10586_v36  ;;  %v10606_v47 = vpop.eup %10605  ;;  %10625 = vpow2.f32 %v8516_v15  ;;  %v8522_v36 = vmul.f32 -1.442695, %v14930_v51  ;;  %v4118_v19 = vadd.f32 1.0, %v10604_v8 }
 0x598   : > { %4992 = vmatprep.mubr.f32.mxu1 %v10588_v28  ;;  %v10608_v0 = vpop.eup %10607  ;;  %10627 = vpow2.f32 %v8517_v39 }
 0x599   : > { %v10610_v37 = vpop.eup %10609  ;;  %10629 = vpow2.f32 %v4665_v20 }
 0x59a   : > { %v10612_v41 = vpop.eup %10611  ;;  %10631 = vrcp.f32 %v4113_v30 }
 0x59b   : > { %4993 = vmatmul.mubr.f32.gmra.mrb[52].mxu1 %v10592_v58  ;;  %v10614_v33 = vpop.eup %10613  ;;  %10633 = vrcp.f32 %v4114_v25  ;;  %v4117_v42 = vadd.f32 1.0, %v10612_v41  ;;  %v4160_v58 = vmul.f32 %v10610_v37, %v12051_v7 }
 0x59c   : > { %4997 = vmatprep.mubr.f32.mxu1 %v10594_v35  ;;  %v10616_v12 = vpop.eup %10615  ;;  %10635 = vpow2.f32 %v8518_v54 }
 0x59d   : > { %v10618_v23 = vpop.eup %10617  ;;  %10637 = vpow2.f32 %v8519_v56 }
 0x59e   : > { %v10620_v14 = vpop.eup %10619  ;;  %10639 = vrcp.f32 %v4115_v44  ;;  %v4159_v21 = vmul.f32 %v10618_v23, %v12053_v49 }
 0x59f   : > { %4998 = vmatmul.mubr.f32.gmra.mrb[54].mxu1 %v10598_v16  ;;  %v10622_v62 = vpop.eup %10621  ;;  %10641 = vrcp.f32 %v4116_v48  ;;  %v4119_v28 = vadd.f32 1.0, %v10620_v14 }
 0x5a0   : > { %5002 = vmatprep.mubr.f32.mxu1 %v10600_v52  ;;  %v10624_v2 = vpop.eup %10623  ;;  %10643 = vpow2.f32 %v8520_v50 }
 0x5a1   : > { %v10626_v29 = vpop.eup %10625  ;;  %10645 = vpow2.f32 %v8521_v34 }
 0x5a2   : > { %v10628_v60 = vpop.eup %10627  ;;  %10647 = vrcp.f32 %v4117_v42  ;;  %v4120_v59 = vadd.f32 1.0, %v10626_v29 }
 0x5a3   : > { %5003 = vmatmul.mubr.f32.gmra.mrb[56].mxu1 %v10606_v47  ;;  %v10630_v9 = vpop.eup %10629  ;;  %10649 = vpow2.f32 %v8522_v36  ;;  %v4121_v40 = vadd.f32 1.0, %v10628_v60 }
 0x5a4   : > { %5007 = vmatprep.mubr.f32.mxu1 %v10608_v0  ;;  %v10632_v57 = vpop.eup %10631  ;;  %10651 = vrcp.f32 %v4118_v19 }
 0x5a5   : > { %v10634_v6 = vpop.eup %10633  ;;  %10653 = vrcp.f32 %v4119_v28  ;;  %v4161_v35 = vmul.f32 %v10632_v57, %v12061_v45 }
 0x5a6   : > { %v10636_v55 = vpop.eup %10635  ;;  %10655 = vrcp.f32 %v4120_v59  ;;  %v4162_v11 = vmul.f32 %v10634_v6, %v12059_v17 }
 0x5a7   : > { %5008 = vmatmul.mubr.f32.gmra.mrb[58].mxu1 %v10614_v33  ;;  %v10638_v38 = vpop.eup %10637  ;;  %v4122_v53 = vadd.f32 1.0, %v10636_v55  ;;  %10657 = vrcp.f32 %v4121_v40 }
 0x5a8   : > { %5012 = vmatprep.mubr.f32.mxu1 %v10616_v12  ;;  %v10640_v61 = vpop.eup %10639  ;;  %v4123_v32 = vadd.f32 1.0, %v10638_v38 }
 0x5a9   : > { %v10642_v49 = vpop.eup %10641  ;;  %v4163_v7 = vmul.f32 %v10640_v61, %v12069_v26  ;;  %10659 = vrcp.f32 %v4122_v53  ;;  %v5605_v61 = vld [vmem:[%s14822_s16] sm:$0xff] }
 0x5aa   : > { %v10644_v13 = vpop.eup %10643  ;;  %10661 = vrcp.f32 %v4123_v32  ;;  %v4164_v39 = vmul.f32 %v10642_v49, %v12067_v3  ;;  %v5606_v49 = vld [vmem:[%s14822_s16 + $0x8] sm:$0xff] }
 0x5ab   : > { %5013 = vmatmul.mubr.f32.gmra.mrb[60].mxu1 %v10622_v62  ;;  %v10646_v16 = vpop.eup %10645  ;;  %v4124_v45 = vadd.f32 1.0, %v10644_v13  ;;  %v9819_v13 = vpack.c.bf16 %v5606_v49, %v5605_v61 }
 0x5ac   : > { %5017 = vmatprep.mubr.f32.mxu1 %v10624_v2  ;;  %v10648_v18 = vpop.eup %10647  ;;  %v4125_v52 = vadd.f32 1.0, %v10646_v16  ;;  %v5607_v16 = vld [vmem:[%s14822_s16 + $0x10] sm:$0xff] }
 0x5ad   : > { %v10650_v15 = vpop.eup %10649  ;;  %v4165_v20 = vmul.f32 %v10648_v18, %v12077_v43  ;;  %10663 = vrcp.f32 %v4124_v45  ;;  %9820 = vmatprep.subr.bf16.mxu0 %v9819_v13 }
 0x5ae   : > { %v10652_v1 = vpop.eup %10651  ;;  %v4126_v17 = vadd.f32 1.0, %v10650_v15  ;;  %10665 = vrcp.f32 %v4125_v52  ;;  %9822 = vmatpush3.bf16.msra.mxu0 %v9819_v13 }
 0x5af   : > { %5018 = vmatmul.mubr.f32.gmra.mrb[62].mxu1 %v10630_v9  ;;  %v10654_v8 = vpop.eup %10653  ;;  %v4166_v26 = vmul.f32 %v10652_v1, %v12075_v31  ;;  %v5610_v1 = vld [vmem:[%s14822_s16 + $0x28] sm:$0xff] }
 0x5b0   : > { %9571 = vmatprep.mubr.msk.f32.mxu1 %vm3807_vm2, %v4159_v21  ;;  %v10656_v30 = vpop.eup %10655  ;;  %v4167_v47 = vmul.f32 %v10654_v8, %v12085_v4  ;;  %10667 = vrcp.f32 %v4126_v17 }
 0x5b1   : > { %v10658_v25 = vpop.eup %10657  ;;  %v4168_v3 = vmul.f32 %v10656_v30, %v12083_v46  ;;  %v5611_v30 = vld [vmem:[%s14822_s16 + $0x30] sm:$0xff] }
 0x5b2   : > { %v4169_v0 = vmul.f32 %v10658_v25, %v12093_v63 }
 0x5b3   : > { %9572 = vmatmul.mubr.msk.f32.vlgmr.msra.gmra.mrb[64].mxu1 %vm3807_vm2, %v4160_v58  ;;  %v10660_v43 = vpop.eup %10659 }
 0x5b4   : > { %9574 = vmatprep.mubr.msk.f32.mxu1 %vm3807_vm2, %v4161_v35  ;;  %v10662_v54 = vpop.eup %10661  ;;  %v4170_v31 = vmul.f32 %v10660_v43, %v12091_v22 }
 0x5b5   : > { %v4171_v4 = vmul.f32 %v10662_v54, %v14927_v24 }
 0x5b7   : > { %9575 = vmatmul.mubr.msk.f32.gmra.mrb[66].mxu1 %vm3807_vm2, %v4162_v11  ;;  %v10664_v37 = vpop.eup %10663 }
 0x5b8   : > { %9577 = vmatprep.mubr.msk.f32.mxu1 %vm3807_vm2, %v4163_v7  ;;  %v10666_v56 = vpop.eup %10665  ;;  %v4172_v46 = vmul.f32 %v10664_v37, %v14928_v27  ;;  %v5608_v7 = vld [vmem:[%s14822_s16 + $0x18] sm:$0xff] }
 0x5b9   : > { %v4173_v63 = vmul.f32 %v10666_v56, %v14929_v10  ;;  %v9823_v45 = vpack.c.bf16 %v5608_v7, %v5607_v16 }
 0x5ba   : > { %v10668_v41 = vpop.eup %10667 }
 0x5bb   : > { %9578 = vmatmul.mubr.msk.f32.gmra.mrb[68].mxu1 %vm3807_vm2, %v4164_v39  ;;  %v4174_v44 = vmul.f32 %v10668_v41, %v14930_v51  ;;  %9824 = vmatprep.subr.bf16.mxu0 %v9823_v45  ;;  %v5609_v39 = vld [vmem:[%s14822_s16 + $0x20] sm:$0xff] }
 0x5bc   : > { %9580 = vmatprep.mubr.msk.f32.mxu1 %vm3807_vm2, %v4165_v20  ;;  %9826 = vmatpush3.bf16.msra.mxu0 %v9823_v45  ;;  %v9827_v20 = vpack.c.bf16 %v5610_v1, %v5609_v39 }
 0x5be   : > { %9828 = vmatprep.subr.bf16.mxu0 %v9827_v20 }
 0x5bf   : > { %9581 = vmatmul.mubr.msk.f32.gmra.mrb[70].mxu1 %vm3807_vm2, %v4166_v26 }
 0x5c0   : > { %9583 = vmatprep.mubr.msk.f32.mxu1 %vm3807_vm2, %v4167_v47  ;;  %9830 = vmatpush3.bf16.msra.mxu0 %v9827_v20  ;;  %v5612_v47 = vld [vmem:[%s14822_s16 + $0x38] sm:$0xff] }
 0x5c3   : > { %9584 = vmatmul.mubr.msk.f32.gmra.mrb[72].mxu1 %vm3807_vm2, %v4168_v3  ;;  %v9831_v3 = vpack.c.bf16 %v5612_v47, %v5611_v30 }
 0x5c4   : > { %9586 = vmatprep.mubr.msk.f32.mxu1 %vm3807_vm2, %v4169_v0 }
 0x5c5   : > { %9832 = vmatprep.subr.bf16.mxu0 %v9831_v3 }
 0x5c6   : > { %9834 = vmatpush3.bf16.msra.mxu0 %v9831_v3 }
 0x5c7   : > { %9587 = vmatmul.mubr.msk.f32.gmra.mrb[74].mxu1 %vm3807_vm2, %v4170_v31 }
 0x5c8   : > { %9589 = vmatprep.mubr.msk.f32.mxu1 %vm3807_vm2, %v4171_v4 }
 0x5cb   : > { %9590 = vmatmul.mubr.msk.f32.gmra.mrb[76].mxu1 %vm3807_vm2, %v4172_v46 }
 0x5cc   : > { %9592 = vmatprep.mubr.msk.f32.mxu1 %vm3807_vm2, %v4173_v63 }
 0x5cf   : > { %9593 = vmatmul.mubr.msk.f32.gmra.mrb[78].mxu1 %vm3807_vm2, %v4174_v44 }
 0x606   : > { %v8801_v22 = vpop.f32.mrb[0].mxu1 }
 0x607   : > { %v8802_v24 = vpop.f32.mrb[1].mxu1 }
 0x608   : > { %v12888_v33 = vadd.f32 %v8802_v24, %v8801_v22 }
 0x60a   : > { %v8804_v48 = vpop.f32.mrb[2].mxu1 }
 0x60b   : > { %v8805_v12 = vpop.f32.mrb[3].mxu1 }
 0x60c   : > { %v12890_v50 = vadd.f32 %v8805_v12, %v8804_v48 }
 0x60e   : > { %v8807_v27 = vpop.f32.mrb[4].mxu1 }
 0x60f   : > { %v8808_v23 = vpop.f32.mrb[5].mxu1 }
 0x610   : > { %v12892_v34 = vadd.f32 %v8808_v23, %v8807_v27 }
 0x612   : > { %v8810_v10 = vpop.f32.mrb[6].mxu1 }
 0x613   : > { %v8811_v14 = vpop.f32.mrb[7].mxu1 }
 0x614   : > { %v12894_v42 = vadd.f32 %v8811_v14, %v8810_v10 }
 0x616   : > { %v8813_v62 = vpop.f32.mrb[8].mxu1 }
 0x617   : > { %v8814_v2 = vpop.f32.mrb[9].mxu1 }
 0x618   : > { %v12896_v51 = vadd.f32 %v8814_v2, %v8813_v62 }
 0x61a   : > { %v8816_v36 = vpop.f32.mrb[10].mxu1 }
 0x61b   : > { %v8817_v29 = vpop.f32.mrb[11].mxu1 }
 0x61c   : > { %v12898_v19 = vadd.f32 %v8817_v29, %v8816_v36 }
 0x61e   : > { %v8819_v60 = vpop.f32.mrb[12].mxu1 }
 0x61f   : > { %v8820_v28 = vpop.f32.mrb[13].mxu1 }
 0x620   : > { %v12900_v9 = vadd.f32 %v8820_v28, %v8819_v60 }
 0x622   : > { %v8822_v21 = vpop.f32.mrb[14].mxu1 }
 0x623   : > { %v8823_v57 = vpop.f32.mrb[15].mxu1 }
 0x624   : > { %v12902_v6 = vadd.f32 %v8823_v57, %v8822_v21 }
 0x626   : > { %v8825_v59 = vpop.f32.mrb[16].mxu1 }
 0x627   : > { %v8826_v55 = vpop.f32.mrb[17].mxu1 }
 0x628   : > { %v12904_v58 = vadd.f32 %v8826_v55, %v8825_v59 }
 0x62a   : > { %v8828_v40 = vpop.f32.mrb[18].mxu1 }
 0x62b   : > { %v8829_v38 = vpop.f32.mrb[19].mxu1 }
 0x62c   : > { %v12906_v35 = vadd.f32 %v8829_v38, %v8828_v40 }
 0x62e   : > { %v8831_v53 = vpop.f32.mrb[20].mxu1 }
 0x62f   : > { %v8832_v32 = vpop.f32.mrb[21].mxu1 }
 0x630   : > { %v12914_v11 = vadd.f32 %v8832_v32, %v8831_v53 }
 0x632   : > { %v8834_v18 = vpop.f32.mrb[22].mxu1 }
 0x633   : > { %v8835_v15 = vpop.f32.mrb[23].mxu1 }
 0x634   : > { %v12922_v52 = vadd.f32 %v8835_v15, %v8834_v18 }
 0x636   : > { %v8837_v8 = vpop.f32.mrb[24].mxu1 }
 0x637   : > { %v8838_v17 = vpop.f32.mrb[25].mxu1 }
 0x638   : > { %v12930_v26 = vadd.f32 %v8838_v17, %v8837_v8 }
 0x63a   : > { %v8840_v25 = vpop.f32.mrb[26].mxu1 }
 0x63b   : > { %v8841_v43 = vpop.f32.mrb[27].mxu1 }
 0x63c   : > { %v12938_v0 = vadd.f32 %v8841_v43, %v8840_v25 }
 0x63e   : > { %v8843_v54 = vpop.f32.mrb[28].mxu1 }
 0x63f   : > { %v8844_v31 = vpop.f32.mrb[29].mxu1 }
 0x640   : > { %v12940_v37 = vadd.f32 %v8844_v31, %v8843_v54 }
 0x642   : > { %v8846_v4 = vpop.f32.mrb[30].mxu1 }
 0x643   : > { %v8847_v56 = vpop.f32.mrb[31].mxu1 }
 0x644   : > { %v12942_v46 = vadd.f32 %v8847_v56, %v8846_v4 }
 0x646   : > { %v8881_v41 = vpop.f32.mrb[32].mxu1 }
 0x647   : > { %v8882_v63 = vpop.f32.mrb[33].mxu1 }
 0x648   : > { %v8883_v44 = vadd.f32 %v8882_v63, %v8881_v41 }
 0x64a   : > { %v8884_v22 = vpop.f32.mrb[34].mxu1  ;;  %v12945_v24 = vadd.f32 %v8883_v44, %v12888_v33 }
 0x64b   : > { %v8885_v48 = vpop.f32.mrb[35].mxu1 }
 0x64c   : > { %v8886_v12 = vadd.f32 %v8885_v48, %v8884_v22 }
 0x64e   : > { %v8887_v27 = vpop.f32.mrb[36].mxu1  ;;  %v4950_v23 = vadd.f32 %v8886_v12, %v12890_v50 }
 0x64f   : > { %v8888_v10 = vpop.f32.mrb[37].mxu1 }
 0x650   : > { %v8889_v14 = vadd.f32 %v8888_v10, %v8887_v27 }
 0x652   : > { %v8890_v62 = vpop.f32.mrb[38].mxu1  ;;  %v12949_v2 = vadd.f32 %v8889_v14, %v12892_v34 }
 0x653   : > { %v8891_v36 = vpop.f32.mrb[39].mxu1 }
 0x654   : > { %v8892_v29 = vadd.f32 %v8891_v36, %v8890_v62 }
 0x656   : > { %v8893_v60 = vpop.f32.mrb[40].mxu1  ;;  %v4960_v28 = vadd.f32 %v8892_v29, %v12894_v42 }
 0x657   : > { %v8894_v21 = vpop.f32.mrb[41].mxu1 }
 0x658   : > { %v8895_v57 = vadd.f32 %v8894_v21, %v8893_v60 }
 0x65a   : > { %v8896_v33 = vpop.f32.mrb[42].mxu1  ;;  %v12953_v59 = vadd.f32 %v8895_v57, %v12896_v51 }
 0x65b   : > { %v8897_v55 = vpop.f32.mrb[43].mxu1 }
 0x65c   : > { %v8898_v40 = vadd.f32 %v8897_v55, %v8896_v33 }
 0x65e   : > { %v8899_v50 = vpop.f32.mrb[44].mxu1  ;;  %v12956_v38 = vadd.f32 %v8898_v40, %v12898_v19 }
 0x65f   : > { %v8900_v61 = vpop.f32.mrb[45].mxu1 }
 0x660   : > { %v8901_v34 = vadd.f32 %v8900_v61, %v8899_v50 }
 0x662   : > { %v8902_v49 = vpop.f32.mrb[46].mxu1  ;;  %v12959_v53 = vadd.f32 %v8901_v34, %v12900_v9 }
 0x663   : > { %v8903_v13 = vpop.f32.mrb[47].mxu1 }
 0x664   : > { %v8904_v42 = vadd.f32 %v8903_v13, %v8902_v49 }
 0x666   : > { %v8905_v32 = vpop.f32.mrb[48].mxu1  ;;  %v12962_v16 = vadd.f32 %v8904_v42, %v12902_v6 }
 0x667   : > { %v8906_v51 = vpop.f32.mrb[49].mxu1 }
 0x668   : > { %v8907_v7 = vadd.f32 %v8906_v51, %v8905_v32 }
 0x66a   : > { %v8908_v18 = vpop.f32.mrb[50].mxu1  ;;  %v12965_v45 = vadd.f32 %v8907_v7, %v12904_v58 }
 0x66b   : > { %v8909_v19 = vpop.f32.mrb[51].mxu1 }
 0x66c   : > { %v8910_v15 = vadd.f32 %v8909_v19, %v8908_v18 }
 0x66e   : > { %v8911_v39 = vpop.f32.mrb[52].mxu1  ;;  %v12968_v1 = vadd.f32 %v8910_v15, %v12906_v35 }
 0x66f   : > { %v8912_v9 = vpop.f32.mrb[53].mxu1 }
 0x670   : > { %v8913_v20 = vadd.f32 %v8912_v9, %v8911_v39 }
 0x672   : > { %v8914_v8 = vpop.f32.mrb[54].mxu1  ;;  %v12971_v17 = vadd.f32 %v8913_v20, %v12914_v11 }
 0x673   : > { %v8915_v6 = vpop.f32.mrb[55].mxu1 }
 0x674   : > { %v8916_v30 = vadd.f32 %v8915_v6, %v8914_v8 }
 0x676   : > { %v8917_v47 = vpop.f32.mrb[56].mxu1  ;;  %v12974_v25 = vadd.f32 %v8916_v30, %v12922_v52 }
 0x677   : > { %v8918_v58 = vpop.f32.mrb[57].mxu1 }
 0x678   : > { %v8919_v3 = vadd.f32 %v8918_v58, %v8917_v47 }
 0x67a   : > { %v8920_v43 = vpop.f32.mrb[58].mxu1  ;;  %v12977_v54 = vadd.f32 %v8919_v3, %v12930_v26  ;;  %v12988_v26 = vld [vmem:[%s14817_s11] ss:$0 sm:$0xff] }
 0x67b   : > { %v8921_v35 = vpop.f32.mrb[59].mxu1 }
 0x67c   : > { %v8922_v31 = vadd.f32 %v8921_v35, %v8920_v43 }
 0x67e   : > { %v8923_v4 = vpop.f32.mrb[60].mxu1  ;;  %v12980_v56 = vadd.f32 %v8922_v31, %v12938_v0 }
 0x67f   : > { %v8924_v11 = vpop.f32.mrb[61].mxu1 }
 0x680   : > { %v8925_v41 = vadd.f32 %v8924_v11, %v8923_v4 }
 0x682   : > { %v8926_v63 = vpop.f32.mrb[62].mxu1  ;;  %v12983_v44 = vadd.f32 %v8925_v41, %v12940_v37 }
 0x683   : > { %v8927_v52 = vpop.f32.mrb[63].mxu1 }
 0x684   : > { %v8928_v22 = vadd.f32 %v8927_v52, %v8926_v63 }
 0x686   : > { %v9573_v48 = vpop.f32.mrb[64].mxu1  ;;  %v12991_v12 = vadd.f32 %v8928_v22, %v12942_v46 }
 0x687   : > { %v5143_v27 = vadd.f32 %v9573_v48, %v4950_v23  ;;  %v5137_v0 = vpop.f32.mrb[65].mxu1 }
 0x688   : > { %v5138_v10 = vadd.f32 %v5137_v0, %v12945_v24 }
 0x689   : > { %v12995_v14 = vadd.f32 %v12988_v26, %v5143_v27 }
 0x68a   : > { %v12998_v37 = vadd.f32 %v12988_v26, %v5138_v10  ;;  %v9576_v62 = vpop.f32.mrb[66].mxu1 }
 0x68b   : > { %v8543_v36 = vmul.f32 -1.442695, %v12995_v14  ;;  %v5153_v29 = vadd.f32 %v9576_v62, %v4960_v28  ;;  %v5147_v60 = vpop.f32.mrb[67].mxu1  ;;  %v5242_v21 = vsel %vm3807_vm2, %v12995_v14, 0.0 }
 0x68c   : > { %v8542_v46 = vmul.f32 -1.442695, %v12998_v37  ;;  %v5148_v23 = vadd.f32 %v5147_v60, %v12949_v2  ;;  %5243 = vadd.xlane.f32.xlu1 %v5242_v21  ;;  %v5239_v24 = vsel %vm3807_vm2, %v12998_v37, 0.0 }
 0x68d   : > { %10669 = vpow2.f32 %v8543_v36  ;;  %v13008_v57 = vadd.f32 %v12988_v26, %v5153_v29  ;;  %5240 = vadd.xlane.f32.xlu0 %v5239_v24 }
 0x68e   : > { %10671 = vpow2.f32 %v8542_v46  ;;  %v13011_v28 = vadd.f32 %v12988_v26, %v5148_v23  ;;  %v9579_v33 = vpop.f32.mrb[68].mxu1 }
 0x68f   : > { %v8545_v55 = vmul.f32 -1.442695, %v13008_v57  ;;  %v5163_v40 = vadd.f32 %v9579_v33, %v12956_v38  ;;  %v5157_v50 = vpop.f32.mrb[69].mxu1  ;;  %v5248_v19 = vsel %vm3807_vm2, %v13008_v57, 0.0 }
 0x690   : > { %v8544_v2 = vmul.f32 -1.442695, %v13011_v28  ;;  %v5158_v61 = vadd.f32 %v5157_v50, %v12953_v59  ;;  %v5245_v34 = vsel %vm3807_vm2, %v13011_v28, 0.0 }
 0x691   : > { %10673 = vpow2.f32 %v8545_v55  ;;  %v13020_v49 = vadd.f32 %v12988_v26, %v5163_v40  ;;  %5246 = vadd.xlane.f32.xlu0 %v5245_v34 }
 0x692   : > { %10675 = vpow2.f32 %v8544_v2  ;;  %v13023_v13 = vadd.f32 %v12988_v26, %v5158_v61  ;;  %v9582_v42 = vpop.f32.mrb[70].mxu1 }
 0x693   : > { %v8547_v38 = vmul.f32 -1.442695, %v13020_v49  ;;  %v5173_v32 = vadd.f32 %v9582_v42, %v12962_v16  ;;  %v5167_v51 = vpop.f32.mrb[71].mxu1  ;;  %v5254_v59 = vsel %vm3807_vm2, %v13020_v49, 0.0 }
 0x694   : > { %v8546_v7 = vmul.f32 -1.442695, %v13023_v13  ;;  %v5168_v18 = vadd.f32 %v5167_v51, %v12959_v53  ;;  %5255 = vadd.xlane.f32.xlu1 %v5254_v59  ;;  %v5251_v43 = vsel %vm3807_vm2, %v13023_v13, 0.0 }
 0x695   : > { %10677 = vpow2.f32 %v8547_v38  ;;  %v13034_v15 = vadd.f32 %v12988_v26, %v5173_v32  ;;  %5249 = vadd.xlane.f32.xlu0 %v5248_v19 }
 0x696   : > { %10679 = vpow2.f32 %v8546_v7  ;;  %v13037_v16 = vadd.f32 %v12988_v26, %v5168_v18  ;;  %v9585_v39 = vpop.f32.mrb[72].mxu1 }
 0x697   : > { %v10670_v9 = vpop.eup %10669  ;;  %v8549_v20 = vmul.f32 -1.442695, %v13034_v15  ;;  %v5183_v8 = vadd.f32 %v9585_v39, %v12968_v1  ;;  %v5177_v53 = vpop.f32.mrb[73].mxu1  ;;  %v5260_v6 = vsel %vm3807_vm2, %v13034_v15, 0.0 }
 0x698   : > { %v10672_v30 = vpop.eup %10671  ;;  %v5542_v47 = vadd.f32 1.0, %v10670_v9  ;;  %v8548_v58 = vmul.f32 -1.442695, %v13037_v16  ;;  %v5178_v3 = vadd.f32 %v5177_v53, %v12965_v45  ;;  %5261 = vadd.xlane.f32.xlu1 %v5260_v6  ;;  %v5257_v11 = vsel %vm3807_vm2, %v13037_v16, 0.0 }
 0x699   : > { %v5541_v35 = vadd.f32 1.0, %v10672_v30  ;;  %10681 = vpow2.f32 %v8549_v20  ;;  %v13048_v31 = vadd.f32 %v12988_v26, %v5183_v8  ;;  %5252 = vadd.xlane.f32.xlu0 %v5251_v43 }
 0x69a   : > { %10683 = vrcp.f32 %v5542_v47  ;;  %v13051_v1 = vadd.f32 %v12988_v26, %v5178_v3  ;;  %v9588_v4 = vpop.f32.mrb[74].mxu1 }
 0x69b   : > { %v10674_v41 = vpop.eup %10673  ;;  %10685 = vrcp.f32 %v5541_v35  ;;  %v8551_v45 = vmul.f32 -1.442695, %v13048_v31  ;;  %v5193_v63 = vadd.f32 %v9588_v4, %v12974_v25  ;;  %v5187_v52 = vpop.f32.mrb[75].mxu1  ;;  %v5266_v22 = vsel %vm3807_vm2, %v13048_v31, 0.0 }
 0x69c   : > { %v10676_v48 = vpop.eup %10675  ;;  %v5544_v27 = vadd.f32 1.0, %v10674_v41  ;;  %10687 = vpow2.f32 %v8548_v58  ;;  %v8550_v0 = vmul.f32 -1.442695, %v13051_v1  ;;  %v5188_v10 = vadd.f32 %v5187_v52, %v12971_v17  ;;  %5267 = vadd.xlane.f32.xlu1 %v5266_v22 }
 0x69d   : > { %v5543_v62 = vadd.f32 1.0, %v10676_v48  ;;  %10689 = vpow2.f32 %v8551_v45  ;;  %v13062_v36 = vadd.f32 %v12988_v26, %v5193_v63  ;;  %5258 = vadd.xlane.f32.xlu0 %v5257_v11  ;;  %v5263_v60 = vsel %vm3807_vm2, %v13051_v1, 0.0 }
 0x69e   : > { %10691 = vrcp.f32 %v5544_v27  ;;  %v13065_v25 = vadd.f32 %v12988_v26, %v5188_v10  ;;  %v9591_v29 = vpop.f32.mrb[76].mxu1 }
 0x69f   : > { %v10678_v21 = vpop.eup %10677  ;;  %10693 = vrcp.f32 %v5543_v62  ;;  %v8553_v46 = vmul.f32 -1.442695, %v13062_v36  ;;  %v5203_v17 = vadd.f32 %v9591_v29, %v12980_v56  ;;  %v5197_v23 = vpop.f32.mrb[77].mxu1  ;;  %v5272_v24 = vsel %vm3807_vm2, %v13062_v36, 0.0 }
 0x6a0   : > { %v10680_v33 = vpop.eup %10679  ;;  %v5546_v55 = vadd.f32 1.0, %v10678_v21  ;;  %10695 = vpow2.f32 %v8550_v0  ;;  %v8552_v40 = vmul.f32 -1.442695, %v13065_v25  ;;  %v5198_v50 = vadd.f32 %v5197_v23, %v12977_v54  ;;  %5273 = vadd.xlane.f32.xlu1 %v5272_v24 }
 0x6a1   : > { %v5545_v2 = vadd.f32 1.0, %v10680_v33  ;;  %10697 = vpow2.f32 %v8553_v46  ;;  %v13076_v61 = vadd.f32 %v12988_v26, %v5203_v17  ;;  %5264 = vadd.xlane.f32.xlu0 %v5263_v60  ;;  %v5269_v42 = vsel %vm3807_vm2, %v13065_v25, 0.0 }
 0x6a2   : > { %10699 = vrcp.f32 %v5546_v55  ;;  %v13079_v56 = vadd.f32 %v12988_v26, %v5198_v50  ;;  %v9594_v34 = vpop.f32.mrb[78].mxu1 }
 0x6a3   : > { %v10682_v38 = vpop.eup %10681  ;;  %10701 = vrcp.f32 %v5545_v2  ;;  %v8555_v32 = vmul.f32 -1.442695, %v13076_v61  ;;  %v5213_v54 = vadd.f32 %v9594_v34, %v12991_v12  ;;  %v5207_v51 = vpop.f32.mrb[79].mxu1  ;;  %v5278_v59 = vsel %vm3807_vm2, %v13076_v61, 0.0 }
 0x6a4   : > { %v10684_v7 = vpop.eup %10683  ;;  %v5548_v18 = vadd.f32 1.0, %v10682_v38  ;;  %10703 = vpow2.f32 %v8552_v40  ;;  %v8554_v19 = vmul.f32 -1.442695, %v13079_v56  ;;  %v5208_v39 = vadd.f32 %v5207_v51, %v12983_v44  ;;  %5279 = vadd.xlane.f32.xlu1 %v5278_v59 }
 0x6a5   : > { %v10686_v9 = vpop.eup %10685  ;;  %10705 = vpow2.f32 %v8555_v32  ;;  %v13090_v20 = vadd.f32 %v12988_v26, %v5213_v54  ;;  %5270 = vadd.xlane.f32.xlu0 %v5269_v42  ;;  %v5590_v12 = vmul.f32 %v10684_v7, %v12995_v14 }
 0x6a6   : > { %v10688_v8 = vpop.eup %10687  ;;  %v13094_v53 = vadd.f32 %v12988_v26, %v5208_v39  ;;  %v5589_v6 = vmul.f32 %v10686_v9, %v12998_v37  ;;  %10707 = vpow2.f32 %v8554_v19  ;;  %v5275_v26 = vsel %vm3807_vm2, %v13079_v56, 0.0 }
 0x6a7   : > { %v10690_v30 = vpop.eup %10689  ;;  %v5547_v47 = vadd.f32 1.0, %v10688_v8  ;;  %v8557_v44 = vmul.f32 -1.442695, %v13090_v20  ;;  %v5284_v58 = vsel %vm3807_vm2, %v13090_v20, 0.0  ;;  %10709 = vrcp.f32 %v5548_v18 }
 0x6a8   : > { %v10692_v3 = vpop.eup %10691  ;;  %v5550_v43 = vadd.f32 1.0, %v10690_v30  ;;  %v8556_v35 = vmul.f32 -1.442695, %v13094_v53  ;;  %9611 = vmatprep.mubr.msk.f32.mxu0 %vm3807_vm2, %v5589_v6  ;;  %5285 = vadd.xlane.f32.xlu1 %v5284_v58  ;;  %v5281_v27 = vsel %vm3807_vm2, %v13094_v53, 0.0 }
 0x6a9   : > { %v10694_v4 = vpop.eup %10693  ;;  %10711 = vrcp.f32 %v5547_v47  ;;  %9612 = vmatmul.mubr.msk.f32.vlgmr.msra.gmra.mrb[16].mxu0 %vm3807_vm2, %v5590_v12  ;;  %5276 = vadd.xlane.f32.xlu0 %v5275_v26  ;;  %v5592_v52 = vmul.f32 %v10692_v3, %v13008_v57 }
 0x6aa   : > { %v10696_v11 = vpop.eup %10695  ;;  %10713 = vrcp.f32 %v5550_v43  ;;  %v5591_v41 = vmul.f32 %v10694_v4, %v13011_v28 }
 0x6ab   : > { %v10698_v45 = vpop.eup %10697  ;;  %v5549_v63 = vadd.f32 1.0, %v10696_v11  ;;  %10715 = vpow2.f32 %v8557_v44 }
 0x6ac   : > { %v10700_v22 = vpop.eup %10699  ;;  %v5552_v48 = vadd.f32 1.0, %v10698_v45  ;;  %10717 = vpow2.f32 %v8556_v35  ;;  %9614 = vmatprep.mubr.msk.f32.mxu0 %vm3807_vm2, %v5591_v41 }
 0x6ad   : > { %v10702_v0 = vpop.eup %10701  ;;  %10719 = vrcp.f32 %v5549_v63  ;;  %9615 = vmatmul.mubr.msk.f32.gmra.mrb[18].mxu0 %vm3807_vm2, %v5592_v52  ;;  %5282 = vadd.xlane.f32.xlu0 %v5281_v27  ;;  %v5594_v21 = vmul.f32 %v10700_v22, %v13020_v49 }
 0x6ae   : > { %v10704_v10 = vpop.eup %10703  ;;  %v5593_v62 = vmul.f32 %v10702_v0, %v13023_v13  ;;  %10721 = vrcp.f32 %v5552_v48 }
 0x6af   : > { %v10706_v29 = vpop.eup %10705  ;;  %v5551_v60 = vadd.f32 1.0, %v10704_v10 }
 0x6b0   : > { %v5554_v46 = vadd.f32 1.0, %v10706_v29  ;;  %9617 = vmatprep.mubr.msk.f32.mxu0 %vm3807_vm2, %v5593_v62  ;;  %v10708_v17 = vpop.eup %10707 }
 0x6b1   : > { %10723 = vrcp.f32 %v5551_v60  ;;  %9618 = vmatmul.mubr.msk.f32.gmra.mrb[20].mxu0 %vm3807_vm2, %v5594_v21  ;;  %v10710_v23 = vpop.eup %10709  ;;  %v5553_v24 = vadd.f32 1.0, %v10708_v17 }
 0x6b2   : > { %10725 = vrcp.f32 %v5554_v46  ;;  %v5596_v2 = vmul.f32 %v10710_v23, %v13034_v15 }
 0x6b3   : > { %v10712_v33 = vpop.eup %10711  ;;  %10727 = vrcp.f32 %v5553_v24 }
 0x6b4   : > { %v10714_v55 = vpop.eup %10713  ;;  %v5595_v40 = vmul.f32 %v10712_v33, %v13037_v16 }
 0x6b5   : > { %v10716_v50 = vpop.eup %10715  ;;  %v5598_v51 = vmul.f32 %v10714_v55, %v13048_v31 }
 0x6b6   : > { %v10718_v34 = vpop.eup %10717  ;;  %v5556_v42 = vadd.f32 1.0, %v10716_v50  ;;  %9620 = vmatprep.mubr.msk.f32.mxu0 %vm3807_vm2, %v5595_v40 }
 0x6b7   : > { %v10720_v38 = vpop.eup %10719  ;;  %v5555_v32 = vadd.f32 1.0, %v10718_v34  ;;  %9621 = vmatmul.mubr.msk.f32.gmra.mrb[22].mxu0 %vm3807_vm2, %v5596_v2 }
 0x6b8   : > { %10729 = vrcp.f32 %v5556_v42  ;;  %v5597_v54 = vmul.f32 %v10720_v38, %v13051_v1  ;;  %v10722_v59 = vpop.eup %10721 }
 0x6b9   : > { %10731 = vrcp.f32 %v5555_v32  ;;  %v5600_v39 = vmul.f32 %v10722_v59, %v13062_v36 }
 0x6ba   : > { %9623 = vmatprep.mubr.msk.f32.mxu0 %vm3807_vm2, %v5597_v54 }
 0x6bb   : > { %v10724_v7 = vpop.eup %10723  ;;  %9624 = vmatmul.mubr.msk.f32.gmra.mrb[24].mxu0 %vm3807_vm2, %v5598_v51 }
 0x6bc   : > { %v5599_v18 = vmul.f32 %v10724_v7, %v13065_v25  ;;  %v10726_v19 = vpop.eup %10725 }
 0x6bd   : > { %v10728_v9 = vpop.eup %10727  ;;  %v5602_v12 = vmul.f32 %v10726_v19, %v13076_v61 }
 0x6be   : > { %9626 = vmatprep.mubr.msk.f32.mxu0 %vm3807_vm2, %v5599_v18  ;;  %v5601_v8 = vmul.f32 %v10728_v9, %v13079_v56 }
 0x6bf   : > { %9627 = vmatmul.mubr.msk.f32.gmra.mrb[26].mxu0 %vm3807_vm2, %v5600_v39 }
 0x6c0   : > { %9629 = vmatprep.mubr.msk.f32.mxu0 %vm3807_vm2, %v5601_v8 }
 0x6c2   : > { %v10730_v6 = vpop.eup %10729 }
 0x6c3   : > { %v10732_v30 = vpop.eup %10731  ;;  %9630 = vmatmul.mubr.msk.f32.gmra.mrb[28].mxu0 %vm3807_vm2, %v5602_v12  ;;  %v5604_v44 = vmul.f32 %v10730_v6, %v13090_v20 }
 0x6c4   : > { %v5603_v47 = vmul.f32 %v10732_v30, %v13094_v53 }
 0x6c6   : > { %9632 = vmatprep.mubr.msk.f32.mxu0 %vm3807_vm2, %v5603_v47 }
 0x6c7   : > { %9633 = vmatmul.mubr.msk.f32.gmra.mrb[30].mxu0 %vm3807_vm2, %v5604_v44 }
 0x719   : > { %v5244_v58 = vpop.xlane.xlu1 %5243 }
 0x71a   : > { %v5288_v3 = vmul.f32 0.015625, %v5244_v58  ;;  %v5241_v43 = vpop.xlane.xlu0 %5240 }
 0x71b   : > { %v5287_v35 = vmul.f32 0.015625, %v5241_v43 }
 0x71c   : > { %v13136_v26 = vsub.f32 %v12995_v14, %v5288_v3 }
 0x71d   : > { %v13139_v4 = vsub.f32 %v12998_v37, %v5287_v35 }
 0x71e   : > { %v5247_v11 = vpop.xlane.xlu0 %5246  ;;  %v5320_v41 = vmul.f32 %v13136_v26, %v13136_v26 }
 0x71f   : > { %v5289_v45 = vmul.f32 0.015625, %v5247_v11  ;;  %v5319_v63 = vmul.f32 %v13139_v4, %v13139_v4 }
 0x720   : > { %v5338_v52 = vsel %vm3807_vm2, %v5320_v41, 0.0 }
 0x721   : > { %v13147_v22 = vsub.f32 %v13011_v28, %v5289_v45  ;;  %v5256_v48 = vpop.xlane.xlu1 %5255  ;;  %5339 = vadd.xlane.f32.xlu1 %v5338_v52  ;;  %v5335_v14 = vsel %vm3807_vm2, %v5319_v63, 0.0 }
 0x722   : > { %v5292_v27 = vmul.f32 0.015625, %v5256_v48  ;;  %v5250_v37 = vpop.xlane.xlu0 %5249  ;;  %5336 = vadd.xlane.f32.xlu0 %v5335_v14 }
 0x723   : > { %v5290_v0 = vmul.f32 0.015625, %v5250_v37  ;;  %v5321_v10 = vmul.f32 %v13147_v22, %v13147_v22 }
 0x724   : > { %v13153_v62 = vsub.f32 %v13020_v49, %v5292_v27 }
 0x725   : > { %v13156_v29 = vsub.f32 %v13008_v57, %v5290_v0  ;;  %v5262_v60 = vpop.xlane.xlu1 %5261  ;;  %v5341_v28 = vsel %vm3807_vm2, %v5321_v10, 0.0 }
 0x726   : > { %v5294_v21 = vmul.f32 0.015625, %v5262_v60  ;;  %v5253_v46 = vpop.xlane.xlu0 %5252  ;;  %5342 = vadd.xlane.f32.xlu0 %v5341_v28  ;;  %v5324_v24 = vmul.f32 %v13153_v62, %v13153_v62 }
 0x727   : > { %v5291_v17 = vmul.f32 0.015625, %v5253_v46  ;;  %v5322_v23 = vmul.f32 %v13156_v29, %v13156_v29  ;;  %v6116_v46 = vld [vmem:[%s14821_s15 + $0x88] sm:$0xff] }
 0x728   : > { %v13164_v33 = vsub.f32 %v13034_v15, %v5294_v21  ;;  %v5350_v42 = vsel %vm3807_vm2, %v5324_v24, 0.0  ;;  %v6100_v24 = vld [vmem:[%s14821_s15 + $0x8] sm:$0xff] }
 0x729   : > { %v13167_v49 = vsub.f32 %v13023_v13, %v5291_v17  ;;  %v5268_v57 = vpop.xlane.xlu1 %5267  ;;  %v5344_v55 = vsel %vm3807_vm2, %v5322_v23, 0.0  ;;  %v6099_v17 = vld [vmem:[%s14821_s15] sm:$0xff] }
 0x72a   : > { %v5296_v40 = vmul.f32 0.015625, %v5268_v57  ;;  %v5259_v50 = vpop.xlane.xlu0 %5258  ;;  %5345 = vadd.xlane.f32.xlu1 %v5344_v55  ;;  %v5326_v54 = vmul.f32 %v13164_v33, %v13164_v33  ;;  %v6117_v57 = vld [vmem:[%s14821_s15 + $0x90] sm:$0xff]  ;;  %v6118_v55 = vld [vmem:[%s14821_s15 + $0x98] sm:$0xff] }
 0x72b   : > { %v5293_v2 = vmul.f32 0.015625, %v5259_v50  ;;  %v5323_v34 = vmul.f32 %v13167_v49, %v13167_v49  ;;  %v9759_v50 = vpack.c.bf16 %v6118_v55, %v6117_v57 }
 0x72c   : > { %v13174_v38 = vsub.f32 %v13048_v31, %v5296_v40  ;;  %v5356_v39 = vsel %vm3807_vm2, %v5326_v54, 0.0  ;;  %v9757_v40 = vpack.c.bf16 %v6100_v24, %v6099_v17 }
 0x72d   : > { %v13177_v15 = vsub.f32 %v13037_v16, %v5293_v2  ;;  %v5274_v13 = vpop.xlane.xlu1 %5273  ;;  %v5347_v32 = vsel %vm3807_vm2, %v5323_v34, 0.0  ;;  %v6101_v2 = vld [vmem:[%s14821_s15 + $0x10] sm:$0xff]  ;;  %v6102_v34 = vld [vmem:[%s14821_s15 + $0x18] sm:$0xff] }
 0x72e   : > { %v5298_v51 = vmul.f32 0.015625, %v5274_v13  ;;  %v5265_v59 = vpop.xlane.xlu0 %5264  ;;  %5351 = vadd.xlane.f32.xlu1 %v5350_v42  ;;  %5348 = vadd.xlane.f32.xlu0 %v5347_v32  ;;  %v5328_v8 = vmul.f32 %v13174_v38, %v13174_v38  ;;  %v6119_v42 = vld [vmem:[%s14821_s15 + $0xa0] sm:$0xff]  ;;  %v6120_v13 = vld [vmem:[%s14821_s15 + $0xa8] sm:$0xff]  ;;  %v9761_v32 = vpack.c.bf16 %v6102_v34, %v6101_v2 }
 0x72f   : > { %v5295_v7 = vmul.f32 0.015625, %v5265_v59  ;;  %v5325_v18 = vmul.f32 %v13177_v15, %v13177_v15  ;;  %v9763_v54 = vpack.c.bf16 %v6120_v13, %v6119_v42 }
 0x730   : > { %v13185_v31 = vsub.f32 %v13062_v36, %v5298_v51  ;;  %v5362_v3 = vsel %vm3807_vm2, %v5328_v8, 0.0 }
 0x731   : > { %v13188_v16 = vsub.f32 %v13051_v1, %v5295_v7  ;;  %v5280_v19 = vpop.xlane.xlu1 %5279  ;;  %v5353_v9 = vsel %vm3807_vm2, %v5325_v18, 0.0 }
 0x732   : > { %v5300_v12 = vmul.f32 0.015625, %v5280_v19  ;;  %v5271_v6 = vpop.xlane.xlu0 %5270  ;;  %5357 = vadd.xlane.f32.xlu1 %v5356_v39  ;;  %5354 = vadd.xlane.f32.xlu0 %v5353_v9  ;;  %v5330_v1 = vmul.f32 %v13185_v31, %v13185_v31 }
 0x733   : > { %v5297_v30 = vmul.f32 0.015625, %v5271_v6  ;;  %v5327_v36 = vmul.f32 %v13188_v16, %v13188_v16 }
 0x734   : > { %v13199_v47 = vsub.f32 %v13076_v61, %v5300_v12  ;;  %v5368_v63 = vsel %vm3807_vm2, %v5330_v1, 0.0 }
 0x735   : > { %v13202_v44 = vsub.f32 %v13065_v25, %v5297_v30  ;;  %v5286_v58 = vpop.xlane.xlu1 %5285  ;;  %v5359_v43 = vsel %vm3807_vm2, %v5327_v36, 0.0 }
 0x736   : > { %v5302_v35 = vmul.f32 0.015625, %v5286_v58  ;;  %v5277_v11 = vpop.xlane.xlu0 %5276  ;;  %5363 = vadd.xlane.f32.xlu1 %v5362_v3  ;;  %5360 = vadd.xlane.f32.xlu0 %v5359_v43  ;;  %v5332_v48 = vmul.f32 %v13199_v47, %v13199_v47 }
 0x737   : > { %v5299_v41 = vmul.f32 0.015625, %v5277_v11  ;;  %v5329_v45 = vmul.f32 %v13202_v44, %v13202_v44 }
 0x738   : > { %v13210_v61 = vsub.f32 %v13090_v20, %v5302_v35  ;;  %v5374_v20 = vsel %vm3807_vm2, %v5332_v48, 0.0 }
 0x739   : > { %v13213_v25 = vsub.f32 %v13079_v56, %v5299_v41  ;;  %v5365_v52 = vsel %vm3807_vm2, %v5329_v45, 0.0 }
 0x73a   : > { %5369 = vadd.xlane.f32.xlu1 %v5368_v63  ;;  %5366 = vadd.xlane.f32.xlu0 %v5365_v52  ;;  %v5283_v14 = vpop.xlane.xlu0 %5282  ;;  %v5334_v10 = vmul.f32 %v13210_v61, %v13210_v61 }
 0x73b   : > { %v5301_v27 = vmul.f32 0.015625, %v5283_v14  ;;  %v5331_v37 = vmul.f32 %v13213_v25, %v13213_v25 }
 0x73c   : > { %v5380_v28 = vsel %vm3807_vm2, %v5334_v10, 0.0 }
 0x73d   : > { %v13221_v0 = vsub.f32 %v13094_v53, %v5301_v27  ;;  %v5371_v56 = vsel %vm3807_vm2, %v5331_v37, 0.0  ;;  %v6115_v53 = vld [vmem:[%s14821_s15 + $0x80] sm:$0xff] }
 0x73e   : > { %5375 = vadd.xlane.f32.xlu1 %v5374_v20  ;;  %5372 = vadd.xlane.f32.xlu0 %v5371_v56  ;;  %v9755_v23 = vpack.c.bf16 %v6116_v46, %v6115_v53  ;;  %v13296_v46 = vld [vmem:[%s14818_s12] ss:$0 sm:$0xff] }
 0x73f   : > { %v5333_v60 = vmul.f32 %v13221_v0, %v13221_v0 }
 0x740   : > { %9756 = vmatprep.subr.bf16.mxu1 %v9755_v23 }
 0x741   : > { %v5377_v21 = vsel %vm3807_vm2, %v5333_v60, 0.0  ;;  %9758 = vmatpush3.bf16.msra.mxu1 %v9757_v40 }
 0x742   : > { %5381 = vadd.xlane.f32.xlu1 %v5380_v28  ;;  %5378 = vadd.xlane.f32.xlu0 %v5377_v21 }
 0x743   : > { %9760 = vmatprep.subr.bf16.mxu1 %v9759_v50  ;;  %v13302_v50 = vld [vmem:[%s14819_s13] ss:$0 sm:$0xff] }
 0x745   : > { %9762 = vmatpush3.bf16.msra.mxu1 %v9761_v32 }
 0x746   : > { %9764 = vmatprep.subr.bf16.mxu1 %v9763_v54 }
 0x77c   : > { %v13261_v51 = vpop.f32.mrb[16].mxu0 }
 0x77d   : > { %v13263_v59 = vpop.f32.mrb[17].mxu0 }
 0x780   : > { %v13265_v7 = vpop.f32.mrb[18].mxu0 }
 0x781   : > { %v13267_v18 = vpop.f32.mrb[19].mxu0 }
 0x784   : > { %v13269_v19 = vpop.f32.mrb[20].mxu0 }
 0x785   : > { %v13271_v39 = vpop.f32.mrb[21].mxu0 }
 0x78a   : > { %v13273_v9 = vpop.f32.mrb[22].mxu0 }
 0x78b   : > { %v13275_v8 = vpop.f32.mrb[23].mxu0 }
 0x78e   : > { %v13277_v12 = vpop.f32.mrb[24].mxu0 }
 0x78f   : > { %v13279_v6 = vpop.f32.mrb[25].mxu0 }
 0x792   : > { %v13281_v30 = vpop.f32.mrb[26].mxu0 }
 0x793   : > { %v13283_v36 = vpop.f32.mrb[27].mxu0 }
 0x796   : > { %v13285_v1 = vpop.f32.mrb[28].mxu0 }
 0x797   : > { %v13287_v58 = vpop.f32.mrb[29].mxu0 }
 0x79a   : > { %v13289_v3 = vpop.f32.mrb[30].mxu0 }
 0x79b   : > { %v13291_v43 = vpop.f32.mrb[31].mxu0 }
 0x7ae   : > { %v5340_v35 = vpop.xlane.xlu1 %5339 }
 0x7af   : > { %v5384_v11 = vmul.f32 0.015625, %v5340_v35  ;;  %v5337_v41 = vpop.xlane.xlu0 %5336 }
 0x7b0   : > { %v5383_v45 = vmul.f32 0.015625, %v5337_v41 }
 0x7b1   : > { %v5400_v63 = vadd.f32 1e-05, %v5384_v11 }
 0x7b2   : > { %v5399_v52 = vadd.f32 1e-05, %v5383_v45 }
 0x7b3   : > { %10733 = vrsqrt.f32 %v5400_v63  ;;  %v5343_v48 = vpop.xlane.xlu0 %5342 }
 0x7b4   : > { %10735 = vrsqrt.f32 %v5399_v52  ;;  %v5385_v14 = vmul.f32 0.015625, %v5343_v48 }
 0x7b6   : > { %v5401_v27 = vadd.f32 1e-05, %v5385_v14 }
 0x7b7   : > { %v5346_v37 = vpop.xlane.xlu1 %5345 }
 0x7b8   : > { %10737 = vrsqrt.f32 %v5401_v27  ;;  %v5386_v20 = vmul.f32 0.015625, %v5346_v37  ;;  %v6103_v27 = vld [vmem:[%s14821_s15 + $0x20] sm:$0xff] }
 0x7ba   : > { %v5402_v56 = vadd.f32 1e-05, %v5386_v20 }
 0x7bb   : > { %v5352_v10 = vpop.xlane.xlu1 %5351  ;;  %v5349_v60 = vpop.xlane.xlu0 %5348 }
 0x7bc   : > { %10739 = vrsqrt.f32 %v5402_v56  ;;  %v5388_v28 = vmul.f32 0.015625, %v5352_v10  ;;  %v5387_v21 = vmul.f32 0.015625, %v5349_v60 }
 0x7bd   : > { %v10734_v53 = vpop.eup %10733 }
 0x7be   : > { %v10736_v17 = vpop.eup %10735  ;;  %v5404_v23 = vadd.f32 1e-05, %v5388_v28  ;;  %v5403_v24 = vadd.f32 1e-05, %v5387_v21  ;;  %v5432_v57 = vmul.f32 %v10734_v53, %v13136_v26 }
 0x7bf   : > { %v5358_v55 = vpop.xlane.xlu1 %5357  ;;  %v5355_v40 = vpop.xlane.xlu0 %5354  ;;  %v5431_v2 = vmul.f32 %v10736_v17, %v13139_v4 }
 0x7c0   : > { %10741 = vrsqrt.f32 %v5404_v23  ;;  %v5390_v34 = vmul.f32 0.015625, %v5358_v55  ;;  %v5389_v42 = vmul.f32 0.015625, %v5355_v40  ;;  %v5455_v13 = vmul.f32 %v13296_v46, %v5432_v57  ;;  %v6121_v57 = vld [vmem:[%s14821_s15 + $0xb0] sm:$0xff]  ;;  %v6122_v55 = vld [vmem:[%s14821_s15 + $0xb8] sm:$0xff] }
 0x7c1   : > { %10743 = vrsqrt.f32 %v5403_v24  ;;  %v5454_v32 = vmul.f32 %v13296_v46, %v5431_v2 }
 0x7c2   : > { %v10738_v54 = vpop.eup %10737  ;;  %v5406_v35 = vadd.f32 1e-05, %v5390_v34  ;;  %v5405_v26 = vadd.f32 1e-05, %v5389_v42  ;;  %v13308_v11 = vadd.f32 %v13302_v50, %v5455_v13  ;;  %v9767_v42 = vpack.c.bf16 %v6122_v55, %v6121_v57  ;;  %v6106_v13 = vld [vmem:[%s14821_s15 + $0x38] sm:$0xff]  ;;  %v6107_v57 = vld [vmem:[%s14821_s15 + $0x40] sm:$0xff] }
 0x7c3   : > { %v5364_v41 = vpop.xlane.xlu1 %5363  ;;  %v5361_v45 = vpop.xlane.xlu0 %5360  ;;  %v13311_v63 = vadd.f32 %v13302_v50, %v5454_v32  ;;  %v5433_v4 = vmul.f32 %v10738_v54, %v13147_v22  ;;  %v6104_v22 = vld [vmem:[%s14821_s15 + $0x28] sm:$0xff] }
 0x7c4   : > { %10745 = vrsqrt.f32 %v5406_v35  ;;  %v5392_v52 = vmul.f32 0.015625, %v5364_v41  ;;  %v5391_v48 = vmul.f32 0.015625, %v5361_v45  ;;  %5631 = vrot.lane.b32.xlu1 %v13308_v11, %s14931_s8  ;;  %v9765_v10 = vpack.c.bf16 %v6104_v22, %v6103_v27 }
 0x7c5   : > { %10747 = vrsqrt.f32 %v5405_v26  ;;  %5629 = vrot.lane.b32.xlu0 %v13311_v63, %s14931_s8  ;;  %v5456_v14 = vmul.f32 %v13296_v46, %v5433_v4 }
 0x7c6   : > { %v10740_v37 = vpop.eup %10739  ;;  %v5408_v20 = vadd.f32 1e-05, %v5392_v52  ;;  %v5407_v56 = vadd.f32 1e-05, %v5391_v48  ;;  %9766 = vmatpush3.bf16.msra.mxu1 %v9765_v10 }
 0x7c7   : > { %v5370_v60 = vpop.xlane.xlu1 %5369  ;;  %v5367_v28 = vpop.xlane.xlu0 %5366  ;;  %v13326_v21 = vadd.f32 %v13302_v50, %v5456_v14  ;;  %v5434_v53 = vmul.f32 %v10740_v37, %v13156_v29  ;;  %v6105_v29 = vld [vmem:[%s14821_s15 + $0x30] sm:$0xff]  ;;  %9768 = vmatprep.subr.bf16.mxu1 %v9767_v42 }
 0x7c8   : > { %10749 = vrsqrt.f32 %v5408_v20  ;;  %v5394_v17 = vmul.f32 0.015625, %v5370_v60  ;;  %v5393_v23 = vmul.f32 0.015625, %v5367_v28  ;;  %v9769_v45 = vpack.c.bf16 %v6106_v13, %v6105_v29 }
 0x7c9   : > { %10751 = vrsqrt.f32 %v5407_v56  ;;  %5633 = vrot.lane.b32.xlu1 %v13326_v21, %s14931_s8  ;;  %v5457_v24 = vmul.f32 %v13296_v46, %v5434_v53 }
 0x7ca   : > { %v10742_v40 = vpop.eup %10741  ;;  %v5410_v2 = vadd.f32 1e-05, %v5394_v17  ;;  %v5409_v34 = vadd.f32 1e-05, %v5393_v23  ;;  %9770 = vmatpush3.bf16.msra.mxu1 %v9769_v45  ;;  %v6123_v23 = vld [vmem:[%s14821_s15 + $0xc0] sm:$0xff] }
 0x7cb   : > { %v10744_v32 = vpop.eup %10743  ;;  %v5376_v54 = vpop.xlane.xlu1 %5375  ;;  %v13345_v26 = vadd.f32 %v13302_v50, %v5457_v24  ;;  %v5436_v41 = vmul.f32 %v10742_v40, %v13153_v62  ;;  %v6124_v24 = vld [vmem:[%s14821_s15 + $0xc8] sm:$0xff] }
 0x7cc   : > { %v5373_v35 = vpop.xlane.xlu0 %5372  ;;  %10753 = vrsqrt.f32 %v5410_v2  ;;  %v5396_v4 = vmul.f32 0.015625, %v5376_v54  ;;  %v5435_v48 = vmul.f32 %v10744_v32, %v13167_v49  ;;  %v9771_v29 = vpack.c.bf16 %v6124_v24, %v6123_v23  ;;  %v6108_v40 = vld [vmem:[%s14821_s15 + $0x48] sm:$0xff] }
 0x7cd   : > { %v5395_v52 = vmul.f32 0.015625, %v5373_v35  ;;  %10755 = vrsqrt.f32 %v5409_v34  ;;  %5635 = vrot.lane.b32.xlu1 %v13345_v26, %s14931_s8  ;;  %v5459_v14 = vmul.f32 %v13296_v46, %v5436_v41  ;;  %v9773_v13 = vpack.c.bf16 %v6108_v40, %v6107_v57 }
 0x7ce   : > { %v10746_v27 = vpop.eup %10745  ;;  %v5412_v22 = vadd.f32 1e-05, %v5396_v4  ;;  %v5458_v20 = vmul.f32 %v13296_v46, %v5435_v48  ;;  %9772 = vmatprep.subr.bf16.mxu1 %v9771_v29 }
 0x7cf   : > { %v5411_v37 = vadd.f32 1e-05, %v5395_v52  ;;  %v10748_v62 = vpop.eup %10747  ;;  %v5382_v56 = vpop.xlane.xlu1 %5381  ;;  %v13354_v60 = vadd.f32 %v13302_v50, %v5459_v14  ;;  %v5438_v49 = vmul.f32 %v10746_v27, %v13164_v33  ;;  %9774 = vmatpush3.bf16.msra.mxu1 %v9773_v13  ;;  %v6125_v52 = vld [vmem:[%s14821_s15 + $0xd0] sm:$0xff] }
 0x7d0   : > { %v5379_v10 = vpop.xlane.xlu0 %5378  ;;  %10757 = vrsqrt.f32 %v5412_v22  ;;  %v5398_v28 = vmul.f32 0.015625, %v5382_v56  ;;  %v13358_v17 = vadd.f32 %v13302_v50, %v5458_v20  ;;  %v5437_v55 = vmul.f32 %v10748_v62, %v13177_v15  ;;  %v6110_v22 = vld [vmem:[%s14821_s15 + $0x58] sm:$0xff] }
 0x7d1   : > { %v5397_v53 = vmul.f32 0.015625, %v5379_v10  ;;  %10759 = vrsqrt.f32 %v5411_v37  ;;  %5639 = vrot.lane.b32.xlu1 %v13354_v60, %s14931_s8  ;;  %v5461_v33 = vmul.f32 %v13296_v46, %v5438_v49 }
 0x7d2   : > { %v10750_v2 = vpop.eup %10749  ;;  %v5414_v34 = vadd.f32 1e-05, %v5398_v28  ;;  %5637 = vrot.lane.b32.xlu0 %v13358_v17, %s14931_s8  ;;  %v5460_v35 = vmul.f32 %v13296_v46, %v5437_v55 }
 0x7d3   : > { %v5413_v42 = vadd.f32 1e-05, %v5397_v53  ;;  %v10752_v32 = vpop.eup %10751  ;;  %v13379_v54 = vadd.f32 %v13302_v50, %v5461_v33  ;;  %v5440_v15 = vmul.f32 %v10750_v2, %v13174_v38  ;;  %v6126_v38 = vld [vmem:[%s14821_s15 + $0xd8] sm:$0xff] }
 0x7d4   : > { %10761 = vrsqrt.f32 %v5414_v34  ;;  %v5439_v41 = vmul.f32 %v10752_v32, %v13188_v16  ;;  %v13387_v45 = vadd.f32 %v13302_v50, %v5460_v35  ;;  %v6109_v16 = vld [vmem:[%s14821_s15 + $0x50] sm:$0xff]  ;;  %v9775_v27 = vpack.c.bf16 %v6126_v38, %v6125_v52  ;;  %v6127_v32 = vld [vmem:[%s14821_s15 + $0xe0] sm:$0xff]  ;;  %v6128_v35 = vld [vmem:[%s14821_s15 + $0xe8] sm:$0xff] }
 0x7d5   : > { %10763 = vrsqrt.f32 %v5413_v42  ;;  %5643 = vrot.lane.b32.xlu1 %v13379_v54, %s14931_s8  ;;  %v5463_v4 = vmul.f32 %v13296_v46, %v5440_v15  ;;  %v9777_v56 = vpack.c.bf16 %v6110_v22, %v6109_v16  ;;  %v6130_v16 = vld [vmem:[%s14821_s15 + $0xf8] sm:$0xff]  ;;  %v6147_v22 = vld [vmem:[%s14821_s15 + $0x180] sm:$0xff] }
 0x7d6   : > { %v10754_v48 = vpop.eup %10753  ;;  %v5462_v14 = vmul.f32 %v13296_v46, %v5439_v41  ;;  %5641 = vrot.lane.b32.xlu0 %v13387_v45, %s14931_s8  ;;  %9776 = vmatprep.subr.bf16.mxu1 %v9775_v27  ;;  %v6112_v41 = vld [vmem:[%s14821_s15 + $0x68] sm:$0xff] }
 0x7d7   : > { %v10756_v37 = vpop.eup %10755  ;;  %v13406_v20 = vadd.f32 %v13302_v50, %v5463_v4  ;;  %v5442_v62 = vmul.f32 %v10754_v48, %v13185_v31  ;;  %9778 = vmatpush3.bf16.msra.mxu1 %v9777_v56  ;;  %v5693_v56 = vld [vmem:[%s14820_s14] sm:$0xf] }
 0x7d8   : > { %v13410_v10 = vadd.f32 %v13302_v50, %v5462_v14  ;;  %v5441_v49 = vmul.f32 %v10756_v37, %v13202_v44  ;;  %v6114_v14 = vld [vmem:[%s14821_s15 + $0x78] sm:$0xff]  ;;  %v6148_v37 = vld [vmem:[%s14821_s15 + $0x188] sm:$0xff] }
 0x7d9   : > { %5647 = vrot.lane.b32.xlu1 %v13406_v20, %s14931_s8  ;;  %v5465_v28 = vmul.f32 %v13296_v46, %v5442_v62  ;;  %v9787_v62 = vpack.c.bf16 %v6148_v37, %v6147_v22 }
 0x7da   : > { %v10758_v53 = vpop.eup %10757  ;;  %v5464_v23 = vmul.f32 %v13296_v46, %v5441_v49  ;;  %5645 = vrot.lane.b32.xlu0 %v13410_v10, %s14931_s8  ;;  %v14932_v49 = vld [vmem:[#allocation15_spill] sm:$0xff] }
 0x7db   : > { %v10760_v24 = vpop.eup %10759  ;;  %v13420_v31 = vadd.f32 %v13302_v50, %v5465_v28  ;;  %v5444_v57 = vmul.f32 %v10758_v53, %v13199_v47  ;;  %v13491_v28 = vrot.slane %v5693_v56, %v14932_v49  ;;  %v14933_v53 = vld [vmem:[#allocation16_spill] sm:$0xff] }
 0x7dc   : > { %v13424_v44 = vadd.f32 %v13302_v50, %v5464_v23  ;;  %v5443_v33 = vmul.f32 %v10760_v24, %v13213_v25  ;;  %v13494_v23 = vrot.slane %v5693_v56, %v14933_v53  ;;  %v14934_v24 = vld [vmem:[#allocation14_spill] sm:$0xff] }
 0x7dd   : > { %5651 = vrot.lane.b32.xlu1 %v13420_v31, %s14931_s8  ;;  %v5467_v55 = vmul.f32 %v13296_v46, %v5444_v57  ;;  %v13497_v57 = vrot.slane %v5693_v56, %v14934_v24 }
 0x7de   : > { %v10762_v29 = vpop.eup %10761  ;;  %v5466_v40 = vmul.f32 %v13296_v46, %v5443_v33  ;;  %5649 = vrot.lane.b32.xlu0 %v13424_v44, %s14931_s8  ;;  %v13500_v33 = vrot.slane %v5693_v56, %v12704_v5 }
 0x7df   : > { %v10764_v2 = vpop.eup %10763  ;;  %v13434_v34 = vadd.f32 %v13302_v50, %v5467_v55  ;;  %v5446_v47 = vmul.f32 %v10762_v29, %v13210_v61  ;;  %v6111_v61 = vld [vmem:[%s14821_s15 + $0x60] sm:$0xff] }
 0x7e0   : > { %v13438_v42 = vadd.f32 %v13302_v50, %v5466_v40  ;;  %v5445_v25 = vmul.f32 %v10764_v2, %v13221_v0  ;;  %v9779_v0 = vpack.c.bf16 %v6128_v35, %v6127_v32  ;;  %v9781_v52 = vpack.c.bf16 %v6112_v41, %v6111_v61 }
 0x7e1   : > { %5655 = vrot.lane.b32.xlu1 %v13434_v34, %s14931_s8  ;;  %v5469_v13 = vmul.f32 %v13296_v46, %v5446_v47 }
 0x7e2   : > { %v5468_v15 = vmul.f32 %v13296_v46, %v5445_v25  ;;  %5653 = vrot.lane.b32.xlu0 %v13438_v42, %s14931_s8  ;;  %9780 = vmatprep.subr.bf16.mxu1 %v9779_v0  ;;  %v6129_v46 = vld [vmem:[%s14821_s15 + $0xf0] sm:$0xff] }
 0x7e3   : > { %v13460_v4 = vadd.f32 %v13302_v50, %v5469_v13  ;;  %9782 = vmatpush3.bf16.msra.mxu1 %v9781_v52  ;;  %v9783_v48 = vpack.c.bf16 %v6130_v16, %v6129_v46 }
 0x7e4   : > { %v13463_v38 = vadd.f32 %v13302_v50, %v5468_v15  ;;  %v6113_v50 = vld [vmem:[%s14821_s15 + $0x70] sm:$0xff] }
 0x7e5   : > { %5659 = vrot.lane.b32.xlu1 %v13460_v4, %s14931_s8  ;;  %v9785_v27 = vpack.c.bf16 %v6114_v14, %v6113_v50  ;;  %9784 = vmatprep.subr.bf16.mxu1 %v9783_v48 }
 0x7e6   : > { %5657 = vrot.lane.b32.xlu0 %v13463_v38, %s14931_s8 }
 0x7e7   : > { %9786 = vmatpush3.bf16.msra.mxu1 %v9785_v27 }
 0x7e8   : > { %9788 = vmatprep.subr.bf16.mxu1 %v9787_v62 }
 0x836   : > { %v5632_v55 = vpop.permute.xlu1 %5631 }
 0x837   : > { %v13504_v29 = vsel %vm3807_vm2, %v13308_v11, %v5632_v55  ;;  %v5630_v40 = vpop.permute.xlu0 %5629 }
 0x838   : > { %v5719_v2 = vsub.f32 %v13504_v29, %v13491_v28  ;;  %v5720_v47 = vsub.f32 %v13504_v29, %v13494_v23  ;;  %v13516_v32 = vsel %vm3807_vm2, %v13311_v63, %v5630_v40 }
 0x839   : > { %v5715_v11 = vsub.f32 %v13516_v32, %v13491_v28  ;;  %v5716_v61 = vsub.f32 %v13516_v32, %v13494_v23 }
 0x83a   : > { %v5784_v35 = vmul.f32 3.5, %v5720_v47  ;;  %v5783_v41 = vmul.f32 3.5, %v5719_v2 }
 0x83b   : > { %v5634_v52 = vpop.permute.xlu1 %5633  ;;  %v5779_v16 = vmul.f32 3.5, %v5715_v11  ;;  %v5780_v50 = vmul.f32 3.5, %v5716_v61 }
 0x83c   : > { %v5848_v46 = vmul.f32 %v5784_v35, %v5784_v35  ;;  %v5847_v14 = vmul.f32 %v5783_v41, %v5783_v41  ;;  %v13528_v27 = vsel %vm3807_vm2, %v13326_v21, %v5634_v52  ;;  %v6155_v21 = vld [vmem:[%s14821_s15 + $0x1c0] sm:$0xff] }
 0x83d   : > { %v5843_v63 = vmul.f32 %v5779_v16, %v5779_v16  ;;  %v5844_v48 = vmul.f32 %v5780_v50, %v5780_v50  ;;  %v5723_v56 = vsub.f32 %v13528_v27, %v13491_v28  ;;  %v5724_v55 = vsub.f32 %v13528_v27, %v13494_v23 }
 0x83e   : > { %v5912_v22 = vsub.f32 0.0, %v5848_v46  ;;  %v5911_v35 = vsub.f32 0.0, %v5847_v14 }
 0x83f   : > { %v5907_v37 = vsub.f32 0.0, %v5843_v63  ;;  %v5908_v62 = vsub.f32 0.0, %v5844_v48  ;;  %v5636_v40 = vpop.permute.xlu1 %5635  ;;  %v5787_v41 = vmul.f32 3.5, %v5723_v56  ;;  %v5788_v52 = vmul.f32 3.5, %v5724_v55 }
 0x840   : > { %v5981_v61 = vmul.f32 1.442695, %v5912_v22  ;;  %v13540_v46 = vsel %vm3807_vm2, %v13345_v26, %v5636_v40  ;;  %v5979_v14 = vmul.f32 1.442695, %v5911_v35  ;;  %v6131_v35 = vld [vmem:[%s14821_s15 + $0x100] sm:$0xff] }
 0x841   : > { %v5971_v2 = vmul.f32 1.442695, %v5907_v37  ;;  %v5973_v47 = vmul.f32 1.442695, %v5908_v62  ;;  %v5727_v16 = vsub.f32 %v13540_v46, %v13491_v28  ;;  %v5851_v50 = vmul.f32 %v5787_v41, %v5787_v41 }
 0x842   : > { %v5852_v63 = vmul.f32 %v5788_v52, %v5788_v52  ;;  %v5728_v48 = vsub.f32 %v13540_v46, %v13494_v23 }
 0x843   : > { %10765 = vpow2.f32 %v5971_v2  ;;  %v5915_v37 = vsub.f32 0.0, %v5851_v50  ;;  %v5791_v56 = vmul.f32 3.5, %v5727_v16  ;;  %v5640_v40 = vpop.permute.xlu1 %5639 }
 0x844   : > { %10767 = vpow2.f32 %v5973_v47  ;;  %v5916_v62 = vsub.f32 0.0, %v5852_v63  ;;  %v5792_v55 = vmul.f32 3.5, %v5728_v48  ;;  %v13558_v50 = vsel %vm3807_vm2, %v13354_v60, %v5640_v40  ;;  %v6149_v48 = vld [vmem:[%s14821_s15 + $0x190] sm:$0xff] }
 0x845   : > { %10769 = vpow2.f32 %v5981_v61  ;;  %v5987_v2 = vmul.f32 1.442695, %v5915_v37  ;;  %v5855_v41 = vmul.f32 %v5791_v56, %v5791_v56  ;;  %v6132_v61 = vld [vmem:[%s14821_s15 + $0x108] sm:$0xff]  ;;  %v5736_v37 = vsub.f32 %v13558_v50, %v13494_v23 }
 0x846   : > { %v5989_v47 = vmul.f32 1.442695, %v5916_v62  ;;  %10771 = vpow2.f32 %v5979_v14  ;;  %v5856_v52 = vmul.f32 %v5792_v55, %v5792_v55  ;;  %v6150_v14 = vld [vmem:[%s14821_s15 + $0x198] sm:$0xff]  ;;  %v5638_v62 = vpop.permute.xlu0 %5637  ;;  %v9789_v56 = vpack.c.bf16 %v6132_v61, %v6131_v35 }
 0x847   : > { %v5919_v16 = vsub.f32 0.0, %v5855_v41  ;;  %v9791_v26 = vpack.c.bf16 %v6150_v14, %v6149_v48  ;;  %v6134_v35 = vld [vmem:[%s14821_s15 + $0x118] sm:$0xff]  ;;  %v5800_v61 = vmul.f32 3.5, %v5736_v37  ;;  %v6152_v48 = vld [vmem:[%s14821_s15 + $0x1a8] sm:$0xff] }
 0x848   : > { %10773 = vpow2.f32 %v5989_v47  ;;  %v5920_v63 = vsub.f32 0.0, %v5856_v52  ;;  %v5735_v47 = vsub.f32 %v13558_v50, %v13491_v28 }
 0x849   : > { %10775 = vpow2.f32 %v5987_v2  ;;  %v5995_v60 = vmul.f32 1.442695, %v5919_v16  ;;  %v6133_v2 = vld [vmem:[%s14821_s15 + $0x110] sm:$0xff]  ;;  %v13582_v16 = vsel %vm3807_vm2, %v13358_v17, %v5638_v62 }
 0x84a   : > { %v5997_v40 = vmul.f32 1.442695, %v5920_v63  ;;  %v6151_v63 = vld [vmem:[%s14821_s15 + $0x1a0] sm:$0xff]  ;;  %v5731_v41 = vsub.f32 %v13582_v16, %v13491_v28  ;;  %v5799_v37 = vmul.f32 3.5, %v5735_v47  ;;  %v5732_v17 = vsub.f32 %v13582_v16, %v13494_v23 }
 0x84b   : > { %v9793_v62 = vpack.c.bf16 %v6134_v35, %v6133_v2  ;;  %v9795_v11 = vpack.c.bf16 %v6152_v48, %v6151_v63  ;;  %v6153_v2 = vld [vmem:[%s14821_s15 + $0x1b0] sm:$0xff] }
 0x84c   : > { %10777 = vpow2.f32 %v5997_v40  ;;  %v6135_v40 = vld [vmem:[%s14821_s15 + $0x120] sm:$0xff]  ;;  %v5795_v47 = vmul.f32 3.5, %v5731_v41  ;;  %v5796_v35 = vmul.f32 3.5, %v5732_v17  ;;  %v6137_v63 = vld [vmem:[%s14821_s15 + $0x130] sm:$0xff]  ;;  %v6156_v17 = vld [vmem:[%s14821_s15 + $0x1c8] sm:$0xff] }
 0x84d   : > { %v10766_v55 = vpop.eup %10765  ;;  %10779 = vpow2.f32 %v5995_v60  ;;  %v9803_v13 = vpack.c.bf16 %v6156_v17, %v6155_v21 }
 0x84e   : > { %v10768_v52 = vpop.eup %10767  ;;  %v5859_v22 = vmul.f32 %v5795_v47, %v5795_v47  ;;  %v5860_v15 = vmul.f32 %v5796_v35, %v5796_v35  ;;  %v5642_v35 = vpop.permute.xlu0 %5641 }
 0x84f   : > { %6227 = vmatprep.mubr.f32.mxu1 %v10768_v52  ;;  %v10770_v14 = vpop.eup %10769  ;;  %v5864_v52 = vmul.f32 %v5800_v61, %v5800_v61  ;;  %v5644_v61 = vpop.permute.xlu1 %5643 }
 0x850   : > { %6228 = vmatmul.mubr.f32.vlgmr.msra.gmra.mrb[80].mxu1 %v10766_v55  ;;  %v6136_v55 = vld [vmem:[%s14821_s15 + $0x128] sm:$0xff]  ;;  %v10772_v60 = vpop.eup %10771 }
 0x851   : > { %9790 = vmatpush3.bf16.msra.mxu1 %v9789_v56  ;;  %6232 = vmatprep.mubr.f32.mxu1 %v10770_v14  ;;  %v5863_v14 = vmul.f32 %v5799_v37, %v5799_v37  ;;  %v9797_v41 = vpack.c.bf16 %v6136_v55, %v6135_v40  ;;  %v6138_v56 = vld [vmem:[%s14821_s15 + $0x138] sm:$0xff]  ;;  %v5928_v25 = vsub.f32 0.0, %v5864_v52  ;;  %v13624_v40 = vsel %vm3807_vm2, %v13379_v54, %v5644_v61  ;;  %v6140_v54 = vld [vmem:[%s14821_s15 + $0x148] sm:$0xff] }
 0x852   : > { %9792 = vmatprep.subr.bf16.mxu1 %v9791_v26  ;;  %v6154_v26 = vld [vmem:[%s14821_s15 + $0x1b8] sm:$0xff]  ;;  %v10774_v48 = vpop.eup %10773  ;;  %v5924_v55 = vsub.f32 0.0, %v5860_v15  ;;  %v9801_v47 = vpack.c.bf16 %v6138_v56, %v6137_v63  ;;  %v5743_v24 = vsub.f32 %v13624_v40, %v13491_v28  ;;  %v5744_v52 = vsub.f32 %v13624_v40, %v13494_v23  ;;  %v6157_v63 = vld [vmem:[%s14821_s15 + $0x1d0] sm:$0xff] }
 0x853   : > { %v9799_v37 = vpack.c.bf16 %v6154_v26, %v6153_v2  ;;  %v5927_v0 = vsub.f32 0.0, %v5863_v14  ;;  %v6013_v21 = vmul.f32 1.442695, %v5928_v25  ;;  %v5746_v2 = vsub.f32 %v13624_v40, %v13500_v33 }
 0x854   : > { %6233 = vmatmul.mubr.f32.gmra.mrb[82].mxu1 %v10772_v60  ;;  %v10776_v60 = vpop.eup %10775  ;;  %v5808_v61 = vmul.f32 3.5, %v5744_v52  ;;  %v13648_v25 = vsel %vm3807_vm2, %v13387_v45, %v5642_v35  ;;  %v5807_v17 = vmul.f32 3.5, %v5743_v24  ;;  %v6141_v45 = vld [vmem:[%s14821_s15 + $0x150] sm:$0xff] }
 0x855   : > { %9794 = vmatpush3.bf16.msra.mxu1 %v9793_v62  ;;  %6237 = vmatprep.mubr.f32.mxu1 %v10774_v48  ;;  %v5923_v62 = vsub.f32 0.0, %v5859_v22  ;;  %v6005_v22 = vmul.f32 1.442695, %v5924_v55  ;;  %v6158_v48 = vld [vmem:[%s14821_s15 + $0x1d8] sm:$0xff]  ;;  %v5741_v24 = vsub.f32 %v13648_v25, %v13497_v57  ;;  %v5742_v55 = vsub.f32 %v13648_v25, %v13500_v33 }
 0x856   : > { %9796 = vmatprep.subr.bf16.mxu1 %v9795_v11  ;;  %v6139_v11 = vld [vmem:[%s14821_s15 + $0x140] sm:$0xff]  ;;  %v10778_v15 = vpop.eup %10777 }
 0x857   : > { %v6003_v5 = vmul.f32 1.442695, %v5923_v62  ;;  %v10780_v26 = vpop.eup %10779  ;;  %10781 = vpow2.f32 %v6005_v22  ;;  %v9805_v14 = vpack.c.bf16 %v6140_v54, %v6139_v11  ;;  %v9807_v62 = vpack.c.bf16 %v6158_v48, %v6157_v63  ;;  %v5648_v11 = vpop.permute.xlu1 %5647  ;;  %v6144_v63 = vld [vmem:[%s14821_s15 + $0x168] sm:$0xff]  ;;  %v6161_v48 = vld [vmem:[%s14821_s15 + $0x1f0] sm:$0xff] }
 0x858   : > { %6238 = vmatmul.mubr.f32.gmra.mrb[84].mxu1 %v10776_v60  ;;  %v5739_v60 = vsub.f32 %v13648_v25, %v13491_v28  ;;  %v5871_v54 = vmul.f32 %v5807_v17, %v5807_v17  ;;  %v13684_v17 = vsel %vm3807_vm2, %v13406_v20, %v5648_v11  ;;  %v6145_v11 = vld [vmem:[%s14821_s15 + $0x170] sm:$0xff] }
 0x859   : > { %9798 = vmatpush3.bf16.msra.mxu1 %v9797_v41  ;;  %6242 = vmatprep.mubr.f32.mxu1 %v10778_v15  ;;  %v6011_v41 = vmul.f32 1.442695, %v5927_v0  ;;  %10783 = vpow2.f32 %v6003_v5  ;;  %v6142_v0 = vld [vmem:[%s14821_s15 + $0x158] sm:$0xff]  ;;  %v5872_v5 = vmul.f32 %v5808_v61, %v5808_v61 }
 0x85a   : > { %9800 = vmatprep.subr.bf16.mxu1 %v9799_v37  ;;  %10785 = vpow2.f32 %v6013_v21  ;;  %v5740_v37 = vsub.f32 %v13648_v25, %v13494_v23  ;;  %v5803_v52 = vmul.f32 3.5, %v5739_v60  ;;  %v9809_v15 = vpack.c.bf16 %v6142_v0, %v6141_v45  ;;  %v6143_v21 = vld [vmem:[%s14821_s15 + $0x160] sm:$0xff]  ;;  %v5646_v0 = vpop.permute.xlu0 %5645 }
 0x85b   : > { %10787 = vpow2.f32 %v6011_v41  ;;  %v5936_v41 = vsub.f32 0.0, %v5872_v5  ;;  %v5752_v45 = vsub.f32 %v13684_v17, %v13494_v23  ;;  %v5751_v5 = vsub.f32 %v13684_v17, %v13491_v28 }
 0x85c   : > { %6243 = vmatmul.mubr.f32.gmra.mrb[86].mxu1 %v10780_v26  ;;  %v5804_v35 = vmul.f32 3.5, %v5740_v37  ;;  %v5867_v22 = vmul.f32 %v5803_v52, %v5803_v52 }
 0x85d   : > { %9802 = vmatpush3.bf16.msra.mxu1 %v9801_v47  ;;  %v6160_v47 = vld [vmem:[%s14821_s15 + $0x1e8] sm:$0xff] }
 0x85e   : > { %9804 = vmatprep.subr.bf16.mxu1 %v9803_v13  ;;  %v6159_v13 = vld [vmem:[%s14821_s15 + $0x1e0] sm:$0xff]  ;;  %v5868_v26 = vmul.f32 %v5804_v35, %v5804_v35  ;;  %v5931_v60 = vsub.f32 0.0, %v5867_v22 }
 0x85f   : > { %v9811_v61 = vpack.c.bf16 %v6160_v47, %v6159_v13  ;;  %v9813_v13 = vpack.c.bf16 %v6144_v63, %v6143_v21  ;;  %v6029_v21 = vmul.f32 1.442695, %v5936_v41  ;;  %v5816_v63 = vmul.f32 3.5, %v5752_v45 }
 0x860   : > { %v5932_v37 = vsub.f32 0.0, %v5868_v26  ;;  %v6019_v35 = vmul.f32 1.442695, %v5931_v60  ;;  %v5815_v41 = vmul.f32 3.5, %v5751_v5 }
 0x861   : > { %9806 = vmatpush3.bf16.msra.mxu1 %v9805_v14  ;;  %v6162_v14 = vld [vmem:[%s14821_s15 + $0x1f8] sm:$0xff]  ;;  %v10782_v52 = vpop.eup %10781 }
 0x862   : > { %9808 = vmatprep.subr.bf16.mxu1 %v9807_v62  ;;  %v5935_v62 = vsub.f32 0.0, %v5871_v54  ;;  %v9815_v47 = vpack.c.bf16 %v6162_v14, %v6161_v48  ;;  %v6021_v56 = vmul.f32 1.442695, %v5932_v37  ;;  %v6146_v54 = vld [vmem:[%s14821_s15 + $0x178] sm:$0xff]  ;;  %6247 = vmatprep.mubr.f32.mxu1 %v10782_v52  ;;  %v13702_v48 = vsel %vm3807_vm2, %v13410_v10, %v5646_v0 }
 0x863   : > { %v9817_v14 = vpack.c.bf16 %v6146_v54, %v6145_v11  ;;  %v5748_v37 = vsub.f32 %v13702_v48, %v13494_v23  ;;  %v5880_v52 = vmul.f32 %v5816_v63, %v5816_v63  ;;  %v5652_v11 = vpop.permute.xlu1 %5651 }
 0x864   : > { %10789 = vpow2.f32 %v6021_v56  ;;  %v6027_v60 = vmul.f32 1.442695, %v5935_v62  ;;  %v5750_v56 = vsub.f32 %v13702_v48, %v13500_v33  ;;  %v5879_v62 = vmul.f32 %v5815_v41, %v5815_v41 }
 0x865   : > { %9810 = vmatpush3.bf16.msra.mxu1 %v9809_v15  ;;  %v10784_v15 = vpop.eup %10783  ;;  %10791 = vpow2.f32 %v6019_v35  ;;  %v5944_v5 = vsub.f32 0.0, %v5880_v52 }
 0x866   : > { %9812 = vmatprep.subr.bf16.mxu1 %v9811_v61  ;;  %v10786_v26 = vpop.eup %10785  ;;  %6248 = vmatmul.mubr.f32.gmra.mrb[88].mxu1 %v10784_v15  ;;  %v5747_v61 = vsub.f32 %v13702_v48, %v13491_v28  ;;  %10793 = vpow2.f32 %v6029_v21  ;;  %v13714_v15 = vsel %vm3807_vm2, %v13420_v31, %v5652_v11 }
 0x867   : > { %6252 = vmatprep.mubr.f32.mxu1 %v10786_v26  ;;  %v10788_v45 = vpop.eup %10787  ;;  %10795 = vpow2.f32 %v6027_v60  ;;  %v5943_v26 = vsub.f32 0.0, %v5879_v62  ;;  %v6045_v41 = vmul.f32 1.442695, %v5944_v5 }
 0x868   : > { %v5811_v0 = vmul.f32 3.5, %v5747_v61  ;;  %v5759_v61 = vsub.f32 %v13714_v15, %v13491_v28 }
 0x869   : > { %9814 = vmatpush3.bf16.msra.mxu1 %v9813_v13  ;;  %v5812_v13 = vmul.f32 3.5, %v5748_v37  ;;  %v5760_v37 = vsub.f32 %v13714_v15, %v13494_v23 }
 0x86a   : > { %9816 = vmatprep.subr.bf16.mxu1 %v9815_v47  ;;  %6253 = vmatmul.mubr.f32.gmra.mrb[90].mxu1 %v10788_v45  ;;  %v5875_v35 = vmul.f32 %v5811_v0, %v5811_v0  ;;  %v5823_v5 = vmul.f32 3.5, %v5759_v61 }
 0x86b   : > { %v5876_v54 = vmul.f32 %v5812_v13, %v5812_v13  ;;  %v5824_v13 = vmul.f32 3.5, %v5760_v37 }
 0x86c   : > { %v5939_v47 = vsub.f32 0.0, %v5875_v35  ;;  %v6043_v35 = vmul.f32 1.442695, %v5943_v26  ;;  %v5887_v61 = vmul.f32 %v5823_v5, %v5823_v5 }
 0x86d   : > { %9818 = vmatpush3.bf16.msra.mxu1 %v9817_v14  ;;  %v5940_v21 = vsub.f32 0.0, %v5876_v54  ;;  %v5650_v14 = vpop.permute.xlu0 %5649  ;;  %v5888_v37 = vmul.f32 %v5824_v13, %v5824_v13 }
 0x86e   : > { %v6035_v63 = vmul.f32 1.442695, %v5939_v47  ;;  %v10790_v60 = vpop.eup %10789  ;;  %v13726_v62 = vsel %vm3807_vm2, %v13424_v44, %v5650_v14  ;;  %v5951_v31 = vsub.f32 0.0, %v5887_v61 }
 0x86f   : > { %v6037_v45 = vmul.f32 1.442695, %v5940_v21  ;;  %v10792_v0 = vpop.eup %10791  ;;  %6257 = vmatprep.mubr.f32.mxu1 %v10790_v60  ;;  %v5755_v54 = vsub.f32 %v13726_v62, %v13491_v28  ;;  %v5756_v47 = vsub.f32 %v13726_v62, %v13494_v23 }
 0x870   : > { %v10794_v11 = vpop.eup %10793  ;;  %6258 = vmatmul.mubr.f32.gmra.mrb[92].mxu1 %v10792_v0 }
 0x871   : > { %10797 = vpow2.f32 %v6037_v45  ;;  %6262 = vmatprep.mubr.f32.mxu1 %v10794_v11  ;;  %v10796_v21 = vpop.eup %10795  ;;  %v5819_v14 = vmul.f32 3.5, %v5755_v54  ;;  %v5820_v26 = vmul.f32 3.5, %v5756_v47  ;;  %v5654_v44 = vpop.permute.xlu0 %5653 }
 0x872   : > { %10799 = vpow2.f32 %v6035_v63  ;;  %v5656_v63 = vpop.permute.xlu1 %5655 }
 0x873   : > { %10801 = vpow2.f32 %v6045_v41  ;;  %v5883_v45 = vmul.f32 %v5819_v14, %v5819_v14  ;;  %v5884_v0 = vmul.f32 %v5820_v26, %v5820_v26  ;;  %v5952_v41 = vsub.f32 0.0, %v5888_v37 }
 0x874   : > { %6263 = vmatmul.mubr.f32.gmra.mrb[94].mxu1 %v10796_v21  ;;  %10803 = vpow2.f32 %v6043_v35  ;;  %v13738_v11 = vsel %vm3807_vm2, %v13434_v34, %v5656_v63  ;;  %v13750_v63 = vsel %vm3807_vm2, %v13438_v42, %v5654_v44 }
 0x875   : > { %v5947_v13 = vsub.f32 0.0, %v5883_v45  ;;  %v5948_v52 = vsub.f32 0.0, %v5884_v0  ;;  %v5768_v60 = vsub.f32 %v13738_v11, %v13494_v23  ;;  %v5767_v35 = vsub.f32 %v13738_v11, %v13491_v28 }
 0x876   : > { %v6061_v37 = vmul.f32 1.442695, %v5952_v41  ;;  %v5763_v61 = vsub.f32 %v13750_v63, %v13491_v28  ;;  %v5764_v41 = vsub.f32 %v13750_v63, %v13494_v23  ;;  %v5660_v44 = vpop.permute.xlu1 %5659 }
 0x877   : > { %v6051_v47 = vmul.f32 1.442695, %v5947_v13  ;;  %v6053_v20 = vmul.f32 1.442695, %v5948_v52  ;;  %v5832_v26 = vmul.f32 3.5, %v5768_v60  ;;  %v5831_v45 = vmul.f32 3.5, %v5767_v35 }
 0x878   : > { %v6059_v52 = vmul.f32 1.442695, %v5951_v31  ;;  %v5827_v31 = vmul.f32 3.5, %v5763_v61 }
 0x879   : > { %10805 = vpow2.f32 %v6053_v20  ;;  %v5896_v0 = vmul.f32 %v5832_v26, %v5832_v26  ;;  %v5828_v20 = vmul.f32 3.5, %v5764_v41  ;;  %v13762_v26 = vsel %vm3807_vm2, %v13460_v4, %v5660_v44 }
 0x87a   : > { %10807 = vpow2.f32 %v6051_v47  ;;  %v5891_v35 = vmul.f32 %v5827_v31, %v5827_v31  ;;  %v5776_v61 = vsub.f32 %v13762_v26, %v13494_v23 }
 0x87b   : > { %v10798_v54 = vpop.eup %10797  ;;  %10809 = vpow2.f32 %v6061_v37  ;;  %v5960_v47 = vsub.f32 0.0, %v5896_v0 }
 0x87c   : > { %v10800_v21 = vpop.eup %10799  ;;  %6267 = vmatprep.mubr.f32.mxu1 %v10798_v54  ;;  %10811 = vpow2.f32 %v6059_v52  ;;  %v5895_v54 = vmul.f32 %v5831_v45, %v5831_v45  ;;  %v5775_v52 = vsub.f32 %v13762_v26, %v13491_v28  ;;  %v5840_v31 = vmul.f32 3.5, %v5776_v61 }
 0x87d   : > { %v10802_v14 = vpop.eup %10801  ;;  %6268 = vmatmul.mubr.f32.gmra.mrb[96].mxu1 %v10800_v21  ;;  %v5892_v21 = vmul.f32 %v5828_v20, %v5828_v20  ;;  %v6077_v34 = vmul.f32 1.442695, %v5960_v47 }
 0x87e   : > { %6272 = vmatprep.mubr.f32.mxu1 %v10802_v14  ;;  %v10804_v13 = vpop.eup %10803  ;;  %v5955_v14 = vsub.f32 0.0, %v5891_v35  ;;  %v5959_v5 = vsub.f32 0.0, %v5895_v54  ;;  %v5839_v35 = vmul.f32 3.5, %v5775_v52  ;;  %v5904_v61 = vmul.f32 %v5840_v31, %v5840_v31 }
 0x87f   : > { %v5956_v37 = vsub.f32 0.0, %v5892_v21 }
 0x880   : > { %v6067_v60 = vmul.f32 1.442695, %v5955_v14  ;;  %v6075_v54 = vmul.f32 1.442695, %v5959_v5  ;;  %v5968_v31 = vsub.f32 0.0, %v5904_v61 }
 0x881   : > { %6273 = vmatmul.mubr.f32.gmra.mrb[98].mxu1 %v10804_v13  ;;  %v5658_v13 = vpop.permute.xlu0 %5657  ;;  %v6069_v42 = vmul.f32 1.442695, %v5956_v37 }
 0x882   : > { %v13774_v44 = vsel %vm3807_vm2, %v13463_v38, %v5658_v13 }
 0x883   : > { %v10806_v41 = vpop.eup %10805  ;;  %10813 = vpow2.f32 %v6069_v42  ;;  %v5771_v47 = vsub.f32 %v13774_v44, %v13491_v28  ;;  %v5772_v21 = vsub.f32 %v13774_v44, %v13494_v23  ;;  %v14935_v42 = vsub.f32 %v13516_v32, %v13500_v33 }
 0x884   : > { %v10808_v0 = vpop.eup %10807  ;;  %6277 = vmatprep.mubr.f32.mxu1 %v10806_v41  ;;  %10815 = vpow2.f32 %v6067_v60  ;;  %v14936_v28 = vsub.f32 %v13504_v29, %v13500_v33  ;;  %v14937_v23 = vsub.f32 %v13516_v32, %v13497_v57  ;;  %v5903_v41 = vmul.f32 %v5839_v35, %v5839_v35 }
 0x885   : > { %v10810_v20 = vpop.eup %10809  ;;  %6278 = vmatmul.mubr.f32.gmra.mrb[100].mxu1 %v10808_v0  ;;  %10817 = vpow2.f32 %v6077_v34  ;;  %v5782_v37 = vmul.f32 3.5, %v14935_v42  ;;  %v5835_v5 = vmul.f32 3.5, %v5771_v47  ;;  %v5836_v60 = vmul.f32 3.5, %v5772_v21 }
 0x886   : > { %6282 = vmatprep.mubr.f32.mxu1 %v10810_v20  ;;  %v10812_v14 = vpop.eup %10811  ;;  %v5786_v34 = vmul.f32 3.5, %v14936_v28  ;;  %10819 = vpow2.f32 %v6075_v54  ;;  %v5781_v13 = vmul.f32 3.5, %v14937_v23  ;;  %v14938_v47 = vsub.f32 %v13504_v29, %v13497_v57 }
 0x887   : > { %v5899_v52 = vmul.f32 %v5835_v5, %v5835_v5  ;;  %v5900_v0 = vmul.f32 %v5836_v60, %v5836_v60  ;;  %v5846_v20 = vmul.f32 %v5782_v37, %v5782_v37  ;;  %v5967_v28 = vsub.f32 0.0, %v5903_v41 }
 0x888   : > { %v5785_v21 = vmul.f32 3.5, %v14938_v47  ;;  %v5845_v38 = vmul.f32 %v5781_v13, %v5781_v13  ;;  %v14939_v35 = vsub.f32 %v13528_v27, %v13500_v33  ;;  %v6093_v37 = vmul.f32 1.442695, %v5968_v31 }
 0x889   : > { %6283 = vmatmul.mubr.f32.gmra.mrb[102].mxu1 %v10812_v14  ;;  %v5963_v42 = vsub.f32 0.0, %v5899_v52  ;;  %v5964_v45 = vsub.f32 0.0, %v5900_v0  ;;  %v5850_v14 = vmul.f32 %v5786_v34, %v5786_v34  ;;  %v5910_v32 = vsub.f32 0.0, %v5846_v20 }
 0x88a   : > { %v5790_v5 = vmul.f32 3.5, %v14939_v35  ;;  %v5849_v60 = vmul.f32 %v5785_v21, %v5785_v21  ;;  %v14940_v29 = vsub.f32 %v13528_v27, %v13497_v57  ;;  %v5909_v13 = vsub.f32 0.0, %v5845_v38 }
 0x88b   : > { %v6083_v54 = vmul.f32 1.442695, %v5963_v42  ;;  %v6085_v10 = vmul.f32 1.442695, %v5964_v45  ;;  %v5914_v23 = vsub.f32 0.0, %v5850_v14  ;;  %v14941_v20 = vsub.f32 %v13540_v46, %v13500_v33 }
 0x88c   : > { %v5789_v34 = vmul.f32 3.5, %v14940_v29  ;;  %v6091_v45 = vmul.f32 1.442695, %v5967_v28  ;;  %v5977_v52 = vmul.f32 1.442695, %v5910_v32  ;;  %v5854_v0 = vmul.f32 %v5790_v5, %v5790_v5 }
 0x88d   : > { %v10814_v4 = vpop.eup %10813  ;;  %10821 = vpow2.f32 %v6085_v10  ;;  %v14942_v27 = vsub.f32 %v13540_v46, %v13497_v57  ;;  %v5913_v10 = vsub.f32 0.0, %v5849_v60  ;;  %v5985_v42 = vmul.f32 1.442695, %v5914_v23 }
 0x88e   : > { %v10816_v22 = vpop.eup %10815  ;;  %6287 = vmatprep.mubr.f32.mxu1 %v10814_v4  ;;  %10823 = vpow2.f32 %v6083_v54  ;;  %v5794_v4 = vmul.f32 3.5, %v14941_v20  ;;  %v5975_v47 = vmul.f32 1.442695, %v5909_v13  ;;  %v5918_v38 = vsub.f32 0.0, %v5854_v0 }
 0x88f   : > { %v10818_v61 = vpop.eup %10817  ;;  %6288 = vmatmul.mubr.f32.gmra.mrb[104].mxu1 %v10816_v22  ;;  %10825 = vpow2.f32 %v6093_v37  ;;  %v5853_v22 = vmul.f32 %v5789_v34, %v5789_v34  ;;  %v5793_v31 = vmul.f32 3.5, %v14942_v27  ;;  %v14943_v14 = vsub.f32 %v13582_v16, %v13500_v33 }
 0x890   : > { %6292 = vmatprep.mubr.f32.mxu1 %v10818_v61  ;;  %v10820_v41 = vpop.eup %10819  ;;  %10827 = vpow2.f32 %v6091_v45  ;;  %v5858_v21 = vmul.f32 %v5794_v4, %v5794_v4  ;;  %v5983_v35 = vmul.f32 1.442695, %v5913_v10  ;;  %v14944_v5 = vsub.f32 %v13558_v50, %v13500_v33 }
 0x891   : > { %10829 = vpow2.f32 %v5977_v52  ;;  %v5798_v28 = vmul.f32 3.5, %v14943_v14  ;;  %v5917_v54 = vsub.f32 0.0, %v5853_v22  ;;  %v5857_v32 = vmul.f32 %v5793_v31, %v5793_v31 }
 0x892   : > { %10831 = vpow2.f32 %v5975_v47  ;;  %v5802_v46 = vmul.f32 3.5, %v14944_v5  ;;  %v14945_v37 = vsub.f32 %v13582_v16, %v13497_v57  ;;  %v5993_v29 = vmul.f32 1.442695, %v5918_v38 }
 0x893   : > { %6293 = vmatmul.mubr.f32.gmra.mrb[106].mxu1 %v10820_v41  ;;  %10833 = vpow2.f32 %v5985_v42  ;;  %v5922_v34 = vsub.f32 0.0, %v5858_v21  ;;  %v5862_v23 = vmul.f32 %v5798_v28, %v5798_v28  ;;  %v5991_v41 = vmul.f32 1.442695, %v5917_v54 }
 0x894   : > { %v5797_v61 = vmul.f32 3.5, %v14945_v37  ;;  %v5921_v52 = vsub.f32 0.0, %v5857_v32  ;;  %10835 = vpow2.f32 %v5983_v35  ;;  %v14946_v0 = vsub.f32 %v13558_v50, %v13497_v57 }
 0x895   : > { %v5866_v4 = vmul.f32 %v5802_v46, %v5802_v46  ;;  %10837 = vpow2.f32 %v5993_v29  ;;  %v6001_v16 = vmul.f32 1.442695, %v5922_v34  ;;  %v5926_v27 = vsub.f32 0.0, %v5862_v23 }
 0x896   : > { %v5801_v20 = vmul.f32 3.5, %v14946_v0  ;;  %v5861_v22 = vmul.f32 %v5797_v61, %v5797_v61  ;;  %v5806_v31 = vmul.f32 3.5, %v5742_v55  ;;  %10839 = vpow2.f32 %v5991_v41 }
 0x897   : > { %v10822_v60 = vpop.eup %10821  ;;  %v5999_v47 = vmul.f32 1.442695, %v5921_v52  ;;  %v5930_v21 = vsub.f32 0.0, %v5866_v4  ;;  %v5805_v50 = vmul.f32 3.5, %v5741_v24  ;;  %10841 = vpow2.f32 %v6001_v16 }
 0x898   : > { %v10824_v13 = vpop.eup %10823  ;;  %6297 = vmatprep.mubr.f32.mxu1 %v10822_v60  ;;  %v5865_v38 = vmul.f32 %v5801_v20, %v5801_v20  ;;  %v5925_v14 = vsub.f32 0.0, %v5861_v22  ;;  %v6009_v28 = vmul.f32 1.442695, %v5926_v27  ;;  %v5810_v54 = vmul.f32 3.5, %v5746_v2 }
 0x899   : > { %v10826_v45 = vpop.eup %10825  ;;  %6298 = vmatmul.mubr.f32.gmra.mrb[108].mxu1 %v10824_v13  ;;  %v5870_v55 = vmul.f32 %v5806_v31, %v5806_v31  ;;  %10843 = vpow2.f32 %v5999_v47  ;;  %v14947_v5 = vsub.f32 %v13624_v40, %v13497_v57  ;;  %v6017_v61 = vmul.f32 1.442695, %v5930_v21 }
 0x89a   : > { %6302 = vmatprep.mubr.f32.mxu1 %v10826_v45  ;;  %v10828_v10 = vpop.eup %10827  ;;  %v5929_v37 = vsub.f32 0.0, %v5865_v38  ;;  %v6007_v25 = vmul.f32 1.442695, %v5925_v14  ;;  %v5869_v24 = vmul.f32 %v5805_v50, %v5805_v50  ;;  %10845 = vpow2.f32 %v6009_v28 }
 0x89b   : > { %v10830_v42 = vpop.eup %10829  ;;  %v5809_v46 = vmul.f32 3.5, %v14947_v5  ;;  %v5874_v60 = vmul.f32 %v5810_v54, %v5810_v54  ;;  %v5934_v29 = vsub.f32 0.0, %v5870_v55  ;;  %v5814_v2 = vmul.f32 3.5, %v5750_v56 }
 0x89c   : > { %v10832_v32 = vpop.eup %10831  ;;  %v14948_v40 = vsub.f32 %v13684_v17, %v13500_v33  ;;  %v6015_v41 = vmul.f32 1.442695, %v5929_v37  ;;  %10847 = vpow2.f32 %v6007_v25  ;;  %v5933_v52 = vsub.f32 0.0, %v5869_v24 }
 0x89d   : > { %6303 = vmatmul.mubr.f32.gmra.mrb[110].mxu1 %v10828_v10  ;;  %v10834_v35 = vpop.eup %10833  ;;  %v5873_v13 = vmul.f32 %v5809_v46, %v5809_v46  ;;  %v14949_v0 = vsub.f32 %v13702_v48, %v13497_v57  ;;  %10849 = vpow2.f32 %v6017_v61  ;;  %v5938_v22 = vsub.f32 0.0, %v5874_v60 }
 0x89e   : > { %6372 = vmatprep.mubr.f32.mxu1 %v10830_v42  ;;  %v10836_v34 = vpop.eup %10835  ;;  %v5818_v45 = vmul.f32 3.5, %v14948_v40  ;;  %v6025_v56 = vmul.f32 1.442695, %v5934_v29  ;;  %v5878_v16 = vmul.f32 %v5814_v2, %v5814_v2  ;;  %10851 = vpow2.f32 %v6015_v41 }
 0x89f   : > { %v10838_v23 = vpop.eup %10837  ;;  %v5813_v20 = vmul.f32 3.5, %v14949_v0  ;;  %v5937_v31 = vsub.f32 0.0, %v5873_v13  ;;  %v6023_v42 = vmul.f32 1.442695, %v5933_v52  ;;  %v14950_v47 = vsub.f32 %v13684_v17, %v13497_v57 }
 0x8a0   : > { %v10840_v4 = vpop.eup %10839  ;;  %v5882_v10 = vmul.f32 %v5818_v45, %v5818_v45  ;;  %v6033_v14 = vmul.f32 1.442695, %v5938_v22  ;;  %10853 = vpow2.f32 %v6025_v56  ;;  %v5942_v50 = vsub.f32 0.0, %v5878_v16 }
 0x8a1   : > { %6373 = vmatmul.mubr.f32.vlgmr.msra.gmra.mrb[112].mxu1 %v10832_v32  ;;  %v10842_v27 = vpop.eup %10841  ;;  %v5817_v38 = vmul.f32 3.5, %v14950_v47  ;;  %v5877_v21 = vmul.f32 %v5813_v20, %v5813_v20  ;;  %v14951_v28 = vsub.f32 %v13726_v62, %v13500_v33  ;;  %v6031_v32 = vmul.f32 1.442695, %v5937_v31 }
 0x8a2   : > { %6377 = vmatprep.mubr.f32.mxu1 %v10834_v35  ;;  %v5946_v35 = vsub.f32 0.0, %v5882_v10  ;;  %v14952_v5 = vsub.f32 %v13714_v15, %v13500_v33  ;;  %10855 = vpow2.f32 %v6023_v42  ;;  %v14953_v61 = vsub.f32 %v13726_v62, %v13497_v57 }
 0x8a3   : > { %v10844_v48 = vpop.eup %10843  ;;  %v5822_v54 = vmul.f32 3.5, %v14951_v28  ;;  %v5881_v17 = vmul.f32 %v5817_v38, %v5817_v38  ;;  %v5941_v37 = vsub.f32 0.0, %v5877_v21  ;;  %10857 = vpow2.f32 %v6033_v14 }
 0x8a4   : > { %v10846_v55 = vpop.eup %10845  ;;  %v5826_v46 = vmul.f32 3.5, %v14952_v5  ;;  %v5821_v25 = vmul.f32 3.5, %v14953_v61  ;;  %v6041_v24 = vmul.f32 1.442695, %v5942_v50  ;;  %10859 = vpow2.f32 %v6031_v32 }
 0x8a5   : > { %6378 = vmatmul.mubr.f32.gmra.mrb[114].mxu1 %v10836_v34  ;;  %v5886_v60 = vmul.f32 %v5822_v54, %v5822_v54  ;;  %v6049_v34 = vmul.f32 1.442695, %v5946_v35  ;;  %v5945_v45 = vsub.f32 0.0, %v5881_v17  ;;  %v6039_v41 = vmul.f32 1.442695, %v5941_v37 }
 0x8a6   : > { %6382 = vmatprep.mubr.f32.mxu1 %v10838_v23  ;;  %v10848_v29 = vpop.eup %10847  ;;  %v14954_v23 = vsub.f32 %v13714_v15, %v13497_v57  ;;  %v5890_v40 = vmul.f32 %v5826_v46, %v5826_v46  ;;  %v5885_v52 = vmul.f32 %v5821_v25, %v5821_v25  ;;  %10861 = vpow2.f32 %v6041_v24 }
 0x8a7   : > { %v10850_v2 = vpop.eup %10849  ;;  %v5950_v62 = vsub.f32 0.0, %v5886_v60  ;;  %v14955_v0 = vsub.f32 %v13750_v63, %v13500_v33  ;;  %10863 = vpow2.f32 %v6049_v34  ;;  %v6047_v15 = vmul.f32 1.442695, %v5945_v45 }
 0x8a8   : > { %v5825_v13 = vmul.f32 3.5, %v14954_v23  ;;  %v5954_v16 = vsub.f32 0.0, %v5890_v40  ;;  %10865 = vpow2.f32 %v6039_v41  ;;  %v14956_v31 = vsub.f32 %v13750_v63, %v13497_v57 }
 0x8a9   : > { %6383 = vmatmul.mubr.f32.gmra.mrb[116].mxu1 %v10840_v4  ;;  %v5830_v20 = vmul.f32 3.5, %v14955_v0  ;;  %v10852_v4 = vpop.eup %10851  ;;  %v6057_v42 = vmul.f32 1.442695, %v5950_v62  ;;  %v14957_v47 = vsub.f32 %v13738_v11, %v13500_v33  ;;  %10867 = vpow2.f32 %v6047_v15 }
 0x8aa   : > { %6387 = vmatprep.mubr.f32.mxu1 %v10842_v27  ;;  %v10854_v22 = vpop.eup %10853  ;;  %v5889_v56 = vmul.f32 %v5825_v13, %v5825_v13  ;;  %v5949_v27 = vsub.f32 0.0, %v5885_v52  ;;  %v5829_v10 = vmul.f32 3.5, %v14956_v31  ;;  %v6065_v54 = vmul.f32 1.442695, %v5954_v16 }
 0x8ab   : > { %v5834_v38 = vmul.f32 3.5, %v14957_v47  ;;  %v5894_v21 = vmul.f32 %v5830_v20, %v5830_v20  ;;  %v14958_v63 = vsub.f32 %v13738_v11, %v13497_v57  ;;  %10869 = vpow2.f32 %v6057_v42 }
 0x8ac   : > { %v10856_v14 = vpop.eup %10855  ;;  %v5953_v28 = vsub.f32 0.0, %v5889_v56  ;;  %v5893_v35 = vmul.f32 %v5829_v10, %v5829_v10  ;;  %10871 = vpow2.f32 %v6065_v54  ;;  %v14960_v13 = vsub.f32 %v13762_v26, %v13500_v33 }
 0x8ad   : > { %6388 = vmatmul.mubr.f32.gmra.mrb[118].mxu1 %v10844_v48  ;;  %v5774_v48 = vsub.f32 %v13774_v44, %v13500_v33  ;;  %v10858_v50 = vpop.eup %10857  ;;  %v5833_v32 = vmul.f32 3.5, %v14958_v63  ;;  %v5898_v5 = vmul.f32 %v5834_v38, %v5834_v38  ;;  %v5958_v46 = vsub.f32 0.0, %v5894_v21 }
 0x8ae   : > { %6392 = vmatprep.mubr.f32.mxu1 %v10846_v55  ;;  %v6055_v55 = vmul.f32 1.442695, %v5949_v27  ;;  %v10860_v37 = vpop.eup %10859  ;;  %v6063_v25 = vmul.f32 1.442695, %v5953_v28  ;;  %v5957_v60 = vsub.f32 0.0, %v5893_v35  ;;  %v5842_v40 = vmul.f32 3.5, %v14960_v13 }
 0x8af   : > { %v5838_v17 = vmul.f32 3.5, %v5774_v48  ;;  %v5897_v24 = vmul.f32 %v5833_v32, %v5833_v32  ;;  %v5962_v34 = vsub.f32 0.0, %v5898_v5  ;;  %v6073_v23 = vmul.f32 1.442695, %v5958_v46 }
 0x8b0   : > { %v10862_v61 = vpop.eup %10861  ;;  %10873 = vpow2.f32 %v6055_v55  ;;  %v6071_v62 = vmul.f32 1.442695, %v5957_v60  ;;  %v14961_v0 = vsub.f32 %v13762_v26, %v13497_v57 }
 0x8b1   : > { %6393 = vmatmul.mubr.f32.gmra.mrb[120].mxu1 %v10848_v29  ;;  %v14959_v29 = vsub.f32 %v13774_v44, %v13497_v57  ;;  %v10864_v11 = vpop.eup %10863  ;;  %v5902_v45 = vmul.f32 %v5838_v17, %v5838_v17  ;;  %10875 = vpow2.f32 %v6063_v25  ;;  %v5961_v52 = vsub.f32 0.0, %v5897_v24 }
 0x8b2   : > { %6397 = vmatprep.mubr.f32.mxu1 %v10850_v2  ;;  %v10866_v41 = vpop.eup %10865  ;;  %v5841_v20 = vmul.f32 3.5, %v14961_v0  ;;  %10877 = vpow2.f32 %v6073_v23 }
 0x8b3   : > { %v5837_v2 = vmul.f32 3.5, %v14959_v29  ;;  %v5966_v56 = vsub.f32 0.0, %v5902_v45  ;;  %v10868_v16 = vpop.eup %10867  ;;  %v6079_v33 = vmul.f32 1.442695, %v5961_v52  ;;  %10879 = vpow2.f32 %v6071_v62 }
 0x8b4   : > { %v5905_v27 = vmul.f32 %v5841_v20, %v5841_v20 }
 0x8b5   : > { %6398 = vmatmul.mubr.f32.gmra.mrb[122].mxu1 %v10852_v4  ;;  %v5901_v44 = vmul.f32 %v5837_v2, %v5837_v2  ;;  %v6081_v4 = vmul.f32 1.442695, %v5962_v34  ;;  %v10870_v15 = vpop.eup %10869  ;;  %v6089_v47 = vmul.f32 1.442695, %v5966_v56 }
 0x8b6   : > { %6402 = vmatprep.mubr.f32.mxu1 %v10854_v22  ;;  %v5906_v22 = vmul.f32 %v5842_v40, %v5842_v40  ;;  %v10872_v10 = vpop.eup %10871  ;;  %v5969_v26 = vsub.f32 0.0, %v5905_v27 }
 0x8b7   : > { %v5965_v31 = vsub.f32 0.0, %v5901_v44  ;;  %10881 = vpow2.f32 %v6081_v4 }
 0x8b8   : > { %v5970_v42 = vsub.f32 0.0, %v5906_v22  ;;  %10883 = vpow2.f32 %v6079_v33 }
 0x8b9   : > { %6403 = vmatmul.mubr.f32.gmra.mrb[124].mxu1 %v10856_v14  ;;  %v6087_v38 = vmul.f32 1.442695, %v5965_v31  ;;  %10885 = vpow2.f32 %v6089_v47 }
 0x8ba   : > { %6407 = vmatprep.mubr.f32.mxu1 %v10858_v50  ;;  %v10874_v57 = vpop.eup %10873  ;;  %v6097_v48 = vmul.f32 1.442695, %v5970_v42  ;;  %v6095_v50 = vmul.f32 1.442695, %v5969_v26 }
 0x8bb   : > { %v10876_v21 = vpop.eup %10875  ;;  %10887 = vpow2.f32 %v6087_v38 }
 0x8bc   : > { %v10878_v14 = vpop.eup %10877  ;;  %10889 = vpow2.f32 %v6097_v48 }
 0x8bd   : > { %6408 = vmatmul.mubr.f32.gmra.mrb[126].mxu1 %v10860_v37  ;;  %v10880_v28 = vpop.eup %10879  ;;  %10891 = vpow2.f32 %v6095_v50 }
 0x8be   : > { %6412 = vmatprep.mubr.f32.mxu1 %v10862_v61 }
 0x8c1   : > { %6413 = vmatmul.mubr.f32.gmra.mrb[128].mxu1 %v10866_v41  ;;  %v10882_v54 = vpop.eup %10881 }
 0x8c2   : > { %6417 = vmatprep.mubr.f32.mxu1 %v10864_v11  ;;  %v10884_v55 = vpop.eup %10883 }
 0x8c3   : > { %v10886_v63 = vpop.eup %10885 }
 0x8c5   : > { %6418 = vmatmul.mubr.f32.gmra.mrb[130].mxu1 %v10868_v16  ;;  %v10888_v32 = vpop.eup %10887 }
 0x8c6   : > { %6422 = vmatprep.mubr.f32.mxu1 %v10870_v15  ;;  %v10890_v35 = vpop.eup %10889 }
 0x8c7   : > { %v10892_v5 = vpop.eup %10891 }
 0x8c9   : > { %6423 = vmatmul.mubr.f32.gmra.mrb[132].mxu1 %v10874_v57 }
 0x8ca   : > { %6427 = vmatprep.mubr.f32.mxu1 %v10872_v10 }
 0x8cd   : > { %6428 = vmatmul.mubr.f32.gmra.mrb[134].mxu1 %v10876_v21 }
 0x8ce   : > { %6432 = vmatprep.mubr.f32.mxu1 %v10878_v14 }
 0x8d1   : > { %6433 = vmatmul.mubr.f32.gmra.mrb[136].mxu1 %v10880_v28 }
 0x8d2   : > { %6437 = vmatprep.mubr.f32.mxu1 %v10882_v54 }
 0x8d5   : > { %6438 = vmatmul.mubr.f32.gmra.mrb[138].mxu1 %v10884_v55 }
 0x8d6   : > { %6442 = vmatprep.mubr.f32.mxu1 %v10886_v63 }
 0x8d9   : > { %6443 = vmatmul.mubr.f32.gmra.mrb[140].mxu1 %v10888_v32 }
 0x8da   : > { %6447 = vmatprep.mubr.f32.mxu1 %v10890_v35 }
 0x8dd   : > { %6448 = vmatmul.mubr.f32.gmra.mrb[142].mxu1 %v10892_v5 }
 0x923   : > { %v8985_v46 = vpop.f32.mrb[80].mxu1 }
 0x924   : > { %v8986_v17 = vpop.f32.mrb[81].mxu1 }
 0x925   : > { %v8987_v37 = vadd.f32 %v8986_v17, %v8985_v46 }
 0x927   : > { %v8988_v61 = vpop.f32.mrb[82].mxu1 }
 0x928   : > { %v8989_v25 = vpop.f32.mrb[83].mxu1 }
 0x929   : > { %v8990_v24 = vadd.f32 %v8989_v25, %v8988_v61 }
 0x92b   : > { %v8991_v60 = vpop.f32.mrb[84].mxu1 }
 0x92c   : > { %v8992_v29 = vpop.f32.mrb[85].mxu1 }
 0x92d   : > { %v8993_v2 = vadd.f32 %v8992_v29, %v8991_v60 }
 0x92f   : > { %v8994_v11 = vpop.f32.mrb[86].mxu1 }
 0x930   : > { %v8995_v34 = vpop.f32.mrb[87].mxu1 }
 0x931   : > { %v13877_v23 = vadd.f32 %v8995_v34, %v8994_v11  ;;  %v13906_v34 = vld [vmem:[%s14823_s17] ss:$0 sm:$0xff] }
 0x939   : > { %v8997_v13 = vpop.f32.mrb[88].mxu1 }
 0x93a   : > { %v8998_v40 = vpop.f32.mrb[89].mxu1 }
 0x93b   : > { %v13879_v45 = vadd.f32 %v8998_v40, %v8997_v13 }
 0x93d   : > { %v9000_v41 = vpop.f32.mrb[90].mxu1 }
 0x93e   : > { %v9001_v52 = vpop.f32.mrb[91].mxu1 }
 0x93f   : > { %v13881_v62 = vadd.f32 %v9001_v52, %v9000_v41 }
 0x943   : > { %v9003_v0 = vpop.f32.mrb[92].mxu1 }
 0x944   : > { %v9004_v20 = vpop.f32.mrb[93].mxu1 }
 0x945   : > { %v13883_v44 = vadd.f32 %v9004_v20, %v9003_v0 }
 0x947   : > { %v9006_v4 = vpop.f32.mrb[94].mxu1 }
 0x948   : > { %v9007_v22 = vpop.f32.mrb[95].mxu1 }
 0x949   : > { %v13885_v56 = vadd.f32 %v9007_v22, %v9006_v4 }
 0x950   : > { %v9009_v16 = vpop.f32.mrb[96].mxu1 }
 0x951   : > { %v9010_v15 = vpop.f32.mrb[97].mxu1 }
 0x952   : > { %v13887_v33 = vadd.f32 %v9010_v15, %v9009_v16 }
 0x954   : > { %v9012_v27 = vpop.f32.mrb[98].mxu1 }
 0x955   : > { %v9013_v31 = vpop.f32.mrb[99].mxu1 }
 0x956   : > { %v13889_v10 = vadd.f32 %v9013_v31, %v9012_v27 }
 0x958   : > { %v9015_v42 = vpop.f32.mrb[100].mxu1 }
 0x959   : > { %v9016_v47 = vpop.f32.mrb[101].mxu1 }
 0x95a   : > { %v13891_v57 = vadd.f32 %v9016_v47, %v9015_v42 }
 0x95c   : > { %v9018_v26 = vpop.f32.mrb[102].mxu1 }
 0x95d   : > { %v9019_v38 = vpop.f32.mrb[103].mxu1 }
 0x95e   : > { %v13893_v21 = vadd.f32 %v9019_v38, %v9018_v26 }
 0x962   : > { %v9021_v48 = vpop.f32.mrb[104].mxu1 }
 0x963   : > { %v9022_v14 = vpop.f32.mrb[105].mxu1 }
 0x964   : > { %v13895_v50 = vadd.f32 %v9022_v14, %v9021_v48 }
 0x966   : > { %v9024_v28 = vpop.f32.mrb[106].mxu1 }
 0x967   : > { %v9025_v54 = vpop.f32.mrb[107].mxu1 }
 0x968   : > { %v13897_v55 = vadd.f32 %v9025_v54, %v9024_v28 }
 0x96c   : > { %v9027_v63 = vpop.f32.mrb[108].mxu1 }
 0x96d   : > { %v9028_v32 = vpop.f32.mrb[109].mxu1 }
 0x96e   : > { %v13899_v35 = vadd.f32 %v9028_v32, %v9027_v63 }
 0x970   : > { %v9030_v5 = vpop.f32.mrb[110].mxu1 }
 0x971   : > { %v9031_v46 = vpop.f32.mrb[111].mxu1 }
 0x972   : > { %v13901_v17 = vadd.f32 %v9031_v46, %v9030_v5 }
 0x974   : > { %v9065_v61 = vpop.f32.mrb[112].mxu1 }
 0x975   : > { %v9066_v25 = vpop.f32.mrb[113].mxu1 }
 0x976   : > { %v9067_v60 = vadd.f32 %v9066_v25, %v9065_v61 }
 0x978   : > { %v6375_v29 = vadd.f32 %v9067_v60, %v8987_v37  ;;  %v9068_v11 = vpop.f32.mrb[114].mxu1 }
 0x979   : > { %v9069_v13 = vpop.f32.mrb[115].mxu1 }
 0x97a   : > { %v6568_v40 = vadd.f32 %v13263_v59, %v6375_v29  ;;  %v9070_v41 = vadd.f32 %v9069_v13, %v9068_v11 }
 0x97c   : > { %v13910_v52 = vadd.f32 %v13906_v34, %v6568_v40  ;;  %v6380_v0 = vadd.f32 %v9070_v41, %v8990_v24  ;;  %v9071_v20 = vpop.f32.mrb[116].mxu1 }
 0x97d   : > { %v9072_v4 = vpop.f32.mrb[117].mxu1 }
 0x97e   : > { %v6573_v22 = vadd.f32 %v13261_v51, %v6380_v0  ;;  %v9073_v16 = vadd.f32 %v9072_v4, %v9071_v20  ;;  %v6669_v37 = vsel %vm3807_vm2, %v13910_v52, 0.0 }
 0x97f   : > { %6670 = vadd.xlane.f32.xlu0 %v6669_v37 }
 0x980   : > { %v13916_v15 = vadd.f32 %v13906_v34, %v6573_v22  ;;  %v6385_v27 = vadd.f32 %v9073_v16, %v8993_v2  ;;  %v9074_v31 = vpop.f32.mrb[118].mxu1 }
 0x981   : > { %v9075_v59 = vpop.f32.mrb[119].mxu1 }
 0x982   : > { %14962 = vst [vmem:[#allocation12_spill] sm:$0xff] %v13916_v15  ;;  %v6578_v42 = vadd.f32 %v13267_v18, %v6385_v27  ;;  %v9076_v47 = vadd.f32 %v9075_v59, %v9074_v31  ;;  %v6672_v24 = vsel %vm3807_vm2, %v13916_v15, 0.0 }
 0x983   : > { %6673 = vadd.xlane.f32.xlu1 %v6672_v24 }
 0x984   : > { %v13922_v51 = vadd.f32 %v13906_v34, %v6578_v42  ;;  %v6390_v26 = vadd.f32 %v9076_v47, %v13877_v23  ;;  %v9077_v38 = vpop.f32.mrb[120].mxu1 }
 0x985   : > { %v9078_v48 = vpop.f32.mrb[121].mxu1 }
 0x986   : > { %14963 = vst [vmem:[#allocation10_spill] sm:$0xff] %v13922_v51  ;;  %v6583_v14 = vadd.f32 %v13265_v7, %v6390_v26  ;;  %v9079_v28 = vadd.f32 %v9078_v48, %v9077_v38  ;;  %v6675_v2 = vsel %vm3807_vm2, %v13922_v51, 0.0 }
 0x987   : > { %6676 = vadd.xlane.f32.xlu0 %v6675_v2 }
 0x988   : > { %v13929_v18 = vadd.f32 %v13906_v34, %v6583_v14  ;;  %v6395_v54 = vadd.f32 %v9079_v28, %v13879_v45  ;;  %v9080_v63 = vpop.f32.mrb[122].mxu1 }
 0x989   : > { %v9081_v32 = vpop.f32.mrb[123].mxu1 }
 0x98a   : > { %14964 = vst [vmem:[#allocation13_spill] sm:$0xff] %v13929_v18  ;;  %v6588_v5 = vadd.f32 %v13271_v39, %v6395_v54  ;;  %v9082_v46 = vadd.f32 %v9081_v32, %v9080_v63  ;;  %v6678_v23 = vsel %vm3807_vm2, %v13929_v18, 0.0 }
 0x98b   : > { %6679 = vadd.xlane.f32.xlu0 %v6678_v23 }
 0x98c   : > { %v13936_v7 = vadd.f32 %v13906_v34, %v6588_v5  ;;  %v6400_v61 = vadd.f32 %v9082_v46, %v13881_v62  ;;  %v9083_v25 = vpop.f32.mrb[124].mxu1 }
 0x98d   : > { %v9084_v60 = vpop.f32.mrb[125].mxu1 }
 0x98e   : > { %14965 = vst [vmem:[#allocation11_spill] sm:$0xff] %v13936_v7  ;;  %v6593_v29 = vadd.f32 %v13269_v19, %v6400_v61  ;;  %v9085_v11 = vadd.f32 %v9084_v60, %v9083_v25  ;;  %v6681_v45 = vsel %vm3807_vm2, %v13936_v7, 0.0 }
 0x98f   : > { %6682 = vadd.xlane.f32.xlu0 %v6681_v45 }
 0x990   : > { %v13943_v39 = vadd.f32 %v13906_v34, %v6593_v29  ;;  %v6405_v13 = vadd.f32 %v9085_v11, %v13883_v44  ;;  %v9086_v40 = vpop.f32.mrb[126].mxu1 }
 0x991   : > { %v9087_v41 = vpop.f32.mrb[127].mxu1 }
 0x992   : > { %14966 = vst [vmem:[#allocation15_spill] sm:$0xff] %v13943_v39  ;;  %v6598_v0 = vadd.f32 %v13275_v8, %v6405_v13  ;;  %v9088_v20 = vadd.f32 %v9087_v41, %v9086_v40  ;;  %v6684_v62 = vsel %vm3807_vm2, %v13943_v39, 0.0 }
 0x993   : > { %6685 = vadd.xlane.f32.xlu1 %v6684_v62 }
 0x994   : > { %v13950_v19 = vadd.f32 %v13906_v34, %v6598_v0  ;;  %v6410_v4 = vadd.f32 %v9088_v20, %v13885_v56  ;;  %v9089_v22 = vpop.f32.mrb[128].mxu1 }
 0x995   : > { %v9090_v16 = vpop.f32.mrb[129].mxu1 }
 0x996   : > { %v6603_v37 = vadd.f32 %v13273_v9, %v6410_v4  ;;  %v9091_v27 = vadd.f32 %v9090_v16, %v9089_v22  ;;  %v6687_v44 = vsel %vm3807_vm2, %v13950_v19, 0.0 }
 0x997   : > { %6688 = vadd.xlane.f32.xlu0 %v6687_v44 }
 0x998   : > { %v13957_v8 = vadd.f32 %v13906_v34, %v6603_v37  ;;  %v6415_v31 = vadd.f32 %v9091_v27, %v13887_v33  ;;  %v9092_v59 = vpop.f32.mrb[130].mxu1 }
 0x999   : > { %v9093_v42 = vpop.f32.mrb[131].mxu1 }
 0x99a   : > { %v6608_v47 = vadd.f32 %v13279_v6, %v6415_v31  ;;  %v9094_v24 = vadd.f32 %v9093_v42, %v9092_v59  ;;  %v6690_v56 = vsel %vm3807_vm2, %v13957_v8, 0.0 }
 0x99b   : > { %6691 = vadd.xlane.f32.xlu1 %v6690_v56 }
 0x99c   : > { %v13964_v9 = vadd.f32 %v13906_v34, %v6608_v47  ;;  %v6420_v26 = vadd.f32 %v9094_v24, %v13889_v10  ;;  %v9095_v38 = vpop.f32.mrb[132].mxu1 }
 0x99d   : > { %v9096_v48 = vpop.f32.mrb[133].mxu1 }
 0x99e   : > { %14967 = vst [vmem:[#allocation16_spill] sm:$0xff] %v13964_v9  ;;  %v6613_v14 = vadd.f32 %v13277_v12, %v6420_v26  ;;  %v9097_v28 = vadd.f32 %v9096_v48, %v9095_v38  ;;  %v6693_v33 = vsel %vm3807_vm2, %v13964_v9, 0.0 }
 0x99f   : > { %6694 = vadd.xlane.f32.xlu0 %v6693_v33 }
 0x9a0   : > { %v13971_v6 = vadd.f32 %v13906_v34, %v6613_v14  ;;  %v6425_v2 = vadd.f32 %v9097_v28, %v13891_v57  ;;  %v9098_v54 = vpop.f32.mrb[134].mxu1 }
 0x9a1   : > { %v9099_v63 = vpop.f32.mrb[135].mxu1 }
 0x9a2   : > { %14968 = vst [vmem:[#allocation18_spill] sm:$0xff] %v13971_v6  ;;  %v6618_v32 = vadd.f32 %v13283_v36, %v6425_v2  ;;  %v9100_v5 = vadd.f32 %v9099_v63, %v9098_v54  ;;  %v6696_v10 = vsel %vm3807_vm2, %v13971_v6, 0.0 }
 0x9a3   : > { %6697 = vadd.xlane.f32.xlu1 %v6696_v10 }
 0x9a4   : > { %v13978_v12 = vadd.f32 %v13906_v34, %v6618_v32  ;;  %v6430_v46 = vadd.f32 %v9100_v5, %v13893_v21  ;;  %v9101_v23 = vpop.f32.mrb[136].mxu1 }
 0x9a5   : > { %v9102_v61 = vpop.f32.mrb[137].mxu1 }
 0x9a6   : > { %14969 = vst [vmem:[#allocation19_spill] sm:$0xff] %v13978_v12  ;;  %v6623_v25 = vadd.f32 %v13281_v30, %v6430_v46  ;;  %v9103_v60 = vadd.f32 %v9102_v61, %v9101_v23  ;;  %v6699_v57 = vsel %vm3807_vm2, %v13978_v12, 0.0 }
 0x9a7   : > { %6700 = vadd.xlane.f32.xlu0 %v6699_v57 }
 0x9a8   : > { %v13985_v36 = vadd.f32 %v13906_v34, %v6623_v25  ;;  %v6435_v29 = vadd.f32 %v9103_v60, %v13895_v50  ;;  %v9104_v11 = vpop.f32.mrb[138].mxu1 }
 0x9a9   : > { %v9105_v45 = vpop.f32.mrb[139].mxu1 }
 0x9aa   : > { %14970 = vst [vmem:[#allocation20_spill] sm:$0xff] %v13985_v36  ;;  %v6628_v13 = vadd.f32 %v13287_v58, %v6435_v29  ;;  %v9106_v40 = vadd.f32 %v9105_v45, %v9104_v11  ;;  %v6702_v21 = vsel %vm3807_vm2, %v13985_v36, 0.0 }
 0x9ab   : > { %6703 = vadd.xlane.f32.xlu1 %v6702_v21 }
 0x9ac   : > { %v13992_v30 = vadd.f32 %v13906_v34, %v6628_v13  ;;  %v6440_v41 = vadd.f32 %v9106_v40, %v13897_v55  ;;  %v9107_v0 = vpop.f32.mrb[140].mxu1 }
 0x9ad   : > { %v9108_v20 = vpop.f32.mrb[141].mxu1 }
 0x9ae   : > { %14971 = vst [vmem:[#allocation21_spill] sm:$0xff] %v13992_v30  ;;  %v6633_v62 = vadd.f32 %v13285_v1, %v6440_v41  ;;  %v9109_v4 = vadd.f32 %v9108_v20, %v9107_v0  ;;  %v6705_v50 = vsel %vm3807_vm2, %v13992_v30, 0.0 }
 0x9af   : > { %6706 = vadd.xlane.f32.xlu0 %v6705_v50 }
 0x9b0   : > { %v13999_v58 = vadd.f32 %v13906_v34, %v6633_v62  ;;  %v6445_v22 = vadd.f32 %v9109_v4, %v13899_v35  ;;  %v9110_v16 = vpop.f32.mrb[142].mxu1 }
 0x9b1   : > { %v9111_v37 = vpop.f32.mrb[143].mxu1 }
 0x9b2   : > { %v6638_v27 = vadd.f32 %v13291_v43, %v6445_v22  ;;  %v9112_v44 = vadd.f32 %v9111_v37, %v9110_v16  ;;  %v6708_v55 = vsel %vm3807_vm2, %v13999_v58, 0.0 }
 0x9b3   : > { %6709 = vadd.xlane.f32.xlu1 %v6708_v55 }
 0x9b4   : > { %v14006_v1 = vadd.f32 %v13906_v34, %v6638_v27  ;;  %v6450_v31 = vadd.f32 %v9112_v44, %v13901_v17 }
 0x9b6   : > { %v6643_v59 = vadd.f32 %v13289_v3, %v6450_v31  ;;  %v6711_v42 = vsel %vm3807_vm2, %v14006_v1, 0.0 }
 0x9b7   : > { %6712 = vadd.xlane.f32.xlu0 %v6711_v42 }
 0x9b8   : > { %v14013_v35 = vadd.f32 %v13906_v34, %v6643_v59 }
 0x9ba   : > { %v6714_v43 = vsel %vm3807_vm2, %v14013_v35, 0.0 }
 0x9bb   : > { %6715 = vadd.xlane.f32.xlu1 %v6714_v43 }
 0xa0c   : > { %v6671_v47 = vpop.xlane.xlu0 %6670 }
 0xa0d   : > { %v6717_v24 = vmul.f32 0.015625, %v6671_v47 }
 0xa0f   : > { %v14018_v56 = vsub.f32 %v13910_v52, %v6717_v24 }
 0xa10   : > { %v6674_v26 = vpop.xlane.xlu1 %6673 }
 0xa11   : > { %v6718_v17 = vmul.f32 0.015625, %v6674_v26  ;;  %v6749_v3 = vmul.f32 %v14018_v56, %v14018_v56 }
 0xa13   : > { %v14023_v38 = vsub.f32 %v13916_v15, %v6718_v17  ;;  %v6765_v34 = vsel %vm3807_vm2, %v6749_v3, 0.0 }
 0xa14   : > { %v6677_v48 = vpop.xlane.xlu0 %6676  ;;  %6766 = vadd.xlane.f32.xlu0 %v6765_v34 }
 0xa15   : > { %v6719_v14 = vmul.f32 0.015625, %v6677_v48  ;;  %v6750_v28 = vmul.f32 %v14023_v38, %v14023_v38 }
 0xa17   : > { %v14029_v33 = vsub.f32 %v13922_v51, %v6719_v14  ;;  %v6768_v2 = vsel %vm3807_vm2, %v6750_v28, 0.0 }
 0xa18   : > { %v6680_v54 = vpop.xlane.xlu0 %6679  ;;  %6769 = vadd.xlane.f32.xlu1 %v6768_v2 }
 0xa19   : > { %v6720_v63 = vmul.f32 0.015625, %v6680_v54  ;;  %v6751_v32 = vmul.f32 %v14029_v33, %v14029_v33 }
 0xa1b   : > { %v14035_v5 = vsub.f32 %v13929_v18, %v6720_v63  ;;  %v6771_v10 = vsel %vm3807_vm2, %v6751_v32, 0.0 }
 0xa1c   : > { %v6683_v46 = vpop.xlane.xlu0 %6682  ;;  %6772 = vadd.xlane.f32.xlu0 %v6771_v10 }
 0xa1d   : > { %v6721_v23 = vmul.f32 0.015625, %v6683_v46  ;;  %v6752_v61 = vmul.f32 %v14035_v5, %v14035_v5 }
 0xa1f   : > { %v14041_v25 = vsub.f32 %v13936_v7, %v6721_v23  ;;  %v6774_v60 = vsel %vm3807_vm2, %v6752_v61, 0.0 }
 0xa20   : > { %v6686_v57 = vpop.xlane.xlu1 %6685  ;;  %6775 = vadd.xlane.f32.xlu1 %v6774_v60 }
 0xa21   : > { %v6722_v29 = vmul.f32 0.015625, %v6686_v57  ;;  %v6753_v11 = vmul.f32 %v14041_v25, %v14041_v25 }
 0xa23   : > { %v14047_v45 = vsub.f32 %v13943_v39, %v6722_v29  ;;  %v6777_v13 = vsel %vm3807_vm2, %v6753_v11, 0.0 }
 0xa24   : > { %v6689_v40 = vpop.xlane.xlu0 %6688  ;;  %6778 = vadd.xlane.f32.xlu0 %v6777_v13 }
 0xa25   : > { %v6723_v21 = vmul.f32 0.015625, %v6689_v40  ;;  %v6754_v41 = vmul.f32 %v14047_v45, %v14047_v45 }
 0xa27   : > { %v14053_v0 = vsub.f32 %v13950_v19, %v6723_v21  ;;  %v6780_v20 = vsel %vm3807_vm2, %v6754_v41, 0.0 }
 0xa28   : > { %v6692_v62 = vpop.xlane.xlu1 %6691  ;;  %6781 = vadd.xlane.f32.xlu1 %v6780_v20 }
 0xa29   : > { %v6724_v4 = vmul.f32 0.015625, %v6692_v62  ;;  %v6755_v50 = vmul.f32 %v14053_v0, %v14053_v0 }
 0xa2b   : > { %v14059_v22 = vsub.f32 %v13957_v8, %v6724_v4  ;;  %v6783_v16 = vsel %vm3807_vm2, %v6755_v50, 0.0 }
 0xa2c   : > { %v6695_v37 = vpop.xlane.xlu0 %6694  ;;  %6784 = vadd.xlane.f32.xlu0 %v6783_v16 }
 0xa2d   : > { %v6725_v27 = vmul.f32 0.015625, %v6695_v37  ;;  %v6756_v44 = vmul.f32 %v14059_v22, %v14059_v22 }
 0xa2f   : > { %v14065_v55 = vsub.f32 %v13964_v9, %v6725_v27  ;;  %v6786_v31 = vsel %vm3807_vm2, %v6756_v44, 0.0 }
 0xa30   : > { %v6698_v59 = vpop.xlane.xlu1 %6697  ;;  %6787 = vadd.xlane.f32.xlu1 %v6786_v31 }
 0xa31   : > { %v6726_v42 = vmul.f32 0.015625, %v6698_v59  ;;  %v6757_v43 = vmul.f32 %v14065_v55, %v14065_v55  ;;  %v7545_v59 = vld [vmem:[%s14827_s21 + $0x80] sm:$0xff] }
 0xa33   : > { %v14071_v47 = vsub.f32 %v13971_v6, %v6726_v42  ;;  %v6789_v24 = vsel %vm3807_vm2, %v6757_v43, 0.0  ;;  %v7546_v42 = vld [vmem:[%s14827_s21 + $0x88] sm:$0xff]  ;;  %v7529_v43 = vld [vmem:[%s14827_s21] sm:$0xff] }
 0xa34   : > { %v6701_v26 = vpop.xlane.xlu0 %6700  ;;  %6790 = vadd.xlane.f32.xlu0 %v6789_v24  ;;  %v9835_v24 = vpack.c.bf16 %v7546_v42, %v7545_v59  ;;  %v7535_v59 = vld [vmem:[%s14827_s21 + $0x30] sm:$0xff]  ;;  %v7536_v42 = vld [vmem:[%s14827_s21 + $0x38] sm:$0xff] }
 0xa35   : > { %v6727_v17 = vmul.f32 0.015625, %v6701_v26  ;;  %v6758_v3 = vmul.f32 %v14071_v47, %v14071_v47  ;;  %v7530_v26 = vld [vmem:[%s14827_s21 + $0x8] sm:$0xff] }
 0xa36   : > { %9836 = vmatprep.subr.bf16.mxu1 %v9835_v24  ;;  %v7564_v24 = vld [vmem:[%s14827_s21 + $0x118] sm:$0xff] }
 0xa37   : > { %v14077_v34 = vsub.f32 %v13978_v12, %v6727_v17  ;;  %v6792_v48 = vsel %vm3807_vm2, %v6758_v3, 0.0  ;;  %v7547_v17 = vld [vmem:[%s14827_s21 + $0x90] sm:$0xff]  ;;  %v7548_v3 = vld [vmem:[%s14827_s21 + $0x98] sm:$0xff] }
 0xa38   : > { %v6704_v14 = vpop.xlane.xlu1 %6703  ;;  %6793 = vadd.xlane.f32.xlu1 %v6792_v48  ;;  %v9837_v48 = vpack.c.bf16 %v7530_v26, %v7529_v43  ;;  %v7553_v26 = vld [vmem:[%s14827_s21 + $0xc0] sm:$0xff] }
 0xa39   : > { %v6728_v28 = vmul.f32 0.015625, %v6704_v14  ;;  %v6759_v2 = vmul.f32 %v14077_v34, %v14077_v34  ;;  %v9839_v14 = vpack.c.bf16 %v7548_v3, %v7547_v17  ;;  %v7554_v17 = vld [vmem:[%s14827_s21 + $0xc8] sm:$0xff]  ;;  %v7581_v3 = vld [vmem:[%s14827_s21 + $0x1a0] sm:$0xff] }
 0xa3a   : > { %9838 = vmatpush3.bf16.msra.mxu1 %v9837_v48 }
 0xa3b   : > { %v14083_v54 = vsub.f32 %v13985_v36, %v6728_v28  ;;  %v6795_v63 = vsel %vm3807_vm2, %v6759_v2, 0.0  ;;  %v7531_v28 = vld [vmem:[%s14827_s21 + $0x10] sm:$0xff]  ;;  %v7532_v2 = vld [vmem:[%s14827_s21 + $0x18] sm:$0xff]  ;;  %9840 = vmatprep.subr.bf16.mxu1 %v9839_v14  ;;  %v7582_v14 = vld [vmem:[%s14827_s21 + $0x1a8] sm:$0xff] }
 0xa3c   : > { %v6707_v32 = vpop.xlane.xlu0 %6706  ;;  %6796 = vadd.xlane.f32.xlu0 %v6795_v63  ;;  %v7549_v63 = vld [vmem:[%s14827_s21 + $0xa0] sm:$0xff] }
 0xa3d   : > { %v6729_v10 = vmul.f32 0.015625, %v6707_v32  ;;  %v6760_v46 = vmul.f32 %v14083_v54, %v14083_v54  ;;  %v7550_v32 = vld [vmem:[%s14827_s21 + $0xa8] sm:$0xff] }
 0xa3f   : > { %v14089_v23 = vsub.f32 %v13992_v30, %v6729_v10  ;;  %v6798_v61 = vsel %vm3807_vm2, %v6760_v46, 0.0  ;;  %v9841_v10 = vpack.c.bf16 %v7532_v2, %v7531_v28  ;;  %v9843_v46 = vpack.c.bf16 %v7550_v32, %v7549_v63  ;;  %v7537_v32 = vld [vmem:[%s14827_s21 + $0x40] sm:$0xff] }
 0xa40   : > { %v6710_v60 = vpop.xlane.xlu1 %6709  ;;  %6799 = vadd.xlane.f32.xlu1 %v6798_v61  ;;  %v7533_v61 = vld [vmem:[%s14827_s21 + $0x20] sm:$0xff]  ;;  %v9849_v28 = vpack.c.bf16 %v7536_v42, %v7535_v59  ;;  %v9875_v2 = vpack.c.bf16 %v7582_v14, %v7581_v3  ;;  %v9851_v63 = vpack.c.bf16 %v7554_v17, %v7553_v26 }
 0xa41   : > { %v6730_v57 = vmul.f32 0.015625, %v6710_v60  ;;  %v6761_v29 = vmul.f32 %v14089_v23, %v14089_v23  ;;  %v7534_v60 = vld [vmem:[%s14827_s21 + $0x28] sm:$0xff]  ;;  %9842 = vmatpush3.bf16.msra.mxu1 %v9841_v10  ;;  %v14218_v26 = vld [vmem:[%s14824_s18] ss:$0 sm:$0xff] }
 0xa42   : > { %9844 = vmatprep.subr.bf16.mxu1 %v9843_v46  ;;  %v7538_v10 = vld [vmem:[%s14827_s21 + $0x48] sm:$0xff]  ;;  %v7555_v46 = vld [vmem:[%s14827_s21 + $0xd0] sm:$0xff]  ;;  %v14224_v14 = vld [vmem:[%s14825_s19] ss:$0 sm:$0xff] }
 0xa43   : > { %v14095_v11 = vsub.f32 %v13999_v58, %v6730_v57  ;;  %v6801_v13 = vsel %vm3807_vm2, %v6761_v29, 0.0  ;;  %v7551_v57 = vld [vmem:[%s14827_s21 + $0xb0] sm:$0xff]  ;;  %v7552_v29 = vld [vmem:[%s14827_s21 + $0xb8] sm:$0xff] }
 0xa44   : > { %6802 = vadd.xlane.f32.xlu0 %v6801_v13  ;;  %v6713_v40 = vpop.xlane.xlu0 %6712  ;;  %v7577_v13 = vld [vmem:[%s14827_s21 + $0x180] sm:$0xff] }
 0xa45   : > { %v6731_v21 = vmul.f32 0.015625, %v6713_v40  ;;  %v6762_v41 = vmul.f32 %v14095_v11, %v14095_v11  ;;  %v7578_v40 = vld [vmem:[%s14827_s21 + $0x188] sm:$0xff] }
 0xa47   : > { %v14101_v20 = vsub.f32 %v14006_v1, %v6731_v21  ;;  %v6804_v62 = vsel %vm3807_vm2, %v6762_v41, 0.0  ;;  %v7561_v21 = vld [vmem:[%s14827_s21 + $0x100] sm:$0xff]  ;;  %v7562_v41 = vld [vmem:[%s14827_s21 + $0x108] sm:$0xff] }
 0xa48   : > { %6805 = vadd.xlane.f32.xlu1 %v6804_v62  ;;  %v6716_v4 = vpop.xlane.xlu1 %6715  ;;  %v9845_v62 = vpack.c.bf16 %v7534_v60, %v7533_v61  ;;  %v7556_v61 = vld [vmem:[%s14827_s21 + $0xd8] sm:$0xff]  ;;  %v9853_v60 = vpack.c.bf16 %v7538_v10, %v7537_v32 }
 0xa49   : > { %v6732_v50 = vmul.f32 0.015625, %v6716_v4  ;;  %v6763_v16 = vmul.f32 %v14101_v20, %v14101_v20  ;;  %v9867_v4 = vpack.c.bf16 %v7578_v40, %v7577_v13  ;;  %v7540_v13 = vld [vmem:[%s14827_s21 + $0x58] sm:$0xff] }
 0xa4a   : > { %9846 = vmatpush3.bf16.msra.mxu1 %v9845_v62 }
 0xa4b   : > { %v14107_v37 = vsub.f32 %v14013_v35, %v6732_v50  ;;  %v6807_v27 = vsel %vm3807_vm2, %v6763_v16, 0.0  ;;  %v9869_v50 = vpack.c.bf16 %v7562_v41, %v7561_v21  ;;  %v7579_v16 = vld [vmem:[%s14827_s21 + $0x190] sm:$0xff]  ;;  %9868 = vmatprep.subr.bf16.mxu0 %v9867_v4 }
 0xa4c   : > { %6808 = vadd.xlane.f32.xlu0 %v6807_v27  ;;  %v7580_v27 = vld [vmem:[%s14827_s21 + $0x198] sm:$0xff] }
 0xa4d   : > { %v6764_v44 = vmul.f32 %v14107_v37, %v14107_v37  ;;  %v9871_v43 = vpack.c.bf16 %v7580_v27, %v7579_v16  ;;  %9870 = vmatpush3.bf16.msra.mxu0 %v9869_v50 }
 0xa4f   : > { %v6810_v31 = vsel %vm3807_vm2, %v6764_v44, 0.0  ;;  %v7563_v44 = vld [vmem:[%s14827_s21 + $0x110] sm:$0xff]  ;;  %9872 = vmatprep.subr.bf16.mxu0 %v9871_v43 }
 0xa50   : > { %6811 = vadd.xlane.f32.xlu1 %v6810_v31  ;;  %v9847_v31 = vpack.c.bf16 %v7552_v29, %v7551_v57  ;;  %v9873_v48 = vpack.c.bf16 %v7564_v24, %v7563_v44  ;;  %v9855_v57 = vpack.c.bf16 %v7556_v61, %v7555_v46  ;;  %v7539_v29 = vld [vmem:[%s14827_s21 + $0x50] sm:$0xff] }
 0xa51   : > { %v9857_v40 = vpack.c.bf16 %v7540_v13, %v7539_v29  ;;  %v7565_v29 = vld [vmem:[%s14827_s21 + $0x120] sm:$0xff]  ;;  %v7566_v13 = vld [vmem:[%s14827_s21 + $0x128] sm:$0xff] }
 0xa52   : > { %9848 = vmatprep.subr.bf16.mxu1 %v9847_v31  ;;  %9874 = vmatpush3.bf16.msra.mxu0 %v9873_v48 }
 0xa53   : > { %9850 = vmatpush3.bf16.msra.mxu1 %v9849_v28  ;;  %9876 = vmatprep.subr.bf16.mxu0 %v9875_v2 }
 0xa54   : > { %9852 = vmatprep.subr.bf16.mxu1 %v9851_v63 }
 0xa57   : > { %9854 = vmatpush3.bf16.msra.mxu1 %v9853_v60 }
 0xa58   : > { %9856 = vmatprep.subr.bf16.mxu1 %v9855_v57 }
 0xa5b   : > { %9858 = vmatpush3.bf16.msra.mxu1 %v9857_v40 }
 0xaa1   : > { %v6767_v21 = vpop.xlane.xlu0 %6766 }
 0xaa2   : > { %v6813_v41 = vmul.f32 0.015625, %v6767_v21 }
 0xaa4   : > { %v6829_v62 = vadd.f32 1e-05, %v6813_v41 }
 0xaa5   : > { %v6770_v4 = vpop.xlane.xlu1 %6769 }
 0xaa6   : > { %10893 = vrsqrt.f32 %v6829_v62  ;;  %v6814_v50 = vmul.f32 0.015625, %v6770_v4  ;;  %v9877_v62 = vpack.c.bf16 %v7566_v13, %v7565_v29  ;;  %v7584_v4 = vld [vmem:[%s14827_s21 + $0x1b8] sm:$0xff] }
 0xaa8   : > { %v6830_v16 = vadd.f32 1e-05, %v6814_v50  ;;  %9878 = vmatpush3.bf16.msra.mxu0 %v9877_v62 }
 0xaa9   : > { %v6773_v27 = vpop.xlane.xlu0 %6772 }
 0xaaa   : > { %10895 = vrsqrt.f32 %v6830_v16  ;;  %v6815_v44 = vmul.f32 0.015625, %v6773_v27 }
 0xaac   : > { %v6831_v31 = vadd.f32 1e-05, %v6815_v44 }
 0xaad   : > { %v6776_v59 = vpop.xlane.xlu1 %6775 }
 0xaae   : > { %10897 = vrsqrt.f32 %v6831_v31  ;;  %v6816_v42 = vmul.f32 0.015625, %v6776_v59 }
 0xab0   : > { %v10894_v43 = vpop.eup %10893  ;;  %v6832_v24 = vadd.f32 1e-05, %v6816_v42 }
 0xab1   : > { %v6779_v17 = vpop.xlane.xlu0 %6778  ;;  %v6861_v3 = vmul.f32 %v10894_v43, %v14018_v56  ;;  %v7567_v43 = vld [vmem:[%s14827_s21 + $0x130] sm:$0xff] }
 0xab2   : > { %10899 = vrsqrt.f32 %v6832_v24  ;;  %v6817_v48 = vmul.f32 0.015625, %v6779_v17  ;;  %v7568_v24 = vld [vmem:[%s14827_s21 + $0x138] sm:$0xff]  ;;  %v7557_v17 = vld [vmem:[%s14827_s21 + $0xe0] sm:$0xff] }
 0xab3   : > { %v6884_v28 = vmul.f32 %v14218_v26, %v6861_v3 }
 0xab4   : > { %v10896_v2 = vpop.eup %10895  ;;  %v6833_v63 = vadd.f32 1e-05, %v6817_v48  ;;  %v9881_v48 = vpack.c.bf16 %v7568_v24, %v7567_v43  ;;  %v7588_v43 = vld [vmem:[%s14827_s21 + $0x1d8] sm:$0xff] }
 0xab5   : > { %v6782_v32 = vpop.xlane.xlu1 %6781  ;;  %v14228_v10 = vadd.f32 %v14224_v14, %v6884_v28  ;;  %v6862_v46 = vmul.f32 %v10896_v2, %v14023_v38  ;;  %v7583_v38 = vld [vmem:[%s14827_s21 + $0x1b0] sm:$0xff]  ;;  %v7558_v28 = vld [vmem:[%s14827_s21 + $0xe8] sm:$0xff] }
 0xab6   : > { %10901 = vrsqrt.f32 %v6833_v63  ;;  %v6818_v61 = vmul.f32 0.015625, %v6782_v32  ;;  %v9879_v16 = vpack.c.bf16 %v7584_v4, %v7583_v38  ;;  %v7542_v2 = vld [vmem:[%s14827_s21 + $0x68] sm:$0xff]  ;;  %v9859_v32 = vpack.c.bf16 %v7558_v28, %v7557_v17 }
 0xab7   : > { %7059 = vrot.lane.b32.xlu0 %v14228_v10, %s14931_s8  ;;  %v6885_v56 = vmul.f32 %v14218_v26, %v6862_v46 }
 0xab8   : > { %v10898_v60 = vpop.eup %10897  ;;  %v6834_v57 = vadd.f32 1e-05, %v6818_v61  ;;  %9880 = vmatprep.subr.bf16.mxu0 %v9879_v16  ;;  %v7585_v61 = vld [vmem:[%s14827_s21 + $0x1c0] sm:$0xff]  ;;  %9860 = vmatprep.subr.bf16.mxu1 %v9859_v32  ;;  %v7571_v32 = vld [vmem:[%s14827_s21 + $0x150] sm:$0xff] }
 0xab9   : > { %v6785_v40 = vpop.xlane.xlu0 %6784  ;;  %v14244_v21 = vadd.f32 %v14224_v14, %v6885_v56  ;;  %v6863_v41 = vmul.f32 %v10898_v60, %v14029_v33  ;;  %v7586_v56 = vld [vmem:[%s14827_s21 + $0x1c8] sm:$0xff]  ;;  %9882 = vmatpush3.bf16.msra.mxu0 %v9881_v48  ;;  %v7569_v16 = vld [vmem:[%s14827_s21 + $0x140] sm:$0xff] }
 0xaba   : > { %10903 = vrsqrt.f32 %v6834_v57  ;;  %v6819_v50 = vmul.f32 0.015625, %v6785_v40  ;;  %v9883_v29 = vpack.c.bf16 %v7586_v56, %v7585_v61  ;;  %v7559_v61 = vld [vmem:[%s14827_s21 + $0xf0] sm:$0xff] }
 0xabb   : > { %7061 = vrot.lane.b32.xlu1 %v14244_v21, %s14931_s8  ;;  %v6886_v27 = vmul.f32 %v14218_v26, %v6863_v41 }
 0xabc   : > { %v10900_v44 = vpop.eup %10899  ;;  %v6835_v31 = vadd.f32 1e-05, %v6819_v50  ;;  %9884 = vmatprep.subr.bf16.mxu0 %v9883_v29  ;;  %v7544_v29 = vld [vmem:[%s14827_s21 + $0x78] sm:$0xff] }
 0xabd   : > { %v6788_v59 = vpop.xlane.xlu1 %6787  ;;  %v14254_v33 = vadd.f32 %v14224_v14, %v6886_v27  ;;  %v6864_v42 = vmul.f32 %v10900_v44, %v14035_v5  ;;  %v7541_v5 = vld [vmem:[%s14827_s21 + $0x60] sm:$0xff]  ;;  %v7587_v27 = vld [vmem:[%s14827_s21 + $0x1d0] sm:$0xff] }
 0xabe   : > { %10905 = vrsqrt.f32 %v6835_v31  ;;  %v6820_v3 = vmul.f32 0.015625, %v6788_v59  ;;  %v9861_v46 = vpack.c.bf16 %v7542_v2, %v7541_v5  ;;  %v9887_v17 = vpack.c.bf16 %v7588_v43, %v7587_v27  ;;  %v7573_v43 = vld [vmem:[%s14827_s21 + $0x160] sm:$0xff] }
 0xabf   : > { %7063 = vrot.lane.b32.xlu1 %v14254_v33, %s14931_s8  ;;  %v6887_v63 = vmul.f32 %v14218_v26, %v6864_v42 }
 0xac0   : > { %v10902_v60 = vpop.eup %10901  ;;  %v6836_v57 = vadd.f32 1e-05, %v6820_v3  ;;  %9862 = vmatpush3.bf16.msra.mxu1 %v9861_v46  ;;  %v7572_v46 = vld [vmem:[%s14827_s21 + $0x158] sm:$0xff] }
 0xac1   : > { %v6791_v13 = vpop.xlane.xlu0 %6790  ;;  %v14285_v38 = vadd.f32 %v14224_v14, %v6887_v63  ;;  %v6865_v40 = vmul.f32 %v10902_v60, %v14041_v25  ;;  %v7570_v25 = vld [vmem:[%s14827_s21 + $0x148] sm:$0xff]  ;;  %v7560_v60 = vld [vmem:[%s14827_s21 + $0xf8] sm:$0xff] }
 0xac2   : > { %10907 = vrsqrt.f32 %v6836_v57  ;;  %v6821_v41 = vmul.f32 0.015625, %v6791_v13  ;;  %v9885_v42 = vpack.c.bf16 %v7570_v25, %v7569_v16  ;;  %v7543_v57 = vld [vmem:[%s14827_s21 + $0x70] sm:$0xff] }
 0xac3   : > { %7065 = vrot.lane.b32.xlu1 %v14285_v38, %s14931_s8  ;;  %v6888_v62 = vmul.f32 %v14218_v26, %v6865_v40 }
 0xac4   : > { %v10904_v4 = vpop.eup %10903  ;;  %v6837_v50 = vadd.f32 1e-05, %v6821_v41  ;;  %9886 = vmatpush3.bf16.msra.mxu0 %v9885_v42  ;;  %v9863_v41 = vpack.c.bf16 %v7560_v60, %v7559_v61 }
 0xac5   : > { %v6794_v44 = vpop.xlane.xlu1 %6793  ;;  %v14301_v31 = vadd.f32 %v14224_v14, %v6888_v62  ;;  %v6866_v59 = vmul.f32 %v10904_v4, %v14047_v45  ;;  %9888 = vmatprep.subr.bf16.mxu0 %v9887_v17  ;;  %v9865_v62 = vpack.c.bf16 %v7544_v29, %v7543_v57  ;;  %v7589_v4 = vld [vmem:[%s14827_s21 + $0x1e0] sm:$0xff] }
 0xac6   : > { %10909 = vrsqrt.f32 %v6837_v50  ;;  %v6822_v24 = vmul.f32 0.015625, %v6794_v44  ;;  %v7590_v50 = vld [vmem:[%s14827_s21 + $0x1e8] sm:$0xff]  ;;  %9864 = vmatprep.subr.bf16.mxu1 %v9863_v41  ;;  %v7576_v41 = vld [vmem:[%s14827_s21 + $0x178] sm:$0xff] }
 0xac7   : > { %7067 = vrot.lane.b32.xlu0 %v14301_v31, %s14931_s8  ;;  %v6889_v3 = vmul.f32 %v14218_v26, %v6866_v59  ;;  %v9891_v44 = vpack.c.bf16 %v7590_v50, %v7589_v4  ;;  %9866 = vmatpush3.bf16.msra.mxu1 %v9865_v62  ;;  %v7035_v62 = vld [vmem:[%s14828_s22] sm:$0xff] }
 0xac8   : > { %v10906_v48 = vpop.eup %10905  ;;  %v6838_v28 = vadd.f32 1e-05, %v6822_v24  ;;  %v7574_v24 = vld [vmem:[%s14827_s21 + $0x168] sm:$0xff] }
 0xac9   : > { %v6797_v5 = vpop.xlane.xlu0 %6796  ;;  %v14311_v45 = vadd.f32 %v14224_v14, %v6889_v3  ;;  %v6867_v2 = vmul.f32 %v10906_v48, %v14053_v0  ;;  %v9889_v0 = vpack.c.bf16 %v7572_v46, %v7571_v32  ;;  %v9893_v48 = vpack.c.bf16 %v7574_v24, %v7573_v43 }
 0xaca   : > { %10911 = vrsqrt.f32 %v6838_v28  ;;  %v6823_v63 = vmul.f32 0.015625, %v6797_v5  ;;  %v7592_v28 = vld [vmem:[%s14827_s21 + $0x1f8] sm:$0xff] }
 0xacb   : > { %7069 = vrot.lane.b32.xlu1 %v14311_v45, %s14931_s8  ;;  %v6890_v56 = vmul.f32 %v14218_v26, %v6867_v2  ;;  %9890 = vmatpush3.bf16.msra.mxu0 %v9889_v0 }
 0xacc   : > { %v10908_v13 = vpop.eup %10907  ;;  %v6839_v40 = vadd.f32 1e-05, %v6823_v63  ;;  %9892 = vmatprep.subr.bf16.mxu0 %v9891_v44 }
 0xacd   : > { %v6800_v16 = vpop.xlane.xlu1 %6799  ;;  %v14342_v25 = vadd.f32 %v14224_v14, %v6890_v56  ;;  %v6868_v27 = vmul.f32 %v10908_v13, %v14059_v22  ;;  %v7591_v22 = vld [vmem:[%s14827_s21 + $0x1f0] sm:$0xff] }
 0xace   : > { %10913 = vrsqrt.f32 %v6839_v40  ;;  %v6824_v59 = vmul.f32 0.015625, %v6800_v16  ;;  %v9895_v32 = vpack.c.bf16 %v7592_v28, %v7591_v22  ;;  %v7575_v40 = vld [vmem:[%s14827_s21 + $0x170] sm:$0xff]  ;;  %v7036_v16 = vld [vmem:[%s14828_s22 + $0x8] sm:$0xff] }
 0xacf   : > { %7071 = vrot.lane.b32.xlu0 %v14342_v25, %s14931_s8  ;;  %v6891_v42 = vmul.f32 %v14218_v26, %v6868_v27  ;;  %9894 = vmatpush3.bf16.msra.mxu0 %v9893_v48  ;;  %v9897_v50 = vpack.c.bf16 %v7576_v41, %v7575_v40 }
 0xad0   : > { %v10910_v17 = vpop.eup %10909  ;;  %v6840_v3 = vadd.f32 1e-05, %v6824_v59  ;;  %9896 = vmatprep.subr.bf16.mxu0 %v9895_v32 }
 0xad1   : > { %v6803_v5 = vpop.xlane.xlu0 %6802  ;;  %v14361_v2 = vadd.f32 %v14224_v14, %v6891_v42  ;;  %v6869_v63 = vmul.f32 %v10910_v17, %v14065_v55  ;;  %v14390_v42 = vpack.c.bf16 %v7036_v16, %v7035_v62  ;;  %v8584_v16 = vmul.f32 -1.442695, %v13957_v8 }
 0xad2   : > { %10915 = vrsqrt.f32 %v6840_v3  ;;  %v6825_v46 = vmul.f32 0.015625, %v6803_v5 }
 0xad3   : > { %7073 = vrot.lane.b32.xlu1 %v14361_v2, %s14931_s8  ;;  %v6892_v61 = vmul.f32 %v14218_v26, %v6869_v63  ;;  %9898 = vmatpush3.bf16.msra.mxu0 %v9897_v50  ;;  %v8583_v50 = vmul.f32 -1.442695, %v13950_v19 }
 0xad4   : > { %v10912_v56 = vpop.eup %10911  ;;  %v6841_v0 = vadd.f32 1e-05, %v6825_v46  ;;  %9915 = vmatprep.subr.bf16.mxu1 %v14390_v42  ;;  %9900 = vmatprep.subr.bf16.mxu0 %v14390_v42 }
 0xad5   : > { %v6806_v60 = vpop.xlane.xlu1 %6805  ;;  %v14368_v57 = vadd.f32 %v14224_v14, %v6892_v61  ;;  %v6870_v29 = vmul.f32 %v10912_v56, %v14071_v47 }
 0xad6   : > { %10917 = vrsqrt.f32 %v6841_v0  ;;  %v6826_v55 = vmul.f32 0.015625, %v6806_v60 }
 0xad7   : > { %7075 = vrot.lane.b32.xlu0 %v14368_v57, %s14931_s8  ;;  %v6893_v13 = vmul.f32 %v14218_v26, %v6870_v29 }
 0xad8   : > { %v10914_v47 = vpop.eup %10913  ;;  %v6842_v4 = vadd.f32 1e-05, %v6826_v55 }
 0xad9   : > { %v6809_v27 = vpop.xlane.xlu0 %6808  ;;  %v14387_v44 = vadd.f32 %v14224_v14, %v6893_v13  ;;  %v6871_v59 = vmul.f32 %v10914_v47, %v14077_v34 }
 0xada   : > { %10919 = vrsqrt.f32 %v6842_v4  ;;  %v6827_v43 = vmul.f32 0.015625, %v6809_v27 }
 0xadb   : > { %7077 = vrot.lane.b32.xlu1 %v14387_v44, %s14931_s8  ;;  %v6894_v24 = vmul.f32 %v14218_v26, %v6871_v59  ;;  %v8580_v59 = vmul.f32 -1.442695, %v13929_v18 }
 0xadc   : > { %v10916_v22 = vpop.eup %10915  ;;  %v6843_v17 = vadd.f32 1e-05, %v6827_v43 }
 0xadd   : > { %v6812_v3 = vpop.xlane.xlu1 %6811  ;;  %v14398_v48 = vadd.f32 %v14224_v14, %v6894_v24  ;;  %v6872_v34 = vmul.f32 %v10916_v22, %v14083_v54  ;;  %v8581_v22 = vmul.f32 -1.442695, %v13936_v7 }
 0xade   : > { %10921 = vrsqrt.f32 %v6843_v17  ;;  %v6828_v28 = vmul.f32 0.015625, %v6812_v3  ;;  %v8582_v17 = vmul.f32 -1.442695, %v13943_v39  ;;  %v8586_v3 = vmul.f32 -1.442695, %v13971_v6 }
 0xadf   : > { %7079 = vrot.lane.b32.xlu0 %v14398_v48, %s14931_s8  ;;  %v6895_v5 = vmul.f32 %v14218_v26, %v6872_v34 }
 0xae0   : > { %v10918_v63 = vpop.eup %10917  ;;  %v6844_v32 = vadd.f32 1e-05, %v6828_v28 }
 0xae1   : > { %v14405_v46 = vadd.f32 %v14224_v14, %v6895_v5  ;;  %v6873_v61 = vmul.f32 %v10918_v63, %v14089_v23  ;;  %v8587_v5 = vmul.f32 -1.442695, %v13978_v12  ;;  %v7123_v63 = vld [vmem:[%s14826_s20] sm:$0xf] }
 0xae2   : > { %10923 = vrsqrt.f32 %v6844_v32 }
 0xae3   : > { %7081 = vrot.lane.b32.xlu1 %v14405_v46, %s14931_s8  ;;  %v6896_v54 = vmul.f32 %v14218_v26, %v6873_v61  ;;  %v8588_v61 = vmul.f32 -1.442695, %v13985_v36 }
 0xae4   : > { %v10920_v56 = vpop.eup %10919 }
 0xae5   : > { %v14412_v0 = vadd.f32 %v14224_v14, %v6896_v54  ;;  %v6874_v60 = vmul.f32 %v10920_v56, %v14095_v11  ;;  %v14453_v54 = vrot.slane %v7123_v63, %v14932_v49  ;;  %v14456_v56 = vrot.slane %v7123_v63, %v14933_v53  ;;  %v7037_v53 = vld [vmem:[%s14828_s22 + $0x10] sm:$0xff] }
 0xae7   : > { %7083 = vrot.lane.b32.xlu0 %v14412_v0, %s14931_s8  ;;  %v6897_v29 = vmul.f32 %v14218_v26, %v6874_v60  ;;  %v14972_v60 = vld [vmem:[#allocation14_spill] sm:$0xff] }
 0xae8   : > { %v10922_v55 = vpop.eup %10921 }
 0xae9   : > { %v14419_v23 = vadd.f32 %v14224_v14, %v6897_v29  ;;  %v6875_v13 = vmul.f32 %v10922_v55, %v14101_v20  ;;  %v8577_v20 = vmul.f32 -1.442695, %v13910_v52  ;;  %v14459_v29 = vrot.slane %v7123_v63, %v14972_v60  ;;  %v14973_v55 = vld [vmem:[#allocation17_spill] sm:$0xff] }
 0xaeb   : > { %7085 = vrot.lane.b32.xlu1 %v14419_v23, %s14931_s8  ;;  %v6898_v40 = vmul.f32 %v14218_v26, %v6875_v13  ;;  %10925 = vpow2.f32 %v8577_v20  ;;  %v14462_v13 = vrot.slane %v7123_v63, %v14973_v55 }
 0xaec   : > { %v10924_v41 = vpop.eup %10923  ;;  %10927 = vpow2.f32 %v8583_v50  ;;  %v7038_v50 = vld [vmem:[%s14828_s22 + $0x18] sm:$0xff] }
 0xaed   : > { %v14426_v62 = vadd.f32 %v14224_v14, %v6898_v40  ;;  %v6876_v11 = vmul.f32 %v10924_v41, %v14107_v37  ;;  %10929 = vpow2.f32 %v8584_v16  ;;  %v8578_v37 = vmul.f32 -1.442695, %v13916_v15  ;;  %v7039_v16 = vld [vmem:[%s14828_s22 + $0x20] sm:$0xff] }
 0xaee   : > { %v8589_v41 = vmul.f32 -1.442695, %v13992_v30  ;;  %v14505_v55 = vpack.c.bf16 %v7038_v50, %v7037_v53 }
 0xaef   : > { %7087 = vrot.lane.b32.xlu0 %v14426_v62, %s14931_s8  ;;  %v6899_v47 = vmul.f32 %v14218_v26, %v6876_v11  ;;  %v8585_v26 = vmul.f32 -1.442695, %v13964_v9  ;;  %10931 = vpow2.f32 %v8578_v37 }
 0xaf1   : > { %v14433_v4 = vadd.f32 %v14224_v14, %v6899_v47  ;;  %v8579_v14 = vmul.f32 -1.442695, %v13922_v51  ;;  %10933 = vpow2.f32 %v8585_v26 }
 0xaf3   : > { %7089 = vrot.lane.b32.xlu1 %v14433_v4, %s14931_s8  ;;  %10935 = vpow2.f32 %v8579_v14  ;;  %s11128_s8 = sshll.u32 %s11189_s5, 4  ;;  %s11129_s8 = int_to_ptr.vmem [resolvable:$false] %s11128_s8 }
 0xaf4   : > { %10937 = vpow2.f32 %v8580_v59  ;;  %v7040_v59 = vld [vmem:[%s14828_s22 + $0x28] sm:$0xff]  ;;  %s11130_s7 = scalar_lea.vmem %s11129_s8, 4096  ;;  %p11131_p0 = scmp.lt.s32.totalorder %s14758_s27, %s11129_s8 }
 0xaf5   : > { %v10926_v27 = vpop.eup %10925  ;;  %p11132_p1 = scmp.lt.s32.totalorder %s11130_s7, %s11124_s0 }
 0xaf6   : > { %v6971_v43 = vadd.f32 1.0, %v10926_v27  ;;  %v10928_v24 = vpop.eup %10927 }
 0xaf7   : > { %v10930_v34 = vpop.eup %10929  ;;  %v6977_v28 = vadd.f32 1.0, %v10928_v24  ;;  %v7042_v24 = vld [vmem:[%s14828_s22 + $0x38] sm:$0xff]  ;;  %p11133_p2 = por %p11132_p1, %p11131_p0 }
 0xaf8   : > { %10939 = vrcp.f32 %v6971_v43  ;;  %v6978_v32 = vadd.f32 1.0, %v10930_v34  ;;  %v7041_v43 = vld [vmem:[%s14828_s22 + $0x30] sm:$0xff] }
 0xaf9   : > { %10941 = vpow2.f32 %v8581_v22  ;;  %v14464_v40 = vpop.eup %10931  ;;  %p11134_p3 = pnand %p11133_p2, %p11127_p13 }
 0xafa   : > { %10943 = vpow2.f32 %v8582_v17 }
 0xafb   : > { %10945 = vpow2.f32 %v8586_v3  ;;  %v10934_v11 = vpop.eup %10933 }
 0xafc   : > { %10947 = vrcp.f32 %v6977_v28  ;;  %v14497_v17 = vadd.f32 1.0, %v10934_v11 }
 0xafd   : > { %10949 = vpow2.f32 %v8587_v5  ;;  %v14467_v20 = vpop.eup %10935 }
 0xafe   : > { %10951 = vrcp.f32 %v6978_v32  ;;  %v14480_v37 = vpop.eup %10937 }
 0xaff   : > { %10953 = vpow2.f32 %v8588_v61 }
 0xb00   : > { %10955 = vpow2.f32 %v8589_v41 }
 0xb02   : > { %v14495_v22 = vpop.eup %10939 }
 0xb03   : > { %v14499_v3 = vpop.eup %10941 }
 0xb04   : > { %v14501_v61 = vpop.eup %10943 }
 0xb05   : > { %v14511_v11 = vpop.eup %10945 }
 0xb29   : > { %v7060_v47 = vpop.permute.xlu0 %7059 }
 0xb2a   : > { %v7107_v49 = vsel %vm3807_vm2, %v14228_v10, %v7060_v47  ;;  %v14507_v47 = vpack.c.bf16 %v7040_v59, %v7039_v16 }
 0xb2b   : > { %v7145_v27 = vsub.f32 %v7107_v49, %v14453_v54  ;;  %v7146_v26 = vsub.f32 %v7107_v49, %v14456_v56  ;;  %v7147_v10 = vsub.f32 %v7107_v49, %v14459_v29  ;;  %v7148_v14 = vsub.f32 %v7107_v49, %v14462_v13 }
 0xb2c   : > { %v14509_v49 = vpack.c.bf16 %v7042_v24, %v7041_v43 }
 0xb2d   : > { %v7209_v34 = vmul.f32 3.5, %v7145_v27  ;;  %v7210_v28 = vmul.f32 3.5, %v7146_v26  ;;  %v7211_v5 = vmul.f32 3.5, %v7147_v10  ;;  %v7212_v63 = vmul.f32 3.5, %v7148_v14  ;;  %v7062_v32 = vpop.permute.xlu1 %7061  ;;  %v14513_v10 = vpop.eup %10947 }
 0xb2e   : > { %v7108_v60 = vsel %vm3807_vm2, %v14244_v21, %v7062_v32  ;;  %v14519_v32 = vpop.eup %10949 }
 0xb2f   : > { %v7273_v41 = vmul.f32 %v7209_v34, %v7209_v34  ;;  %v7274_v39 = vmul.f32 %v7210_v28, %v7210_v28  ;;  %v7275_v27 = vmul.f32 %v7211_v5, %v7211_v5  ;;  %v7276_v26 = vmul.f32 %v7212_v63, %v7212_v63  ;;  %v14521_v36 = vpop.eup %10951 }
 0xb30   : > { %v7149_v14 = vsub.f32 %v7108_v60, %v14453_v54  ;;  %v7150_v30 = vsub.f32 %v7108_v60, %v14456_v56  ;;  %v7151_v21 = vsub.f32 %v7108_v60, %v14459_v29  ;;  %v7152_v53 = vsub.f32 %v7108_v60, %v14462_v13  ;;  %14974 = vst [vmem:[#allocation14_spill] sm:$0xff] %v14521_v36  ;;  %v14525_v60 = vpop.eup %10953 }
 0xb31   : > { %v7337_v50 = vsub.f32 0.0, %v7273_v41  ;;  %v7338_v16 = vsub.f32 0.0, %v7274_v39  ;;  %v7339_v59 = vsub.f32 0.0, %v7275_v27  ;;  %v7340_v43 = vsub.f32 0.0, %v7276_v26  ;;  %v7064_v24 = vpop.permute.xlu1 %7063 }
 0xb32   : > { %v7213_v34 = vmul.f32 3.5, %v7149_v14  ;;  %v7214_v28 = vmul.f32 3.5, %v7150_v30  ;;  %v7215_v5 = vmul.f32 3.5, %v7151_v21  ;;  %v7216_v63 = vmul.f32 3.5, %v7152_v53  ;;  %v14529_v21 = vpop.eup %10955 }
 0xb33   : > { %v7401_v7 = vmul.f32 1.442695, %v7337_v50  ;;  %v7403_v18 = vmul.f32 1.442695, %v7338_v16  ;;  %v7405_v12 = vmul.f32 1.442695, %v7339_v59  ;;  %v7109_v6 = vsel %vm3807_vm2, %v14254_v33, %v7064_v24 }
 0xb34   : > { %v7407_v39 = vmul.f32 1.442695, %v7340_v43  ;;  %v7277_v41 = vmul.f32 %v7213_v34, %v7213_v34  ;;  %v7278_v27 = vmul.f32 %v7214_v28, %v7214_v28  ;;  %v7279_v26 = vmul.f32 %v7215_v5, %v7215_v5 }
 0xb35   : > { %10957 = vpow2.f32 %v7401_v7  ;;  %v7280_v51 = vmul.f32 %v7216_v63, %v7216_v63  ;;  %v7153_v30 = vsub.f32 %v7109_v6, %v14453_v54  ;;  %v7154_v14 = vsub.f32 %v7109_v6, %v14456_v56  ;;  %v7066_v24 = vpop.permute.xlu1 %7065 }
 0xb36   : > { %10959 = vpow2.f32 %v7403_v18  ;;  %v7341_v53 = vsub.f32 0.0, %v7277_v41  ;;  %v7342_v50 = vsub.f32 0.0, %v7278_v27  ;;  %v7343_v16 = vsub.f32 0.0, %v7279_v26 }
 0xb37   : > { %10961 = vpow2.f32 %v7405_v12  ;;  %v7344_v33 = vsub.f32 0.0, %v7280_v51  ;;  %v7155_v59 = vsub.f32 %v7109_v6, %v14459_v29  ;;  %v7156_v43 = vsub.f32 %v7109_v6, %v14462_v13 }
 0xb38   : > { %10963 = vpow2.f32 %v7407_v39  ;;  %v7409_v7 = vmul.f32 1.442695, %v7341_v53  ;;  %v7411_v34 = vmul.f32 1.442695, %v7342_v50  ;;  %v7413_v28 = vmul.f32 1.442695, %v7343_v16 }
 0xb39   : > { %v7415_v5 = vmul.f32 1.442695, %v7344_v33  ;;  %v7217_v63 = vmul.f32 3.5, %v7153_v30  ;;  %v7218_v15 = vmul.f32 3.5, %v7154_v14  ;;  %v7219_v9 = vmul.f32 3.5, %v7155_v59  ;;  %v7068_v36 = vpop.permute.xlu0 %7067 }
 0xb3a   : > { %10965 = vpow2.f32 %v7409_v7  ;;  %v7220_v18 = vmul.f32 3.5, %v7156_v43  ;;  %v7110_v12 = vsel %vm3807_vm2, %v14285_v38, %v7066_v24  ;;  %v7111_v51 = vsel %vm3807_vm2, %v14301_v31, %v7068_v36 }
 0xb3b   : > { %10967 = vpow2.f32 %v7411_v34  ;;  %v7281_v6 = vmul.f32 %v7217_v63, %v7217_v63  ;;  %v7282_v41 = vmul.f32 %v7218_v15, %v7218_v15  ;;  %v7283_v39 = vmul.f32 %v7219_v9, %v7219_v9 }
 0xb3c   : > { %10969 = vpow2.f32 %v7413_v28  ;;  %v7284_v27 = vmul.f32 %v7220_v18, %v7220_v18  ;;  %v7157_v26 = vsub.f32 %v7110_v12, %v14453_v54  ;;  %v7158_v30 = vsub.f32 %v7110_v12, %v14456_v56 }
 0xb3d   : > { %10971 = vpow2.f32 %v7415_v5  ;;  %v7345_v14 = vsub.f32 0.0, %v7281_v6  ;;  %v7346_v53 = vsub.f32 0.0, %v7282_v41  ;;  %v7347_v50 = vsub.f32 0.0, %v7283_v39 }
 0xb3e   : > { %v7348_v16 = vsub.f32 0.0, %v7284_v27  ;;  %v7159_v38 = vsub.f32 %v7110_v12, %v14459_v29  ;;  %v7160_v33 = vsub.f32 %v7110_v12, %v14462_v13  ;;  %v7221_v36 = vmul.f32 3.5, %v7157_v26 }
 0xb3f   : > { %v10958_v31 = vpop.eup %10957  ;;  %v7417_v59 = vmul.f32 1.442695, %v7345_v14  ;;  %v7419_v15 = vmul.f32 1.442695, %v7346_v53  ;;  %v7421_v9 = vmul.f32 1.442695, %v7347_v50  ;;  %v7161_v43 = vsub.f32 %v7111_v51, %v14453_v54 }
 0xb40   : > { %v10960_v24 = vpop.eup %10959  ;;  %v7423_v7 = vmul.f32 1.442695, %v7348_v16  ;;  %v7222_v34 = vmul.f32 3.5, %v7158_v30  ;;  %v7223_v28 = vmul.f32 3.5, %v7159_v38  ;;  %v7224_v5 = vmul.f32 3.5, %v7160_v33 }
 0xb41   : > { %v10962_v63 = vpop.eup %10961  ;;  %10973 = vpow2.f32 %v7417_v59  ;;  %v7285_v18 = vmul.f32 %v7221_v36, %v7221_v36  ;;  %v7162_v6 = vsub.f32 %v7111_v51, %v14456_v56  ;;  %v7163_v41 = vsub.f32 %v7111_v51, %v14459_v29  ;;  %7657 = vmatprep.mubr.f32.mxu1 %v10960_v24  ;;  %v7070_v24 = vpop.permute.xlu1 %7069 }
 0xb42   : > { %v10964_v12 = vpop.eup %10963  ;;  %10975 = vpow2.f32 %v7419_v15  ;;  %v7286_v39 = vmul.f32 %v7222_v34, %v7222_v34  ;;  %v7287_v27 = vmul.f32 %v7223_v28, %v7223_v28  ;;  %v7288_v26 = vmul.f32 %v7224_v5, %v7224_v5  ;;  %7658 = vmatmul.mubr.f32.vlgmr.msra.gmra.mrb[144].mxu1 %v10958_v31  ;;  %v7072_v34 = vpop.permute.xlu0 %7071 }
 0xb43   : > { %10977 = vpow2.f32 %v7421_v9  ;;  %v7349_v14 = vsub.f32 0.0, %v7285_v18  ;;  %v7164_v30 = vsub.f32 %v7111_v51, %v14462_v13  ;;  %v7225_v53 = vmul.f32 3.5, %v7161_v43  ;;  %7802 = vmatprep.mubr.f32.mxu0 %v10964_v12  ;;  %9919 = vmatpush3.bf16.msra.mxu1 %v14390_v42 }
 0xb44   : > { %v10966_v50 = vpop.eup %10965  ;;  %10979 = vpow2.f32 %v7423_v7  ;;  %v7350_v16 = vsub.f32 0.0, %v7286_v39  ;;  %v7351_v38 = vsub.f32 0.0, %v7287_v27  ;;  %v7352_v33 = vsub.f32 0.0, %v7288_v26  ;;  %7803 = vmatmul.mubr.f32.vlgmr.msra.gmra.mrb[32].mxu0 %v10962_v63  ;;  %9916 = vmatprep.subr.bf16.mxu1 %v14505_v55 }
 0xb45   : > { %v10968_v36 = vpop.eup %10967  ;;  %v7425_v59 = vmul.f32 1.442695, %v7349_v14  ;;  %v7226_v15 = vmul.f32 3.5, %v7162_v6  ;;  %v7227_v31 = vmul.f32 3.5, %v7163_v41  ;;  %v7228_v9 = vmul.f32 3.5, %v7164_v30  ;;  %9902 = vmatpush3.bf16.msra.mxu0 %v14390_v42 }
 0xb46   : > { %v10970_v51 = vpop.eup %10969  ;;  %v7427_v43 = vmul.f32 1.442695, %v7350_v16  ;;  %v7429_v28 = vmul.f32 1.442695, %v7351_v38  ;;  %v7431_v5 = vmul.f32 1.442695, %v7352_v33  ;;  %v7289_v7 = vmul.f32 %v7225_v53, %v7225_v53  ;;  %7662 = vmatprep.mubr.f32.mxu1 %v10968_v36  ;;  %9904 = vmatprep.subr.bf16.mxu0 %v14505_v55 }
 0xb47   : > { %v10972_v63 = vpop.eup %10971  ;;  %10981 = vpow2.f32 %v7425_v59  ;;  %v7290_v18 = vmul.f32 %v7226_v15, %v7226_v15  ;;  %v7291_v12 = vmul.f32 %v7227_v31, %v7227_v31  ;;  %v7292_v39 = vmul.f32 %v7228_v9, %v7228_v9  ;;  %7663 = vmatmul.mubr.f32.gmra.mrb[146].mxu1 %v10966_v50 }
 0xb48   : > { %10983 = vpow2.f32 %v7427_v43  ;;  %v7353_v6 = vsub.f32 0.0, %v7289_v7  ;;  %v7112_v41 = vsel %vm3807_vm2, %v14311_v45, %v7070_v24  ;;  %v7113_v42 = vsel %vm3807_vm2, %v14342_v25, %v7072_v34  ;;  %7807 = vmatprep.mubr.f32.mxu0 %v10972_v63  ;;  %9920 = vmatpush3.bf16.msra.mxu1 %v14505_v55 }
 0xb49   : > { %10985 = vpow2.f32 %v7429_v28  ;;  %v7354_v27 = vsub.f32 0.0, %v7290_v18  ;;  %v7355_v26 = vsub.f32 0.0, %v7291_v12  ;;  %v7356_v14 = vsub.f32 0.0, %v7292_v39  ;;  %7808 = vmatmul.mubr.f32.gmra.mrb[34].mxu0 %v10970_v51  ;;  %9917 = vmatprep.subr.bf16.mxu1 %v14507_v47 }
 0xb4a   : > { %10987 = vpow2.f32 %v7431_v5  ;;  %v7433_v30 = vmul.f32 1.442695, %v7353_v6  ;;  %v7165_v53 = vsub.f32 %v7112_v41, %v14453_v54  ;;  %v7166_v50 = vsub.f32 %v7112_v41, %v14456_v56  ;;  %9906 = vmatpush3.bf16.msra.mxu0 %v14505_v55 }
 0xb4b   : > { %v10974_v45 = vpop.eup %10973  ;;  %v7435_v25 = vmul.f32 1.442695, %v7354_v27  ;;  %v7437_v16 = vmul.f32 1.442695, %v7355_v26  ;;  %v7439_v38 = vmul.f32 1.442695, %v7356_v14  ;;  %v7167_v33 = vsub.f32 %v7112_v41, %v14459_v29  ;;  %9908 = vmatprep.subr.bf16.mxu0 %v14507_v47 }
 0xb4c   : > { %v10976_v36 = vpop.eup %10975  ;;  %10989 = vpow2.f32 %v7433_v30  ;;  %v7168_v59 = vsub.f32 %v7112_v41, %v14462_v13  ;;  %v7229_v15 = vmul.f32 3.5, %v7165_v53  ;;  %v7230_v31 = vmul.f32 3.5, %v7166_v50  ;;  %9921 = vmatpush3.bf16.msra.mxu1 %v14507_v47  ;;  %v7074_v53 = vpop.permute.xlu1 %7073 }
 0xb4d   : > { %v10978_v9 = vpop.eup %10977  ;;  %10991 = vpow2.f32 %v7435_v25  ;;  %v7231_v24 = vmul.f32 3.5, %v7167_v33  ;;  %v7169_v55 = vsub.f32 %v7113_v42, %v14453_v54  ;;  %v7170_v34 = vsub.f32 %v7113_v42, %v14456_v56  ;;  %7667 = vmatprep.mubr.f32.mxu1 %v10976_v36  ;;  %9918 = vmatprep.subr.bf16.mxu1 %v14509_v49 }
 0xb4e   : > { %v10980_v51 = vpop.eup %10979  ;;  %10993 = vpow2.f32 %v7437_v16  ;;  %v7232_v43 = vmul.f32 3.5, %v7168_v59  ;;  %v7293_v28 = vmul.f32 %v7229_v15, %v7229_v15  ;;  %v7294_v5 = vmul.f32 %v7230_v31, %v7230_v31  ;;  %7668 = vmatmul.mubr.f32.gmra.mrb[148].mxu1 %v10974_v45  ;;  %9910 = vmatpush3.bf16.msra.mxu0 %v14507_v47 }
 0xb4f   : > { %10995 = vpow2.f32 %v7439_v38  ;;  %v7295_v7 = vmul.f32 %v7231_v24, %v7231_v24  ;;  %v7171_v63 = vsub.f32 %v7113_v42, %v14459_v29  ;;  %v7172_v18 = vsub.f32 %v7113_v42, %v14462_v13  ;;  %7812 = vmatprep.mubr.f32.mxu0 %v10980_v51  ;;  %9912 = vmatprep.subr.bf16.mxu0 %v14509_v49 }
 0xb50   : > { %v7296_v12 = vmul.f32 %v7232_v43, %v7232_v43  ;;  %v7357_v39 = vsub.f32 0.0, %v7293_v28  ;;  %v7358_v6 = vsub.f32 0.0, %v7294_v5  ;;  %v7233_v41 = vmul.f32 3.5, %v7169_v55  ;;  %7813 = vmatmul.mubr.f32.gmra.mrb[36].mxu0 %v10978_v9  ;;  %9922 = vmatpush3.bf16.msra.mxu1 %v14509_v49 }
 0xb51   : > { %v10982_v27 = vpop.eup %10981  ;;  %v7359_v26 = vsub.f32 0.0, %v7295_v7  ;;  %v7234_v14 = vmul.f32 3.5, %v7170_v34  ;;  %v7235_v47 = vmul.f32 3.5, %v7171_v63  ;;  %v7236_v30 = vmul.f32 3.5, %v7172_v18  ;;  %v7076_v63 = vpop.permute.xlu0 %7075 }
 0xb52   : > { %v10984_v50 = vpop.eup %10983  ;;  %v7360_v45 = vsub.f32 0.0, %v7296_v12  ;;  %v7441_v25 = vmul.f32 1.442695, %v7357_v39  ;;  %v7443_v42 = vmul.f32 1.442695, %v7358_v6  ;;  %v7297_v16 = vmul.f32 %v7233_v41, %v7233_v41  ;;  %9914 = vmatpush3.bf16.msra.mxu0 %v14509_v49  ;;  %v7078_v18 = vpop.permute.xlu1 %7077 }
 0xb53   : > { %v10986_v38 = vpop.eup %10985  ;;  %v7445_v33 = vmul.f32 1.442695, %v7359_v26  ;;  %v7298_v36 = vmul.f32 %v7234_v14, %v7234_v14  ;;  %v7299_v59 = vmul.f32 %v7235_v47, %v7235_v47  ;;  %v7300_v15 = vmul.f32 %v7236_v30, %v7236_v30  ;;  %7672 = vmatprep.mubr.f32.mxu1 %v10984_v50 }
 0xb54   : > { %v10988_v31 = vpop.eup %10987  ;;  %10997 = vpow2.f32 %v7441_v25  ;;  %v7447_v9 = vmul.f32 1.442695, %v7360_v45  ;;  %v7361_v24 = vsub.f32 0.0, %v7297_v16  ;;  %v7114_v55 = vsel %vm3807_vm2, %v14361_v2, %v7074_v53  ;;  %7673 = vmatmul.mubr.f32.gmra.mrb[150].mxu1 %v10982_v27 }
 0xb55   : > { %10999 = vpow2.f32 %v7443_v42  ;;  %v7362_v34 = vsub.f32 0.0, %v7298_v36  ;;  %v7363_v51 = vsub.f32 0.0, %v7299_v59  ;;  %v7364_v43 = vsub.f32 0.0, %v7300_v15  ;;  %7817 = vmatprep.mubr.f32.mxu0 %v10988_v31 }
 0xb56   : > { %v10990_v49 = vpop.eup %10989  ;;  %11001 = vpow2.f32 %v7445_v33  ;;  %v7449_v28 = vmul.f32 1.442695, %v7361_v24  ;;  %v7173_v5 = vsub.f32 %v7114_v55, %v14453_v54  ;;  %v7174_v7 = vsub.f32 %v7114_v55, %v14456_v56  ;;  %7818 = vmatmul.mubr.f32.gmra.mrb[38].mxu0 %v10986_v38 }
 0xb57   : > { %v10992_v12 = vpop.eup %10991  ;;  %11003 = vpow2.f32 %v7447_v9  ;;  %v7451_v39 = vmul.f32 1.442695, %v7362_v34  ;;  %v7453_v2 = vmul.f32 1.442695, %v7363_v51  ;;  %v7455_v6 = vmul.f32 1.442695, %v7364_v43 }
 0xb58   : > { %v10994_v41 = vpop.eup %10993  ;;  %11005 = vpow2.f32 %v7449_v28  ;;  %v7175_v27 = vsub.f32 %v7114_v55, %v14459_v29  ;;  %v7176_v26 = vsub.f32 %v7114_v55, %v14462_v13  ;;  %v7237_v14 = vmul.f32 3.5, %v7173_v5  ;;  %7677 = vmatprep.mubr.f32.mxu1 %v10992_v12 }
 0xb59   : > { %v10996_v47 = vpop.eup %10995  ;;  %11007 = vpow2.f32 %v7451_v39  ;;  %v7238_v30 = vmul.f32 3.5, %v7174_v7  ;;  %v7115_v53 = vsel %vm3807_vm2, %v14368_v57, %v7076_v63  ;;  %v14581_v50 = vsel %vm3807_vm2, %v14387_v44, %v7078_v18  ;;  %7678 = vmatmul.mubr.f32.gmra.mrb[152].mxu1 %v10990_v49 }
 0xb5a   : > { %11009 = vpow2.f32 %v7453_v2  ;;  %v7239_v45 = vmul.f32 3.5, %v7175_v27  ;;  %v7240_v25 = vmul.f32 3.5, %v7176_v26  ;;  %v7301_v42 = vmul.f32 %v7237_v14, %v7237_v14  ;;  %7822 = vmatprep.mubr.f32.mxu0 %v10996_v47 }
 0xb5b   : > { %11011 = vpow2.f32 %v7455_v6  ;;  %v7302_v16 = vmul.f32 %v7238_v30, %v7238_v30  ;;  %v7177_v38 = vsub.f32 %v7115_v53, %v14453_v54  ;;  %v7178_v33 = vsub.f32 %v7115_v53, %v14456_v56  ;;  %7823 = vmatmul.mubr.f32.gmra.mrb[40].mxu0 %v10994_v41 }
 0xb5c   : > { %v7303_v36 = vmul.f32 %v7239_v45, %v7239_v45  ;;  %v7304_v59 = vmul.f32 %v7240_v25, %v7240_v25  ;;  %v7365_v57 = vsub.f32 0.0, %v7301_v42  ;;  %v7179_v15 = vsub.f32 %v7115_v53, %v14459_v29  ;;  %v7080_v25 = vpop.permute.xlu0 %7079 }
 0xb5d   : > { %v7366_v44 = vsub.f32 0.0, %v7302_v16  ;;  %v7180_v31 = vsub.f32 %v7115_v53, %v14462_v13  ;;  %v7241_v9 = vmul.f32 3.5, %v7177_v38  ;;  %v7242_v24 = vmul.f32 3.5, %v7178_v33 }
 0xb5e   : > { %v10998_v55 = vpop.eup %10997  ;;  %v7367_v34 = vsub.f32 0.0, %v7303_v36  ;;  %v7368_v51 = vsub.f32 0.0, %v7304_v59  ;;  %v7457_v43 = vmul.f32 1.442695, %v7365_v57  ;;  %v7243_v49 = vmul.f32 3.5, %v7179_v15 }
 0xb5f   : > { %v11000_v28 = vpop.eup %10999  ;;  %v7459_v5 = vmul.f32 1.442695, %v7366_v44  ;;  %v7244_v7 = vmul.f32 3.5, %v7180_v31  ;;  %v7305_v63 = vmul.f32 %v7241_v9, %v7241_v9  ;;  %v7306_v18 = vmul.f32 %v7242_v24, %v7242_v24 }
 0xb60   : > { %v11002_v12 = vpop.eup %11001  ;;  %11013 = vpow2.f32 %v7457_v43  ;;  %v7461_v39 = vmul.f32 1.442695, %v7367_v34  ;;  %v7463_v2 = vmul.f32 1.442695, %v7368_v51  ;;  %v7307_v6 = vmul.f32 %v7243_v49, %v7243_v49  ;;  %7682 = vmatprep.mubr.f32.mxu1 %v11000_v28 }
 0xb61   : > { %v11004_v41 = vpop.eup %11003  ;;  %11015 = vpow2.f32 %v7459_v5  ;;  %v7308_v27 = vmul.f32 %v7244_v7, %v7244_v7  ;;  %v7369_v26 = vsub.f32 0.0, %v7305_v63  ;;  %v7370_v14 = vsub.f32 0.0, %v7306_v18  ;;  %7683 = vmatmul.mubr.f32.gmra.mrb[154].mxu1 %v10998_v55 }
 0xb62   : > { %v11006_v47 = vpop.eup %11005  ;;  %11017 = vpow2.f32 %v7461_v39  ;;  %v7371_v30 = vsub.f32 0.0, %v7307_v6  ;;  %v7181_v53 = vsub.f32 %v14581_v50, %v14453_v54  ;;  %v7182_v45 = vsub.f32 %v14581_v50, %v14456_v56  ;;  %7827 = vmatprep.mubr.f32.mxu0 %v11004_v41 }
 0xb63   : > { %v11008_v42 = vpop.eup %11007  ;;  %11019 = vpow2.f32 %v7463_v2  ;;  %v7372_v16 = vsub.f32 0.0, %v7308_v27  ;;  %v7465_v38 = vmul.f32 1.442695, %v7369_v26  ;;  %v7467_v33 = vmul.f32 1.442695, %v7370_v14  ;;  %7828 = vmatmul.mubr.f32.gmra.mrb[42].mxu0 %v11002_v12 }
 0xb64   : > { %v11010_v36 = vpop.eup %11009  ;;  %v7469_v59 = vmul.f32 1.442695, %v7371_v30  ;;  %v7183_v57 = vsub.f32 %v14581_v50, %v14459_v29  ;;  %v7184_v15 = vsub.f32 %v14581_v50, %v14462_v13  ;;  %v7245_v44 = vmul.f32 3.5, %v7181_v53  ;;  %7687 = vmatprep.mubr.f32.mxu1 %v11008_v42  ;;  %v7084_v42 = vpop.permute.xlu0 %7083 }
 0xb65   : > { %v11012_v31 = vpop.eup %11011  ;;  %11021 = vpow2.f32 %v7465_v38  ;;  %v7471_v9 = vmul.f32 1.442695, %v7372_v16  ;;  %v7246_v24 = vmul.f32 3.5, %v7182_v45  ;;  %v7117_v55 = vsel %vm3807_vm2, %v14398_v48, %v7080_v25  ;;  %7688 = vmatmul.mubr.f32.gmra.mrb[156].mxu1 %v11006_v47  ;;  %v7082_v25 = vpop.permute.xlu1 %7081 }
 0xb66   : > { %11023 = vpow2.f32 %v7467_v33  ;;  %v7247_v34 = vmul.f32 3.5, %v7183_v57  ;;  %v7248_v51 = vmul.f32 3.5, %v7184_v15  ;;  %v7309_v43 = vmul.f32 %v7245_v44, %v7245_v44  ;;  %7832 = vmatprep.mubr.f32.mxu0 %v11012_v31 }
 0xb67   : > { %11025 = vpow2.f32 %v7469_v59  ;;  %v7310_v49 = vmul.f32 %v7246_v24, %v7246_v24  ;;  %v7185_v28 = vsub.f32 %v7117_v55, %v14453_v54  ;;  %v7186_v50 = vsub.f32 %v7117_v55, %v14456_v56  ;;  %7833 = vmatmul.mubr.f32.gmra.mrb[44].mxu0 %v11010_v36 }
 0xb68   : > { %11027 = vpow2.f32 %v7471_v9  ;;  %v7311_v5 = vmul.f32 %v7247_v34, %v7247_v34  ;;  %v7312_v7 = vmul.f32 %v7248_v51, %v7248_v51  ;;  %v7373_v63 = vsub.f32 0.0, %v7309_v43 }
 0xb69   : > { %v7374_v18 = vsub.f32 0.0, %v7310_v49  ;;  %v7187_v48 = vsub.f32 %v7117_v55, %v14459_v29  ;;  %v7188_v12 = vsub.f32 %v7117_v55, %v14462_v13  ;;  %v7249_v39 = vmul.f32 3.5, %v7185_v28 }
 0xb6a   : > { %v11014_v2 = vpop.eup %11013  ;;  %v7375_v6 = vsub.f32 0.0, %v7311_v5  ;;  %v7376_v41 = vsub.f32 0.0, %v7312_v7  ;;  %v7473_v27 = vmul.f32 1.442695, %v7373_v63  ;;  %v7250_v26 = vmul.f32 3.5, %v7186_v50 }
 0xb6b   : > { %v11016_v14 = vpop.eup %11015  ;;  %v7475_v47 = vmul.f32 1.442695, %v7374_v18  ;;  %v7251_v30 = vmul.f32 3.5, %v7187_v48  ;;  %v7252_v53 = vmul.f32 3.5, %v7188_v12  ;;  %v7313_v45 = vmul.f32 %v7249_v39, %v7249_v39 }
 0xb6c   : > { %v11018_v16 = vpop.eup %11017  ;;  %11029 = vpow2.f32 %v7473_v27  ;;  %v7477_v38 = vmul.f32 1.442695, %v7375_v6  ;;  %v7479_v33 = vmul.f32 1.442695, %v7376_v41  ;;  %v7314_v36 = vmul.f32 %v7250_v26, %v7250_v26  ;;  %7692 = vmatprep.mubr.f32.mxu1 %v11016_v14 }
 0xb6d   : > { %v11020_v59 = vpop.eup %11019  ;;  %11031 = vpow2.f32 %v7475_v47  ;;  %v7315_v57 = vmul.f32 %v7251_v30, %v7251_v30  ;;  %v7316_v15 = vmul.f32 %v7252_v53, %v7252_v53  ;;  %v7377_v44 = vsub.f32 0.0, %v7313_v45  ;;  %7693 = vmatmul.mubr.f32.gmra.mrb[158].mxu1 %v11014_v2 }
 0xb6e   : > { %11033 = vpow2.f32 %v7477_v38  ;;  %v7378_v31 = vsub.f32 0.0, %v7314_v36  ;;  %v7118_v9 = vsel %vm3807_vm2, %v14405_v46, %v7082_v25  ;;  %v7119_v24 = vsel %vm3807_vm2, %v14412_v0, %v7084_v42  ;;  %7837 = vmatprep.mubr.f32.mxu0 %v11020_v59 }
 0xb6f   : > { %v11022_v55 = vpop.eup %11021  ;;  %11035 = vpow2.f32 %v7479_v33  ;;  %v7379_v34 = vsub.f32 0.0, %v7315_v57  ;;  %v7380_v51 = vsub.f32 0.0, %v7316_v15  ;;  %v7481_v43 = vmul.f32 1.442695, %v7377_v44  ;;  %7838 = vmatmul.mubr.f32.gmra.mrb[46].mxu0 %v11018_v16 }
 0xb70   : > { %v11024_v49 = vpop.eup %11023  ;;  %v7483_v28 = vmul.f32 1.442695, %v7378_v31  ;;  %v7189_v50 = vsub.f32 %v7118_v9, %v14453_v54  ;;  %v7190_v5 = vsub.f32 %v7118_v9, %v14456_v56  ;;  %v7191_v7 = vsub.f32 %v7118_v9, %v14459_v29 }
 0xb71   : > { %v11026_v63 = vpop.eup %11025  ;;  %11037 = vpow2.f32 %v7481_v43  ;;  %v7485_v46 = vmul.f32 1.442695, %v7379_v34  ;;  %v7487_v18 = vmul.f32 1.442695, %v7380_v51  ;;  %v7192_v0 = vsub.f32 %v7118_v9, %v14462_v13  ;;  %7697 = vmatprep.mubr.f32.mxu1 %v11024_v49  ;;  %v7086_v9 = vpop.permute.xlu1 %7085 }
 0xb72   : > { %v11028_v48 = vpop.eup %11027  ;;  %11039 = vpow2.f32 %v7483_v28  ;;  %v7253_v12 = vmul.f32 3.5, %v7189_v50  ;;  %v7254_v39 = vmul.f32 3.5, %v7190_v5  ;;  %v7255_v2 = vmul.f32 3.5, %v7191_v7  ;;  %7698 = vmatmul.mubr.f32.gmra.mrb[160].mxu1 %v11022_v55  ;;  %v7088_v55 = vpop.permute.xlu0 %7087 }
 0xb73   : > { %11041 = vpow2.f32 %v7485_v46  ;;  %v7256_v6 = vmul.f32 3.5, %v7192_v0  ;;  %v7193_v41 = vsub.f32 %v7119_v24, %v14453_v54  ;;  %v7194_v27 = vsub.f32 %v7119_v24, %v14456_v56  ;;  %7842 = vmatprep.mubr.f32.mxu0 %v11028_v48 }
 0xb74   : > { %11043 = vpow2.f32 %v7487_v18  ;;  %v7317_v26 = vmul.f32 %v7253_v12, %v7253_v12  ;;  %v7318_v14 = vmul.f32 %v7254_v39, %v7254_v39  ;;  %v7319_v47 = vmul.f32 %v7255_v2, %v7255_v2  ;;  %7843 = vmatmul.mubr.f32.gmra.mrb[48].mxu0 %v11026_v63 }
 0xb75   : > { %v7320_v30 = vmul.f32 %v7256_v6, %v7256_v6  ;;  %v7195_v53 = vsub.f32 %v7119_v24, %v14459_v29  ;;  %v7196_v45 = vsub.f32 %v7119_v24, %v14462_v13  ;;  %v7257_v25 = vmul.f32 3.5, %v7193_v41 }
 0xb76   : > { %v11030_v42 = vpop.eup %11029  ;;  %v7381_v16 = vsub.f32 0.0, %v7317_v26  ;;  %v7382_v38 = vsub.f32 0.0, %v7318_v14  ;;  %v7383_v33 = vsub.f32 0.0, %v7319_v47  ;;  %v7258_v36 = vmul.f32 3.5, %v7194_v27 }
 0xb77   : > { %v11032_v59 = vpop.eup %11031  ;;  %v7384_v57 = vsub.f32 0.0, %v7320_v30  ;;  %v7259_v15 = vmul.f32 3.5, %v7195_v53  ;;  %v7260_v44 = vmul.f32 3.5, %v7196_v45  ;;  %v7321_v31 = vmul.f32 %v7257_v25, %v7257_v25 }
 0xb78   : > { %v11034_v34 = vpop.eup %11033  ;;  %v7489_v51 = vmul.f32 1.442695, %v7381_v16  ;;  %v7491_v43 = vmul.f32 1.442695, %v7382_v38  ;;  %v7493_v49 = vmul.f32 1.442695, %v7383_v33  ;;  %v7322_v28 = vmul.f32 %v7258_v36, %v7258_v36  ;;  %7702 = vmatprep.mubr.f32.mxu1 %v11032_v59 }
 0xb79   : > { %v11036_v24 = vpop.eup %11035  ;;  %v7495_v50 = vmul.f32 1.442695, %v7384_v57  ;;  %v7323_v5 = vmul.f32 %v7259_v15, %v7259_v15  ;;  %v7324_v7 = vmul.f32 %v7260_v44, %v7260_v44  ;;  %v7385_v63 = vsub.f32 0.0, %v7321_v31  ;;  %7703 = vmatmul.mubr.f32.gmra.mrb[162].mxu1 %v11030_v42 }
 0xb7a   : > { %11045 = vpow2.f32 %v7489_v51  ;;  %v7386_v46 = vsub.f32 0.0, %v7322_v28  ;;  %v7120_v18 = vsel %vm3807_vm2, %v14419_v23, %v7086_v9  ;;  %v7121_v0 = vsel %vm3807_vm2, %v14426_v62, %v7088_v55  ;;  %7847 = vmatprep.mubr.f32.mxu0 %v11036_v24  ;;  %v7090_v24 = vpop.permute.xlu1 %7089 }
 0xb7b   : > { %v11038_v48 = vpop.eup %11037  ;;  %11047 = vpow2.f32 %v7491_v43  ;;  %v7387_v12 = vsub.f32 0.0, %v7323_v5  ;;  %v7388_v39 = vsub.f32 0.0, %v7324_v7  ;;  %v7497_v2 = vmul.f32 1.442695, %v7385_v63  ;;  %7848 = vmatmul.mubr.f32.gmra.mrb[50].mxu0 %v11034_v34 }
 0xb7c   : > { %v11040_v6 = vpop.eup %11039  ;;  %11049 = vpow2.f32 %v7493_v49  ;;  %v7499_v41 = vmul.f32 1.442695, %v7386_v46  ;;  %v7197_v27 = vsub.f32 %v7120_v18, %v14453_v54  ;;  %v7198_v26 = vsub.f32 %v7120_v18, %v14456_v56 }
 0xb7d   : > { %v11042_v14 = vpop.eup %11041  ;;  %11051 = vpow2.f32 %v7495_v50  ;;  %v7501_v23 = vmul.f32 1.442695, %v7387_v12  ;;  %v7503_v47 = vmul.f32 1.442695, %v7388_v39  ;;  %v7199_v62 = vsub.f32 %v7120_v18, %v14459_v29  ;;  %7707 = vmatprep.mubr.f32.mxu1 %v11040_v6 }
 0xb7e   : > { %v11044_v30 = vpop.eup %11043  ;;  %11053 = vpow2.f32 %v7497_v2  ;;  %v7200_v53 = vsub.f32 %v7120_v18, %v14462_v13  ;;  %v7261_v45 = vmul.f32 3.5, %v7197_v27  ;;  %v7262_v25 = vmul.f32 3.5, %v7198_v26  ;;  %7708 = vmatmul.mubr.f32.gmra.mrb[164].mxu1 %v11038_v48 }
 0xb7f   : > { %11055 = vpow2.f32 %v7499_v41  ;;  %v7263_v42 = vmul.f32 3.5, %v7199_v62  ;;  %v7201_v16 = vsub.f32 %v7121_v0, %v14453_v54  ;;  %v7202_v38 = vsub.f32 %v7121_v0, %v14456_v56  ;;  %7852 = vmatprep.mubr.f32.mxu0 %v11044_v30 }
 0xb80   : > { %11057 = vpow2.f32 %v7501_v23  ;;  %v7264_v33 = vmul.f32 3.5, %v7200_v53  ;;  %v7325_v36 = vmul.f32 %v7261_v45, %v7261_v45  ;;  %v7326_v59 = vmul.f32 %v7262_v25, %v7262_v25  ;;  %7853 = vmatmul.mubr.f32.gmra.mrb[52].mxu0 %v11042_v14 }
 0xb81   : > { %11059 = vpow2.f32 %v7503_v47  ;;  %v7327_v57 = vmul.f32 %v7263_v42, %v7263_v42  ;;  %v7203_v15 = vsub.f32 %v7121_v0, %v14459_v29  ;;  %v7204_v44 = vsub.f32 %v7121_v0, %v14462_v13 }
 0xb82   : > { %v7328_v31 = vmul.f32 %v7264_v33, %v7264_v33  ;;  %v7389_v9 = vsub.f32 0.0, %v7325_v36  ;;  %v7390_v55 = vsub.f32 0.0, %v7326_v59  ;;  %v7265_v34 = vmul.f32 3.5, %v7201_v16 }
 0xb83   : > { %v7391_v51 = vsub.f32 0.0, %v7327_v57  ;;  %v7266_v43 = vmul.f32 3.5, %v7202_v38  ;;  %v7267_v49 = vmul.f32 3.5, %v7203_v15  ;;  %v7268_v28 = vmul.f32 3.5, %v7204_v44 }
 0xb84   : > { %v11046_v50 = vpop.eup %11045  ;;  %v7392_v5 = vsub.f32 0.0, %v7328_v31  ;;  %v7505_v7 = vmul.f32 1.442695, %v7389_v9  ;;  %v7507_v63 = vmul.f32 1.442695, %v7390_v55  ;;  %v7329_v46 = vmul.f32 %v7265_v34, %v7265_v34 }
 0xb85   : > { %v11048_v18 = vpop.eup %11047  ;;  %v7509_v48 = vmul.f32 1.442695, %v7391_v51  ;;  %v7330_v12 = vmul.f32 %v7266_v43, %v7266_v43  ;;  %v7331_v39 = vmul.f32 %v7267_v49, %v7267_v49  ;;  %v7332_v2 = vmul.f32 %v7268_v28, %v7268_v28 }
 0xb86   : > { %v11050_v0 = vpop.eup %11049  ;;  %11061 = vpow2.f32 %v7505_v7  ;;  %v7511_v6 = vmul.f32 1.442695, %v7392_v5  ;;  %v7393_v41 = vsub.f32 0.0, %v7329_v46  ;;  %v7122_v27 = vsel %vm3807_vm2, %v14433_v4, %v7090_v24  ;;  %7712 = vmatprep.mubr.f32.mxu1 %v11048_v18 }
 0xb87   : > { %v11052_v26 = vpop.eup %11051  ;;  %11063 = vpow2.f32 %v7507_v63  ;;  %v7394_v14 = vsub.f32 0.0, %v7330_v12  ;;  %v7395_v23 = vsub.f32 0.0, %v7331_v39  ;;  %v7396_v47 = vsub.f32 0.0, %v7332_v2  ;;  %7713 = vmatmul.mubr.f32.gmra.mrb[166].mxu1 %v11046_v50 }
 0xb88   : > { %v11054_v62 = vpop.eup %11053  ;;  %11065 = vpow2.f32 %v7509_v48  ;;  %v7513_v30 = vmul.f32 1.442695, %v7393_v41  ;;  %v7205_v53 = vsub.f32 %v7122_v27, %v14453_v54  ;;  %v7206_v45 = vsub.f32 %v7122_v27, %v14456_v56  ;;  %7857 = vmatprep.mubr.f32.mxu0 %v11052_v26 }
 0xb89   : > { %v11056_v25 = vpop.eup %11055  ;;  %11067 = vpow2.f32 %v7511_v6  ;;  %v7515_v42 = vmul.f32 1.442695, %v7394_v14  ;;  %v7517_v16 = vmul.f32 1.442695, %v7395_v23  ;;  %v7519_v4 = vmul.f32 1.442695, %v7396_v47  ;;  %7858 = vmatmul.mubr.f32.gmra.mrb[54].mxu0 %v11050_v0 }
 0xb8a   : > { %v11058_v38 = vpop.eup %11057  ;;  %11069 = vpow2.f32 %v7513_v30  ;;  %v7207_v33 = vsub.f32 %v7122_v27, %v14459_v29  ;;  %v7208_v36 = vsub.f32 %v7122_v27, %v14462_v13  ;;  %v7269_v59 = vmul.f32 3.5, %v7205_v53  ;;  %7717 = vmatprep.mubr.f32.mxu1 %v11056_v25 }
 0xb8b   : > { %v11060_v57 = vpop.eup %11059  ;;  %v8590_v54 = vmul.f32 -1.442695, %v13999_v58  ;;  %v8591_v56 = vmul.f32 -1.442695, %v14006_v1  ;;  %11071 = vpow2.f32 %v7515_v42  ;;  %v7270_v15 = vmul.f32 3.5, %v7206_v45  ;;  %7718 = vmatmul.mubr.f32.gmra.mrb[168].mxu1 %v11054_v62 }
 0xb8c   : > { %11073 = vpow2.f32 %v7517_v16  ;;  %v7271_v44 = vmul.f32 3.5, %v7207_v33  ;;  %v7272_v31 = vmul.f32 3.5, %v7208_v36  ;;  %v7333_v9 = vmul.f32 %v7269_v59, %v7269_v59  ;;  %7862 = vmatprep.mubr.f32.mxu0 %v11060_v57  ;;  %v14977_v59 = vld [vmem:[#allocation12_spill] sm:$0xff] }
 0xb8d   : > { %v8592_v55 = vmul.f32 -1.442695, %v14013_v35  ;;  %11075 = vpow2.f32 %v7519_v4  ;;  %v7334_v29 = vmul.f32 %v7270_v15, %v7270_v15  ;;  %7863 = vmatmul.mubr.f32.gmra.mrb[56].mxu0 %v11058_v38  ;;  %v6972_v46 = vadd.f32 1.0, %v14464_v40  ;;  %v14975_v4 = vld [vmem:[#allocation14_spill] sm:$0xff] }
 0xb8e   : > { %11077 = vrcp.f32 %v14497_v17  ;;  %v7335_v13 = vmul.f32 %v7271_v44, %v7271_v44  ;;  %v7336_v34 = vmul.f32 %v7272_v31, %v7272_v31  ;;  %v7397_v51 = vsub.f32 0.0, %v7333_v9  ;;  %v14980_v31 = vld [vmem:[#allocation19_spill] sm:$0xff] }
 0xb8f   : > { %11079 = vpow2.f32 %v8590_v54  ;;  %v7398_v43 = vsub.f32 0.0, %v7334_v29  ;;  %v6973_v12 = vadd.f32 1.0, %v14467_v20  ;;  %v6980_v2 = vadd.f32 1.0, %v14511_v11  ;;  %v14981_v29 = vld [vmem:[#allocation13_spill] sm:$0xff] }
 0xb90   : > { %v11062_v49 = vpop.eup %11061  ;;  %11081 = vpow2.f32 %v8591_v56  ;;  %v7399_v28 = vsub.f32 0.0, %v7335_v13  ;;  %v7400_v24 = vsub.f32 0.0, %v7336_v34  ;;  %v7521_v50 = vmul.f32 1.442695, %v7397_v51  ;;  %v14982_v51 = vld [vmem:[#allocation11_spill] sm:$0xff] }
 0xb91   : > { %v11064_v5 = vpop.eup %11063  ;;  %11083 = vpow2.f32 %v8592_v55  ;;  %v7523_v7 = vmul.f32 1.442695, %v7398_v43  ;;  %v6981_v6 = vadd.f32 1.0, %v14519_v32  ;;  %v6974_v41 = vadd.f32 1.0, %v14480_v37 }
 0xb92   : > { %v11066_v63 = vpop.eup %11065  ;;  %11085 = vpow2.f32 %v7521_v50  ;;  %v7525_v18 = vmul.f32 1.442695, %v7399_v28  ;;  %v7527_v48 = vmul.f32 1.442695, %v7400_v24  ;;  %7722 = vmatprep.mubr.f32.mxu1 %v11064_v5  ;;  %v6975_v20 = vadd.f32 1.0, %v14499_v3  ;;  %v14984_v50 = vld [vmem:[#allocation21_spill] sm:$0xff] }
 0xb93   : > { %v11068_v17 = vpop.eup %11067  ;;  %11087 = vpow2.f32 %v7523_v7  ;;  %7723 = vmatmul.mubr.f32.gmra.mrb[170].mxu1 %v11062_v49  ;;  %v6982_v11 = vadd.f32 1.0, %v14525_v60  ;;  %v6983_v32 = vadd.f32 1.0, %v14529_v21  ;;  %v6976_v37 = vadd.f32 1.0, %v14501_v61  ;;  %v14983_v49 = vld [vmem:[#allocation20_spill] sm:$0xff] }
 0xb94   : > { %v11070_v39 = vpop.eup %11069  ;;  %11089 = vpow2.f32 %v7525_v18  ;;  %7867 = vmatprep.mubr.f32.mxu0 %v11068_v17  ;;  %v7025_v60 = vmul.f32 %v14513_v10, %v13950_v19  ;;  %v7019_v61 = vmul.f32 %v14495_v22, %v13910_v52  ;;  %v7026_v38 = vmul.f32 %v14975_v4, %v13957_v8  ;;  %v14976_v19 = vld [vmem:[#allocation16_spill] sm:$0xff]  ;;  %v14978_v52 = vld [vmem:[#allocation10_spill] sm:$0xff] }
 0xb95   : > { %v11072_v0 = vpop.eup %11071  ;;  %11091 = vpow2.f32 %v7527_v48  ;;  %7868 = vmatmul.mubr.f32.gmra.mrb[58].mxu0 %v11066_v63  ;;  %v14979_v8 = vld [vmem:[#allocation18_spill] sm:$0xff]  ;;  %v14985_v63 = vld [vmem:[#allocation15_spill] sm:$0xff] }
 0xb96   : > { %v11074_v40 = vpop.eup %11073  ;;  %11093 = vrcp.f32 %v6972_v46  ;;  %7727 = vmatprep.mubr.f32.mxu1 %v11072_v0 }
 0xb97   : > { %v11076_v27 = vpop.eup %11075  ;;  %11095 = vrcp.f32 %v6973_v12  ;;  %7728 = vmatmul.mubr.f32.gmra.mrb[172].mxu1 %v11070_v39 }
 0xb98   : > { %v11078_v26 = vpop.eup %11077  ;;  %11097 = vrcp.f32 %v6980_v2  ;;  %7872 = vmatprep.mubr.f32.mxu0 %v11076_v27 }
 0xb99   : > { %v11080_v14 = vpop.eup %11079  ;;  %11099 = vrcp.f32 %v6981_v6  ;;  %7873 = vmatmul.mubr.f32.gmra.mrb[60].mxu0 %v11074_v40  ;;  %v7027_v10 = vmul.f32 %v11078_v26, %v14976_v19 }
 0xb9a   : > { %v11082_v23 = vpop.eup %11081  ;;  %11101 = vrcp.f32 %v6974_v41  ;;  %v6984_v3 = vadd.f32 1.0, %v11080_v14 }
 0xb9b   : > { %v11084_v47 = vpop.eup %11083  ;;  %11103 = vrcp.f32 %v6975_v20  ;;  %v6985_v53 = vadd.f32 1.0, %v11082_v23 }
 0xb9c   : > { %v11086_v62 = vpop.eup %11085  ;;  %11105 = vrcp.f32 %v6982_v11  ;;  %v6986_v42 = vadd.f32 1.0, %v11084_v47 }
 0xb9d   : > { %v11088_v30 = vpop.eup %11087  ;;  %11107 = vrcp.f32 %v6983_v32 }
 0xb9e   : > { %v11090_v45 = vpop.eup %11089  ;;  %11109 = vrcp.f32 %v6976_v37  ;;  %7732 = vmatprep.mubr.f32.mxu1 %v11088_v30 }
 0xb9f   : > { %v11092_v21 = vpop.eup %11091  ;;  %7733 = vmatmul.mubr.f32.gmra.mrb[174].mxu1 %v11086_v62  ;;  %11111 = vrcp.f32 %v6984_v3 }
 0xba0   : > { %v11094_v25 = vpop.eup %11093  ;;  %7877 = vmatprep.mubr.f32.mxu0 %v11092_v21  ;;  %9660 = vmatprep.mubr.msk.f32.mxu1 %vm3807_vm2, %v7025_v60  ;;  %11113 = vrcp.f32 %v6985_v53 }
 0xba1   : > { %v11096_v16 = vpop.eup %11095  ;;  %7878 = vmatmul.mubr.f32.gmra.mrb[62].mxu0 %v11090_v45  ;;  %v7020_v57 = vmul.f32 %v11094_v25, %v14977_v59  ;;  %11115 = vrcp.f32 %v6986_v42 }
 0xba2   : > { %v11098_v33 = vpop.eup %11097  ;;  %9651 = vmatprep.mubr.msk.f32.mxu0 %vm3807_vm2, %v7019_v61  ;;  %v7021_v22 = vmul.f32 %v11096_v16, %v14978_v52 }
 0xba3   : > { %v11100_v36 = vpop.eup %11099  ;;  %9661 = vmatmul.mubr.msk.f32.vlgmr.msra.gmra.mrb[176].mxu1 %vm3807_vm2, %v7026_v38  ;;  %v7028_v15 = vmul.f32 %v11098_v33, %v14979_v8 }
 0xba4   : > { %v11102_v54 = vpop.eup %11101  ;;  %9663 = vmatprep.mubr.msk.f32.mxu1 %vm3807_vm2, %v7027_v10  ;;  %v7029_v9 = vmul.f32 %v11100_v36, %v14980_v31 }
 0xba5   : > { %v11104_v56 = vpop.eup %11103  ;;  %9652 = vmatmul.mubr.msk.f32.vlgmr.msra.gmra.mrb[64].mxu0 %vm3807_vm2, %v7020_v57  ;;  %v7022_v13 = vmul.f32 %v11102_v54, %v14981_v29 }
 0xba6   : > { %v11106_v44 = vpop.eup %11105  ;;  %9654 = vmatprep.mubr.msk.f32.mxu0 %vm3807_vm2, %v7021_v22  ;;  %v7023_v43 = vmul.f32 %v11104_v56, %v14982_v51 }
 0xba7   : > { %v11108_v55 = vpop.eup %11107  ;;  %9664 = vmatmul.mubr.msk.f32.gmra.mrb[178].mxu1 %vm3807_vm2, %v7028_v15  ;;  %v7030_v28 = vmul.f32 %v11106_v44, %v14983_v49 }
 0xba8   : > { %v11110_v34 = vpop.eup %11109  ;;  %9666 = vmatprep.mubr.msk.f32.mxu1 %vm3807_vm2, %v7029_v9  ;;  %v7031_v5 = vmul.f32 %v11108_v55, %v14984_v50 }
 0xba9   : > { %9655 = vmatmul.mubr.msk.f32.gmra.mrb[66].mxu0 %vm3807_vm2, %v7022_v13  ;;  %v11112_v24 = vpop.eup %11111  ;;  %v7024_v46 = vmul.f32 %v11110_v34, %v14985_v63 }
 0xbaa   : > { %9657 = vmatprep.mubr.msk.f32.mxu0 %vm3807_vm2, %v7023_v43  ;;  %v11114_v7 = vpop.eup %11113  ;;  %v7032_v18 = vmul.f32 %v11112_v24, %v13999_v58 }
 0xbab   : > { %9667 = vmatmul.mubr.msk.f32.gmra.mrb[180].mxu1 %vm3807_vm2, %v7030_v28  ;;  %v11116_v48 = vpop.eup %11115  ;;  %v7033_v17 = vmul.f32 %v11114_v7, %v14006_v1 }
 0xbac   : > { %9669 = vmatprep.mubr.msk.f32.mxu1 %vm3807_vm2, %v7031_v5  ;;  %v7034_v12 = vmul.f32 %v11116_v48, %v14013_v35 }
 0xbad   : > { %9658 = vmatmul.mubr.msk.f32.gmra.mrb[68].mxu0 %vm3807_vm2, %v7024_v46 }
 0xbaf   : > { %9670 = vmatmul.mubr.msk.f32.gmra.mrb[182].mxu1 %vm3807_vm2, %v7032_v18 }
 0xbb0   : > { %9672 = vmatprep.mubr.msk.f32.mxu1 %vm3807_vm2, %v7033_v17 }
 0xbb3   : > { %9673 = vmatmul.mubr.msk.f32.gmra.mrb[184].mxu1 %vm3807_vm2, %v7034_v12 }
 0xc15   : > { %v9169_v39 = vpop.f32.mrb[144].mxu1 }
 0xc16   : > { %v9170_v2 = vpop.f32.mrb[145].mxu1 }
 0xc17   : > { %v9249_v0 = vpop.f32.mrb[32].mxu0  ;;  %v9171_v6 = vadd.f32 %v9170_v2, %v9169_v39 }
 0xc18   : > { %v9250_v40 = vpop.f32.mrb[33].mxu0 }
 0xc19   : > { %v9251_v41 = vadd.f32 %v9250_v40, %v9249_v0 }
 0xc1a   : > { %v9172_v27 = vpop.f32.mrb[146].mxu1 }
 0xc1b   : > { %v9173_v20 = vpop.f32.mrb[147].mxu1  ;;  %v14679_v58 = vadd.f32 %v9251_v41, %v9171_v6 }
 0xc1c   : > { %v9252_v26 = vpop.f32.mrb[34].mxu0  ;;  %v9174_v1 = vadd.f32 %v9173_v20, %v9172_v27 }
 0xc1d   : > { %v9253_v11 = vpop.f32.mrb[35].mxu0 }
 0xc1e   : > { %v9254_v14 = vadd.f32 %v9253_v11, %v9252_v26 }
 0xc20   : > { %v14681_v32 = vadd.f32 %v9254_v14, %v9174_v1 }
 0xc21   : > { %v9175_v23 = vpop.f32.mrb[148].mxu1 }
 0xc22   : > { %v9176_v35 = vpop.f32.mrb[149].mxu1 }
 0xc23   : > { %v9255_v37 = vpop.f32.mrb[36].mxu0  ;;  %v9177_v47 = vadd.f32 %v9176_v35, %v9175_v23 }
 0xc24   : > { %v9256_v62 = vpop.f32.mrb[37].mxu0 }
 0xc25   : > { %v9257_v3 = vadd.f32 %v9256_v62, %v9255_v37 }
 0xc27   : > { %v9178_v30 = vpop.f32.mrb[150].mxu1  ;;  %v14683_v53 = vadd.f32 %v9257_v3, %v9177_v47 }
 0xc28   : > { %v9179_v45 = vpop.f32.mrb[151].mxu1 }
 0xc29   : > { %v9258_v60 = vpop.f32.mrb[38].mxu0  ;;  %v9180_v21 = vadd.f32 %v9179_v45, %v9178_v30 }
 0xc2a   : > { %v9259_v25 = vpop.f32.mrb[39].mxu0 }
 0xc2b   : > { %v9260_v42 = vadd.f32 %v9259_v25, %v9258_v60 }
 0xc2c   : > { %v9181_v61 = vpop.f32.mrb[152].mxu1 }
 0xc2d   : > { %v9182_v16 = vpop.f32.mrb[153].mxu1  ;;  %v14685_v4 = vadd.f32 %v9260_v42, %v9180_v21 }
 0xc2e   : > { %v9261_v38 = vpop.f32.mrb[40].mxu0  ;;  %v9183_v33 = vadd.f32 %v9182_v16, %v9181_v61 }
 0xc2f   : > { %v9262_v19 = vpop.f32.mrb[41].mxu0 }
 0xc30   : > { %v9263_v10 = vadd.f32 %v9262_v19, %v9261_v38 }
 0xc32   : > { %v14687_v36 = vadd.f32 %v9263_v10, %v9183_v33 }
 0xc34   : > { %v9184_v59 = vpop.f32.mrb[154].mxu1 }
 0xc35   : > { %v9185_v57 = vpop.f32.mrb[155].mxu1 }
 0xc36   : > { %v9264_v54 = vpop.f32.mrb[42].mxu0  ;;  %v9186_v52 = vadd.f32 %v9185_v57, %v9184_v59 }
 0xc37   : > { %v9265_v22 = vpop.f32.mrb[43].mxu0 }
 0xc38   : > { %v9266_v56 = vadd.f32 %v9265_v22, %v9264_v54  ;;  %v9187_v8 = vpop.f32.mrb[156].mxu1 }
 0xc39   : > { %v9188_v15 = vpop.f32.mrb[157].mxu1 }
 0xc3a   : > { %v9267_v44 = vpop.f32.mrb[44].mxu0  ;;  %v9189_v31 = vadd.f32 %v9188_v15, %v9187_v8  ;;  %v14689_v9 = vadd.f32 %v9266_v56, %v9186_v52 }
 0xc3b   : > { %v9268_v55 = vpop.f32.mrb[45].mxu0 }
 0xc3c   : > { %v9269_v29 = vadd.f32 %v9268_v55, %v9267_v44 }
 0xc3e   : > { %v14691_v13 = vadd.f32 %v9269_v29, %v9189_v31 }
 0xc40   : > { %v9190_v34 = vpop.f32.mrb[158].mxu1 }
 0xc41   : > { %v9191_v51 = vpop.f32.mrb[159].mxu1 }
 0xc42   : > { %v9270_v43 = vpop.f32.mrb[46].mxu0  ;;  %v9192_v49 = vadd.f32 %v9191_v51, %v9190_v34 }
 0xc43   : > { %v9271_v28 = vpop.f32.mrb[47].mxu0 }
 0xc44   : > { %v9272_v24 = vadd.f32 %v9271_v28, %v9270_v43 }
 0xc45   : > { %v9193_v50 = vpop.f32.mrb[160].mxu1 }
 0xc46   : > { %v9194_v5 = vpop.f32.mrb[161].mxu1  ;;  %v7840_v7 = vadd.f32 %v9272_v24, %v9192_v49  ;;  %v14707_v24 = vld [vmem:[%s14829_s23] ss:$0 sm:$0xff] }
 0xc47   : > { %v9273_v63 = vpop.f32.mrb[48].mxu0  ;;  %v9195_v46 = vadd.f32 %v9194_v5, %v9193_v50 }
 0xc48   : > { %v9274_v18 = vpop.f32.mrb[49].mxu0 }
 0xc49   : > { %v9275_v48 = vadd.f32 %v9274_v18, %v9273_v63 }
 0xc4b   : > { %v14693_v17 = vadd.f32 %v9275_v48, %v9195_v46 }
 0xc4c   : > { %v9196_v12 = vpop.f32.mrb[162].mxu1 }
 0xc4d   : > { %v9197_v39 = vpop.f32.mrb[163].mxu1 }
 0xc4e   : > { %v9276_v2 = vpop.f32.mrb[50].mxu0  ;;  %v9198_v0 = vadd.f32 %v9197_v39, %v9196_v12 }
 0xc4f   : > { %v9277_v6 = vpop.f32.mrb[51].mxu0 }
 0xc50   : > { %v9278_v40 = vadd.f32 %v9277_v6, %v9276_v2 }
 0xc51   : > { %v9199_v41 = vpop.f32.mrb[164].mxu1 }
 0xc52   : > { %v9200_v27 = vpop.f32.mrb[165].mxu1  ;;  %v7850_v20 = vadd.f32 %v9278_v40, %v9198_v0 }
 0xc53   : > { %v9279_v26 = vpop.f32.mrb[52].mxu0  ;;  %v9201_v1 = vadd.f32 %v9200_v27, %v9199_v41 }
 0xc54   : > { %v9280_v11 = vpop.f32.mrb[53].mxu0 }
 0xc55   : > { %v9281_v14 = vadd.f32 %v9280_v11, %v9279_v26 }
 0xc57   : > { %v14695_v23 = vadd.f32 %v9281_v14, %v9201_v1 }
 0xc5a   : > { %v9202_v35 = vpop.f32.mrb[166].mxu1 }
 0xc5b   : > { %v9203_v37 = vpop.f32.mrb[167].mxu1 }
 0xc5c   : > { %v9282_v47 = vpop.f32.mrb[54].mxu0  ;;  %v9204_v62 = vadd.f32 %v9203_v37, %v9202_v35 }
 0xc5d   : > { %v9283_v3 = vpop.f32.mrb[55].mxu0 }
 0xc5e   : > { %v9284_v30 = vadd.f32 %v9283_v3, %v9282_v47  ;;  %v9205_v45 = vpop.f32.mrb[168].mxu1 }
 0xc5f   : > { %v9206_v60 = vpop.f32.mrb[169].mxu1 }
 0xc60   : > { %v9285_v21 = vpop.f32.mrb[56].mxu0  ;;  %v9207_v25 = vadd.f32 %v9206_v60, %v9205_v45  ;;  %v7860_v42 = vadd.f32 %v9284_v30, %v9204_v62 }
 0xc61   : > { %v9286_v61 = vpop.f32.mrb[57].mxu0 }
 0xc62   : > { %v9287_v16 = vadd.f32 %v9286_v61, %v9285_v21 }
 0xc64   : > { %v14697_v38 = vadd.f32 %v9287_v16, %v9207_v25 }
 0xc66   : > { %v9208_v33 = vpop.f32.mrb[170].mxu1 }
 0xc67   : > { %v9209_v19 = vpop.f32.mrb[171].mxu1 }
 0xc68   : > { %v9288_v10 = vpop.f32.mrb[58].mxu0  ;;  %v9210_v59 = vadd.f32 %v9209_v19, %v9208_v33 }
 0xc69   : > { %v9289_v57 = vpop.f32.mrb[59].mxu0 }
 0xc6a   : > { %v9290_v54 = vadd.f32 %v9289_v57, %v9288_v10  ;;  %v9211_v52 = vpop.f32.mrb[172].mxu1 }
 0xc6b   : > { %v9212_v22 = vpop.f32.mrb[173].mxu1 }
 0xc6c   : > { %v9291_v56 = vpop.f32.mrb[60].mxu0  ;;  %v9213_v8 = vadd.f32 %v9212_v22, %v9211_v52  ;;  %v7870_v15 = vadd.f32 %v9290_v54, %v9210_v59 }
 0xc6d   : > { %v9292_v44 = vpop.f32.mrb[61].mxu0 }
 0xc6e   : > { %v9293_v31 = vadd.f32 %v9292_v44, %v9291_v56 }
 0xc70   : > { %v14699_v55 = vadd.f32 %v9293_v31, %v9213_v8 }
 0xc72   : > { %v9214_v29 = vpop.f32.mrb[174].mxu1 }
 0xc73   : > { %v9215_v34 = vpop.f32.mrb[175].mxu1 }
 0xc74   : > { %v9294_v51 = vpop.f32.mrb[62].mxu0  ;;  %v9216_v43 = vadd.f32 %v9215_v34, %v9214_v29 }
 0xc75   : > { %v9295_v49 = vpop.f32.mrb[63].mxu0 }
 0xc76   : > { %v9296_v28 = vadd.f32 %v9295_v49, %v9294_v51  ;;  %v9662_v50 = vpop.f32.mrb[176].mxu1 }
 0xc77   : > { %v8033_v5 = vadd.f32 %v9662_v50, %v7840_v7  ;;  %v8027_v63 = vpop.f32.mrb[177].mxu1 }
 0xc78   : > { %v9653_v46 = vpop.f32.mrb[64].mxu0  ;;  %v8028_v18 = vadd.f32 %v8027_v63, %v14691_v13  ;;  %v7880_v48 = vadd.f32 %v9296_v28, %v9216_v43 }
 0xc79   : > { %v8003_v12 = vadd.f32 %v9653_v46, %v14681_v32  ;;  %v8090_v39 = vadd.f32 %v14707_v24, %v8033_v5  ;;  %v7997_v2 = vpop.f32.mrb[65].mxu0 }
 0xc7a   : > { %v7998_v0 = vadd.f32 %v7997_v2, %v14679_v58  ;;  %v8089_v6 = vadd.f32 %v14707_v24, %v8028_v18  ;;  %v9665_v40 = vpop.f32.mrb[178].mxu1 }
 0xc7b   : > { %v8084_v41 = vadd.f32 %v14707_v24, %v8003_v12  ;;  %8106 = vst [vmem:[%s14715_s9 + $0x38] sm:$0xff] %v8090_v39  ;;  %v8043_v13 = vadd.f32 %v9665_v40, %v7850_v20  ;;  %v8037_v32 = vpop.f32.mrb[179].mxu1 }
 0xc7c   : > { %v8083_v7 = vadd.f32 %v14707_v24, %v7998_v0  ;;  %8105 = vst [vmem:[%s14715_s9 + $0x30] sm:$0xff] %v8089_v6  ;;  %v9656_v58 = vpop.f32.mrb[66].mxu0  ;;  %v8038_v27 = vadd.f32 %v8037_v32, %v14693_v17 }
 0xc7d   : > { %8100 = vst [vmem:[%s14715_s9 + $0x8] sm:$0xff] %v8084_v41  ;;  %v8013_v26 = vadd.f32 %v9656_v58, %v14685_v4  ;;  %v8092_v1 = vadd.f32 %v14707_v24, %v8043_v13  ;;  %v8007_v11 = vpop.f32.mrb[67].mxu0 }
 0xc7e   : > { %8099 = vst [vmem:[%s14715_s9] sm:$0xff] %v8083_v7  ;;  %v8008_v14 = vadd.f32 %v8007_v11, %v14683_v53  ;;  %v8091_v20 = vadd.f32 %v14707_v24, %v8038_v27  ;;  %v9668_v35 = vpop.f32.mrb[180].mxu1 }
 0xc7f   : > { %v8086_v37 = vadd.f32 %v14707_v24, %v8013_v26  ;;  %8108 = vst [vmem:[%s14715_s9 + $0x48] sm:$0xff] %v8092_v1  ;;  %v8053_v47 = vadd.f32 %v9668_v35, %v7860_v42  ;;  %v8047_v17 = vpop.f32.mrb[181].mxu1 }
 0xc80   : > { %v8085_v62 = vadd.f32 %v14707_v24, %v8008_v14  ;;  %8107 = vst [vmem:[%s14715_s9 + $0x40] sm:$0xff] %v8091_v20  ;;  %v9659_v4 = vpop.f32.mrb[68].mxu0  ;;  %v8048_v3 = vadd.f32 %v8047_v17, %v14695_v23 }
 0xc81   : > { %8102 = vst [vmem:[%s14715_s9 + $0x18] sm:$0xff] %v8086_v37  ;;  %v8023_v53 = vadd.f32 %v9659_v4, %v14689_v9  ;;  %v8094_v30 = vadd.f32 %v14707_v24, %v8053_v47  ;;  %v8017_v45 = vpop.f32.mrb[69].mxu0 }
 0xc82   : > { %8101 = vst [vmem:[%s14715_s9 + $0x10] sm:$0xff] %v8085_v62  ;;  %v8018_v60 = vadd.f32 %v8017_v45, %v14687_v36  ;;  %v8093_v21 = vadd.f32 %v14707_v24, %v8048_v3  ;;  %v9671_v25 = vpop.f32.mrb[182].mxu1 }
 0xc83   : > { %v8088_v42 = vadd.f32 %v14707_v24, %v8023_v53  ;;  %8110 = vst [vmem:[%s14715_s9 + $0x58] sm:$0xff] %v8094_v30  ;;  %v8063_v23 = vadd.f32 %v9671_v25, %v7870_v15  ;;  %v8057_v61 = vpop.f32.mrb[183].mxu1 }
 0xc84   : > { %v8087_v9 = vadd.f32 %v14707_v24, %v8018_v60  ;;  %8109 = vst [vmem:[%s14715_s9 + $0x50] sm:$0xff] %v8093_v21  ;;  %v8058_v16 = vadd.f32 %v8057_v61, %v14697_v38 }
 0xc85   : > { %8104 = vst [vmem:[%s14715_s9 + $0x28] sm:$0xff] %v8088_v42  ;;  %v8096_v36 = vadd.f32 %v14707_v24, %v8063_v23 }
 0xc86   : > { %8103 = vst [vmem:[%s14715_s9 + $0x20] sm:$0xff] %v8087_v9  ;;  %v8095_v33 = vadd.f32 %v14707_v24, %v8058_v16  ;;  %v9674_v19 = vpop.f32.mrb[184].mxu1 }
 0xc87   : > { %8112 = vst [vmem:[%s14715_s9 + $0x68] sm:$0xff] %v8096_v36  ;;  %v8073_v10 = vadd.f32 %v9674_v19, %v7880_v48  ;;  %v8067_v59 = vpop.f32.mrb[185].mxu1 }
 0xc88   : > { %8111 = vst [vmem:[%s14715_s9 + $0x60] sm:$0xff] %v8095_v33  ;;  %v8068_v57 = vadd.f32 %v8067_v59, %v14699_v55 }
 0xc89   : > { %v8098_v38 = vadd.f32 %v14707_v24, %v8073_v10 }
 0xc8a   : > { %v8097_v54 = vadd.f32 %v14707_v24, %v8068_v57 }
 0xc8b   : > { %8114 = vst [vmem:[%s14715_s9 + $0x78] sm:$0xff] %v8098_v38 }
 0xc8c   : > { %8113 = vst [vmem:[%s14715_s9 + $0x70] sm:$0xff] %v8097_v54 }
 0xc8d   : > { %11137 = shalt.err (!%p11134_p3)
}
 0xc8e   : > { %s11138_s10 = scalar_lea.hbm %s14756_s25, 2048  ;;  %s11142_s9 = scalar_lea.hbm %s14830_s24, 4096 }
 0xc8f   : > { %p11139_p4 = scmp.ne.s32.totalorder %s14756_s25, %s11138_s10  ;;  %p11143_p9 = scmp.lt.u32.totalorder %s14756_s25, %s14830_s24 }
 0xc90   : > { %p11144_p10 = scmp.lt.u32.totalorder %s11142_s9, %s11138_s10  ;;  %p11146_p12 = scmp.lt.u32.totalorder %s11138_s10, %s14756_s25 }
 0xc91   : > { %p11140_p7 = pnand %p11139_p4, %p11355_p5 }
 0xc92   : > { %p11145_p11 = por %p11144_p10, %p11143_p9 }
 0xc93   : > { %p11141_p8 = pneg %p11140_p7 }
 0xc94   : > { %p11147_p13 = por %p11146_p12, %p11145_p11 }
 0xc96   : > { %p11148_p0 = pnand %p11147_p13, %p11141_p8 }
 0xc98   : > { %11151 = shalt.err (!%p11148_p0)
}
 0xc99   : > { %s11190_s29 = smov 128   ;;  %s11191_s0 = smov 8  }
 0xc9a   : > { %10051 = dma.vmem_to_hbm [thread:$0]  (%p11355_p5), %s14758_s27, 2048, %s14756_s25, %s14765_s6, %s11190_s29, %s11190_s29, %s11191_s0  }
 0xc9b PF: > { %s14986_s5 = sld [smem:[#allocation5_spill]]  ;;  %p10057_p1 = scmp.ge.s32.totalorder %s11186_s28, 2 }
 0xc9d   : > { %p10054_p2 = pnand %p10057_p1, %p11359_p6 }
 0xca1   : > { %s8144_s7 = sand.u32 1, %s14986_s5  }
 0xca2   : > { %s8145_s10 = scalar_lea.sflag [#allocation3], %s8144_s7 }
 0xca3   : > { %11169 = dma.done.wait (!%p10054_p2), %s8145_s10, 2048  }
 0xca4   : > { %11171 = vsyncadd (!%p10054_p2), %s8145_s10, 4294965248  ;;  %s14988_s28 = sld [smem:[#allocation7_spill]]  ;;  %s14989_s30 = sld [smem:[#allocation6_spill]] }
 0xca5   : > { %s14990_s27 = sld [smem:[#allocation8_spill]]  ;;  %s14991_s5 = smov %s11178_s26 }
 0xcaa   : > { %p34_p3 = scmp.ge.s32.totalorder %s14988_s28, 4   ;;  %s14992_s26 = smov %s14989_s30 }
 0xcac   :  { %36 = sbr.rel (!%p34_p3) target bundleno = 15 (0xf), region = 158 }
 0xcb3   :  { %8150 = vsyncpa [#allocation3], 1 }
 0xcb4   :  { %8152 = vsyncpa [#allocation3 + $0x1], 1 }

</bundles_post_ra>
